<compile_context>
chip_gen: v7x
topology: tpu7x:2x2x1
jax: 0.10.0
libtpu: 0.0.40
codegen_flags: <defaults>
</compile_context>

<pallas_src>
import functools

import jax
import jax.numpy as jnp
from jax.experimental import pallas as pl
from jax.experimental.pallas import tpu as pltpu


# ----------------------------------------------------------------------------
# Pallas kernels (transposed orientation: channels on sublanes, HW on lanes)
# ----------------------------------------------------------------------------
def _conv_in_relu_kernel(a_ref, w_ref, g_ref, b_ref, o_ref):
    """One sample: conv-as-matmul -> InstanceNorm(eps=1e-5) -> affine -> ReLU."""
    y = jnp.dot(w_ref[...], a_ref[...], preferred_element_type=jnp.float32)
    mean = jnp.mean(y, axis=1, keepdims=True)
    var = jnp.mean((y - mean) ** 2, axis=1, keepdims=True)
    y = (y - mean) * jax.lax.rsqrt(var + 1e-5)
    y = y * g_ref[...] + b_ref[...]
    o_ref[...] = jnp.maximum(y, 0.0).astype(o_ref.dtype)


def _ub4_attn_final_kernel(a_ref, w_ref, g_ref, b_ref, faw_ref, fab_ref,
                           ls_ref, scope_ref, mask_ref):
    """upblock4 conv + IN + ReLU + 1x1 attention conv + LogSigmoid + scope/mask."""
    y = jnp.dot(w_ref[...], a_ref[...], preferred_element_type=jnp.float32)
    mean = jnp.mean(y, axis=1, keepdims=True)
    var = jnp.mean((y - mean) ** 2, axis=1, keepdims=True)
    y = (y - mean) * jax.lax.rsqrt(var + 1e-5)
    y = jnp.maximum(y * g_ref[...] + b_ref[...], 0.0)                 # (4, HW)
    alpha = jnp.sum(y * faw_ref[...], axis=0, keepdims=True) + fab_ref[...]
    ls = ls_ref[...]                                                  # (1, HW)
    # numerically stable log-sigmoid(alpha)
    log_alpha = jnp.minimum(alpha, 0.0) - jnp.log1p(jnp.exp(-jnp.abs(alpha)))
    mask_ref[...] = ls + log_alpha
    scope_ref[...] = ls + log_alpha - alpha


def _tconv_chain_kernel(*refs, relus):
    """Transposed conv chain: refs = [patches, w1, b1, ..., wn, bn, out].

    Layer 0 consumes the im2col patches (K, HW); later layers are 1x1 convs
    applied to the (C, HW) intermediate kept in registers/VMEM.
    """
    h = refs[0][...]
    for l in range(len(relus)):
        w = refs[1 + 2 * l][...]
        b = refs[2 + 2 * l][...]
        h = jnp.dot(w, h.astype(jnp.bfloat16),
                    preferred_element_type=jnp.float32) + b
        if relus[l]:
            h = jnp.maximum(h, 0.0)
    refs[-1][...] = h.astype(refs[-1].dtype)


def _chain_kernel(*refs, relus):
    """Row-major Linear chain (tiny M): refs = [A, w1, b1, ..., wn, bn, out]."""
    h = refs[0][...]
    for l in range(len(relus)):
        w = refs[1 + 2 * l][...]
        b = refs[2 + 2 * l][...]
        h = jnp.dot(h.astype(jnp.bfloat16), w,
                    preferred_element_type=jnp.float32) + b
        if relus[l]:
            h = jnp.maximum(h, 0.0)
    refs[-1][...] = h.astype(refs[-1].dtype)


# ----------------------------------------------------------------------------
# Glue helpers (NCHW, bf16 activations)
# ----------------------------------------------------------------------------
def im2col_t(x, kh, kw, stride=1, pad=0):
    """x: (N,C,H,W) -> (N, kh*kw*C, Ho*Wo) patches (tap-major, channel-inner)."""
    N, C, H, W = x.shape
    if pad:
        x = jnp.pad(x, ((0, 0), (0, 0), (pad, pad), (pad, pad)))
    Ho = (H + 2 * pad - kh) // stride + 1
    Wo = (W + 2 * pad - kw) // stride + 1
    cols = []
    for i in range(kh):
        for j in range(kw):
            cols.append(x[:, :, i: i + stride * (Ho - 1) + 1: stride,
                                j: j + stride * (Wo - 1) + 1: stride])
    a = jnp.concatenate(cols, axis=1)                    # (N, kh*kw*C, Ho, Wo)
    return a.reshape(N, kh * kw * C, Ho * Wo), Ho, Wo


def avgpool2(x):                                         # NCHW 2x2 / stride 2
    N, C, H, W = x.shape
    return x.reshape(N, C, H // 2, 2, W // 2, 2).mean(axis=(3, 5))


def upsample2(x):                                        # NCHW nearest x2
    return jnp.repeat(jnp.repeat(x, 2, axis=2), 2, axis=3)


# ----------------------------------------------------------------------------
# Pallas wrappers
# ----------------------------------------------------------------------------
def conv_in_relu(x, wmat, gamma, beta):
    """3x3/s1/p1 bias-free conv + InstanceNorm + ReLU.  x: (N,Cin,H,W) bf16."""
    N = x.shape[0]
    a, Ho, Wo = im2col_t(x, 3, 3, 1, 1)                  # (N, 9*Cin, HW) bf16
    K = a.shape[1]
    Cout = wmat.shape[0]
    HW = Ho * Wo
    out = pl.pallas_call(
        _conv_in_relu_kernel,
        out_shape=jax.ShapeDtypeStruct((N, Cout, HW), jnp.bfloat16),
        grid=(N,),
        in_specs=[
            pl.BlockSpec((None, K, HW), lambda i: (i, 0, 0)),
            pl.BlockSpec((Cout, K), lambda i: (0, 0)),
            pl.BlockSpec((Cout, 1), lambda i: (0, 0)),
            pl.BlockSpec((Cout, 1), lambda i: (0, 0)),
        ],
        out_specs=pl.BlockSpec((None, Cout, HW), lambda i: (i, 0, 0)),
        compiler_params=pltpu.CompilerParams(dimension_semantics=("parallel",)),
    )(a, wmat, gamma, beta)
    return out.reshape(N, Cout, Ho, Wo)


def ub4_attn_final(x, log_scope_row, wmat, gamma, beta, faw, fab):
    """Fused upblock4 + finalattention + LogSigmoid + scope/mask update.

    x: (N,16,32,32) bf16, log_scope_row: (N,1,1024) f32 (lane-dense).
    Returns (log_scope_next, log_mask), both (N,1,1024) f32.
    """
    N = x.shape[0]
    a, Ho, Wo = im2col_t(x, 3, 3, 1, 1)
    K = a.shape[1]
    Cout = wmat.shape[0]
    HW = Ho * Wo
    scope_next, mask = pl.pallas_call(
        _ub4_attn_final_kernel,
        out_shape=(jax.ShapeDtypeStruct((N, 1, HW), jnp.float32),
                   jax.ShapeDtypeStruct((N, 1, HW), jnp.float32)),
        grid=(N,),
        in_specs=[
            pl.BlockSpec((None, K, HW), lambda i: (i, 0, 0)),
            pl.BlockSpec((Cout, K), lambda i: (0, 0)),
            pl.BlockSpec((Cout, 1), lambda i: (0, 0)),
            pl.BlockSpec((Cout, 1), lambda i: (0, 0)),
            pl.BlockSpec((Cout, 1), lambda i: (0, 0)),
            pl.BlockSpec((1, 1), lambda i: (0, 0)),
            pl.BlockSpec((None, 1, HW), lambda i: (i, 0, 0)),
        ],
        out_specs=(pl.BlockSpec((None, 1, HW), lambda i: (i, 0, 0)),
                   pl.BlockSpec((None, 1, HW), lambda i: (i, 0, 0))),
        compiler_params=pltpu.CompilerParams(dimension_semantics=("parallel",)),
    )(a, wmat, gamma, beta, faw, fab, log_scope_row)
    return scope_next, mask


def conv_chain_t(x, layers, kh, kw, stride=1, pad=0, out_dtype=jnp.bfloat16):
    """Transposed conv chain (with bias, optional ReLU) over the sample grid.

    First layer is a (kh,kw) conv of x; subsequent layers must be 1x1 convs.
    x: (NB, Cin, H, W) bf16; layers: [(W (Cout, K) bf16, b (Cout,1) f32, relu)].
    """
    NB = x.shape[0]
    a, Ho, Wo = im2col_t(x, kh, kw, stride, pad)
    K = a.shape[1]
    HW = Ho * Wo
    relus = tuple(bool(r) for _, _, r in layers)
    Cout = layers[-1][0].shape[0]
    in_specs = [pl.BlockSpec((None, K, HW), lambda i: (i, 0, 0))]
    args = [a]
    for w, b, _ in layers:
        in_specs.append(pl.BlockSpec(w.shape, lambda i: (0, 0)))
        in_specs.append(pl.BlockSpec(b.shape, lambda i: (0, 0)))
        args.append(w)
        args.append(b)
    out = pl.pallas_call(
        functools.partial(_tconv_chain_kernel, relus=relus),
        out_shape=jax.ShapeDtypeStruct((NB, Cout, HW), out_dtype),
        grid=(NB,),
        in_specs=in_specs,
        out_specs=pl.BlockSpec((None, Cout, HW), lambda i: (i, 0, 0)),
        compiler_params=pltpu.CompilerParams(dimension_semantics=("parallel",)),
    )(*args)
    return out.reshape(NB, Cout, Ho, Wo)


def matmul_chain(a, layers, out_dtype=jnp.float32):
    """Fused Linear chain on a small-M matrix (M = batch rows only).

    a: (M, K0) bf16; layers: [(W (K_l, N_l) bf16, b (1, N_l) f32, relu), ...].
    Single block (no M split): the split is pure overhead on 1-TC chips and M
    here is 2..6 rows.
    """
    M, K0 = a.shape
    relus = tuple(bool(r) for _, _, r in layers)
    Nout = layers[-1][0].shape[1]
    in_specs = [pl.BlockSpec((M, K0), lambda i: (0, 0))]
    args = [a]
    for w, b, _ in layers:
        in_specs.append(pl.BlockSpec(w.shape, lambda i: (0, 0)))
        in_specs.append(pl.BlockSpec(b.shape, lambda i: (0, 0)))
        args.append(w)
        args.append(b)
    return pl.pallas_call(
        functools.partial(_chain_kernel, relus=relus),
        out_shape=jax.ShapeDtypeStruct((M, Nout), out_dtype),
        grid=(1,),
        in_specs=in_specs,
        out_specs=pl.BlockSpec((M, Nout), lambda i: (0, 0)),
    )(*args)


# ----------------------------------------------------------------------------
# Parameters (deterministic synthetic init, PyTorch-shaped)
# ----------------------------------------------------------------------------
def init_params(key):
    ks = iter(jax.random.split(key, 64))

    def cw(cout, cin, k):
        return 0.05 * jax.random.normal(next(ks), (cout, cin, k, k), jnp.float32)

    def lw(out, inp):
        return 0.05 * jax.random.normal(next(ks), (out, inp), jnp.float32)

    def bias(n):
        return 0.01 * jax.random.normal(next(ks), (n,), jnp.float32)

    attn = dict(
        db1_w=cw(8, 4, 3),   db1_g=jnp.ones(8),  db1_b=jnp.zeros(8),
        db2_w=cw(16, 8, 3),  db2_g=jnp.ones(16), db2_b=jnp.zeros(16),
        db3_w=cw(32, 16, 3), db3_g=jnp.ones(32), db3_b=jnp.zeros(32),
        db4_w=cw(64, 32, 3), db4_g=jnp.ones(64), db4_b=jnp.zeros(64),
        mlp1_w=lw(64, 1024), mlp1_b=bias(64),
        mlp2_w=lw(64, 64),   mlp2_b=bias(64),
        mlp3_w=lw(1024, 64), mlp3_b=bias(1024),
        ub1_w=cw(32, 128, 3), ub1_g=jnp.ones(32), ub1_b=jnp.zeros(32),
        ub2_w=cw(16, 64, 3),  ub2_g=jnp.ones(16), ub2_b=jnp.zeros(16),
        ub3_w=cw(8, 32, 3),   ub3_g=jnp.ones(8),  ub3_b=jnp.zeros(8),
        ub4_w=cw(4, 16, 3),   ub4_g=jnp.ones(4),  ub4_b=jnp.zeros(4),
        fa_w=cw(1, 4, 1),     fa_b=bias(1),
    )
    vae = dict(
        e1_w=cw(16, 4, 3),  e1_b=bias(16),
        e2_w=cw(32, 16, 3), e2_b=bias(32),
        e3_w=cw(32, 32, 3), e3_b=bias(32),
        el1_w=lw(128, 512), el1_b=bias(128),
        el2_w=lw(32, 128),  el2_b=bias(32),
        d1_w=cw(32, 18, 3), d1_b=bias(32),
        d2_w=cw(32, 32, 3), d2_b=bias(32),
        d3_w=cw(16, 32, 3), d3_b=bias(16),
        d4_w=cw(4, 16, 1),  d4_b=bias(4),
    )
    return dict(attn=attn, vae=vae)


def _conv_wmat_t(w):
    """(Cout,Cin,kh,kw) -> (Cout, kh*kw*Cin) bf16, matching im2col_t order."""
    cout = w.shape[0]
    return jnp.transpose(w, (0, 2, 3, 1)).reshape(cout, -1).astype(jnp.bfloat16)


def _lin_wmat(w):      # torch Linear weight (out, in) -> (in, out) bf16
    return w.T.astype(jnp.bfloat16)


def _row(v):
    return v.reshape(1, -1).astype(jnp.float32)


def _col(v):
    return v.reshape(-1, 1).astype(jnp.float32)


def prepare_params(params):
    """One-time (under jit) conversion of PyTorch-shaped params to kernel form."""
    pa, pv = params["attn"], params["vae"]
    A = {}
    for name in ("db1", "db2", "db3", "db4", "ub1", "ub2", "ub3", "ub4"):
        A[name] = (_conv_wmat_t(pa[name + "_w"]),
                   _col(pa[name + "_g"]), _col(pa[name + "_b"]))
    A["mlp"] = [(_lin_wmat(pa["mlp1_w"]), _row(pa["mlp1_b"]), True),
                (_lin_wmat(pa["mlp2_w"]), _row(pa["mlp2_b"]), True),
                (_lin_wmat(pa["mlp3_w"]), _row(pa["mlp3_b"]), True)]
    A["fa"] = (pa["fa_w"].reshape(4, 1).astype(jnp.float32),
               pa["fa_b"].reshape(1, 1).astype(jnp.float32))
    V = {}
    for name in ("e1", "e2", "e3", "d1", "d2", "d3", "d4"):
        V[name] = (_conv_wmat_t(pv[name + "_w"]), _col(pv[name + "_b"]))
    V["el"] = [(_lin_wmat(pv["el1_w"]), _row(pv["el1_b"]), False),
               (_lin_wmat(pv["el2_w"]), _row(pv["el2_b"]), False)]
    return A, V


# ----------------------------------------------------------------------------
# Model forward passes (NCHW, bf16 activations)
# ----------------------------------------------------------------------------
def attention_forward(A, x_bf, log_scope_row):
    """x_bf: (N,3,32,32) bf16, log_scope_row: (N,1,1024) f32."""
    N = x_bf.shape[0]
    ls_img = log_scope_row.reshape(N, 1, 32, 32).astype(jnp.bfloat16)
    x0 = jnp.concatenate([x_bf, ls_img], axis=1)                     # (N,4,32,32)
    x1 = conv_in_relu(x0, *A["db1"])                                 # (N,8,32,32)
    x2 = conv_in_relu(avgpool2(x1), *A["db2"])                       # (N,16,16,16)
    x3 = conv_in_relu(avgpool2(x2), *A["db3"])                       # (N,32,8,8)
    x4 = conv_in_relu(avgpool2(x3), *A["db4"])                       # (N,64,4,4)

    # channel-major flatten == torch nn.Flatten on NCHW
    flat = x4.reshape(N, 64 * 4 * 4)
    y = matmul_chain(flat, A["mlp"], out_dtype=jnp.bfloat16)         # fused 3-layer MLP
    y = y.reshape(N, 64, 4, 4)

    y = upsample2(conv_in_relu(jnp.concatenate([y, x4], 1), *A["ub1"]))  # (N,32,8,8)
    y = upsample2(conv_in_relu(jnp.concatenate([y, x3], 1), *A["ub2"]))  # (N,16,16,16)
    y = upsample2(conv_in_relu(jnp.concatenate([y, x2], 1), *A["ub3"]))  # (N,8,32,32)

    faw, fab = A["fa"]
    log_scope_next, log_mask = ub4_attn_final(
        jnp.concatenate([y, x1], 1), log_scope_row, *A["ub4"], faw, fab)
    return log_scope_next, log_mask                                  # (N,1,1024) f32


def vae_forward(V, x_rep, log_mask_img, noise):
    """Batched over NB = K*N slots.  x_rep: (NB,3,32,32) bf16."""
    NB = x_rep.shape[0]
    x0 = jnp.concatenate([x_rep, log_mask_img.astype(jnp.bfloat16)], axis=1)
    h = conv_chain_t(x0, [(*V["e1"], True)], 3, 3, stride=2, pad=1)  # (NB,16,16,16)
    h = conv_chain_t(h, [(*V["e2"], True)], 3, 3, stride=2, pad=1)   # (NB,32,8,8)
    h = conv_chain_t(h, [(*V["e3"], True)], 3, 3, stride=2, pad=1)   # (NB,32,4,4)
    flat = h.reshape(NB, 512)                                        # channel-major flatten
    latent = matmul_chain(flat, V["el"])                             # fused el1->el2, (NB,32)
    mu, log_sigma = latent[:, :16], latent[:, 16:]

    z = mu + jnp.exp(log_sigma) * noise                              # reparameterization
    z_map = jnp.broadcast_to(z.reshape(NB, 16, 1, 1), (NB, 16, 38, 38))
    lin = jnp.linspace(-1.0, 1.0, 38, dtype=jnp.float32)
    d1 = jnp.broadcast_to(lin.reshape(1, 1, 38, 1), (NB, 1, 38, 38))  # 'ij' rows (H axis)
    d2 = jnp.broadcast_to(lin.reshape(1, 1, 1, 38), (NB, 1, 38, 38))  # 'ij' cols (W axis)
    zc = jnp.concatenate([z_map, d1, d2], axis=1).astype(jnp.bfloat16)  # (NB,18,38,38)

    h = conv_chain_t(zc, [(*V["d1"], True)], 3, 3, 1, 0)             # (NB,32,36,36)
    h = conv_chain_t(h, [(*V["d2"], True)], 3, 3, 1, 0)              # (NB,32,34,34)
    rec = conv_chain_t(h, [(*V["d3"], True), (*V["d4"], False)],     # fused d3 + 1x1 d4
                       3, 3, 1, 0, out_dtype=jnp.float32)            # (NB,4,32,32)
    return mu, log_sigma, rec[:, :3], rec[:, 3:]


@functools.partial(jax.jit, static_argnums=(3,))
def minimonet_forward(params, x, key, K):
    """x: (N,3,32,32). Returns (mu, log_sigma, log_mask, x_hat_mu, mask_hat_logits)."""
    A, V = prepare_params(params)
    N = x.shape[0]
    x_bf = x.astype(jnp.bfloat16)

    # --- sequential attention passes, collecting all K log-masks ---
    log_scope = jnp.zeros((N, 1, 1024), jnp.float32)                 # log(1) = 0
    log_masks = []
    for _ in range(K - 1):
        log_scope, log_mask = attention_forward(A, x_bf, log_scope)
        log_masks.append(log_mask)
    log_masks.append(log_scope)                                      # last slot mask = scope
    lm = jnp.stack(log_masks)                                        # (K, N, 1, 1024)

    # --- all K component-VAE passes batched into one call (NB = K*N) ---
    NB = K * N
    x_rep = jnp.broadcast_to(x_bf[None], (K,) + x_bf.shape).reshape(NB, 3, 32, 32)
    lm_img = lm.reshape(NB, 1, 32, 32)
    noise = jax.random.normal(key, (NB, 16), jnp.float32)
    mu, log_sigma, x_hat, m_hat = vae_forward(V, x_rep, lm_img, noise)

    return (mu.reshape(K, N, 16),
            log_sigma.reshape(K, N, 16),
            lm.reshape(K, N, 1, 32, 32),
            x_hat.reshape(K, N, 3, 32, 32),
            m_hat.reshape(K, N, 1, 32, 32))


# ----------------------------------------------------------------------------
if __name__ == "__main__":
    K = 3          # slots
    batchsize = 2  # image spatial size is fixed at 32x32 by the architecture

    key = jax.random.PRNGKey(0)
    pkey, xkey, nkey = jax.random.split(key, 3)
    params = init_params(pkey)
    x = jax.random.uniform(xkey, (batchsize, 3, 32, 32), jnp.float32)

    mu, log_sigma, log_mask, x_hat_mu, mask_hat_logits = minimonet_forward(
        params, x, nkey, K)
    jax.block_until_ready((mu, log_sigma, log_mask, x_hat_mu, mask_hat_logits))

    assert mu.shape == (K, batchsize, 16)
    assert log_sigma.shape == (K, batchsize, 16)
    assert log_mask.shape == (K, batchsize, 1, 32, 32)
    assert x_hat_mu.shape == (K, batchsize, 3, 32, 32)
    assert mask_hat_logits.shape == (K, batchsize, 1, 32, 32)
    assert bool(jnp.all(jnp.isfinite(x_hat_mu)))
    assert bool(jnp.all(jnp.isfinite(log_mask)))
    print("KERNEL_OK")
</pallas_src>

<mosaic_0001>
module attributes {stable_mosaic.version = 11 : i64} {
  func.func @_conv_in_relu_kernel(%arg0: i32, %arg1: memref<1x36x1024xbf16, #tpu.memory_space<vmem>>, %arg2: memref<8x36xbf16, #tpu.memory_space<vmem>>, %arg3: memref<8x1xf32, #tpu.memory_space<vmem>>, %arg4: memref<8x1xf32, #tpu.memory_space<vmem>>, %arg5: memref<1x8x1024xbf16, #tpu.memory_space<vmem>>) attributes {dimension_semantics = [#tpu.dimension_semantics<parallel>], iteration_bounds = array<i64: 2>, scalar_prefetch = 0 : i64, scratch_operands = 0 : i64, tpu.core_type = #tpu.core_type<tc>, window_params = [{transform_indices = @transform_0, window_bounds = array<i64: 1, 36, 1024>}, {pipeline_mode = #tpu.pipeline_mode<synchronous>, transform_indices = @transform_1, window_bounds = array<i64: 8, 36>}, {pipeline_mode = #tpu.pipeline_mode<synchronous>, transform_indices = @transform_2, window_bounds = array<i64: 8, 1>}, {pipeline_mode = #tpu.pipeline_mode<synchronous>, transform_indices = @transform_3, window_bounds = array<i64: 8, 1>}, {transform_indices = @transform_4, window_bounds = array<i64: 1, 8, 1024>}]} {
    %c0 = arith.constant 0 : index
    %c0_0 = arith.constant 0 : index
    %0 = vector.load %arg2[%c0, %c0_0] : memref<8x36xbf16, #tpu.memory_space<vmem>>, vector<8x36xbf16>
    %c0_1 = arith.constant 0 : index
    %c0_2 = arith.constant 0 : index
    %c0_3 = arith.constant 0 : index
    %1 = vector.load %arg1[%c0_1, %c0_2, %c0_3] : memref<1x36x1024xbf16, #tpu.memory_space<vmem>>, vector<1x36x1024xbf16>
    %2 = vector.shape_cast %1 : vector<1x36x1024xbf16> to vector<36x1024xbf16>
    %cst = arith.constant dense<0.000000e+00> : vector<8x1024xf32>
    %3 = tpu.matmul %0, %2, %cst {dimension_numbers = #tpu.dot_dimension_numbers<[1], [0], [0], [1], [0, 0, 1, 1], [], []>} : vector<8x36xbf16>, vector<36x1024xbf16>, vector<8x1024xf32> -> vector<8x1024xf32>
    %cst_4 = arith.constant dense<0.000000e+00> : vector<8xf32>
    %4 = vector.multi_reduction <add>, %3, %cst_4 [1] : vector<8x1024xf32> to vector<8xf32>
    %5 = vector.shape_cast %4 : vector<8xf32> to vector<8x1xf32>
    %cst_5 = arith.constant 1.024000e+03 : f32
    %6 = vector.broadcast %cst_5 : f32 to vector<8x1xf32>
    %7 = arith.divf %5, %6 : vector<8x1xf32>
    %8 = vector.broadcast %7 : vector<8x1xf32> to vector<8x1024xf32>
    %9 = arith.subf %3, %8 : vector<8x1024xf32>
    %10 = arith.mulf %9, %9 : vector<8x1024xf32>
    %cst_6 = arith.constant dense<0.000000e+00> : vector<8xf32>
    %11 = vector.multi_reduction <add>, %10, %cst_6 [1] : vector<8x1024xf32> to vector<8xf32>
    %12 = vector.shape_cast %11 : vector<8xf32> to vector<8x1xf32>
    %cst_7 = arith.constant 1.024000e+03 : f32
    %13 = vector.broadcast %cst_7 : f32 to vector<8x1xf32>
    %14 = arith.divf %12, %13 : vector<8x1xf32>
    %15 = vector.broadcast %7 : vector<8x1xf32> to vector<8x1024xf32>
    %16 = arith.subf %3, %15 : vector<8x1024xf32>
    %cst_8 = arith.constant 9.99999974E-6 : f32
    %17 = vector.broadcast %cst_8 : f32 to vector<8x1xf32>
    %18 = arith.addf %14, %17 : vector<8x1xf32>
    %19 = math.rsqrt %18 : vector<8x1xf32>
    %20 = vector.broadcast %19 : vector<8x1xf32> to vector<8x1024xf32>
    %21 = arith.mulf %16, %20 : vector<8x1024xf32>
    %c0_9 = arith.constant 0 : index
    %c0_10 = arith.constant 0 : index
    %22 = vector.load %arg3[%c0_9, %c0_10] : memref<8x1xf32, #tpu.memory_space<vmem>>, vector<8x1xf32>
    %23 = vector.broadcast %22 : vector<8x1xf32> to vector<8x1024xf32>
    %24 = arith.mulf %21, %23 : vector<8x1024xf32>
    %c0_11 = arith.constant 0 : index
    %c0_12 = arith.constant 0 : index
    %25 = vector.load %arg4[%c0_11, %c0_12] : memref<8x1xf32, #tpu.memory_space<vmem>>, vector<8x1xf32>
    %26 = vector.broadcast %25 : vector<8x1xf32> to vector<8x1024xf32>
    %27 = arith.addf %24, %26 : vector<8x1024xf32>
    %cst_13 = arith.constant 0.000000e+00 : f32
    %28 = vector.broadcast %cst_13 : f32 to vector<8x1024xf32>
    %29 = arith.maximumf %27, %28 : vector<8x1024xf32>
    %30 = arith.truncf %29 : vector<8x1024xf32> to vector<8x1024xbf16>
    %c0_14 = arith.constant 0 : index
    %c0_15 = arith.constant 0 : index
    %c0_16 = arith.constant 0 : index
    %31 = vector.load %arg5[%c0_14, %c0_15, %c0_16] : memref<1x8x1024xbf16, #tpu.memory_space<vmem>>, vector<1x8x1024xbf16>
    %32 = vector.shape_cast %31 : vector<1x8x1024xbf16> to vector<8x1024xbf16>
    %33 = vector.shape_cast %30 : vector<8x1024xbf16> to vector<1x8x1024xbf16>
    tpu.vector_store %arg5[%c0_14, %c0_15, %c0_16], %33 {strides = array<i32>} : memref<1x8x1024xbf16, #tpu.memory_space<vmem>>, vector<1x8x1024xbf16>,
    return
  }
  func.func @transform_0(%arg0: i32) -> (i32, i32, i32) {
    %c0_i32 = arith.constant 0 : i32
    %c0_i32_0 = arith.constant 0 : i32
    %c0_i32_1 = arith.constant 0 : i32
    return %arg0, %c0_i32, %c0_i32_0 : i32, i32, i32
  }
  func.func @transform_1(%arg0: i32) -> (i32, i32) {
    %c0_i32 = arith.constant 0 : i32
    %c0_i32_0 = arith.constant 0 : i32
    %c0_i32_1 = arith.constant 0 : i32
    return %c0_i32, %c0_i32_0 : i32, i32
  }
  func.func @transform_2(%arg0: i32) -> (i32, i32) {
    %c0_i32 = arith.constant 0 : i32
    %c0_i32_0 = arith.constant 0 : i32
    %c0_i32_1 = arith.constant 0 : i32
    return %c0_i32, %c0_i32_0 : i32, i32
  }
  func.func @transform_3(%arg0: i32) -> (i32, i32) {
    %c0_i32 = arith.constant 0 : i32
    %c0_i32_0 = arith.constant 0 : i32
    %c0_i32_1 = arith.constant 0 : i32
    return %c0_i32, %c0_i32_0 : i32, i32
  }
  func.func @transform_4(%arg0: i32) -> (i32, i32, i32) {
    %c0_i32 = arith.constant 0 : i32
    %c0_i32_0 = arith.constant 0 : i32
    %c0_i32_1 = arith.constant 0 : i32
    return %arg0, %c0_i32, %c0_i32_0 : i32, i32, i32
  }
}

module attributes {stable_mosaic.version = 11 : i64} {
  func.func @_conv_in_relu_kernel(%arg0: i32, %arg1: memref<1x72x256xbf16, #tpu.memory_space<vmem>>, %arg2: memref<16x72xbf16, #tpu.memory_space<vmem>>, %arg3: memref<16x1xf32, #tpu.memory_space<vmem>>, %arg4: memref<16x1xf32, #tpu.memory_space<vmem>>, %arg5: memref<1x16x256xbf16, #tpu.memory_space<vmem>>) attributes {dimension_semantics = [#tpu.dimension_semantics<parallel>], iteration_bounds = array<i64: 2>, scalar_prefetch = 0 : i64, scratch_operands = 0 : i64, tpu.core_type = #tpu.core_type<tc>, window_params = [{transform_indices = @transform_0, window_bounds = array<i64: 1, 72, 256>}, {pipeline_mode = #tpu.pipeline_mode<synchronous>, transform_indices = @transform_1, window_bounds = array<i64: 16, 72>}, {pipeline_mode = #tpu.pipeline_mode<synchronous>, transform_indices = @transform_2, window_bounds = array<i64: 16, 1>}, {pipeline_mode = #tpu.pipeline_mode<synchronous>, transform_indices = @transform_3, window_bounds = array<i64: 16, 1>}, {transform_indices = @transform_4, window_bounds = array<i64: 1, 16, 256>}]} {
    %c0 = arith.constant 0 : index
    %c0_0 = arith.constant 0 : index
    %0 = vector.load %arg2[%c0, %c0_0] : memref<16x72xbf16, #tpu.memory_space<vmem>>, vector<16x72xbf16>
    %c0_1 = arith.constant 0 : index
    %c0_2 = arith.constant 0 : index
    %c0_3 = arith.constant 0 : index
    %1 = vector.load %arg1[%c0_1, %c0_2, %c0_3] : memref<1x72x256xbf16, #tpu.memory_space<vmem>>, vector<1x72x256xbf16>
    %2 = vector.shape_cast %1 : vector<1x72x256xbf16> to vector<72x256xbf16>
    %cst = arith.constant dense<0.000000e+00> : vector<16x256xf32>
    %3 = tpu.matmul %0, %2, %cst {dimension_numbers = #tpu.dot_dimension_numbers<[1], [0], [0], [1], [0, 0, 1, 1], [], []>} : vector<16x72xbf16>, vector<72x256xbf16>, vector<16x256xf32> -> vector<16x256xf32>
    %cst_4 = arith.constant dense<0.000000e+00> : vector<16xf32>
    %4 = vector.multi_reduction <add>, %3, %cst_4 [1] : vector<16x256xf32> to vector<16xf32>
    %5 = vector.shape_cast %4 : vector<16xf32> to vector<16x1xf32>
    %cst_5 = arith.constant 2.560000e+02 : f32
    %6 = vector.broadcast %cst_5 : f32 to vector<16x1xf32>
    %7 = arith.divf %5, %6 : vector<16x1xf32>
    %8 = vector.broadcast %7 : vector<16x1xf32> to vector<16x256xf32>
    %9 = arith.subf %3, %8 : vector<16x256xf32>
    %10 = arith.mulf %9, %9 : vector<16x256xf32>
    %cst_6 = arith.constant dense<0.000000e+00> : vector<16xf32>
    %11 = vector.multi_reduction <add>, %10, %cst_6 [1] : vector<16x256xf32> to vector<16xf32>
    %12 = vector.shape_cast %11 : vector<16xf32> to vector<16x1xf32>
    %cst_7 = arith.constant 2.560000e+02 : f32
    %13 = vector.broadcast %cst_7 : f32 to vector<16x1xf32>
    %14 = arith.divf %12, %13 : vector<16x1xf32>
    %15 = vector.broadcast %7 : vector<16x1xf32> to vector<16x256xf32>
    %16 = arith.subf %3, %15 : vector<16x256xf32>
    %cst_8 = arith.constant 9.99999974E-6 : f32
    %17 = vector.broadcast %cst_8 : f32 to vector<16x1xf32>
    %18 = arith.addf %14, %17 : vector<16x1xf32>
    %19 = math.rsqrt %18 : vector<16x1xf32>
    %20 = vector.broadcast %19 : vector<16x1xf32> to vector<16x256xf32>
    %21 = arith.mulf %16, %20 : vector<16x256xf32>
    %c0_9 = arith.constant 0 : index
    %c0_10 = arith.constant 0 : index
    %22 = vector.load %arg3[%c0_9, %c0_10] : memref<16x1xf32, #tpu.memory_space<vmem>>, vector<16x1xf32>
    %23 = vector.broadcast %22 : vector<16x1xf32> to vector<16x256xf32>
    %24 = arith.mulf %21, %23 : vector<16x256xf32>
    %c0_11 = arith.constant 0 : index
    %c0_12 = arith.constant 0 : index
    %25 = vector.load %arg4[%c0_11, %c0_12] : memref<16x1xf32, #tpu.memory_space<vmem>>, vector<16x1xf32>
    %26 = vector.broadcast %25 : vector<16x1xf32> to vector<16x256xf32>
    %27 = arith.addf %24, %26 : vector<16x256xf32>
    %cst_13 = arith.constant 0.000000e+00 : f32
    %28 = vector.broadcast %cst_13 : f32 to vector<16x256xf32>
    %29 = arith.maximumf %27, %28 : vector<16x256xf32>
    %30 = arith.truncf %29 : vector<16x256xf32> to vector<16x256xbf16>
    %c0_14 = arith.constant 0 : index
    %c0_15 = arith.constant 0 : index
    %c0_16 = arith.constant 0 : index
    %31 = vector.load %arg5[%c0_14, %c0_15, %c0_16] : memref<1x16x256xbf16, #tpu.memory_space<vmem>>, vector<1x16x256xbf16>
    %32 = vector.shape_cast %31 : vector<1x16x256xbf16> to vector<16x256xbf16>
    %33 = vector.shape_cast %30 : vector<16x256xbf16> to vector<1x16x256xbf16>
    tpu.vector_store %arg5[%c0_14, %c0_15, %c0_16], %33 {strides = array<i32>} : memref<1x16x256xbf16, #tpu.memory_space<vmem>>, vector<1x16x256xbf16>,
    return
  }
  func.func @transform_0(%arg0: i32) -> (i32, i32, i32) {
    %c0_i32 = arith.constant 0 : i32
    %c0_i32_0 = arith.constant 0 : i32
    %c0_i32_1 = arith.constant 0 : i32
    return %arg0, %c0_i32, %c0_i32_0 : i32, i32, i32
  }
  func.func @transform_1(%arg0: i32) -> (i32, i32) {
    %c0_i32 = arith.constant 0 : i32
    %c0_i32_0 = arith.constant 0 : i32
    %c0_i32_1 = arith.constant 0 : i32
    return %c0_i32, %c0_i32_0 : i32, i32
  }
  func.func @transform_2(%arg0: i32) -> (i32, i32) {
    %c0_i32 = arith.constant 0 : i32
    %c0_i32_0 = arith.constant 0 : i32
    %c0_i32_1 = arith.constant 0 : i32
    return %c0_i32, %c0_i32_0 : i32, i32
  }
  func.func @transform_3(%arg0: i32) -> (i32, i32) {
    %c0_i32 = arith.constant 0 : i32
    %c0_i32_0 = arith.constant 0 : i32
    %c0_i32_1 = arith.constant 0 : i32
    return %c0_i32, %c0_i32_0 : i32, i32
  }
  func.func @transform_4(%arg0: i32) -> (i32, i32, i32) {
    %c0_i32 = arith.constant 0 : i32
    %c0_i32_0 = arith.constant 0 : i32
    %c0_i32_1 = arith.constant 0 : i32
    return %arg0, %c0_i32, %c0_i32_0 : i32, i32, i32
  }
}

module attributes {stable_mosaic.version = 11 : i64} {
  func.func @_conv_in_relu_kernel(%arg0: i32, %arg1: memref<1x144x64xbf16, #tpu.memory_space<vmem>>, %arg2: memref<32x144xbf16, #tpu.memory_space<vmem>>, %arg3: memref<32x1xf32, #tpu.memory_space<vmem>>, %arg4: memref<32x1xf32, #tpu.memory_space<vmem>>, %arg5: memref<1x32x64xbf16, #tpu.memory_space<vmem>>) attributes {dimension_semantics = [#tpu.dimension_semantics<parallel>], iteration_bounds = array<i64: 2>, scalar_prefetch = 0 : i64, scratch_operands = 0 : i64, tpu.core_type = #tpu.core_type<tc>, window_params = [{transform_indices = @transform_0, window_bounds = array<i64: 1, 144, 64>}, {pipeline_mode = #tpu.pipeline_mode<synchronous>, transform_indices = @transform_1, window_bounds = array<i64: 32, 144>}, {pipeline_mode = #tpu.pipeline_mode<synchronous>, transform_indices = @transform_2, window_bounds = array<i64: 32, 1>}, {pipeline_mode = #tpu.pipeline_mode<synchronous>, transform_indices = @transform_3, window_bounds = array<i64: 32, 1>}, {transform_indices = @transform_4, window_bounds = array<i64: 1, 32, 64>}]} {
    %c0 = arith.constant 0 : index
    %c0_0 = arith.constant 0 : index
    %0 = vector.load %arg2[%c0, %c0_0] : memref<32x144xbf16, #tpu.memory_space<vmem>>, vector<32x144xbf16>
    %c0_1 = arith.constant 0 : index
    %c0_2 = arith.constant 0 : index
    %c0_3 = arith.constant 0 : index
    %1 = vector.load %arg1[%c0_1, %c0_2, %c0_3] : memref<1x144x64xbf16, #tpu.memory_space<vmem>>, vector<1x144x64xbf16>
    %2 = vector.shape_cast %1 : vector<1x144x64xbf16> to vector<144x64xbf16>
    %cst = arith.constant dense<0.000000e+00> : vector<32x64xf32>
    %3 = tpu.matmul %0, %2, %cst {dimension_numbers = #tpu.dot_dimension_numbers<[1], [0], [0], [1], [0, 0, 1, 1], [], []>} : vector<32x144xbf16>, vector<144x64xbf16>, vector<32x64xf32> -> vector<32x64xf32>
    %cst_4 = arith.constant dense<0.000000e+00> : vector<32xf32>
    %4 = vector.multi_reduction <add>, %3, %cst_4 [1] : vector<32x64xf32> to vector<32xf32>
    %5 = vector.shape_cast %4 : vector<32xf32> to vector<32x1xf32>
    %cst_5 = arith.constant 6.400000e+01 : f32
    %6 = vector.broadcast %cst_5 : f32 to vector<32x1xf32>
    %7 = arith.divf %5, %6 : vector<32x1xf32>
    %8 = vector.broadcast %7 : vector<32x1xf32> to vector<32x64xf32>
    %9 = arith.subf %3, %8 : vector<32x64xf32>
    %10 = arith.mulf %9, %9 : vector<32x64xf32>
    %cst_6 = arith.constant dense<0.000000e+00> : vector<32xf32>
    %11 = vector.multi_reduction <add>, %10, %cst_6 [1] : vector<32x64xf32> to vector<32xf32>
    %12 = vector.shape_cast %11 : vector<32xf32> to vector<32x1xf32>
    %cst_7 = arith.constant 6.400000e+01 : f32
    %13 = vector.broadcast %cst_7 : f32 to vector<32x1xf32>
    %14 = arith.divf %12, %13 : vector<32x1xf32>
    %15 = vector.broadcast %7 : vector<32x1xf32> to vector<32x64xf32>
    %16 = arith.subf %3, %15 : vector<32x64xf32>
    %cst_8 = arith.constant 9.99999974E-6 : f32
    %17 = vector.broadcast %cst_8 : f32 to vector<32x1xf32>
    %18 = arith.addf %14, %17 : vector<32x1xf32>
    %19 = math.rsqrt %18 : vector<32x1xf32>
    %20 = vector.broadcast %19 : vector<32x1xf32> to vector<32x64xf32>
    %21 = arith.mulf %16, %20 : vector<32x64xf32>
    %c0_9 = arith.constant 0 : index
    %c0_10 = arith.constant 0 : index
    %22 = vector.load %arg3[%c0_9, %c0_10] : memref<32x1xf32, #tpu.memory_space<vmem>>, vector<32x1xf32>
    %23 = vector.broadcast %22 : vector<32x1xf32> to vector<32x64xf32>
    %24 = arith.mulf %21, %23 : vector<32x64xf32>
    %c0_11 = arith.constant 0 : index
    %c0_12 = arith.constant 0 : index
    %25 = vector.load %arg4[%c0_11, %c0_12] : memref<32x1xf32, #tpu.memory_space<vmem>>, vector<32x1xf32>
    %26 = vector.broadcast %25 : vector<32x1xf32> to vector<32x64xf32>
    %27 = arith.addf %24, %26 : vector<32x64xf32>
    %cst_13 = arith.constant 0.000000e+00 : f32
    %28 = vector.broadcast %cst_13 : f32 to vector<32x64xf32>
    %29 = arith.maximumf %27, %28 : vector<32x64xf32>
    %30 = arith.truncf %29 : vector<32x64xf32> to vector<32x64xbf16>
    %c0_14 = arith.constant 0 : index
    %c0_15 = arith.constant 0 : index
    %c0_16 = arith.constant 0 : index
    %31 = vector.load %arg5[%c0_14, %c0_15, %c0_16] : memref<1x32x64xbf16, #tpu.memory_space<vmem>>, vector<1x32x64xbf16>
    %32 = vector.shape_cast %31 : vector<1x32x64xbf16> to vector<32x64xbf16>
    %33 = vector.shape_cast %30 : vector<32x64xbf16> to vector<1x32x64xbf16>
    tpu.vector_store %arg5[%c0_14, %c0_15, %c0_16], %33 {strides = array<i32>} : memref<1x32x64xbf16, #tpu.memory_space<vmem>>, vector<1x32x64xbf16>,
    return
  }
  func.func @transform_0(%arg0: i32) -> (i32, i32, i32) {
    %c0_i32 = arith.constant 0 : i32
    %c0_i32_0 = arith.constant 0 : i32
    %c0_i32_1 = arith.constant 0 : i32
    return %arg0, %c0_i32, %c0_i32_0 : i32, i32, i32
  }
  func.func @transform_1(%arg0: i32) -> (i32, i32) {
    %c0_i32 = arith.constant 0 : i32
    %c0_i32_0 = arith.constant 0 : i32
    %c0_i32_1 = arith.constant 0 : i32
    return %c0_i32, %c0_i32_0 : i32, i32
  }
  func.func @transform_2(%arg0: i32) -> (i32, i32) {
    %c0_i32 = arith.constant 0 : i32
    %c0_i32_0 = arith.constant 0 : i32
    %c0_i32_1 = arith.constant 0 : i32
    return %c0_i32, %c0_i32_0 : i32, i32
  }
  func.func @transform_3(%arg0: i32) -> (i32, i32) {
    %c0_i32 = arith.constant 0 : i32
    %c0_i32_0 = arith.constant 0 : i32
    %c0_i32_1 = arith.constant 0 : i32
    return %c0_i32, %c0_i32_0 : i32, i32
  }
  func.func @transform_4(%arg0: i32) -> (i32, i32, i32) {
    %c0_i32 = arith.constant 0 : i32
    %c0_i32_0 = arith.constant 0 : i32
    %c0_i32_1 = arith.constant 0 : i32
    return %arg0, %c0_i32, %c0_i32_0 : i32, i32, i32
  }
}

module attributes {stable_mosaic.version = 11 : i64} {
  func.func @_chain_kernel(%arg0: i32, %arg1: memref<2x1024xbf16, #tpu.memory_space<vmem>>, %arg2: memref<1024x64xbf16, #tpu.memory_space<vmem>>, %arg3: memref<1x64xf32, #tpu.memory_space<vmem>>, %arg4: memref<64x64xbf16, #tpu.memory_space<vmem>>, %arg5: memref<1x64xf32, #tpu.memory_space<vmem>>, %arg6: memref<64x1024xbf16, #tpu.memory_space<vmem>>, %arg7: memref<1x1024xf32, #tpu.memory_space<vmem>>, %arg8: memref<2x1024xbf16, #tpu.memory_space<vmem>>) attributes {dimension_semantics = [#tpu.dimension_semantics<arbitrary>], iteration_bounds = array<i64: 1>, scalar_prefetch = 0 : i64, scratch_operands = 0 : i64, tpu.core_type = #tpu.core_type<tc>, window_params = [{pipeline_mode = #tpu.pipeline_mode<synchronous>, transform_indices = @transform_0, window_bounds = array<i64: 2, 1024>}, {pipeline_mode = #tpu.pipeline_mode<synchronous>, transform_indices = @transform_1, window_bounds = array<i64: 1024, 64>}, {pipeline_mode = #tpu.pipeline_mode<synchronous>, transform_indices = @transform_2, window_bounds = array<i64: 1, 64>}, {pipeline_mode = #tpu.pipeline_mode<synchronous>, transform_indices = @transform_3, window_bounds = array<i64: 64, 64>}, {pipeline_mode = #tpu.pipeline_mode<synchronous>, transform_indices = @transform_4, window_bounds = array<i64: 1, 64>}, {pipeline_mode = #tpu.pipeline_mode<synchronous>, transform_indices = @transform_5, window_bounds = array<i64: 64, 1024>}, {pipeline_mode = #tpu.pipeline_mode<synchronous>, transform_indices = @transform_6, window_bounds = array<i64: 1, 1024>}, {pipeline_mode = #tpu.pipeline_mode<synchronous>, transform_indices = @transform_7, window_bounds = array<i64: 2, 1024>}]} {
    %c0 = arith.constant 0 : index
    %c0_0 = arith.constant 0 : index
    %0 = vector.load %arg1[%c0, %c0_0] : memref<2x1024xbf16, #tpu.memory_space<vmem>>, vector<2x1024xbf16>
    %c0_1 = arith.constant 0 : index
    %c0_2 = arith.constant 0 : index
    %1 = vector.load %arg2[%c0_1, %c0_2] : memref<1024x64xbf16, #tpu.memory_space<vmem>>, vector<1024x64xbf16>
    %c0_3 = arith.constant 0 : index
    %c0_4 = arith.constant 0 : index
    %2 = vector.load %arg3[%c0_3, %c0_4] : memref<1x64xf32, #tpu.memory_space<vmem>>, vector<1x64xf32>
    %cst = arith.constant dense<0.000000e+00> : vector<2x64xf32>
    %3 = tpu.matmul %0, %1, %cst {dimension_numbers = #tpu.dot_dimension_numbers<[1], [0], [0], [1], [0, 0, 1, 1], [], []>} : vector<2x1024xbf16>, vector<1024x64xbf16>, vector<2x64xf32> -> vector<2x64xf32>
    %4 = vector.broadcast %2 : vector<1x64xf32> to vector<2x64xf32>
    %5 = arith.addf %3, %4 : vector<2x64xf32>
    %cst_5 = arith.constant 0.000000e+00 : f32
    %6 = vector.broadcast %cst_5 : f32 to vector<2x64xf32>
    %7 = arith.maximumf %5, %6 : vector<2x64xf32>
    %c0_6 = arith.constant 0 : index
    %c0_7 = arith.constant 0 : index
    %8 = vector.load %arg4[%c0_6, %c0_7] : memref<64x64xbf16, #tpu.memory_space<vmem>>, vector<64x64xbf16>
    %c0_8 = arith.constant 0 : index
    %c0_9 = arith.constant 0 : index
    %9 = vector.load %arg5[%c0_8, %c0_9] : memref<1x64xf32, #tpu.memory_space<vmem>>, vector<1x64xf32>
    %10 = arith.truncf %7 : vector<2x64xf32> to vector<2x64xbf16>
    %cst_10 = arith.constant dense<0.000000e+00> : vector<2x64xf32>
    %11 = tpu.matmul %10, %8, %cst_10 {dimension_numbers = #tpu.dot_dimension_numbers<[1], [0], [0], [1], [0, 0, 1, 1], [], []>} : vector<2x64xbf16>, vector<64x64xbf16>, vector<2x64xf32> -> vector<2x64xf32>
    %12 = vector.broadcast %9 : vector<1x64xf32> to vector<2x64xf32>
    %13 = arith.addf %11, %12 : vector<2x64xf32>
    %cst_11 = arith.constant 0.000000e+00 : f32
    %14 = vector.broadcast %cst_11 : f32 to vector<2x64xf32>
    %15 = arith.maximumf %13, %14 : vector<2x64xf32>
    %c0_12 = arith.constant 0 : index
    %c0_13 = arith.constant 0 : index
    %16 = vector.load %arg6[%c0_12, %c0_13] : memref<64x1024xbf16, #tpu.memory_space<vmem>>, vector<64x1024xbf16>
    %c0_14 = arith.constant 0 : index
    %c0_15 = arith.constant 0 : index
    %17 = vector.load %arg7[%c0_14, %c0_15] : memref<1x1024xf32, #tpu.memory_space<vmem>>, vector<1x1024xf32>
    %18 = arith.truncf %15 : vector<2x64xf32> to vector<2x64xbf16>
    %cst_16 = arith.constant dense<0.000000e+00> : vector<2x1024xf32>
    %19 = tpu.matmul %18, %16, %cst_16 {dimension_numbers = #tpu.dot_dimension_numbers<[1], [0], [0], [1], [0, 0, 1, 1], [], []>} : vector<2x64xbf16>, vector<64x1024xbf16>, vector<2x1024xf32> -> vector<2x1024xf32>
    %20 = vector.broadcast %17 : vector<1x1024xf32> to vector<2x1024xf32>
    %21 = arith.addf %19, %20 : vector<2x1024xf32>
    %cst_17 = arith.constant 0.000000e+00 : f32
    %22 = vector.broadcast %cst_17 : f32 to vector<2x1024xf32>
    %23 = arith.maximumf %21, %22 : vector<2x1024xf32>
    %24 = arith.truncf %23 : vector<2x1024xf32> to vector<2x1024xbf16>
    %c0_18 = arith.constant 0 : index
    %c0_19 = arith.constant 0 : index
    %25 = vector.load %arg8[%c0_18, %c0_19] : memref<2x1024xbf16, #tpu.memory_space<vmem>>, vector<2x1024xbf16>
    tpu.vector_store %arg8[%c0_18, %c0_19], %24 {strides = array<i32>} : memref<2x1024xbf16, #tpu.memory_space<vmem>>, vector<2x1024xbf16>,
    return
  }
  func.func @transform_0(%arg0: i32) -> (i32, i32) {
    %c0_i32 = arith.constant 0 : i32
    %c0_i32_0 = arith.constant 0 : i32
    %c0_i32_1 = arith.constant 0 : i32
    return %c0_i32, %c0_i32_0 : i32, i32
  }
  func.func @transform_1(%arg0: i32) -> (i32, i32) {
    %c0_i32 = arith.constant 0 : i32
    %c0_i32_0 = arith.constant 0 : i32
    %c0_i32_1 = arith.constant 0 : i32
    return %c0_i32, %c0_i32_0 : i32, i32
  }
  func.func @transform_2(%arg0: i32) -> (i32, i32) {
    %c0_i32 = arith.constant 0 : i32
    %c0_i32_0 = arith.constant 0 : i32
    %c0_i32_1 = arith.constant 0 : i32
    return %c0_i32, %c0_i32_0 : i32, i32
  }
  func.func @transform_3(%arg0: i32) -> (i32, i32) {
    %c0_i32 = arith.constant 0 : i32
    %c0_i32_0 = arith.constant 0 : i32
    %c0_i32_1 = arith.constant 0 : i32
    return %c0_i32, %c0_i32_0 : i32, i32
  }
  func.func @transform_4(%arg0: i32) -> (i32, i32) {
    %c0_i32 = arith.constant 0 : i32
    %c0_i32_0 = arith.constant 0 : i32
    %c0_i32_1 = arith.constant 0 : i32
    return %c0_i32, %c0_i32_0 : i32, i32
  }
  func.func @transform_5(%arg0: i32) -> (i32, i32) {
    %c0_i32 = arith.constant 0 : i32
    %c0_i32_0 = arith.constant 0 : i32
    %c0_i32_1 = arith.constant 0 : i32
    return %c0_i32, %c0_i32_0 : i32, i32
  }
  func.func @transform_6(%arg0: i32) -> (i32, i32) {
    %c0_i32 = arith.constant 0 : i32
    %c0_i32_0 = arith.constant 0 : i32
    %c0_i32_1 = arith.constant 0 : i32
    return %c0_i32, %c0_i32_0 : i32, i32
  }
  func.func @transform_7(%arg0: i32) -> (i32, i32) {
    %c0_i32 = arith.constant 0 : i32
    %c0_i32_0 = arith.constant 0 : i32
    %c0_i32_1 = arith.constant 0 : i32
    return %c0_i32, %c0_i32_0 : i32, i32
  }
}

module attributes {stable_mosaic.version = 11 : i64} {
  func.func @_conv_in_relu_kernel(%arg0: i32, %arg1: memref<1x288x16xbf16, #tpu.memory_space<vmem>>, %arg2: memref<64x288xbf16, #tpu.memory_space<vmem>>, %arg3: memref<64x1xf32, #tpu.memory_space<vmem>>, %arg4: memref<64x1xf32, #tpu.memory_space<vmem>>, %arg5: memref<1x64x16xbf16, #tpu.memory_space<vmem>>) attributes {dimension_semantics = [#tpu.dimension_semantics<parallel>], iteration_bounds = array<i64: 2>, scalar_prefetch = 0 : i64, scratch_operands = 0 : i64, tpu.core_type = #tpu.core_type<tc>, window_params = [{transform_indices = @transform_0, window_bounds = array<i64: 1, 288, 16>}, {pipeline_mode = #tpu.pipeline_mode<synchronous>, transform_indices = @transform_1, window_bounds = array<i64: 64, 288>}, {pipeline_mode = #tpu.pipeline_mode<synchronous>, transform_indices = @transform_2, window_bounds = array<i64: 64, 1>}, {pipeline_mode = #tpu.pipeline_mode<synchronous>, transform_indices = @transform_3, window_bounds = array<i64: 64, 1>}, {transform_indices = @transform_4, window_bounds = array<i64: 1, 64, 16>}]} {
    %c0 = arith.constant 0 : index
    %c0_0 = arith.constant 0 : index
    %0 = vector.load %arg2[%c0, %c0_0] : memref<64x288xbf16, #tpu.memory_space<vmem>>, vector<64x288xbf16>
    %c0_1 = arith.constant 0 : index
    %c0_2 = arith.constant 0 : index
    %c0_3 = arith.constant 0 : index
    %1 = vector.load %arg1[%c0_1, %c0_2, %c0_3] : memref<1x288x16xbf16, #tpu.memory_space<vmem>>, vector<1x288x16xbf16>
    %2 = vector.shape_cast %1 : vector<1x288x16xbf16> to vector<288x16xbf16>
    %cst = arith.constant dense<0.000000e+00> : vector<64x16xf32>
    %3 = tpu.matmul %0, %2, %cst {dimension_numbers = #tpu.dot_dimension_numbers<[1], [0], [0], [1], [0, 0, 1, 1], [], []>} : vector<64x288xbf16>, vector<288x16xbf16>, vector<64x16xf32> -> vector<64x16xf32>
    %cst_4 = arith.constant dense<0.000000e+00> : vector<64xf32>
    %4 = vector.multi_reduction <add>, %3, %cst_4 [1] : vector<64x16xf32> to vector<64xf32>
    %5 = vector.shape_cast %4 : vector<64xf32> to vector<64x1xf32>
    %cst_5 = arith.constant 1.600000e+01 : f32
    %6 = vector.broadcast %cst_5 : f32 to vector<64x1xf32>
    %7 = arith.divf %5, %6 : vector<64x1xf32>
    %8 = vector.broadcast %7 : vector<64x1xf32> to vector<64x16xf32>
    %9 = arith.subf %3, %8 : vector<64x16xf32>
    %10 = arith.mulf %9, %9 : vector<64x16xf32>
    %cst_6 = arith.constant dense<0.000000e+00> : vector<64xf32>
    %11 = vector.multi_reduction <add>, %10, %cst_6 [1] : vector<64x16xf32> to vector<64xf32>
    %12 = vector.shape_cast %11 : vector<64xf32> to vector<64x1xf32>
    %cst_7 = arith.constant 1.600000e+01 : f32
    %13 = vector.broadcast %cst_7 : f32 to vector<64x1xf32>
    %14 = arith.divf %12, %13 : vector<64x1xf32>
    %15 = vector.broadcast %7 : vector<64x1xf32> to vector<64x16xf32>
    %16 = arith.subf %3, %15 : vector<64x16xf32>
    %cst_8 = arith.constant 9.99999974E-6 : f32
    %17 = vector.broadcast %cst_8 : f32 to vector<64x1xf32>
    %18 = arith.addf %14, %17 : vector<64x1xf32>
    %19 = math.rsqrt %18 : vector<64x1xf32>
    %20 = vector.broadcast %19 : vector<64x1xf32> to vector<64x16xf32>
    %21 = arith.mulf %16, %20 : vector<64x16xf32>
    %c0_9 = arith.constant 0 : index
    %c0_10 = arith.constant 0 : index
    %22 = vector.load %arg3[%c0_9, %c0_10] : memref<64x1xf32, #tpu.memory_space<vmem>>, vector<64x1xf32>
    %23 = vector.broadcast %22 : vector<64x1xf32> to vector<64x16xf32>
    %24 = arith.mulf %21, %23 : vector<64x16xf32>
    %c0_11 = arith.constant 0 : index
    %c0_12 = arith.constant 0 : index
    %25 = vector.load %arg4[%c0_11, %c0_12] : memref<64x1xf32, #tpu.memory_space<vmem>>, vector<64x1xf32>
    %26 = vector.broadcast %25 : vector<64x1xf32> to vector<64x16xf32>
    %27 = arith.addf %24, %26 : vector<64x16xf32>
    %cst_13 = arith.constant 0.000000e+00 : f32
    %28 = vector.broadcast %cst_13 : f32 to vector<64x16xf32>
    %29 = arith.maximumf %27, %28 : vector<64x16xf32>
    %30 = arith.truncf %29 : vector<64x16xf32> to vector<64x16xbf16>
    %c0_14 = arith.constant 0 : index
    %c0_15 = arith.constant 0 : index
    %c0_16 = arith.constant 0 : index
    %31 = vector.load %arg5[%c0_14, %c0_15, %c0_16] : memref<1x64x16xbf16, #tpu.memory_space<vmem>>, vector<1x64x16xbf16>
    %32 = vector.shape_cast %31 : vector<1x64x16xbf16> to vector<64x16xbf16>
    %33 = vector.shape_cast %30 : vector<64x16xbf16> to vector<1x64x16xbf16>
    tpu.vector_store %arg5[%c0_14, %c0_15, %c0_16], %33 {strides = array<i32>} : memref<1x64x16xbf16, #tpu.memory_space<vmem>>, vector<1x64x16xbf16>,
    return
  }
  func.func @transform_0(%arg0: i32) -> (i32, i32, i32) {
    %c0_i32 = arith.constant 0 : i32
    %c0_i32_0 = arith.constant 0 : i32
    %c0_i32_1 = arith.constant 0 : i32
    return %arg0, %c0_i32, %c0_i32_0 : i32, i32, i32
  }
  func.func @transform_1(%arg0: i32) -> (i32, i32) {
    %c0_i32 = arith.constant 0 : i32
    %c0_i32_0 = arith.constant 0 : i32
    %c0_i32_1 = arith.constant 0 : i32
    return %c0_i32, %c0_i32_0 : i32, i32
  }
  func.func @transform_2(%arg0: i32) -> (i32, i32) {
    %c0_i32 = arith.constant 0 : i32
    %c0_i32_0 = arith.constant 0 : i32
    %c0_i32_1 = arith.constant 0 : i32
    return %c0_i32, %c0_i32_0 : i32, i32
  }
  func.func @transform_3(%arg0: i32) -> (i32, i32) {
    %c0_i32 = arith.constant 0 : i32
    %c0_i32_0 = arith.constant 0 : i32
    %c0_i32_1 = arith.constant 0 : i32
    return %c0_i32, %c0_i32_0 : i32, i32
  }
  func.func @transform_4(%arg0: i32) -> (i32, i32, i32) {
    %c0_i32 = arith.constant 0 : i32
    %c0_i32_0 = arith.constant 0 : i32
    %c0_i32_1 = arith.constant 0 : i32
    return %arg0, %c0_i32, %c0_i32_0 : i32, i32, i32
  }
}

module attributes {stable_mosaic.version = 11 : i64} {
  func.func @_conv_in_relu_kernel(%arg0: i32, %arg1: memref<1x1152x16xbf16, #tpu.memory_space<vmem>>, %arg2: memref<32x1152xbf16, #tpu.memory_space<vmem>>, %arg3: memref<32x1xf32, #tpu.memory_space<vmem>>, %arg4: memref<32x1xf32, #tpu.memory_space<vmem>>, %arg5: memref<1x32x16xbf16, #tpu.memory_space<vmem>>) attributes {dimension_semantics = [#tpu.dimension_semantics<parallel>], iteration_bounds = array<i64: 2>, scalar_prefetch = 0 : i64, scratch_operands = 0 : i64, tpu.core_type = #tpu.core_type<tc>, window_params = [{transform_indices = @transform_0, window_bounds = array<i64: 1, 1152, 16>}, {pipeline_mode = #tpu.pipeline_mode<synchronous>, transform_indices = @transform_1, window_bounds = array<i64: 32, 1152>}, {pipeline_mode = #tpu.pipeline_mode<synchronous>, transform_indices = @transform_2, window_bounds = array<i64: 32, 1>}, {pipeline_mode = #tpu.pipeline_mode<synchronous>, transform_indices = @transform_3, window_bounds = array<i64: 32, 1>}, {transform_indices = @transform_4, window_bounds = array<i64: 1, 32, 16>}]} {
    %c0 = arith.constant 0 : index
    %c0_0 = arith.constant 0 : index
    %0 = vector.load %arg2[%c0, %c0_0] : memref<32x1152xbf16, #tpu.memory_space<vmem>>, vector<32x1152xbf16>
    %c0_1 = arith.constant 0 : index
    %c0_2 = arith.constant 0 : index
    %c0_3 = arith.constant 0 : index
    %1 = vector.load %arg1[%c0_1, %c0_2, %c0_3] : memref<1x1152x16xbf16, #tpu.memory_space<vmem>>, vector<1x1152x16xbf16>
    %2 = vector.shape_cast %1 : vector<1x1152x16xbf16> to vector<1152x16xbf16>
    %cst = arith.constant dense<0.000000e+00> : vector<32x16xf32>
    %3 = tpu.matmul %0, %2, %cst {dimension_numbers = #tpu.dot_dimension_numbers<[1], [0], [0], [1], [0, 0, 1, 1], [], []>} : vector<32x1152xbf16>, vector<1152x16xbf16>, vector<32x16xf32> -> vector<32x16xf32>
    %cst_4 = arith.constant dense<0.000000e+00> : vector<32xf32>
    %4 = vector.multi_reduction <add>, %3, %cst_4 [1] : vector<32x16xf32> to vector<32xf32>
    %5 = vector.shape_cast %4 : vector<32xf32> to vector<32x1xf32>
    %cst_5 = arith.constant 1.600000e+01 : f32
    %6 = vector.broadcast %cst_5 : f32 to vector<32x1xf32>
    %7 = arith.divf %5, %6 : vector<32x1xf32>
    %8 = vector.broadcast %7 : vector<32x1xf32> to vector<32x16xf32>
    %9 = arith.subf %3, %8 : vector<32x16xf32>
    %10 = arith.mulf %9, %9 : vector<32x16xf32>
    %cst_6 = arith.constant dense<0.000000e+00> : vector<32xf32>
    %11 = vector.multi_reduction <add>, %10, %cst_6 [1] : vector<32x16xf32> to vector<32xf32>
    %12 = vector.shape_cast %11 : vector<32xf32> to vector<32x1xf32>
    %cst_7 = arith.constant 1.600000e+01 : f32
    %13 = vector.broadcast %cst_7 : f32 to vector<32x1xf32>
    %14 = arith.divf %12, %13 : vector<32x1xf32>
    %15 = vector.broadcast %7 : vector<32x1xf32> to vector<32x16xf32>
    %16 = arith.subf %3, %15 : vector<32x16xf32>
    %cst_8 = arith.constant 9.99999974E-6 : f32
    %17 = vector.broadcast %cst_8 : f32 to vector<32x1xf32>
    %18 = arith.addf %14, %17 : vector<32x1xf32>
    %19 = math.rsqrt %18 : vector<32x1xf32>
    %20 = vector.broadcast %19 : vector<32x1xf32> to vector<32x16xf32>
    %21 = arith.mulf %16, %20 : vector<32x16xf32>
    %c0_9 = arith.constant 0 : index
    %c0_10 = arith.constant 0 : index
    %22 = vector.load %arg3[%c0_9, %c0_10] : memref<32x1xf32, #tpu.memory_space<vmem>>, vector<32x1xf32>
    %23 = vector.broadcast %22 : vector<32x1xf32> to vector<32x16xf32>
    %24 = arith.mulf %21, %23 : vector<32x16xf32>
    %c0_11 = arith.constant 0 : index
    %c0_12 = arith.constant 0 : index
    %25 = vector.load %arg4[%c0_11, %c0_12] : memref<32x1xf32, #tpu.memory_space<vmem>>, vector<32x1xf32>
    %26 = vector.broadcast %25 : vector<32x1xf32> to vector<32x16xf32>
    %27 = arith.addf %24, %26 : vector<32x16xf32>
    %cst_13 = arith.constant 0.000000e+00 : f32
    %28 = vector.broadcast %cst_13 : f32 to vector<32x16xf32>
    %29 = arith.maximumf %27, %28 : vector<32x16xf32>
    %30 = arith.truncf %29 : vector<32x16xf32> to vector<32x16xbf16>
    %c0_14 = arith.constant 0 : index
    %c0_15 = arith.constant 0 : index
    %c0_16 = arith.constant 0 : index
    %31 = vector.load %arg5[%c0_14, %c0_15, %c0_16] : memref<1x32x16xbf16, #tpu.memory_space<vmem>>, vector<1x32x16xbf16>
    %32 = vector.shape_cast %31 : vector<1x32x16xbf16> to vector<32x16xbf16>
    %33 = vector.shape_cast %30 : vector<32x16xbf16> to vector<1x32x16xbf16>
    tpu.vector_store %arg5[%c0_14, %c0_15, %c0_16], %33 {strides = array<i32>} : memref<1x32x16xbf16, #tpu.memory_space<vmem>>, vector<1x32x16xbf16>,
    return
  }
  func.func @transform_0(%arg0: i32) -> (i32, i32, i32) {
    %c0_i32 = arith.constant 0 : i32
    %c0_i32_0 = arith.constant 0 : i32
    %c0_i32_1 = arith.constant 0 : i32
    return %arg0, %c0_i32, %c0_i32_0 : i32, i32, i32
  }
  func.func @transform_1(%arg0: i32) -> (i32, i32) {
    %c0_i32 = arith.constant 0 : i32
    %c0_i32_0 = arith.constant 0 : i32
    %c0_i32_1 = arith.constant 0 : i32
    return %c0_i32, %c0_i32_0 : i32, i32
  }
  func.func @transform_2(%arg0: i32) -> (i32, i32) {
    %c0_i32 = arith.constant 0 : i32
    %c0_i32_0 = arith.constant 0 : i32
    %c0_i32_1 = arith.constant 0 : i32
    return %c0_i32, %c0_i32_0 : i32, i32
  }
  func.func @transform_3(%arg0: i32) -> (i32, i32) {
    %c0_i32 = arith.constant 0 : i32
    %c0_i32_0 = arith.constant 0 : i32
    %c0_i32_1 = arith.constant 0 : i32
    return %c0_i32, %c0_i32_0 : i32, i32
  }
  func.func @transform_4(%arg0: i32) -> (i32, i32, i32) {
    %c0_i32 = arith.constant 0 : i32
    %c0_i32_0 = arith.constant 0 : i32
    %c0_i32_1 = arith.constant 0 : i32
    return %arg0, %c0_i32, %c0_i32_0 : i32, i32, i32
  }
}

module attributes {stable_mosaic.version = 11 : i64} {
  func.func @_conv_in_relu_kernel(%arg0: i32, %arg1: memref<1x576x64xbf16, #tpu.memory_space<vmem>>, %arg2: memref<16x576xbf16, #tpu.memory_space<vmem>>, %arg3: memref<16x1xf32, #tpu.memory_space<vmem>>, %arg4: memref<16x1xf32, #tpu.memory_space<vmem>>, %arg5: memref<1x16x64xbf16, #tpu.memory_space<vmem>>) attributes {dimension_semantics = [#tpu.dimension_semantics<parallel>], iteration_bounds = array<i64: 2>, scalar_prefetch = 0 : i64, scratch_operands = 0 : i64, tpu.core_type = #tpu.core_type<tc>, window_params = [{transform_indices = @transform_0, window_bounds = array<i64: 1, 576, 64>}, {pipeline_mode = #tpu.pipeline_mode<synchronous>, transform_indices = @transform_1, window_bounds = array<i64: 16, 576>}, {pipeline_mode = #tpu.pipeline_mode<synchronous>, transform_indices = @transform_2, window_bounds = array<i64: 16, 1>}, {pipeline_mode = #tpu.pipeline_mode<synchronous>, transform_indices = @transform_3, window_bounds = array<i64: 16, 1>}, {transform_indices = @transform_4, window_bounds = array<i64: 1, 16, 64>}]} {
    %c0 = arith.constant 0 : index
    %c0_0 = arith.constant 0 : index
    %0 = vector.load %arg2[%c0, %c0_0] : memref<16x576xbf16, #tpu.memory_space<vmem>>, vector<16x576xbf16>
    %c0_1 = arith.constant 0 : index
    %c0_2 = arith.constant 0 : index
    %c0_3 = arith.constant 0 : index
    %1 = vector.load %arg1[%c0_1, %c0_2, %c0_3] : memref<1x576x64xbf16, #tpu.memory_space<vmem>>, vector<1x576x64xbf16>
    %2 = vector.shape_cast %1 : vector<1x576x64xbf16> to vector<576x64xbf16>
    %cst = arith.constant dense<0.000000e+00> : vector<16x64xf32>
    %3 = tpu.matmul %0, %2, %cst {dimension_numbers = #tpu.dot_dimension_numbers<[1], [0], [0], [1], [0, 0, 1, 1], [], []>} : vector<16x576xbf16>, vector<576x64xbf16>, vector<16x64xf32> -> vector<16x64xf32>
    %cst_4 = arith.constant dense<0.000000e+00> : vector<16xf32>
    %4 = vector.multi_reduction <add>, %3, %cst_4 [1] : vector<16x64xf32> to vector<16xf32>
    %5 = vector.shape_cast %4 : vector<16xf32> to vector<16x1xf32>
    %cst_5 = arith.constant 6.400000e+01 : f32
    %6 = vector.broadcast %cst_5 : f32 to vector<16x1xf32>
    %7 = arith.divf %5, %6 : vector<16x1xf32>
    %8 = vector.broadcast %7 : vector<16x1xf32> to vector<16x64xf32>
    %9 = arith.subf %3, %8 : vector<16x64xf32>
    %10 = arith.mulf %9, %9 : vector<16x64xf32>
    %cst_6 = arith.constant dense<0.000000e+00> : vector<16xf32>
    %11 = vector.multi_reduction <add>, %10, %cst_6 [1] : vector<16x64xf32> to vector<16xf32>
    %12 = vector.shape_cast %11 : vector<16xf32> to vector<16x1xf32>
    %cst_7 = arith.constant 6.400000e+01 : f32
    %13 = vector.broadcast %cst_7 : f32 to vector<16x1xf32>
    %14 = arith.divf %12, %13 : vector<16x1xf32>
    %15 = vector.broadcast %7 : vector<16x1xf32> to vector<16x64xf32>
    %16 = arith.subf %3, %15 : vector<16x64xf32>
    %cst_8 = arith.constant 9.99999974E-6 : f32
    %17 = vector.broadcast %cst_8 : f32 to vector<16x1xf32>
    %18 = arith.addf %14, %17 : vector<16x1xf32>
    %19 = math.rsqrt %18 : vector<16x1xf32>
    %20 = vector.broadcast %19 : vector<16x1xf32> to vector<16x64xf32>
    %21 = arith.mulf %16, %20 : vector<16x64xf32>
    %c0_9 = arith.constant 0 : index
    %c0_10 = arith.constant 0 : index
    %22 = vector.load %arg3[%c0_9, %c0_10] : memref<16x1xf32, #tpu.memory_space<vmem>>, vector<16x1xf32>
    %23 = vector.broadcast %22 : vector<16x1xf32> to vector<16x64xf32>
    %24 = arith.mulf %21, %23 : vector<16x64xf32>
    %c0_11 = arith.constant 0 : index
    %c0_12 = arith.constant 0 : index
    %25 = vector.load %arg4[%c0_11, %c0_12] : memref<16x1xf32, #tpu.memory_space<vmem>>, vector<16x1xf32>
    %26 = vector.broadcast %25 : vector<16x1xf32> to vector<16x64xf32>
    %27 = arith.addf %24, %26 : vector<16x64xf32>
    %cst_13 = arith.constant 0.000000e+00 : f32
    %28 = vector.broadcast %cst_13 : f32 to vector<16x64xf32>
    %29 = arith.maximumf %27, %28 : vector<16x64xf32>
    %30 = arith.truncf %29 : vector<16x64xf32> to vector<16x64xbf16>
    %c0_14 = arith.constant 0 : index
    %c0_15 = arith.constant 0 : index
    %c0_16 = arith.constant 0 : index
    %31 = vector.load %arg5[%c0_14, %c0_15, %c0_16] : memref<1x16x64xbf16, #tpu.memory_space<vmem>>, vector<1x16x64xbf16>
    %32 = vector.shape_cast %31 : vector<1x16x64xbf16> to vector<16x64xbf16>
    %33 = vector.shape_cast %30 : vector<16x64xbf16> to vector<1x16x64xbf16>
    tpu.vector_store %arg5[%c0_14, %c0_15, %c0_16], %33 {strides = array<i32>} : memref<1x16x64xbf16, #tpu.memory_space<vmem>>, vector<1x16x64xbf16>,
    return
  }
  func.func @transform_0(%arg0: i32) -> (i32, i32, i32) {
    %c0_i32 = arith.constant 0 : i32
    %c0_i32_0 = arith.constant 0 : i32
    %c0_i32_1 = arith.constant 0 : i32
    return %arg0, %c0_i32, %c0_i32_0 : i32, i32, i32
  }
  func.func @transform_1(%arg0: i32) -> (i32, i32) {
    %c0_i32 = arith.constant 0 : i32
    %c0_i32_0 = arith.constant 0 : i32
    %c0_i32_1 = arith.constant 0 : i32
    return %c0_i32, %c0_i32_0 : i32, i32
  }
  func.func @transform_2(%arg0: i32) -> (i32, i32) {
    %c0_i32 = arith.constant 0 : i32
    %c0_i32_0 = arith.constant 0 : i32
    %c0_i32_1 = arith.constant 0 : i32
    return %c0_i32, %c0_i32_0 : i32, i32
  }
  func.func @transform_3(%arg0: i32) -> (i32, i32) {
    %c0_i32 = arith.constant 0 : i32
    %c0_i32_0 = arith.constant 0 : i32
    %c0_i32_1 = arith.constant 0 : i32
    return %c0_i32, %c0_i32_0 : i32, i32
  }
  func.func @transform_4(%arg0: i32) -> (i32, i32, i32) {
    %c0_i32 = arith.constant 0 : i32
    %c0_i32_0 = arith.constant 0 : i32
    %c0_i32_1 = arith.constant 0 : i32
    return %arg0, %c0_i32, %c0_i32_0 : i32, i32, i32
  }
}

module attributes {stable_mosaic.version = 11 : i64} {
  func.func @_conv_in_relu_kernel(%arg0: i32, %arg1: memref<1x288x256xbf16, #tpu.memory_space<vmem>>, %arg2: memref<8x288xbf16, #tpu.memory_space<vmem>>, %arg3: memref<8x1xf32, #tpu.memory_space<vmem>>, %arg4: memref<8x1xf32, #tpu.memory_space<vmem>>, %arg5: memref<1x8x256xbf16, #tpu.memory_space<vmem>>) attributes {dimension_semantics = [#tpu.dimension_semantics<parallel>], iteration_bounds = array<i64: 2>, scalar_prefetch = 0 : i64, scratch_operands = 0 : i64, tpu.core_type = #tpu.core_type<tc>, window_params = [{transform_indices = @transform_0, window_bounds = array<i64: 1, 288, 256>}, {pipeline_mode = #tpu.pipeline_mode<synchronous>, transform_indices = @transform_1, window_bounds = array<i64: 8, 288>}, {pipeline_mode = #tpu.pipeline_mode<synchronous>, transform_indices = @transform_2, window_bounds = array<i64: 8, 1>}, {pipeline_mode = #tpu.pipeline_mode<synchronous>, transform_indices = @transform_3, window_bounds = array<i64: 8, 1>}, {transform_indices = @transform_4, window_bounds = array<i64: 1, 8, 256>}]} {
    %c0 = arith.constant 0 : index
    %c0_0 = arith.constant 0 : index
    %0 = vector.load %arg2[%c0, %c0_0] : memref<8x288xbf16, #tpu.memory_space<vmem>>, vector<8x288xbf16>
    %c0_1 = arith.constant 0 : index
    %c0_2 = arith.constant 0 : index
    %c0_3 = arith.constant 0 : index
    %1 = vector.load %arg1[%c0_1, %c0_2, %c0_3] : memref<1x288x256xbf16, #tpu.memory_space<vmem>>, vector<1x288x256xbf16>
    %2 = vector.shape_cast %1 : vector<1x288x256xbf16> to vector<288x256xbf16>
    %cst = arith.constant dense<0.000000e+00> : vector<8x256xf32>
    %3 = tpu.matmul %0, %2, %cst {dimension_numbers = #tpu.dot_dimension_numbers<[1], [0], [0], [1], [0, 0, 1, 1], [], []>} : vector<8x288xbf16>, vector<288x256xbf16>, vector<8x256xf32> -> vector<8x256xf32>
    %cst_4 = arith.constant dense<0.000000e+00> : vector<8xf32>
    %4 = vector.multi_reduction <add>, %3, %cst_4 [1] : vector<8x256xf32> to vector<8xf32>
    %5 = vector.shape_cast %4 : vector<8xf32> to vector<8x1xf32>
    %cst_5 = arith.constant 2.560000e+02 : f32
    %6 = vector.broadcast %cst_5 : f32 to vector<8x1xf32>
    %7 = arith.divf %5, %6 : vector<8x1xf32>
    %8 = vector.broadcast %7 : vector<8x1xf32> to vector<8x256xf32>
    %9 = arith.subf %3, %8 : vector<8x256xf32>
    %10 = arith.mulf %9, %9 : vector<8x256xf32>
    %cst_6 = arith.constant dense<0.000000e+00> : vector<8xf32>
    %11 = vector.multi_reduction <add>, %10, %cst_6 [1] : vector<8x256xf32> to vector<8xf32>
    %12 = vector.shape_cast %11 : vector<8xf32> to vector<8x1xf32>
    %cst_7 = arith.constant 2.560000e+02 : f32
    %13 = vector.broadcast %cst_7 : f32 to vector<8x1xf32>
    %14 = arith.divf %12, %13 : vector<8x1xf32>
    %15 = vector.broadcast %7 : vector<8x1xf32> to vector<8x256xf32>
    %16 = arith.subf %3, %15 : vector<8x256xf32>
    %cst_8 = arith.constant 9.99999974E-6 : f32
    %17 = vector.broadcast %cst_8 : f32 to vector<8x1xf32>
    %18 = arith.addf %14, %17 : vector<8x1xf32>
    %19 = math.rsqrt %18 : vector<8x1xf32>
    %20 = vector.broadcast %19 : vector<8x1xf32> to vector<8x256xf32>
    %21 = arith.mulf %16, %20 : vector<8x256xf32>
    %c0_9 = arith.constant 0 : index
    %c0_10 = arith.constant 0 : index
    %22 = vector.load %arg3[%c0_9, %c0_10] : memref<8x1xf32, #tpu.memory_space<vmem>>, vector<8x1xf32>
    %23 = vector.broadcast %22 : vector<8x1xf32> to vector<8x256xf32>
    %24 = arith.mulf %21, %23 : vector<8x256xf32>
    %c0_11 = arith.constant 0 : index
    %c0_12 = arith.constant 0 : index
    %25 = vector.load %arg4[%c0_11, %c0_12] : memref<8x1xf32, #tpu.memory_space<vmem>>, vector<8x1xf32>
    %26 = vector.broadcast %25 : vector<8x1xf32> to vector<8x256xf32>
    %27 = arith.addf %24, %26 : vector<8x256xf32>
    %cst_13 = arith.constant 0.000000e+00 : f32
    %28 = vector.broadcast %cst_13 : f32 to vector<8x256xf32>
    %29 = arith.maximumf %27, %28 : vector<8x256xf32>
    %30 = arith.truncf %29 : vector<8x256xf32> to vector<8x256xbf16>
    %c0_14 = arith.constant 0 : index
    %c0_15 = arith.constant 0 : index
    %c0_16 = arith.constant 0 : index
    %31 = vector.load %arg5[%c0_14, %c0_15, %c0_16] : memref<1x8x256xbf16, #tpu.memory_space<vmem>>, vector<1x8x256xbf16>
    %32 = vector.shape_cast %31 : vector<1x8x256xbf16> to vector<8x256xbf16>
    %33 = vector.shape_cast %30 : vector<8x256xbf16> to vector<1x8x256xbf16>
    tpu.vector_store %arg5[%c0_14, %c0_15, %c0_16], %33 {strides = array<i32>} : memref<1x8x256xbf16, #tpu.memory_space<vmem>>, vector<1x8x256xbf16>,
    return
  }
  func.func @transform_0(%arg0: i32) -> (i32, i32, i32) {
    %c0_i32 = arith.constant 0 : i32
    %c0_i32_0 = arith.constant 0 : i32
    %c0_i32_1 = arith.constant 0 : i32
    return %arg0, %c0_i32, %c0_i32_0 : i32, i32, i32
  }
  func.func @transform_1(%arg0: i32) -> (i32, i32) {
    %c0_i32 = arith.constant 0 : i32
    %c0_i32_0 = arith.constant 0 : i32
    %c0_i32_1 = arith.constant 0 : i32
    return %c0_i32, %c0_i32_0 : i32, i32
  }
  func.func @transform_2(%arg0: i32) -> (i32, i32) {
    %c0_i32 = arith.constant 0 : i32
    %c0_i32_0 = arith.constant 0 : i32
    %c0_i32_1 = arith.constant 0 : i32
    return %c0_i32, %c0_i32_0 : i32, i32
  }
  func.func @transform_3(%arg0: i32) -> (i32, i32) {
    %c0_i32 = arith.constant 0 : i32
    %c0_i32_0 = arith.constant 0 : i32
    %c0_i32_1 = arith.constant 0 : i32
    return %c0_i32, %c0_i32_0 : i32, i32
  }
  func.func @transform_4(%arg0: i32) -> (i32, i32, i32) {
    %c0_i32 = arith.constant 0 : i32
    %c0_i32_0 = arith.constant 0 : i32
    %c0_i32_1 = arith.constant 0 : i32
    return %arg0, %c0_i32, %c0_i32_0 : i32, i32, i32
  }
}

module attributes {stable_mosaic.version = 11 : i64} {
  func.func @_ub4_attn_final_kernel(%arg0: i32, %arg1: memref<1x144x1024xbf16, #tpu.memory_space<vmem>>, %arg2: memref<4x144xbf16, #tpu.memory_space<vmem>>, %arg3: memref<4x1xf32, #tpu.memory_space<vmem>>, %arg4: memref<4x1xf32, #tpu.memory_space<vmem>>, %arg5: memref<4x1xf32, #tpu.memory_space<vmem>>, %arg6: memref<1x1xf32, #tpu.memory_space<vmem>>, %arg7: memref<1x1x1024xf32, #tpu.memory_space<vmem>>, %arg8: memref<1x1x1024xf32, #tpu.memory_space<vmem>>, %arg9: memref<1x1x1024xf32, #tpu.memory_space<vmem>>) attributes {dimension_semantics = [#tpu.dimension_semantics<parallel>], iteration_bounds = array<i64: 2>, scalar_prefetch = 0 : i64, scratch_operands = 0 : i64, tpu.core_type = #tpu.core_type<tc>, window_params = [{transform_indices = @transform_0, window_bounds = array<i64: 1, 144, 1024>}, {pipeline_mode = #tpu.pipeline_mode<synchronous>, transform_indices = @transform_1, window_bounds = array<i64: 4, 144>}, {pipeline_mode = #tpu.pipeline_mode<synchronous>, transform_indices = @transform_2, window_bounds = array<i64: 4, 1>}, {pipeline_mode = #tpu.pipeline_mode<synchronous>, transform_indices = @transform_3, window_bounds = array<i64: 4, 1>}, {pipeline_mode = #tpu.pipeline_mode<synchronous>, transform_indices = @transform_4, window_bounds = array<i64: 4, 1>}, {pipeline_mode = #tpu.pipeline_mode<synchronous>, transform_indices = @transform_5, window_bounds = array<i64: 1, 1>}, {transform_indices = @transform_6, window_bounds = array<i64: 1, 1, 1024>}, {transform_indices = @transform_7, window_bounds = array<i64: 1, 1, 1024>}, {transform_indices = @transform_8, window_bounds = array<i64: 1, 1, 1024>}]} {
    %c0 = arith.constant 0 : index
    %c0_0 = arith.constant 0 : index
    %0 = vector.load %arg2[%c0, %c0_0] : memref<4x144xbf16, #tpu.memory_space<vmem>>, vector<4x144xbf16>
    %c0_1 = arith.constant 0 : index
    %c0_2 = arith.constant 0 : index
    %c0_3 = arith.constant 0 : index
    %1 = vector.load %arg1[%c0_1, %c0_2, %c0_3] : memref<1x144x1024xbf16, #tpu.memory_space<vmem>>, vector<1x144x1024xbf16>
    %2 = vector.shape_cast %1 : vector<1x144x1024xbf16> to vector<144x1024xbf16>
    %cst = arith.constant dense<0.000000e+00> : vector<4x1024xf32>
    %3 = tpu.matmul %0, %2, %cst {dimension_numbers = #tpu.dot_dimension_numbers<[1], [0], [0], [1], [0, 0, 1, 1], [], []>} : vector<4x144xbf16>, vector<144x1024xbf16>, vector<4x1024xf32> -> vector<4x1024xf32>
    %cst_4 = arith.constant dense<0.000000e+00> : vector<4xf32>
    %4 = vector.multi_reduction <add>, %3, %cst_4 [1] : vector<4x1024xf32> to vector<4xf32>
    %5 = vector.shape_cast %4 : vector<4xf32> to vector<4x1xf32>
    %cst_5 = arith.constant 1.024000e+03 : f32
    %6 = vector.broadcast %cst_5 : f32 to vector<4x1xf32>
    %7 = arith.divf %5, %6 : vector<4x1xf32>
    %8 = vector.broadcast %7 : vector<4x1xf32> to vector<4x1024xf32>
    %9 = arith.subf %3, %8 : vector<4x1024xf32>
    %10 = arith.mulf %9, %9 : vector<4x1024xf32>
    %cst_6 = arith.constant dense<0.000000e+00> : vector<4xf32>
    %11 = vector.multi_reduction <add>, %10, %cst_6 [1] : vector<4x1024xf32> to vector<4xf32>
    %12 = vector.shape_cast %11 : vector<4xf32> to vector<4x1xf32>
    %cst_7 = arith.constant 1.024000e+03 : f32
    %13 = vector.broadcast %cst_7 : f32 to vector<4x1xf32>
    %14 = arith.divf %12, %13 : vector<4x1xf32>
    %15 = vector.broadcast %7 : vector<4x1xf32> to vector<4x1024xf32>
    %16 = arith.subf %3, %15 : vector<4x1024xf32>
    %cst_8 = arith.constant 9.99999974E-6 : f32
    %17 = vector.broadcast %cst_8 : f32 to vector<4x1xf32>
    %18 = arith.addf %14, %17 : vector<4x1xf32>
    %19 = math.rsqrt %18 : vector<4x1xf32>
    %20 = vector.broadcast %19 : vector<4x1xf32> to vector<4x1024xf32>
    %21 = arith.mulf %16, %20 : vector<4x1024xf32>
    %c0_9 = arith.constant 0 : index
    %c0_10 = arith.constant 0 : index
    %22 = vector.load %arg3[%c0_9, %c0_10] : memref<4x1xf32, #tpu.memory_space<vmem>>, vector<4x1xf32>
    %23 = vector.broadcast %22 : vector<4x1xf32> to vector<4x1024xf32>
    %24 = arith.mulf %21, %23 : vector<4x1024xf32>
    %c0_11 = arith.constant 0 : index
    %c0_12 = arith.constant 0 : index
    %25 = vector.load %arg4[%c0_11, %c0_12] : memref<4x1xf32, #tpu.memory_space<vmem>>, vector<4x1xf32>
    %26 = vector.broadcast %25 : vector<4x1xf32> to vector<4x1024xf32>
    %27 = arith.addf %24, %26 : vector<4x1024xf32>
    %cst_13 = arith.constant 0.000000e+00 : f32
    %28 = vector.broadcast %cst_13 : f32 to vector<4x1024xf32>
    %29 = arith.maximumf %27, %28 : vector<4x1024xf32>
    %c0_14 = arith.constant 0 : index
    %c0_15 = arith.constant 0 : index
    %30 = vector.load %arg5[%c0_14, %c0_15] : memref<4x1xf32, #tpu.memory_space<vmem>>, vector<4x1xf32>
    %31 = vector.broadcast %30 : vector<4x1xf32> to vector<4x1024xf32>
    %32 = arith.mulf %29, %31 : vector<4x1024xf32>
    %cst_16 = arith.constant dense<0.000000e+00> : vector<1024xf32>
    %33 = vector.multi_reduction <add>, %32, %cst_16 [0] : vector<4x1024xf32> to vector<1024xf32>
    %34 = vector.shape_cast %33 : vector<1024xf32> to vector<1x1024xf32>
    %c0_17 = arith.constant 0 : index
    %c0_18 = arith.constant 0 : index
    %35 = vector.load %arg6[%c0_17, %c0_18] : memref<1x1xf32, #tpu.memory_space<vmem>>, vector<1x1xf32>
    %36 = vector.broadcast %35 : vector<1x1xf32> to vector<1x1024xf32>
    %37 = arith.addf %34, %36 : vector<1x1024xf32>
    %c0_19 = arith.constant 0 : index
    %c0_20 = arith.constant 0 : index
    %c0_21 = arith.constant 0 : index
    %38 = vector.load %arg7[%c0_19, %c0_20, %c0_21] : memref<1x1x1024xf32, #tpu.memory_space<vmem>>, vector<1x1x1024xf32>
    %39 = vector.shape_cast %38 : vector<1x1x1024xf32> to vector<1x1024xf32>
    %cst_22 = arith.constant 0.000000e+00 : f32
    %40 = vector.broadcast %cst_22 : f32 to vector<1x1024xf32>
    %41 = arith.minimumf %37, %40 : vector<1x1024xf32>
    %42 = math.absf %37 : vector<1x1024xf32>
    %cst_23 = arith.constant 0.000000e+00 : f32
    %43 = vector.broadcast %cst_23 : f32 to vector<1x1024xf32>
    %44 = arith.subf %43, %42 : vector<1x1024xf32>
    %45 = math.exp %44 : vector<1x1024xf32>
    %46 = math.log1p %45 : vector<1x1024xf32>
    %47 = arith.subf %41, %46 : vector<1x1024xf32>
    %48 = arith.addf %39, %47 : vector<1x1024xf32>
    %c0_24 = arith.constant 0 : index
    %c0_25 = arith.constant 0 : index
    %c0_26 = arith.constant 0 : index
    %49 = vector.load %arg9[%c0_24, %c0_25, %c0_26] : memref<1x1x1024xf32, #tpu.memory_space<vmem>>, vector<1x1x1024xf32>
    %50 = vector.shape_cast %49 : vector<1x1x1024xf32> to vector<1x1024xf32>
    %51 = vector.shape_cast %48 : vector<1x1024xf32> to vector<1x1x1024xf32>
    tpu.vector_store %arg9[%c0_24, %c0_25, %c0_26], %51 {strides = array<i32>} : memref<1x1x1024xf32, #tpu.memory_space<vmem>>, vector<1x1x1024xf32>,
    %52 = arith.addf %39, %47 : vector<1x1024xf32>
    %53 = arith.subf %52, %37 : vector<1x1024xf32>
    %c0_27 = arith.constant 0 : index
    %c0_28 = arith.constant 0 : index
    %c0_29 = arith.constant 0 : index
    %54 = vector.load %arg8[%c0_27, %c0_28, %c0_29] : memref<1x1x1024xf32, #tpu.memory_space<vmem>>, vector<1x1x1024xf32>
    %55 = vector.shape_cast %54 : vector<1x1x1024xf32> to vector<1x1024xf32>
    %56 = vector.shape_cast %53 : vector<1x1024xf32> to vector<1x1x1024xf32>
    tpu.vector_store %arg8[%c0_27, %c0_28, %c0_29], %56 {strides = array<i32>} : memref<1x1x1024xf32, #tpu.memory_space<vmem>>, vector<1x1x1024xf32>,
    return
  }
  func.func @transform_0(%arg0: i32) -> (i32, i32, i32) {
    %c0_i32 = arith.constant 0 : i32
    %c0_i32_0 = arith.constant 0 : i32
    %c0_i32_1 = arith.constant 0 : i32
    return %arg0, %c0_i32, %c0_i32_0 : i32, i32, i32
  }
  func.func @transform_1(%arg0: i32) -> (i32, i32) {
    %c0_i32 = arith.constant 0 : i32
    %c0_i32_0 = arith.constant 0 : i32
    %c0_i32_1 = arith.constant 0 : i32
    return %c0_i32, %c0_i32_0 : i32, i32
  }
  func.func @transform_2(%arg0: i32) -> (i32, i32) {
    %c0_i32 = arith.constant 0 : i32
    %c0_i32_0 = arith.constant 0 : i32
    %c0_i32_1 = arith.constant 0 : i32
    return %c0_i32, %c0_i32_0 : i32, i32
  }
  func.func @transform_3(%arg0: i32) -> (i32, i32) {
    %c0_i32 = arith.constant 0 : i32
    %c0_i32_0 = arith.constant 0 : i32
    %c0_i32_1 = arith.constant 0 : i32
    return %c0_i32, %c0_i32_0 : i32, i32
  }
  func.func @transform_4(%arg0: i32) -> (i32, i32) {
    %c0_i32 = arith.constant 0 : i32
    %c0_i32_0 = arith.constant 0 : i32
    %c0_i32_1 = arith.constant 0 : i32
    return %c0_i32, %c0_i32_0 : i32, i32
  }
  func.func @transform_5(%arg0: i32) -> (i32, i32) {
    %c0_i32 = arith.constant 0 : i32
    %c0_i32_0 = arith.constant 0 : i32
    %c0_i32_1 = arith.constant 0 : i32
    return %c0_i32, %c0_i32_0 : i32, i32
  }
  func.func @transform_6(%arg0: i32) -> (i32, i32, i32) {
    %c0_i32 = arith.constant 0 : i32
    %c0_i32_0 = arith.constant 0 : i32
    %c0_i32_1 = arith.constant 0 : i32
    return %arg0, %c0_i32, %c0_i32_0 : i32, i32, i32
  }
  func.func @transform_7(%arg0: i32) -> (i32, i32, i32) {
    %c0_i32 = arith.constant 0 : i32
    %c0_i32_0 = arith.constant 0 : i32
    %c0_i32_1 = arith.constant 0 : i32
    return %arg0, %c0_i32, %c0_i32_0 : i32, i32, i32
  }
  func.func @transform_8(%arg0: i32) -> (i32, i32, i32) {
    %c0_i32 = arith.constant 0 : i32
    %c0_i32_0 = arith.constant 0 : i32
    %c0_i32_1 = arith.constant 0 : i32
    return %arg0, %c0_i32, %c0_i32_0 : i32, i32, i32
  }
}

module attributes {stable_mosaic.version = 11 : i64} {
  func.func @_tconv_chain_kernel(%arg0: i32, %arg1: memref<1x36x256xbf16, #tpu.memory_space<vmem>>, %arg2: memref<16x36xbf16, #tpu.memory_space<vmem>>, %arg3: memref<16x1xf32, #tpu.memory_space<vmem>>, %arg4: memref<1x16x256xbf16, #tpu.memory_space<vmem>>) attributes {dimension_semantics = [#tpu.dimension_semantics<parallel>], iteration_bounds = array<i64: 6>, scalar_prefetch = 0 : i64, scratch_operands = 0 : i64, tpu.core_type = #tpu.core_type<tc>, window_params = [{transform_indices = @transform_0, window_bounds = array<i64: 1, 36, 256>}, {pipeline_mode = #tpu.pipeline_mode<synchronous>, transform_indices = @transform_1, window_bounds = array<i64: 16, 36>}, {pipeline_mode = #tpu.pipeline_mode<synchronous>, transform_indices = @transform_2, window_bounds = array<i64: 16, 1>}, {transform_indices = @transform_3, window_bounds = array<i64: 1, 16, 256>}]} {
    %c0 = arith.constant 0 : index
    %c0_0 = arith.constant 0 : index
    %c0_1 = arith.constant 0 : index
    %0 = vector.load %arg1[%c0, %c0_0, %c0_1] : memref<1x36x256xbf16, #tpu.memory_space<vmem>>, vector<1x36x256xbf16>
    %1 = vector.shape_cast %0 : vector<1x36x256xbf16> to vector<36x256xbf16>
    %c0_2 = arith.constant 0 : index
    %c0_3 = arith.constant 0 : index
    %2 = vector.load %arg2[%c0_2, %c0_3] : memref<16x36xbf16, #tpu.memory_space<vmem>>, vector<16x36xbf16>
    %c0_4 = arith.constant 0 : index
    %c0_5 = arith.constant 0 : index
    %3 = vector.load %arg3[%c0_4, %c0_5] : memref<16x1xf32, #tpu.memory_space<vmem>>, vector<16x1xf32>
    %cst = arith.constant dense<0.000000e+00> : vector<16x256xf32>
    %4 = tpu.matmul %2, %1, %cst {dimension_numbers = #tpu.dot_dimension_numbers<[1], [0], [0], [1], [0, 0, 1, 1], [], []>} : vector<16x36xbf16>, vector<36x256xbf16>, vector<16x256xf32> -> vector<16x256xf32>
    %5 = vector.broadcast %3 : vector<16x1xf32> to vector<16x256xf32>
    %6 = arith.addf %4, %5 : vector<16x256xf32>
    %cst_6 = arith.constant 0.000000e+00 : f32
    %7 = vector.broadcast %cst_6 : f32 to vector<16x256xf32>
    %8 = arith.maximumf %6, %7 : vector<16x256xf32>
    %9 = arith.truncf %8 : vector<16x256xf32> to vector<16x256xbf16>
    %c0_7 = arith.constant 0 : index
    %c0_8 = arith.constant 0 : index
    %c0_9 = arith.constant 0 : index
    %10 = vector.load %arg4[%c0_7, %c0_8, %c0_9] : memref<1x16x256xbf16, #tpu.memory_space<vmem>>, vector<1x16x256xbf16>
    %11 = vector.shape_cast %10 : vector<1x16x256xbf16> to vector<16x256xbf16>
    %12 = vector.shape_cast %9 : vector<16x256xbf16> to vector<1x16x256xbf16>
    tpu.vector_store %arg4[%c0_7, %c0_8, %c0_9], %12 {strides = array<i32>} : memref<1x16x256xbf16, #tpu.memory_space<vmem>>, vector<1x16x256xbf16>,
    return
  }
  func.func @transform_0(%arg0: i32) -> (i32, i32, i32) {
    %c0_i32 = arith.constant 0 : i32
    %c0_i32_0 = arith.constant 0 : i32
    %c0_i32_1 = arith.constant 0 : i32
    return %arg0, %c0_i32, %c0_i32_0 : i32, i32, i32
  }
  func.func @transform_1(%arg0: i32) -> (i32, i32) {
    %c0_i32 = arith.constant 0 : i32
    %c0_i32_0 = arith.constant 0 : i32
    %c0_i32_1 = arith.constant 0 : i32
    return %c0_i32, %c0_i32_0 : i32, i32
  }
  func.func @transform_2(%arg0: i32) -> (i32, i32) {
    %c0_i32 = arith.constant 0 : i32
    %c0_i32_0 = arith.constant 0 : i32
    %c0_i32_1 = arith.constant 0 : i32
    return %c0_i32, %c0_i32_0 : i32, i32
  }
  func.func @transform_3(%arg0: i32) -> (i32, i32, i32) {
    %c0_i32 = arith.constant 0 : i32
    %c0_i32_0 = arith.constant 0 : i32
    %c0_i32_1 = arith.constant 0 : i32
    return %arg0, %c0_i32, %c0_i32_0 : i32, i32, i32
  }
}

module attributes {stable_mosaic.version = 11 : i64} {
  func.func @_tconv_chain_kernel(%arg0: i32, %arg1: memref<1x144x64xbf16, #tpu.memory_space<vmem>>, %arg2: memref<32x144xbf16, #tpu.memory_space<vmem>>, %arg3: memref<32x1xf32, #tpu.memory_space<vmem>>, %arg4: memref<1x32x64xbf16, #tpu.memory_space<vmem>>) attributes {dimension_semantics = [#tpu.dimension_semantics<parallel>], iteration_bounds = array<i64: 6>, scalar_prefetch = 0 : i64, scratch_operands = 0 : i64, tpu.core_type = #tpu.core_type<tc>, window_params = [{transform_indices = @transform_0, window_bounds = array<i64: 1, 144, 64>}, {pipeline_mode = #tpu.pipeline_mode<synchronous>, transform_indices = @transform_1, window_bounds = array<i64: 32, 144>}, {pipeline_mode = #tpu.pipeline_mode<synchronous>, transform_indices = @transform_2, window_bounds = array<i64: 32, 1>}, {transform_indices = @transform_3, window_bounds = array<i64: 1, 32, 64>}]} {
    %c0 = arith.constant 0 : index
    %c0_0 = arith.constant 0 : index
    %c0_1 = arith.constant 0 : index
    %0 = vector.load %arg1[%c0, %c0_0, %c0_1] : memref<1x144x64xbf16, #tpu.memory_space<vmem>>, vector<1x144x64xbf16>
    %1 = vector.shape_cast %0 : vector<1x144x64xbf16> to vector<144x64xbf16>
    %c0_2 = arith.constant 0 : index
    %c0_3 = arith.constant 0 : index
    %2 = vector.load %arg2[%c0_2, %c0_3] : memref<32x144xbf16, #tpu.memory_space<vmem>>, vector<32x144xbf16>
    %c0_4 = arith.constant 0 : index
    %c0_5 = arith.constant 0 : index
    %3 = vector.load %arg3[%c0_4, %c0_5] : memref<32x1xf32, #tpu.memory_space<vmem>>, vector<32x1xf32>
    %cst = arith.constant dense<0.000000e+00> : vector<32x64xf32>
    %4 = tpu.matmul %2, %1, %cst {dimension_numbers = #tpu.dot_dimension_numbers<[1], [0], [0], [1], [0, 0, 1, 1], [], []>} : vector<32x144xbf16>, vector<144x64xbf16>, vector<32x64xf32> -> vector<32x64xf32>
    %5 = vector.broadcast %3 : vector<32x1xf32> to vector<32x64xf32>
    %6 = arith.addf %4, %5 : vector<32x64xf32>
    %cst_6 = arith.constant 0.000000e+00 : f32
    %7 = vector.broadcast %cst_6 : f32 to vector<32x64xf32>
    %8 = arith.maximumf %6, %7 : vector<32x64xf32>
    %9 = arith.truncf %8 : vector<32x64xf32> to vector<32x64xbf16>
    %c0_7 = arith.constant 0 : index
    %c0_8 = arith.constant 0 : index
    %c0_9 = arith.constant 0 : index
    %10 = vector.load %arg4[%c0_7, %c0_8, %c0_9] : memref<1x32x64xbf16, #tpu.memory_space<vmem>>, vector<1x32x64xbf16>
    %11 = vector.shape_cast %10 : vector<1x32x64xbf16> to vector<32x64xbf16>
    %12 = vector.shape_cast %9 : vector<32x64xbf16> to vector<1x32x64xbf16>
    tpu.vector_store %arg4[%c0_7, %c0_8, %c0_9], %12 {strides = array<i32>} : memref<1x32x64xbf16, #tpu.memory_space<vmem>>, vector<1x32x64xbf16>,
    return
  }
  func.func @transform_0(%arg0: i32) -> (i32, i32, i32) {
    %c0_i32 = arith.constant 0 : i32
    %c0_i32_0 = arith.constant 0 : i32
    %c0_i32_1 = arith.constant 0 : i32
    return %arg0, %c0_i32, %c0_i32_0 : i32, i32, i32
  }
  func.func @transform_1(%arg0: i32) -> (i32, i32) {
    %c0_i32 = arith.constant 0 : i32
    %c0_i32_0 = arith.constant 0 : i32
    %c0_i32_1 = arith.constant 0 : i32
    return %c0_i32, %c0_i32_0 : i32, i32
  }
  func.func @transform_2(%arg0: i32) -> (i32, i32) {
    %c0_i32 = arith.constant 0 : i32
    %c0_i32_0 = arith.constant 0 : i32
    %c0_i32_1 = arith.constant 0 : i32
    return %c0_i32, %c0_i32_0 : i32, i32
  }
  func.func @transform_3(%arg0: i32) -> (i32, i32, i32) {
    %c0_i32 = arith.constant 0 : i32
    %c0_i32_0 = arith.constant 0 : i32
    %c0_i32_1 = arith.constant 0 : i32
    return %arg0, %c0_i32, %c0_i32_0 : i32, i32, i32
  }
}

module attributes {stable_mosaic.version = 11 : i64} {
  func.func @_tconv_chain_kernel(%arg0: i32, %arg1: memref<1x288x16xbf16, #tpu.memory_space<vmem>>, %arg2: memref<32x288xbf16, #tpu.memory_space<vmem>>, %arg3: memref<32x1xf32, #tpu.memory_space<vmem>>, %arg4: memref<1x32x16xbf16, #tpu.memory_space<vmem>>) attributes {dimension_semantics = [#tpu.dimension_semantics<parallel>], iteration_bounds = array<i64: 6>, scalar_prefetch = 0 : i64, scratch_operands = 0 : i64, tpu.core_type = #tpu.core_type<tc>, window_params = [{transform_indices = @transform_0, window_bounds = array<i64: 1, 288, 16>}, {pipeline_mode = #tpu.pipeline_mode<synchronous>, transform_indices = @transform_1, window_bounds = array<i64: 32, 288>}, {pipeline_mode = #tpu.pipeline_mode<synchronous>, transform_indices = @transform_2, window_bounds = array<i64: 32, 1>}, {transform_indices = @transform_3, window_bounds = array<i64: 1, 32, 16>}]} {
    %c0 = arith.constant 0 : index
    %c0_0 = arith.constant 0 : index
    %c0_1 = arith.constant 0 : index
    %0 = vector.load %arg1[%c0, %c0_0, %c0_1] : memref<1x288x16xbf16, #tpu.memory_space<vmem>>, vector<1x288x16xbf16>
    %1 = vector.shape_cast %0 : vector<1x288x16xbf16> to vector<288x16xbf16>
    %c0_2 = arith.constant 0 : index
    %c0_3 = arith.constant 0 : index
    %2 = vector.load %arg2[%c0_2, %c0_3] : memref<32x288xbf16, #tpu.memory_space<vmem>>, vector<32x288xbf16>
    %c0_4 = arith.constant 0 : index
    %c0_5 = arith.constant 0 : index
    %3 = vector.load %arg3[%c0_4, %c0_5] : memref<32x1xf32, #tpu.memory_space<vmem>>, vector<32x1xf32>
    %cst = arith.constant dense<0.000000e+00> : vector<32x16xf32>
    %4 = tpu.matmul %2, %1, %cst {dimension_numbers = #tpu.dot_dimension_numbers<[1], [0], [0], [1], [0, 0, 1, 1], [], []>} : vector<32x288xbf16>, vector<288x16xbf16>, vector<32x16xf32> -> vector<32x16xf32>
    %5 = vector.broadcast %3 : vector<32x1xf32> to vector<32x16xf32>
    %6 = arith.addf %4, %5 : vector<32x16xf32>
    %cst_6 = arith.constant 0.000000e+00 : f32
    %7 = vector.broadcast %cst_6 : f32 to vector<32x16xf32>
    %8 = arith.maximumf %6, %7 : vector<32x16xf32>
    %9 = arith.truncf %8 : vector<32x16xf32> to vector<32x16xbf16>
    %c0_7 = arith.constant 0 : index
    %c0_8 = arith.constant 0 : index
    %c0_9 = arith.constant 0 : index
    %10 = vector.load %arg4[%c0_7, %c0_8, %c0_9] : memref<1x32x16xbf16, #tpu.memory_space<vmem>>, vector<1x32x16xbf16>
    %11 = vector.shape_cast %10 : vector<1x32x16xbf16> to vector<32x16xbf16>
    %12 = vector.shape_cast %9 : vector<32x16xbf16> to vector<1x32x16xbf16>
    tpu.vector_store %arg4[%c0_7, %c0_8, %c0_9], %12 {strides = array<i32>} : memref<1x32x16xbf16, #tpu.memory_space<vmem>>, vector<1x32x16xbf16>,
    return
  }
  func.func @transform_0(%arg0: i32) -> (i32, i32, i32) {
    %c0_i32 = arith.constant 0 : i32
    %c0_i32_0 = arith.constant 0 : i32
    %c0_i32_1 = arith.constant 0 : i32
    return %arg0, %c0_i32, %c0_i32_0 : i32, i32, i32
  }
  func.func @transform_1(%arg0: i32) -> (i32, i32) {
    %c0_i32 = arith.constant 0 : i32
    %c0_i32_0 = arith.constant 0 : i32
    %c0_i32_1 = arith.constant 0 : i32
    return %c0_i32, %c0_i32_0 : i32, i32
  }
  func.func @transform_2(%arg0: i32) -> (i32, i32) {
    %c0_i32 = arith.constant 0 : i32
    %c0_i32_0 = arith.constant 0 : i32
    %c0_i32_1 = arith.constant 0 : i32
    return %c0_i32, %c0_i32_0 : i32, i32
  }
  func.func @transform_3(%arg0: i32) -> (i32, i32, i32) {
    %c0_i32 = arith.constant 0 : i32
    %c0_i32_0 = arith.constant 0 : i32
    %c0_i32_1 = arith.constant 0 : i32
    return %arg0, %c0_i32, %c0_i32_0 : i32, i32, i32
  }
}

module attributes {stable_mosaic.version = 11 : i64} {
  func.func @_chain_kernel(%arg0: i32, %arg1: memref<6x512xbf16, #tpu.memory_space<vmem>>, %arg2: memref<512x128xbf16, #tpu.memory_space<vmem>>, %arg3: memref<1x128xf32, #tpu.memory_space<vmem>>, %arg4: memref<128x32xbf16, #tpu.memory_space<vmem>>, %arg5: memref<1x32xf32, #tpu.memory_space<vmem>>, %arg6: memref<6x32xf32, #tpu.memory_space<vmem>>) attributes {dimension_semantics = [#tpu.dimension_semantics<arbitrary>], iteration_bounds = array<i64: 1>, scalar_prefetch = 0 : i64, scratch_operands = 0 : i64, tpu.core_type = #tpu.core_type<tc>, window_params = [{pipeline_mode = #tpu.pipeline_mode<synchronous>, transform_indices = @transform_0, window_bounds = array<i64: 6, 512>}, {pipeline_mode = #tpu.pipeline_mode<synchronous>, transform_indices = @transform_1, window_bounds = array<i64: 512, 128>}, {pipeline_mode = #tpu.pipeline_mode<synchronous>, transform_indices = @transform_2, window_bounds = array<i64: 1, 128>}, {pipeline_mode = #tpu.pipeline_mode<synchronous>, transform_indices = @transform_3, window_bounds = array<i64: 128, 32>}, {pipeline_mode = #tpu.pipeline_mode<synchronous>, transform_indices = @transform_4, window_bounds = array<i64: 1, 32>}, {pipeline_mode = #tpu.pipeline_mode<synchronous>, transform_indices = @transform_5, window_bounds = array<i64: 6, 32>}]} {
    %c0 = arith.constant 0 : index
    %c0_0 = arith.constant 0 : index
    %0 = vector.load %arg1[%c0, %c0_0] : memref<6x512xbf16, #tpu.memory_space<vmem>>, vector<6x512xbf16>
    %c0_1 = arith.constant 0 : index
    %c0_2 = arith.constant 0 : index
    %1 = vector.load %arg2[%c0_1, %c0_2] : memref<512x128xbf16, #tpu.memory_space<vmem>>, vector<512x128xbf16>
    %c0_3 = arith.constant 0 : index
    %c0_4 = arith.constant 0 : index
    %2 = vector.load %arg3[%c0_3, %c0_4] : memref<1x128xf32, #tpu.memory_space<vmem>>, vector<1x128xf32>
    %cst = arith.constant dense<0.000000e+00> : vector<6x128xf32>
    %3 = tpu.matmul %0, %1, %cst {dimension_numbers = #tpu.dot_dimension_numbers<[1], [0], [0], [1], [0, 0, 1, 1], [], []>} : vector<6x512xbf16>, vector<512x128xbf16>, vector<6x128xf32> -> vector<6x128xf32>
    %4 = vector.broadcast %2 : vector<1x128xf32> to vector<6x128xf32>
    %5 = arith.addf %3, %4 : vector<6x128xf32>
    %c0_5 = arith.constant 0 : index
    %c0_6 = arith.constant 0 : index
    %6 = vector.load %arg4[%c0_5, %c0_6] : memref<128x32xbf16, #tpu.memory_space<vmem>>, vector<128x32xbf16>
    %c0_7 = arith.constant 0 : index
    %c0_8 = arith.constant 0 : index
    %7 = vector.load %arg5[%c0_7, %c0_8] : memref<1x32xf32, #tpu.memory_space<vmem>>, vector<1x32xf32>
    %8 = arith.truncf %5 : vector<6x128xf32> to vector<6x128xbf16>
    %cst_9 = arith.constant dense<0.000000e+00> : vector<6x32xf32>
    %9 = tpu.matmul %8, %6, %cst_9 {dimension_numbers = #tpu.dot_dimension_numbers<[1], [0], [0], [1], [0, 0, 1, 1], [], []>} : vector<6x128xbf16>, vector<128x32xbf16>, vector<6x32xf32> -> vector<6x32xf32>
    %10 = vector.broadcast %7 : vector<1x32xf32> to vector<6x32xf32>
    %11 = arith.addf %9, %10 : vector<6x32xf32>
    %c0_10 = arith.constant 0 : index
    %c0_11 = arith.constant 0 : index
    %12 = vector.load %arg6[%c0_10, %c0_11] : memref<6x32xf32, #tpu.memory_space<vmem>>, vector<6x32xf32>
    tpu.vector_store %arg6[%c0_10, %c0_11], %11 {strides = array<i32>} : memref<6x32xf32, #tpu.memory_space<vmem>>, vector<6x32xf32>,
    return
  }
  func.func @transform_0(%arg0: i32) -> (i32, i32) {
    %c0_i32 = arith.constant 0 : i32
    %c0_i32_0 = arith.constant 0 : i32
    %c0_i32_1 = arith.constant 0 : i32
    return %c0_i32, %c0_i32_0 : i32, i32
  }
  func.func @transform_1(%arg0: i32) -> (i32, i32) {
    %c0_i32 = arith.constant 0 : i32
    %c0_i32_0 = arith.constant 0 : i32
    %c0_i32_1 = arith.constant 0 : i32
    return %c0_i32, %c0_i32_0 : i32, i32
  }
  func.func @transform_2(%arg0: i32) -> (i32, i32) {
    %c0_i32 = arith.constant 0 : i32
    %c0_i32_0 = arith.constant 0 : i32
    %c0_i32_1 = arith.constant 0 : i32
    return %c0_i32, %c0_i32_0 : i32, i32
  }
  func.func @transform_3(%arg0: i32) -> (i32, i32) {
    %c0_i32 = arith.constant 0 : i32
    %c0_i32_0 = arith.constant 0 : i32
    %c0_i32_1 = arith.constant 0 : i32
    return %c0_i32, %c0_i32_0 : i32, i32
  }
  func.func @transform_4(%arg0: i32) -> (i32, i32) {
    %c0_i32 = arith.constant 0 : i32
    %c0_i32_0 = arith.constant 0 : i32
    %c0_i32_1 = arith.constant 0 : i32
    return %c0_i32, %c0_i32_0 : i32, i32
  }
  func.func @transform_5(%arg0: i32) -> (i32, i32) {
    %c0_i32 = arith.constant 0 : i32
    %c0_i32_0 = arith.constant 0 : i32
    %c0_i32_1 = arith.constant 0 : i32
    return %c0_i32, %c0_i32_0 : i32, i32
  }
}

module attributes {stable_mosaic.version = 11 : i64} {
  func.func @_tconv_chain_kernel(%arg0: i32, %arg1: memref<1x162x1296xbf16, #tpu.memory_space<vmem>>, %arg2: memref<32x162xbf16, #tpu.memory_space<vmem>>, %arg3: memref<32x1xf32, #tpu.memory_space<vmem>>, %arg4: memref<1x32x1296xbf16, #tpu.memory_space<vmem>>) attributes {dimension_semantics = [#tpu.dimension_semantics<parallel>], iteration_bounds = array<i64: 6>, scalar_prefetch = 0 : i64, scratch_operands = 0 : i64, tpu.core_type = #tpu.core_type<tc>, window_params = [{transform_indices = @transform_0, window_bounds = array<i64: 1, 162, 1296>}, {pipeline_mode = #tpu.pipeline_mode<synchronous>, transform_indices = @transform_1, window_bounds = array<i64: 32, 162>}, {pipeline_mode = #tpu.pipeline_mode<synchronous>, transform_indices = @transform_2, window_bounds = array<i64: 32, 1>}, {transform_indices = @transform_3, window_bounds = array<i64: 1, 32, 1296>}]} {
    %c0 = arith.constant 0 : index
    %c0_0 = arith.constant 0 : index
    %c0_1 = arith.constant 0 : index
    %0 = vector.load %arg1[%c0, %c0_0, %c0_1] : memref<1x162x1296xbf16, #tpu.memory_space<vmem>>, vector<1x162x1296xbf16>
    %1 = vector.shape_cast %0 : vector<1x162x1296xbf16> to vector<162x1296xbf16>
    %c0_2 = arith.constant 0 : index
    %c0_3 = arith.constant 0 : index
    %2 = vector.load %arg2[%c0_2, %c0_3] : memref<32x162xbf16, #tpu.memory_space<vmem>>, vector<32x162xbf16>
    %c0_4 = arith.constant 0 : index
    %c0_5 = arith.constant 0 : index
    %3 = vector.load %arg3[%c0_4, %c0_5] : memref<32x1xf32, #tpu.memory_space<vmem>>, vector<32x1xf32>
    %cst = arith.constant dense<0.000000e+00> : vector<32x1296xf32>
    %4 = tpu.matmul %2, %1, %cst {dimension_numbers = #tpu.dot_dimension_numbers<[1], [0], [0], [1], [0, 0, 1, 1], [], []>} : vector<32x162xbf16>, vector<162x1296xbf16>, vector<32x1296xf32> -> vector<32x1296xf32>
    %5 = vector.broadcast %3 : vector<32x1xf32> to vector<32x1296xf32>
    %6 = arith.addf %4, %5 : vector<32x1296xf32>
    %cst_6 = arith.constant 0.000000e+00 : f32
    %7 = vector.broadcast %cst_6 : f32 to vector<32x1296xf32>
    %8 = arith.maximumf %6, %7 : vector<32x1296xf32>
    %9 = arith.truncf %8 : vector<32x1296xf32> to vector<32x1296xbf16>
    %c0_7 = arith.constant 0 : index
    %c0_8 = arith.constant 0 : index
    %c0_9 = arith.constant 0 : index
    %10 = vector.load %arg4[%c0_7, %c0_8, %c0_9] : memref<1x32x1296xbf16, #tpu.memory_space<vmem>>, vector<1x32x1296xbf16>
    %11 = vector.shape_cast %10 : vector<1x32x1296xbf16> to vector<32x1296xbf16>
    %12 = vector.shape_cast %9 : vector<32x1296xbf16> to vector<1x32x1296xbf16>
    tpu.vector_store %arg4[%c0_7, %c0_8, %c0_9], %12 {strides = array<i32>} : memref<1x32x1296xbf16, #tpu.memory_space<vmem>>, vector<1x32x1296xbf16>,
    return
  }
  func.func @transform_0(%arg0: i32) -> (i32, i32, i32) {
    %c0_i32 = arith.constant 0 : i32
    %c0_i32_0 = arith.constant 0 : i32
    %c0_i32_1 = arith.constant 0 : i32
    return %arg0, %c0_i32, %c0_i32_0 : i32, i32, i32
  }
  func.func @transform_1(%arg0: i32) -> (i32, i32) {
    %c0_i32 = arith.constant 0 : i32
    %c0_i32_0 = arith.constant 0 : i32
    %c0_i32_1 = arith.constant 0 : i32
    return %c0_i32, %c0_i32_0 : i32, i32
  }
  func.func @transform_2(%arg0: i32) -> (i32, i32) {
    %c0_i32 = arith.constant 0 : i32
    %c0_i32_0 = arith.constant 0 : i32
    %c0_i32_1 = arith.constant 0 : i32
    return %c0_i32, %c0_i32_0 : i32, i32
  }
  func.func @transform_3(%arg0: i32) -> (i32, i32, i32) {
    %c0_i32 = arith.constant 0 : i32
    %c0_i32_0 = arith.constant 0 : i32
    %c0_i32_1 = arith.constant 0 : i32
    return %arg0, %c0_i32, %c0_i32_0 : i32, i32, i32
  }
}

module attributes {stable_mosaic.version = 11 : i64} {
  func.func @_tconv_chain_kernel(%arg0: i32, %arg1: memref<1x288x1156xbf16, #tpu.memory_space<vmem>>, %arg2: memref<32x288xbf16, #tpu.memory_space<vmem>>, %arg3: memref<32x1xf32, #tpu.memory_space<vmem>>, %arg4: memref<1x32x1156xbf16, #tpu.memory_space<vmem>>) attributes {dimension_semantics = [#tpu.dimension_semantics<parallel>], iteration_bounds = array<i64: 6>, scalar_prefetch = 0 : i64, scratch_operands = 0 : i64, tpu.core_type = #tpu.core_type<tc>, window_params = [{transform_indices = @transform_0, window_bounds = array<i64: 1, 288, 1156>}, {pipeline_mode = #tpu.pipeline_mode<synchronous>, transform_indices = @transform_1, window_bounds = array<i64: 32, 288>}, {pipeline_mode = #tpu.pipeline_mode<synchronous>, transform_indices = @transform_2, window_bounds = array<i64: 32, 1>}, {transform_indices = @transform_3, window_bounds = array<i64: 1, 32, 1156>}]} {
    %c0 = arith.constant 0 : index
    %c0_0 = arith.constant 0 : index
    %c0_1 = arith.constant 0 : index
    %0 = vector.load %arg1[%c0, %c0_0, %c0_1] : memref<1x288x1156xbf16, #tpu.memory_space<vmem>>, vector<1x288x1156xbf16>
    %1 = vector.shape_cast %0 : vector<1x288x1156xbf16> to vector<288x1156xbf16>
    %c0_2 = arith.constant 0 : index
    %c0_3 = arith.constant 0 : index
    %2 = vector.load %arg2[%c0_2, %c0_3] : memref<32x288xbf16, #tpu.memory_space<vmem>>, vector<32x288xbf16>
    %c0_4 = arith.constant 0 : index
    %c0_5 = arith.constant 0 : index
    %3 = vector.load %arg3[%c0_4, %c0_5] : memref<32x1xf32, #tpu.memory_space<vmem>>, vector<32x1xf32>
    %cst = arith.constant dense<0.000000e+00> : vector<32x1156xf32>
    %4 = tpu.matmul %2, %1, %cst {dimension_numbers = #tpu.dot_dimension_numbers<[1], [0], [0], [1], [0, 0, 1, 1], [], []>} : vector<32x288xbf16>, vector<288x1156xbf16>, vector<32x1156xf32> -> vector<32x1156xf32>
    %5 = vector.broadcast %3 : vector<32x1xf32> to vector<32x1156xf32>
    %6 = arith.addf %4, %5 : vector<32x1156xf32>
    %cst_6 = arith.constant 0.000000e+00 : f32
    %7 = vector.broadcast %cst_6 : f32 to vector<32x1156xf32>
    %8 = arith.maximumf %6, %7 : vector<32x1156xf32>
    %9 = arith.truncf %8 : vector<32x1156xf32> to vector<32x1156xbf16>
    %c0_7 = arith.constant 0 : index
    %c0_8 = arith.constant 0 : index
    %c0_9 = arith.constant 0 : index
    %10 = vector.load %arg4[%c0_7, %c0_8, %c0_9] : memref<1x32x1156xbf16, #tpu.memory_space<vmem>>, vector<1x32x1156xbf16>
    %11 = vector.shape_cast %10 : vector<1x32x1156xbf16> to vector<32x1156xbf16>
    %12 = vector.shape_cast %9 : vector<32x1156xbf16> to vector<1x32x1156xbf16>
    tpu.vector_store %arg4[%c0_7, %c0_8, %c0_9], %12 {strides = array<i32>} : memref<1x32x1156xbf16, #tpu.memory_space<vmem>>, vector<1x32x1156xbf16>,
    return
  }
  func.func @transform_0(%arg0: i32) -> (i32, i32, i32) {
    %c0_i32 = arith.constant 0 : i32
    %c0_i32_0 = arith.constant 0 : i32
    %c0_i32_1 = arith.constant 0 : i32
    return %arg0, %c0_i32, %c0_i32_0 : i32, i32, i32
  }
  func.func @transform_1(%arg0: i32) -> (i32, i32) {
    %c0_i32 = arith.constant 0 : i32
    %c0_i32_0 = arith.constant 0 : i32
    %c0_i32_1 = arith.constant 0 : i32
    return %c0_i32, %c0_i32_0 : i32, i32
  }
  func.func @transform_2(%arg0: i32) -> (i32, i32) {
    %c0_i32 = arith.constant 0 : i32
    %c0_i32_0 = arith.constant 0 : i32
    %c0_i32_1 = arith.constant 0 : i32
    return %c0_i32, %c0_i32_0 : i32, i32
  }
  func.func @transform_3(%arg0: i32) -> (i32, i32, i32) {
    %c0_i32 = arith.constant 0 : i32
    %c0_i32_0 = arith.constant 0 : i32
    %c0_i32_1 = arith.constant 0 : i32
    return %arg0, %c0_i32, %c0_i32_0 : i32, i32, i32
  }
}

module attributes {stable_mosaic.version = 11 : i64} {
  func.func @_tconv_chain_kernel(%arg0: i32, %arg1: memref<1x288x1024xbf16, #tpu.memory_space<vmem>>, %arg2: memref<16x288xbf16, #tpu.memory_space<vmem>>, %arg3: memref<16x1xf32, #tpu.memory_space<vmem>>, %arg4: memref<4x16xbf16, #tpu.memory_space<vmem>>, %arg5: memref<4x1xf32, #tpu.memory_space<vmem>>, %arg6: memref<1x4x1024xf32, #tpu.memory_space<vmem>>) attributes {dimension_semantics = [#tpu.dimension_semantics<parallel>], iteration_bounds = array<i64: 6>, scalar_prefetch = 0 : i64, scratch_operands = 0 : i64, tpu.core_type = #tpu.core_type<tc>, window_params = [{transform_indices = @transform_0, window_bounds = array<i64: 1, 288, 1024>}, {pipeline_mode = #tpu.pipeline_mode<synchronous>, transform_indices = @transform_1, window_bounds = array<i64: 16, 288>}, {pipeline_mode = #tpu.pipeline_mode<synchronous>, transform_indices = @transform_2, window_bounds = array<i64: 16, 1>}, {pipeline_mode = #tpu.pipeline_mode<synchronous>, transform_indices = @transform_3, window_bounds = array<i64: 4, 16>}, {pipeline_mode = #tpu.pipeline_mode<synchronous>, transform_indices = @transform_4, window_bounds = array<i64: 4, 1>}, {transform_indices = @transform_5, window_bounds = array<i64: 1, 4, 1024>}]} {
    %c0 = arith.constant 0 : index
    %c0_0 = arith.constant 0 : index
    %c0_1 = arith.constant 0 : index
    %0 = vector.load %arg1[%c0, %c0_0, %c0_1] : memref<1x288x1024xbf16, #tpu.memory_space<vmem>>, vector<1x288x1024xbf16>
    %1 = vector.shape_cast %0 : vector<1x288x1024xbf16> to vector<288x1024xbf16>
    %c0_2 = arith.constant 0 : index
    %c0_3 = arith.constant 0 : index
    %2 = vector.load %arg2[%c0_2, %c0_3] : memref<16x288xbf16, #tpu.memory_space<vmem>>, vector<16x288xbf16>
    %c0_4 = arith.constant 0 : index
    %c0_5 = arith.constant 0 : index
    %3 = vector.load %arg3[%c0_4, %c0_5] : memref<16x1xf32, #tpu.memory_space<vmem>>, vector<16x1xf32>
    %cst = arith.constant dense<0.000000e+00> : vector<16x1024xf32>
    %4 = tpu.matmul %2, %1, %cst {dimension_numbers = #tpu.dot_dimension_numbers<[1], [0], [0], [1], [0, 0, 1, 1], [], []>} : vector<16x288xbf16>, vector<288x1024xbf16>, vector<16x1024xf32> -> vector<16x1024xf32>
    %5 = vector.broadcast %3 : vector<16x1xf32> to vector<16x1024xf32>
    %6 = arith.addf %4, %5 : vector<16x1024xf32>
    %cst_6 = arith.constant 0.000000e+00 : f32
    %7 = vector.broadcast %cst_6 : f32 to vector<16x1024xf32>
    %8 = arith.maximumf %6, %7 : vector<16x1024xf32>
    %c0_7 = arith.constant 0 : index
    %c0_8 = arith.constant 0 : index
    %9 = vector.load %arg4[%c0_7, %c0_8] : memref<4x16xbf16, #tpu.memory_space<vmem>>, vector<4x16xbf16>
    %c0_9 = arith.constant 0 : index
    %c0_10 = arith.constant 0 : index
    %10 = vector.load %arg5[%c0_9, %c0_10] : memref<4x1xf32, #tpu.memory_space<vmem>>, vector<4x1xf32>
    %11 = arith.truncf %8 : vector<16x1024xf32> to vector<16x1024xbf16>
    %cst_11 = arith.constant dense<0.000000e+00> : vector<4x1024xf32>
    %12 = tpu.matmul %9, %11, %cst_11 {dimension_numbers = #tpu.dot_dimension_numbers<[1], [0], [0], [1], [0, 0, 1, 1], [], []>} : vector<4x16xbf16>, vector<16x1024xbf16>, vector<4x1024xf32> -> vector<4x1024xf32>
    %13 = vector.broadcast %10 : vector<4x1xf32> to vector<4x1024xf32>
    %14 = arith.addf %12, %13 : vector<4x1024xf32>
    %c0_12 = arith.constant 0 : index
    %c0_13 = arith.constant 0 : index
    %c0_14 = arith.constant 0 : index
    %15 = vector.load %arg6[%c0_12, %c0_13, %c0_14] : memref<1x4x1024xf32, #tpu.memory_space<vmem>>, vector<1x4x1024xf32>
    %16 = vector.shape_cast %15 : vector<1x4x1024xf32> to vector<4x1024xf32>
    %17 = vector.shape_cast %14 : vector<4x1024xf32> to vector<1x4x1024xf32>
    tpu.vector_store %arg6[%c0_12, %c0_13, %c0_14], %17 {strides = array<i32>} : memref<1x4x1024xf32, #tpu.memory_space<vmem>>, vector<1x4x1024xf32>,
    return
  }
  func.func @transform_0(%arg0: i32) -> (i32, i32, i32) {
    %c0_i32 = arith.constant 0 : i32
    %c0_i32_0 = arith.constant 0 : i32
    %c0_i32_1 = arith.constant 0 : i32
    return %arg0, %c0_i32, %c0_i32_0 : i32, i32, i32
  }
  func.func @transform_1(%arg0: i32) -> (i32, i32) {
    %c0_i32 = arith.constant 0 : i32
    %c0_i32_0 = arith.constant 0 : i32
    %c0_i32_1 = arith.constant 0 : i32
    return %c0_i32, %c0_i32_0 : i32, i32
  }
  func.func @transform_2(%arg0: i32) -> (i32, i32) {
    %c0_i32 = arith.constant 0 : i32
    %c0_i32_0 = arith.constant 0 : i32
    %c0_i32_1 = arith.constant 0 : i32
    return %c0_i32, %c0_i32_0 : i32, i32
  }
  func.func @transform_3(%arg0: i32) -> (i32, i32) {
    %c0_i32 = arith.constant 0 : i32
    %c0_i32_0 = arith.constant 0 : i32
    %c0_i32_1 = arith.constant 0 : i32
    return %c0_i32, %c0_i32_0 : i32, i32
  }
  func.func @transform_4(%arg0: i32) -> (i32, i32) {
    %c0_i32 = arith.constant 0 : i32
    %c0_i32_0 = arith.constant 0 : i32
    %c0_i32_1 = arith.constant 0 : i32
    return %c0_i32, %c0_i32_0 : i32, i32
  }
  func.func @transform_5(%arg0: i32) -> (i32, i32, i32) {
    %c0_i32 = arith.constant 0 : i32
    %c0_i32_0 = arith.constant 0 : i32
    %c0_i32_1 = arith.constant 0 : i32
    return %arg0, %c0_i32, %c0_i32_0 : i32, i32, i32
  }
}

</mosaic_0001>

<bundles_post_ra>
// kernel: minimonet_forward.25
= control target key start
LH: loop header
LB: loop body
LE: loop exit
PB: predicated region body
PF: predicated region fallthrough
CT: control target
= control target key end

     0   :  { %s794_s15 = smov 0   ;;  %s864_s0 = inlined_call_operand.vmem [shape: bf16[2,36,1024], index: 0, kind: input, shape index: {}]   ;;  %s865_s1 = inlined_call_operand.vmem [shape: bf16[8,36], index: 1, kind: input, shape index: {}]   ;;  %s866_s2 = inlined_call_operand.vmem [shape: f32[8,1], index: 2, kind: input, shape index: {}]   ;;  %s867_s3 = inlined_call_operand.vmem [shape: f32[8,1], index: 3, kind: input, shape index: {}]   ;;  %s868_s4 = inlined_call_operand.vmem [shape: bf16[2,8,1024], index: 4, kind: output, shape index: {}]  }
   0x1 LB: > { %s687_s16 = sadd.s32 4294967295, %s766_s15   ;;  %p691_p0 = scmp.ge.s32.totalorder %s766_s15, 1  ;;  %s766_s15 = sphi %s794_s15, %s14_s15  }
   0x2   : > { %p162_p1 = scmp.lt.s32.totalorder %s766_s15, 3 }
   0x4   : > { %p163_p2 = pnand %p691_p0, %p162_p1 }
   0x5   : > { %p188_p3 = scmp.lt.s32.totalorder (!%p163_p2), %s687_s16, 1  ;;  %v768_v0 = vmov (!%p163_p2), 0   ;;  %vm324_vm0 = vcmask (!%p163_p2), 1041408   ;;  %v199_v35 = vld [vmem:[%s865_s1] sm:$0xf] (!%p163_p2)  ;;  %vm320_vm1 = vcmask (!%p163_p2), 293888  }
   0x6   : > { %166 = sbr.rel (%p163_p2) target bundleno = 596 (0x254), region = 36  ;;  %381 = vmatprep.mubr.bf16.mxu0 (!%p163_p2), %v768_v0  ;;  %422 = vmatprep.mubr.bf16.mxu1 (!%p163_p2), %v768_v0 }
   0x7   : > { %748 = vset.pattern.permute.xlu1 (!%p163_p2), %v768_v0  ;;  %749 = vset.pattern.permute.xlu0 (!%p163_p2), %v768_v0 }
   0xd   : > { %s870_s16 = smov (!%p188_p3, %s687_s16), 1 }
   0xe   : > { %s738_s17 = smul.u32 160, %s870_s16  ;;  %s733_s27 = sshll.u32 %s870_s16, 5 }
   0xf   : > { %s197_s30 = scalar_lea.vmem %s868_s4, %s733_s27 }
  0x10   : > { %s812_s20 = scalar_lea.vmem %s864_s0, %s738_s17 }
  0x11   : > { %v200_v1 = vld [vmem:[%s812_s20] sm:$0xff]  ;;  %v201_v3 = vld [vmem:[%s812_s20 + $0x8] sm:$0xff]  ;;  %v202_v23 = vld [vmem:[%s812_s20 + $0x10] sm:$0xff] }
  0x12   : > { %v204_v2 = vld [vmem:[%s812_s20 + $0x20] sm:$0xff]  ;;  %v205_v6 = vld [vmem:[%s812_s20 + $0x28] sm:$0xff]  ;;  %v206_v24 = vld [vmem:[%s812_s20 + $0x30] sm:$0xff] }
  0x13   : > { %v696_v4 = vcombine.high %v200_v1, %v204_v2  ;;  %v695_v5 = vcombine.low %v200_v1, %v204_v2  ;;  %v208_v7 = vld [vmem:[%s812_s20 + $0x40] sm:$0xff]  ;;  %v698_v9 = vcombine.high %v201_v3, %v205_v6  ;;  %v697_v10 = vcombine.low %v201_v3, %v205_v6  ;;  %v209_v12 = vld [vmem:[%s812_s20 + $0x48] sm:$0xff]  ;;  %v203_v25 = vld [vmem:[%s812_s20 + $0x18] sm:$0xff] }
  0x14   : > { %v212_v8 = vld [vmem:[%s812_s20 + $0x60] sm:$0xff]  ;;  %v213_v13 = vld [vmem:[%s812_s20 + $0x68] sm:$0xff]  ;;  %v207_v26 = vld [vmem:[%s812_s20 + $0x38] sm:$0xff]  ;;  %v700_v28 = vcombine.high %v202_v23, %v206_v24  ;;  %v699_v36 = vcombine.low %v202_v23, %v206_v24 }
  0x15   : > { %v704_v11 = vcombine.high %v208_v7, %v212_v8  ;;  %v216_v14 = vld [vmem:[%s812_s20 + $0x80] sm:$0x33]  ;;  %349 = vmatprep.subr.bf16.mxu0 %v696_v4  ;;  %v706_v15 = vcombine.high %v209_v12, %v213_v13  ;;  %v217_v16 = vld [vmem:[%s812_s20 + $0x88] sm:$0x33]  ;;  %390 = vmatprep.subr.bf16.mxu1 %v698_v9  ;;  %v703_v17 = vcombine.low %v208_v7, %v212_v8  ;;  %v210_v31 = vld [vmem:[%s812_s20 + $0x50] sm:$0xff] }
  0x16   : > { %350 = vmatpush1.bf16.msra.mxu0 %v695_v5  ;;  %391 = vmatpush1.bf16.msra.mxu1 %v697_v10  ;;  %v705_v18 = vcombine.low %v209_v12, %v213_v13  ;;  %v712_v19 = vcombine.high %v216_v14, %v216_v14  ;;  %v711_v20 = vcombine.low %v216_v14, %v216_v14  ;;  %v214_v32 = vld [vmem:[%s812_s20 + $0x70] sm:$0xff]  ;;  %v211_v33 = vld [vmem:[%s812_s20 + $0x58] sm:$0xff]  ;;  %v560_v9 = vld [vmem:[%s866_s2] sm:$0xff] }
  0x17   : > { %351 = vmatprep.subr.bf16.mxu0 %v704_v11  ;;  %392 = vmatprep.subr.bf16.mxu1 %v706_v15  ;;  %v714_v21 = vcombine.high %v217_v16, %v217_v16  ;;  %v713_v22 = vcombine.low %v217_v16, %v217_v16  ;;  %v702_v30 = vcombine.high %v203_v25, %v207_v26  ;;  %v215_v34 = vld [vmem:[%s812_s20 + $0x78] sm:$0xff]  ;;  %v218_v40 = vld [vmem:[%s812_s20 + $0x90] sm:$0x33]  ;;  %v574_v10 = vld [vmem:[%s867_s3] sm:$0xff] }
  0x18   : > { %v326_v27 = vsel %vm324_vm0, %v711_v20, 0  ;;  %v701_v37 = vcombine.low %v203_v25, %v207_v26  ;;  %v708_v38 = vcombine.high %v210_v31, %v214_v32  ;;  %v710_v39 = vcombine.high %v211_v33, %v215_v34  ;;  %v219_v41 = vld [vmem:[%s812_s20 + $0x98] sm:$0x33]  ;;  %563 = vperm.xlu1 %748, %v560_v9  }
  0x19   : > { %v332_v29 = vsel %vm324_vm0, %v713_v22, 0  ;;  %v707_v42 = vcombine.low %v210_v31, %v214_v32  ;;  %v709_v43 = vcombine.low %v211_v33, %v215_v34  ;;  %v716_v44 = vcombine.high %v218_v40, %v218_v40 }
  0x1a   : > { %352 = vmatpush1.bf16.msra.mxu0 %v703_v17  ;;  %393 = vmatpush1.bf16.msra.mxu1 %v705_v18  ;;  %v715_v45 = vcombine.low %v218_v40, %v218_v40  ;;  %v718_v46 = vcombine.high %v219_v41, %v219_v41  ;;  %v717_v47 = vcombine.low %v219_v41, %v219_v41 }
  0x1b   : > { %719 = vmatprep.subr.msk.bf16.mxu0 %vm324_vm0, %v712_v19  ;;  %721 = vmatprep.subr.msk.bf16.mxu1 %vm324_vm0, %v714_v21 }
  0x1c   : > { %v338_v48 = vsel %vm324_vm0, %v715_v45, 0  ;;  %v344_v49 = vsel %vm324_vm0, %v717_v47, 0  ;;  %577 = vperm.xlu1 %748, %v574_v10  }
  0x1e   : > { %354 = vmatpush1.bf16.msra.mxu0 %v326_v27  ;;  %395 = vmatpush1.bf16.msra.mxu1 %v332_v29 }
  0x1f   : > { %431 = vmatprep.subr.bf16.mxu0 %v700_v28  ;;  %472 = vmatprep.subr.bf16.mxu1 %v702_v30 }
  0x21   : > { %720 = vmatmul.mubr.msk.bf16.vlgmr.msra.gmra.mrb[0].mxu0 %vm320_vm1, %v199_v35  ;;  %722 = vmatmul.mubr.msk.bf16.vlgmr.msra.gmra.mrb[0].mxu1 %vm320_vm1, %v199_v35 }
  0x22   : > { %432 = vmatpush1.bf16.msra.mxu0 %v699_v36  ;;  %473 = vmatpush1.bf16.msra.mxu1 %v701_v37 }
  0x23   : > { %433 = vmatprep.subr.bf16.mxu0 %v708_v38  ;;  %474 = vmatprep.subr.bf16.mxu1 %v710_v39 }
  0x24   : > { %463 = vmatprep.mubr.bf16.mxu0 %v768_v0  ;;  %504 = vmatprep.mubr.bf16.mxu1 %v768_v0 }
  0x26   : > { %434 = vmatpush1.bf16.msra.mxu0 %v707_v42  ;;  %475 = vmatpush1.bf16.msra.mxu1 %v709_v43 }
  0x27   : > { %723 = vmatprep.subr.msk.bf16.mxu0 %vm324_vm0, %v716_v44  ;;  %725 = vmatprep.subr.msk.bf16.mxu1 %vm324_vm0, %v718_v46 }
  0x2a   : > { %436 = vmatpush1.bf16.msra.mxu0 %v338_v48  ;;  %477 = vmatpush1.bf16.msra.mxu1 %v344_v49 }
  0x2d   : > { %724 = vmatmul.mubr.msk.bf16.vlgmr.msra.gmra.mrb[4].mxu0 %vm320_vm1, %v199_v35  ;;  %726 = vmatmul.mubr.msk.bf16.vlgmr.msra.gmra.mrb[4].mxu1 %vm320_vm1, %v199_v35 }
  0x97   : > { %v564_v39 = vpop.permute.xlu1 %563 }
  0xf4   : > { %v383_v50 = vpop.f32.mrb[0].mxu0  ;;  %v424_v52 = vpop.f32.mrb[0].mxu1 }
  0xf5   : > { %v385_v51 = vpop.f32.mrb[1].mxu0  ;;  %v426_v55 = vpop.f32.mrb[1].mxu1 }
  0xf6   : > { %v513_v53 = vadd.f32 %v385_v51, %v383_v50  ;;  %v387_v54 = vpop.f32.mrb[2].mxu0  ;;  %v428_v57 = vpop.f32.mrb[2].mxu1 }
  0xf7   : > { %v388_v56 = vpop.f32.mrb[3].mxu0  ;;  %v429_v59 = vpop.f32.mrb[3].mxu1 }
  0xf8   : > { %v514_v58 = vadd.f32 %v513_v53, %v424_v52  ;;  %v578_v53 = vpop.permute.xlu1 %577 }
  0xfa   : > { %v515_v60 = vadd.f32 %v514_v58, %v426_v55 }
 0x100   : > { %v465_v61 = vpop.f32.mrb[4].mxu0  ;;  %v506_v0 = vpop.f32.mrb[4].mxu1 }
 0x101   : > { %v516_v62 = vadd.f32 %v515_v60, %v465_v61  ;;  %v467_v63 = vpop.f32.mrb[5].mxu0  ;;  %v508_v2 = vpop.f32.mrb[5].mxu1 }
 0x102   : > { %v469_v1 = vpop.f32.mrb[6].mxu0  ;;  %v510_v5 = vpop.f32.mrb[6].mxu1 }
 0x103   : > { %v517_v3 = vadd.f32 %v516_v62, %v467_v63  ;;  %v470_v4 = vpop.f32.mrb[7].mxu0  ;;  %v511_v6 = vpop.f32.mrb[7].mxu1 }
 0x105   : > { %v518_v7 = vadd.f32 %v517_v3, %v506_v0 }
 0x107   : > { %v519_v8 = vadd.f32 %v518_v7, %v508_v2 }
 0x109   : > { %520 = vadd.xlane.f32.xlu0 %v519_v8 }
 0x196   : > { %v521_v11 = vpop.xlane.xlu0 %520 }
 0x197   : > { %v523_v12 = vmul.f32 0.0009765625, %v521_v11 }
 0x199   : > { %v524_v13 = vsub.f32 %v383_v50, %v523_v12  ;;  %v525_v14 = vsub.f32 %v385_v51, %v523_v12  ;;  %v526_v15 = vsub.f32 %v424_v52, %v523_v12  ;;  %v527_v16 = vsub.f32 %v426_v55, %v523_v12 }
 0x19a   : > { %v528_v19 = vsub.f32 %v465_v61, %v523_v12  ;;  %v529_v22 = vsub.f32 %v467_v63, %v523_v12  ;;  %v530_v25 = vsub.f32 %v506_v0, %v523_v12  ;;  %v531_v28 = vsub.f32 %v508_v2, %v523_v12 }
 0x19b   : > { %v532_v17 = vmul.f32 %v524_v13, %v524_v13  ;;  %v533_v18 = vmul.f32 %v525_v14, %v525_v14  ;;  %v534_v20 = vmul.f32 %v526_v15, %v526_v15  ;;  %v535_v23 = vmul.f32 %v527_v16, %v527_v16 }
 0x19c   : > { %v536_v26 = vmul.f32 %v528_v19, %v528_v19  ;;  %v537_v29 = vmul.f32 %v529_v22, %v529_v22  ;;  %v538_v31 = vmul.f32 %v530_v25, %v530_v25  ;;  %v539_v33 = vmul.f32 %v531_v28, %v531_v28 }
 0x19d   : > { %v540_v21 = vadd.f32 %v533_v18, %v532_v17 }
 0x19f   : > { %v541_v24 = vadd.f32 %v540_v21, %v534_v20 }
 0x1a1   : > { %v542_v27 = vadd.f32 %v541_v24, %v535_v23 }
 0x1a3   : > { %v543_v30 = vadd.f32 %v542_v27, %v536_v26 }
 0x1a5   : > { %v544_v32 = vadd.f32 %v543_v30, %v537_v29 }
 0x1a7   : > { %v545_v34 = vadd.f32 %v544_v32, %v538_v31 }
 0x1a9   : > { %v546_v35 = vadd.f32 %v545_v34, %v539_v33 }
 0x1ab   : > { %547 = vadd.xlane.f32.xlu0 %v546_v35 }
 0x238   : > { %v548_v36 = vpop.xlane.xlu0 %547 }
 0x239   : > { %v549_v37 = vmul.f32 0.0009765625, %v548_v36 }
 0x23b   : > { %v550_v38 = vadd.f32 1e-05, %v549_v37 }
 0x23d   : > { %758 = vrsqrt.f32 %v550_v38 }
 0x247   : > { %v759_v40 = vpop.eup %758 }
 0x248   : > { %v552_v41 = vmul.f32 %v759_v40, %v524_v13  ;;  %v553_v42 = vmul.f32 %v759_v40, %v525_v14  ;;  %v554_v43 = vmul.f32 %v759_v40, %v526_v15  ;;  %v555_v44 = vmul.f32 %v759_v40, %v527_v16 }
 0x249   : > { %v556_v45 = vmul.f32 %v759_v40, %v528_v19  ;;  %v557_v46 = vmul.f32 %v759_v40, %v529_v22  ;;  %v558_v47 = vmul.f32 %v759_v40, %v530_v25  ;;  %v559_v48 = vmul.f32 %v759_v40, %v531_v28 }
 0x24a   : > { %v566_v49 = vmul.f32 %v564_v39, %v552_v41  ;;  %v567_v50 = vmul.f32 %v564_v39, %v553_v42  ;;  %v568_v51 = vmul.f32 %v564_v39, %v554_v43  ;;  %v569_v52 = vmul.f32 %v564_v39, %v555_v44 }
 0x24b   : > { %v570_v54 = vmul.f32 %v564_v39, %v556_v45  ;;  %v571_v55 = vmul.f32 %v564_v39, %v557_v46  ;;  %v572_v56 = vmul.f32 %v564_v39, %v558_v47  ;;  %v573_v57 = vmul.f32 %v564_v39, %v559_v48 }
 0x24c   : > { %v580_v58 = vadd.f32 %v578_v53, %v566_v49  ;;  %v581_v59 = vadd.f32 %v578_v53, %v567_v50  ;;  %v582_v60 = vadd.f32 %v578_v53, %v568_v51  ;;  %v583_v61 = vadd.f32 %v578_v53, %v569_v52 }
 0x24d   : > { %v584_v62 = vadd.f32 %v578_v53, %v570_v54  ;;  %v585_v63 = vadd.f32 %v578_v53, %v571_v55  ;;  %v586_v0 = vadd.f32 %v578_v53, %v572_v56  ;;  %v587_v1 = vadd.f32 %v578_v53, %v573_v57 }
 0x24e   : > { %v588_v2 = vmax.f32 %v580_v58, 0.0  ;;  %v589_v3 = vmax.f32 %v581_v59, 0.0  ;;  %v590_v4 = vmax.f32 %v582_v60, 0.0  ;;  %v591_v5 = vmax.f32 %v583_v61, 0.0 }
 0x24f   : > { %v592_v6 = vmax.f32 %v584_v62, 0.0  ;;  %v593_v7 = vmax.f32 %v585_v63, 0.0  ;;  %v594_v8 = vmax.f32 %v586_v0, 0.0  ;;  %v595_v9 = vmax.f32 %v587_v1, 0.0 }
 0x250   : > { %v734_v10 = vpack.c.bf16 %v589_v3, %v588_v2  ;;  %v735_v11 = vpack.c.bf16 %v591_v5, %v590_v4 }
 0x251   : > { %v736_v12 = vpack.c.bf16 %v593_v7, %v592_v6  ;;  %v737_v13 = vpack.c.bf16 %v595_v9, %v594_v8 }
 0x252   : > { %628 = vst [vmem:[%s197_s30] sm:$0xff] %v734_v10  ;;  %629 = vst [vmem:[%s197_s30 + $0x8] sm:$0xff] %v735_v11 }
 0x253   : > { %630 = vst [vmem:[%s197_s30 + $0x10] sm:$0xff] %v736_v12  ;;  %631 = vst [vmem:[%s197_s30 + $0x18] sm:$0xff] %v737_v13 }
 0x254 PF: > { %s14_s15 = sadd.s32 1, %s766_s15  }
 0x255   : > { %p11_p4 = scmp.ge.s32.totalorder %s14_s15, 4  }
 0x257   :  { %13 = sbr.rel (!%p11_p4) target bundleno = 1 (0x1), region = 66 }

// kernel: minimonet_forward.26
= control target key start
LH: loop header
LB: loop body
LE: loop exit
PB: predicated region body
PF: predicated region fallthrough
CT: control target
= control target key end

     0   :  { %s545_s15 = smov 0   ;;  %s581_s0 = inlined_call_operand.vmem [shape: bf16[2,72,256], index: 0, kind: input, shape index: {}]   ;;  %s582_s1 = inlined_call_operand.vmem [shape: bf16[16,72], index: 1, kind: input, shape index: {}]   ;;  %s583_s2 = inlined_call_operand.vmem [shape: f32[16,1], index: 2, kind: input, shape index: {}]   ;;  %s584_s3 = inlined_call_operand.vmem [shape: f32[16,1], index: 3, kind: input, shape index: {}]   ;;  %s585_s4 = inlined_call_operand.vmem [shape: bf16[2,16,256], index: 4, kind: output, shape index: {}]  }
   0x1 LB: > { %s452_s16 = sadd.s32 4294967295, %s517_s15   ;;  %p456_p0 = scmp.ge.s32.totalorder %s517_s15, 1  ;;  %s517_s15 = sphi %s545_s15, %s14_s15  }
   0x2   : > { %p162_p1 = scmp.lt.s32.totalorder %s517_s15, 3 }
   0x4   : > { %p163_p2 = pnand %p456_p0, %p162_p1 }
   0x5   : > { %p188_p3 = scmp.lt.s32.totalorder (!%p163_p2), %s452_s16, 1  ;;  %v519_v0 = vmov (!%p163_p2), 0   ;;  %vm264_vm0 = vcmask (!%p163_p2), 1043456   ;;  %v506_v13 = vld [vmem:[%s582_s1] sm:$0xff] (!%p163_p2)   ;;  %vm260_vm1 = vcmask (!%p163_p2), 588800   ;;  %v348_v14 = vld [vmem:[%s583_s2 + $0x8] sm:$0xff] (!%p163_p2) }
   0x6   : > { %166 = sbr.rel (%p163_p2) target bundleno = 575 (0x23f), region = 36  ;;  %303 = vmatprep.mubr.bf16.mxu0 (!%p163_p2), %v519_v0  ;;  %491 = vset.pattern.permute.xlu1 (!%p163_p2), %v519_v0  ;;  %v363_v15 = vld [vmem:[%s584_s3] sm:$0xff] (!%p163_p2)  ;;  %v364_v37 = vld [vmem:[%s584_s3 + $0x8] sm:$0xff] (!%p163_p2) }
   0x7   : > { %490 = vset.pattern.permute.xlu0 (!%p163_p2), %v519_v0  ;;  %356 = vperm.xlu1 (!%p163_p2), %491, %v348_v14   ;;  %v347_v22 = vld [vmem:[%s583_s2] sm:$0xff] (!%p163_p2) }
   0xb   : > { %367 = vperm.xlu1 (!%p163_p2), %491, %v363_v15  }
   0xd   : > { %s587_s16 = smov (!%p188_p3, %s452_s16), 1 }
   0xe   : > { %s480_s17 = smul.u32 72, %s587_s16  ;;  %s477_s5 = sshll.u32 %s587_s16, 4 }
   0xf   : > { %s197_s8 = scalar_lea.vmem %s585_s4, %s477_s5 }
  0x10   : > { %s192_s20 = scalar_lea.vmem %s581_s0, %s480_s17 }
  0x11   : > { %v492_v1 = vld [vmem:[%s192_s20 + $0x4] ss:$8 sps:$4 sm:$0xff]   ;;  %v494_v2 = vld [vmem:[%s192_s20] ss:$8 sps:$4 sm:$0xff]   ;;  %v495_v3 = vld [vmem:[%s192_s20 + $0x14] ss:$8 sps:$4 sm:$0xff]  }
  0x12   : > { %271 = vmatprep.subr.bf16.mxu0 %v492_v1  ;;  %v497_v4 = vld [vmem:[%s192_s20 + $0x10] ss:$8 sps:$4 sm:$0xff]   ;;  %v498_v5 = vld [vmem:[%s192_s20 + $0x24] ss:$8 sps:$4 sm:$0xff]   ;;  %v500_v6 = vld [vmem:[%s192_s20 + $0x20] ss:$8 sps:$4 sm:$0xff]  }
  0x13   : > { %272 = vmatpush1.bf16.msra.mxu0 %v494_v2  ;;  %v501_v7 = vld [vmem:[%s192_s20 + $0x34] ss:$8 sps:$4 sm:$0xff]   ;;  %v209_v8 = vld [vmem:[%s192_s20 + $0x40] sm:$0xff]  ;;  %v503_v9 = vld [vmem:[%s192_s20 + $0x30] ss:$8 sps:$4 sm:$0xff]  }
  0x14   : > { %273 = vmatprep.subr.bf16.mxu0 %v495_v3  ;;  %v470_v10 = vcombine.high %v209_v8, %v209_v8  ;;  %v469_v11 = vcombine.low %v209_v8, %v209_v8 }
  0x16   : > { %v266_v12 = vsel %vm264_vm0, %v469_v11, 0 }
  0x17   : > { %274 = vmatpush1.bf16.msra.mxu0 %v497_v4 }
  0x18   : > { %275 = vmatprep.subr.bf16.mxu0 %v498_v5 }
  0x1b   : > { %276 = vmatpush1.bf16.msra.mxu0 %v500_v6 }
  0x1c   : > { %277 = vmatprep.subr.bf16.mxu0 %v501_v7 }
  0x1f   : > { %278 = vmatpush1.bf16.msra.mxu0 %v503_v9 }
  0x20   : > { %471 = vmatprep.subr.msk.bf16.mxu0 %vm264_vm0, %v470_v10 }
  0x23   : > { %280 = vmatpush1.bf16.msra.mxu0 %v266_v12 }
  0x26   : > { %472 = vmatmul.mubr.msk.bf16.vlgmr.msra.gmra.mrb[0].mxu0 %vm260_vm1, %v506_v13 }
  0x86   : > { %v357_v38 = vpop.permute.xlu1 %356 }
  0x8a   : > { %v368_v39 = vpop.permute.xlu1 %367 }
  0xf9   : > { %v305_v16 = vpop.f32.mrb[0].mxu0 }
  0xfa   : > { %v307_v17 = vpop.f32.mrb[1].mxu0 }
  0xfb   : > { %v309_v18 = vpop.f32.mrb[2].mxu0  ;;  %v314_v19 = vadd.f32 %v307_v17, %v305_v16 }
  0xfc   : > { %v311_v20 = vpop.f32.mrb[3].mxu0 }
  0xfd   : > { %v317_v21 = vadd.f32 %v311_v20, %v309_v18  ;;  %315 = vadd.xlane.f32.xlu0 %v314_v19 }
 0x101   : > { %318 = vadd.xlane.f32.xlu0 %v317_v21 }
 0x117   : > { %351 = vperm.xlu0 %490, %v347_v22  }
 0x18a   : > { %v316_v23 = vpop.xlane.xlu0 %315 }
 0x18b   : > { %v321_v24 = vmul.f32 0.00390625, %v316_v23 }
 0x18d   : > { %v323_v25 = vsub.f32 %v305_v16, %v321_v24  ;;  %v324_v26 = vsub.f32 %v307_v17, %v321_v24 }
 0x18e   : > { %v319_v27 = vpop.xlane.xlu0 %318 }
 0x18f   : > { %v322_v28 = vmul.f32 0.00390625, %v319_v27  ;;  %v327_v29 = vmul.f32 %v323_v25, %v323_v25  ;;  %v328_v30 = vmul.f32 %v324_v26, %v324_v26 }
 0x191   : > { %v325_v31 = vsub.f32 %v309_v18, %v322_v28  ;;  %v326_v32 = vsub.f32 %v311_v20, %v322_v28  ;;  %v331_v33 = vadd.f32 %v328_v30, %v327_v29 }
 0x193   : > { %332 = vadd.xlane.f32.xlu1 %v331_v33  ;;  %v329_v34 = vmul.f32 %v325_v31, %v325_v31  ;;  %v330_v35 = vmul.f32 %v326_v32, %v326_v32 }
 0x195   : > { %v334_v36 = vadd.f32 %v330_v35, %v329_v34 }
 0x196   : > { %v352_v47 = vpop.permute.xlu0 %351 }
 0x197   : > { %335 = vadd.xlane.f32.xlu1 %v334_v36 }
 0x1a8   : > { %372 = vperm.xlu1 %491, %v364_v37  }
 0x220   : > { %v333_v40 = vpop.xlane.xlu1 %332 }
 0x221   : > { %v337_v41 = vmul.f32 0.00390625, %v333_v40 }
 0x223   : > { %v339_v42 = vadd.f32 1e-05, %v337_v41 }
 0x224   : > { %v336_v43 = vpop.xlane.xlu1 %335 }
 0x225   : > { %507 = vrsqrt.f32 %v339_v42  ;;  %v338_v44 = vmul.f32 0.00390625, %v336_v43 }
 0x227   : > { %v340_v45 = vadd.f32 1e-05, %v338_v44 }
 0x228   : > { %v373_v61 = vpop.permute.xlu1 %372 }
 0x229   : > { %509 = vrsqrt.f32 %v340_v45 }
 0x22f   : > { %v508_v46 = vpop.eup %507 }
 0x230   : > { %v343_v48 = vmul.f32 %v508_v46, %v323_v25  ;;  %v344_v49 = vmul.f32 %v508_v46, %v324_v26 }
 0x232   : > { %v359_v50 = vmul.f32 %v352_v47, %v343_v48  ;;  %v360_v51 = vmul.f32 %v352_v47, %v344_v49 }
 0x233   : > { %v510_v52 = vpop.eup %509 }
 0x234   : > { %v345_v53 = vmul.f32 %v510_v52, %v325_v31  ;;  %v346_v54 = vmul.f32 %v510_v52, %v326_v32  ;;  %v375_v55 = vadd.f32 %v368_v39, %v359_v50  ;;  %v376_v56 = vadd.f32 %v368_v39, %v360_v51 }
 0x236   : > { %v361_v57 = vmul.f32 %v357_v38, %v345_v53  ;;  %v362_v58 = vmul.f32 %v357_v38, %v346_v54  ;;  %v379_v59 = vmax.f32 %v375_v55, 0.0  ;;  %v380_v60 = vmax.f32 %v376_v56, 0.0 }
 0x238   : > { %v377_v62 = vadd.f32 %v373_v61, %v361_v57  ;;  %v378_v63 = vadd.f32 %v373_v61, %v362_v58  ;;  %v478_v0 = vpack.c.bf16 %v380_v60, %v379_v59 }
 0x23a   : > { %v381_v1 = vmax.f32 %v377_v62, 0.0  ;;  %v382_v2 = vmax.f32 %v378_v63, 0.0  ;;  %395 = vst [vmem:[%s197_s8] sm:$0xff] %v478_v0 }
 0x23c   : > { %v479_v3 = vpack.c.bf16 %v382_v2, %v381_v1 }
 0x23e   : > { %396 = vst [vmem:[%s197_s8 + $0x8] sm:$0xff] %v479_v3 }
 0x23f PF: > { %s14_s15 = sadd.s32 1, %s517_s15  }
 0x240   : > { %p11_p4 = scmp.ge.s32.totalorder %s14_s15, 4  }
 0x242   :  { %13 = sbr.rel (!%p11_p4) target bundleno = 1 (0x1), region = 66 }

// kernel: minimonet_forward.27
= control target key start
LH: loop header
LB: loop body
LE: loop exit
PB: predicated region body
PF: predicated region fallthrough
CT: control target
= control target key end

     0   :  { %s660_s15 = smov 0   ;;  %s740_s0 = inlined_call_operand.vmem [shape: bf16[2,144,64], index: 0, kind: input, shape index: {}]   ;;  %s741_s1 = inlined_call_operand.vmem [shape: bf16[32,144], index: 1, kind: input, shape index: {}]   ;;  %s742_s2 = inlined_call_operand.vmem [shape: f32[32,1], index: 2, kind: input, shape index: {}]   ;;  %s743_s3 = inlined_call_operand.vmem [shape: f32[32,1], index: 3, kind: input, shape index: {}]   ;;  %s744_s4 = inlined_call_operand.vmem [shape: bf16[2,32,64], index: 4, kind: output, shape index: {}]  }
   0x1 LB: > { %s539_s16 = sadd.s32 4294967295, %s632_s15   ;;  %p543_p0 = scmp.ge.s32.totalorder %s632_s15, 1  ;;  %s632_s15 = sphi %s660_s15, %s14_s15  }
   0x2   : > { %p162_p1 = scmp.lt.s32.totalorder %s632_s15, 3 }
   0x4   : > { %p163_p2 = pnand %p543_p0, %p162_p1 }
   0x5   : > { %p188_p3 = scmp.lt.s32.totalorder (!%p163_p2), %s539_s16, 1  ;;  %v634_v0 = vmov (!%p163_p2), 0   ;;  %v614_v1 = vld [vmem:[%s741_s1 + $0x4] ss:$8 sps:$4 sm:$0xff] (!%p163_p2)   ;;  %vm293_vm0 = vcmask (!%p163_p2), 130048   ;;  %vm349_vm1 = vcmask (!%p163_p2), 523264  }
   0x6   : > { %166 = sbr.rel (%p163_p2) target bundleno = 591 (0x24f), region = 36  ;;  %300 = vmatprep.subr.bf16.mxu0 (!%p163_p2), %v634_v0  ;;  %573 = vmatprep.subr.bf16.mxu1 (!%p163_p2), %v634_v0  ;;  %v617_v2 = vld [vmem:[%s741_s1 + $0x14] ss:$8 sps:$4 sm:$0xff] (!%p163_p2)   ;;  %v612_v12 = vld [vmem:[%s741_s1] ss:$8 sps:$4 sm:$0xff] (!%p163_p2)   ;;  %vm479_vm2 = vcmask (!%p163_p2), 519168  }
   0x7   : > { %602 = vset.pattern.permute.xlu1 (!%p163_p2), %v634_v0  ;;  %601 = vset.pattern.permute.xlu0 (!%p163_p2), %v634_v0  ;;  %v615_v13 = vld [vmem:[%s741_s1 + $0x10] ss:$8 sps:$4 sm:$0xff] (!%p163_p2)   ;;  %v404_v26 = vld [vmem:[%s742_s2 + $0x8] sm:$0xff] (!%p163_p2)  ;;  %v431_v29 = vld [vmem:[%s743_s3] sm:$0xff] (!%p163_p2) }
   0x8   : > { %560 = vmatprep.mubr.msk.bf16.mxu0 (!%p163_p2), %vm293_vm0, %v614_v1  ;;  %561 = vmatprep.mubr.msk.bf16.mxu1 (!%p163_p2), %vm293_vm0, %v617_v2  ;;  %v405_v27 = vld [vmem:[%s742_s2 + $0x10] sm:$0xff] (!%p163_p2)  ;;  %v406_v28 = vld [vmem:[%s742_s2 + $0x18] sm:$0xff] (!%p163_p2)  ;;  %v432_v30 = vld [vmem:[%s743_s3 + $0x8] sm:$0xff] (!%p163_p2) }
   0x9   : > { %v433_v31 = vld [vmem:[%s743_s3 + $0x10] sm:$0xff] (!%p163_p2)  ;;  %v434_v52 = vld [vmem:[%s743_s3 + $0x18] sm:$0xff] (!%p163_p2)  ;;  %v403_v53 = vld [vmem:[%s742_s2] sm:$0xff] (!%p163_p2) }
   0xd   : > { %s746_s16 = smov (!%p188_p3, %s539_s16), 1 }
   0xe   : > { %s591_s21 = smul.u32 72, %s746_s16 }
  0x10   : > { %s680_s24 = scalar_lea.vmem %s740_s0, %s591_s21  ;;  %s568_s21 = sshll.u32 %s746_s16, 4 }
  0x11   : > { %v603_v3 = vld [vmem:[%s680_s24] sm:$0xff]   ;;  %v604_v4 = vld [vmem:[%s680_s24 + $0x8] sm:$0xff]   ;;  %v605_v5 = vld [vmem:[%s680_s24 + $0x10] sm:$0xff]  }
  0x12   : > { %301 = vmatpush1.bf16.msra.mxu0 %v603_v3  ;;  %582 = vmatpush1.bf16.msra.mxu1 %v603_v3  ;;  %v606_v6 = vld [vmem:[%s680_s24 + $0x18] sm:$0xff]   ;;  %v607_v7 = vld [vmem:[%s680_s24 + $0x20] sm:$0xff]   ;;  %v608_v8 = vld [vmem:[%s680_s24 + $0x28] sm:$0xff]  }
  0x13   : > { %302 = vmatprep.subr.bf16.mxu0 %v634_v0  ;;  %574 = vmatprep.subr.bf16.mxu1 %v634_v0  ;;  %v609_v9 = vld [vmem:[%s680_s24 + $0x30] sm:$0xff]   ;;  %v610_v10 = vld [vmem:[%s680_s24 + $0x38] sm:$0xff]   ;;  %v611_v11 = vld [vmem:[%s680_s24 + $0x40] sm:$0xff]   ;;  %s197_s24 = scalar_lea.vmem %s744_s4, %s568_s21 }
  0x16   : > { %303 = vmatpush1.bf16.msra.mxu0 %v604_v4  ;;  %583 = vmatpush1.bf16.msra.mxu1 %v604_v4 }
  0x17   : > { %304 = vmatprep.subr.bf16.mxu0 %v634_v0  ;;  %575 = vmatprep.subr.bf16.mxu1 %v634_v0 }
  0x1a   : > { %305 = vmatpush1.bf16.msra.mxu0 %v605_v5  ;;  %584 = vmatpush1.bf16.msra.mxu1 %v605_v5 }
  0x1b   : > { %306 = vmatprep.subr.bf16.mxu0 %v634_v0  ;;  %576 = vmatprep.subr.bf16.mxu1 %v634_v0 }
  0x1e   : > { %307 = vmatpush1.bf16.msra.mxu0 %v606_v6  ;;  %585 = vmatpush1.bf16.msra.mxu1 %v606_v6 }
  0x1f   : > { %308 = vmatprep.subr.bf16.mxu0 %v634_v0  ;;  %577 = vmatprep.subr.bf16.mxu1 %v634_v0 }
  0x22   : > { %309 = vmatpush1.bf16.msra.mxu0 %v607_v7  ;;  %586 = vmatpush1.bf16.msra.mxu1 %v607_v7 }
  0x23   : > { %310 = vmatprep.subr.bf16.mxu0 %v634_v0  ;;  %578 = vmatprep.subr.bf16.mxu1 %v634_v0 }
  0x26   : > { %311 = vmatpush1.bf16.msra.mxu0 %v608_v8  ;;  %587 = vmatpush1.bf16.msra.mxu1 %v608_v8 }
  0x27   : > { %312 = vmatprep.subr.bf16.mxu0 %v634_v0  ;;  %579 = vmatprep.subr.bf16.mxu1 %v634_v0 }
  0x2a   : > { %313 = vmatpush1.bf16.msra.mxu0 %v609_v9  ;;  %588 = vmatpush1.bf16.msra.mxu1 %v609_v9 }
  0x2b   : > { %314 = vmatprep.subr.bf16.mxu0 %v634_v0  ;;  %580 = vmatprep.subr.bf16.mxu1 %v634_v0 }
  0x2e   : > { %315 = vmatpush1.bf16.msra.mxu0 %v610_v10  ;;  %589 = vmatpush1.bf16.msra.mxu1 %v610_v10 }
  0x2f   : > { %316 = vmatprep.subr.bf16.mxu0 %v634_v0  ;;  %581 = vmatprep.subr.bf16.mxu1 %v634_v0 }
  0x32   : > { %317 = vmatpush1.bf16.msra.mxu0 %v611_v11  ;;  %590 = vmatpush1.bf16.msra.mxu1 %v611_v11 }
  0x35   : > { %333 = vmatmul.mubr.bf16.vlgmr.msra.gmra.mrb[0].mxu0 %v612_v12  ;;  %341 = vmatmul.mubr.bf16.vlgmr.msra.gmra.mrb[0].mxu1 %v615_v13 }
 0x108   : > { %v334_v14 = vpop.f32.mrb[0].mxu0  ;;  %v342_v15 = vpop.f32.mrb[0].mxu1 }
 0x109   : > { %v336_v16 = vpop.f32.mrb[1].mxu0  ;;  %v356_v17 = vsel %vm349_vm1, %v342_v15, 0.0  ;;  %v344_v18 = vpop.f32.mrb[1].mxu1  ;;  %v350_v19 = vsel %vm349_vm1, %v334_v14, 0.0 }
 0x10a   : > { %357 = vadd.xlane.f32.xlu1 %v356_v17  ;;  %351 = vadd.xlane.f32.xlu0 %v350_v19  ;;  %v337_v20 = vpop.f32.mrb[2].mxu0  ;;  %v345_v21 = vpop.f32.mrb[2].mxu1 }
 0x10b   : > { %v339_v22 = vpop.f32.mrb[3].mxu0  ;;  %v347_v23 = vpop.f32.mrb[3].mxu1  ;;  %v359_v24 = vsel %vm349_vm1, %v345_v21, 0.0  ;;  %v353_v25 = vsel %vm349_vm1, %v337_v20, 0.0 }
 0x10e   : > { %360 = vadd.xlane.f32.xlu1 %v359_v24  ;;  %354 = vadd.xlane.f32.xlu0 %v353_v25 }
 0x11f   : > { %414 = vperm.xlu1 %602, %v404_v26  }
 0x123   : > { %419 = vperm.xlu1 %602, %v405_v27  }
 0x127   : > { %424 = vperm.xlu1 %602, %v406_v28  }
 0x12b   : > { %437 = vperm.xlu1 %602, %v431_v29  }
 0x12f   : > { %442 = vperm.xlu1 %602, %v432_v30  }
 0x133   : > { %447 = vperm.xlu1 %602, %v433_v31  }
 0x197   : > { %v358_v32 = vpop.xlane.xlu1 %357  ;;  %v352_v33 = vpop.xlane.xlu0 %351 }
 0x198   : > { %v365_v34 = vmul.f32 0.015625, %v358_v32  ;;  %v363_v35 = vmul.f32 0.015625, %v352_v33 }
 0x19a   : > { %v369_v36 = vsub.f32 %v342_v15, %v365_v34  ;;  %v367_v37 = vsub.f32 %v334_v14, %v363_v35 }
 0x19b   : > { %v361_v38 = vpop.xlane.xlu1 %360  ;;  %v355_v39 = vpop.xlane.xlu0 %354 }
 0x19c   : > { %v366_v40 = vmul.f32 0.015625, %v361_v38  ;;  %v364_v41 = vmul.f32 0.015625, %v355_v39  ;;  %v371_v42 = vmul.f32 %v367_v37, %v367_v37  ;;  %v373_v46 = vmul.f32 %v369_v36, %v369_v36 }
 0x19e   : > { %v370_v43 = vsub.f32 %v345_v21, %v366_v40  ;;  %v368_v44 = vsub.f32 %v337_v20, %v364_v41  ;;  %v375_v45 = vsel %vm349_vm1, %v371_v42, 0.0  ;;  %v381_v48 = vsel %vm349_vm1, %v373_v46, 0.0 }
 0x19f   : > { %376 = vadd.xlane.f32.xlu0 %v375_v45  ;;  %v415_v54 = vpop.permute.xlu1 %414 }
 0x1a0   : > { %v372_v47 = vmul.f32 %v368_v44, %v368_v44  ;;  %v374_v50 = vmul.f32 %v370_v43, %v370_v43 }
 0x1a2   : > { %v378_v49 = vsel %vm349_vm1, %v372_v47, 0.0  ;;  %v384_v51 = vsel %vm349_vm1, %v374_v50, 0.0 }
 0x1a3   : > { %382 = vadd.xlane.f32.xlu0 %v381_v48  ;;  %379 = vadd.xlane.f32.xlu1 %v378_v49  ;;  %v420_v55 = vpop.permute.xlu1 %419 }
 0x1a7   : > { %385 = vadd.xlane.f32.xlu1 %v384_v51  ;;  %v425_v56 = vpop.permute.xlu1 %424 }
 0x1ab   : > { %v438_v57 = vpop.permute.xlu1 %437 }
 0x1af   : > { %v443_v58 = vpop.permute.xlu1 %442 }
 0x1b3   : > { %v448_v59 = vpop.permute.xlu1 %447 }
 0x1b8   : > { %452 = vperm.xlu1 %602, %v434_v52  }
 0x1b9   : > { %409 = vperm.xlu0 %601, %v403_v53  }
 0x22c   : > { %v377_v60 = vpop.xlane.xlu0 %376 }
 0x22d   : > { %v387_v61 = vmul.f32 0.015625, %v377_v60 }
 0x22f   : > { %v391_v62 = vadd.f32 1e-05, %v387_v61 }
 0x230   : > { %v380_v63 = vpop.xlane.xlu1 %379  ;;  %v383_v0 = vpop.xlane.xlu0 %382 }
 0x231   : > { %618 = vrsqrt.f32 %v391_v62  ;;  %v388_v1 = vmul.f32 0.015625, %v380_v63  ;;  %v389_v2 = vmul.f32 0.015625, %v383_v0 }
 0x233   : > { %v392_v3 = vadd.f32 1e-05, %v388_v1  ;;  %v393_v4 = vadd.f32 1e-05, %v389_v2 }
 0x234   : > { %v386_v5 = vpop.xlane.xlu1 %385 }
 0x235   : > { %620 = vrsqrt.f32 %v392_v3  ;;  %v390_v6 = vmul.f32 0.015625, %v386_v5 }
 0x236   : > { %622 = vrsqrt.f32 %v393_v4 }
 0x237   : > { %v394_v7 = vadd.f32 1e-05, %v390_v6 }
 0x238   : > { %v410_v9 = vpop.permute.xlu0 %409  ;;  %v453_v28 = vpop.permute.xlu1 %452 }
 0x239   : > { %624 = vrsqrt.f32 %v394_v7 }
 0x23b   : > { %v619_v8 = vpop.eup %618 }
 0x23c   : > { %v399_v10 = vmul.f32 %v619_v8, %v367_v37 }
 0x23e   : > { %v427_v11 = vmul.f32 %v410_v9, %v399_v10 }
 0x23f   : > { %v621_v12 = vpop.eup %620 }
 0x240   : > { %v623_v13 = vpop.eup %622  ;;  %v400_v14 = vmul.f32 %v621_v12, %v368_v44  ;;  %v455_v15 = vadd.f32 %v438_v57, %v427_v11 }
 0x241   : > { %v401_v16 = vmul.f32 %v623_v13, %v369_v36 }
 0x242   : > { %v428_v17 = vmul.f32 %v415_v54, %v400_v14  ;;  %v459_v18 = vmax.f32 %v455_v15, 0.0 }
 0x243   : > { %v625_v19 = vpop.eup %624  ;;  %v429_v20 = vmul.f32 %v420_v55, %v401_v16 }
 0x244   : > { %v456_v21 = vadd.f32 %v443_v58, %v428_v17  ;;  %v402_v22 = vmul.f32 %v625_v19, %v370_v43  ;;  %v569_v23 = vpack.c.bf16 %v459_v18, %v459_v18 }
 0x245   : > { %v457_v24 = vadd.f32 %v448_v59, %v429_v20 }
 0x246   : > { %v460_v25 = vmax.f32 %v456_v21, 0.0  ;;  %v430_v26 = vmul.f32 %v425_v56, %v402_v22  ;;  %480 = vst.msk [vmem:[%s197_s24] sm:$0xf] %vm479_vm2, %v569_v23 }
 0x247   : > { %v461_v27 = vmax.f32 %v457_v24, 0.0 }
 0x248   : > { %v570_v29 = vpack.c.bf16 %v460_v25, %v460_v25  ;;  %v458_v30 = vadd.f32 %v453_v28, %v430_v26 }
 0x249   : > { %v571_v31 = vpack.c.bf16 %v461_v27, %v461_v27 }
 0x24a   : > { %481 = vst.msk [vmem:[%s197_s24 + $0x4] sm:$0xf] %vm479_vm2, %v570_v29  ;;  %v462_v32 = vmax.f32 %v458_v30, 0.0 }
 0x24b   : > { %482 = vst.msk [vmem:[%s197_s24 + $0x8] sm:$0xf] %vm479_vm2, %v571_v31 }
 0x24c   : > { %v572_v33 = vpack.c.bf16 %v462_v32, %v462_v32 }
 0x24e   : > { %483 = vst.msk [vmem:[%s197_s24 + $0xc] sm:$0xf] %vm479_vm2, %v572_v33 }
 0x24f PF: > { %s14_s15 = sadd.s32 1, %s632_s15  }
 0x250   : > { %p11_p4 = scmp.ge.s32.totalorder %s14_s15, 4  }
 0x252   :  { %13 = sbr.rel (!%p11_p4) target bundleno = 1 (0x1), region = 66 }

// kernel: minimonet_forward.29
= control target key start
LH: loop header
LB: loop body
LE: loop exit
PB: predicated region body
PF: predicated region fallthrough
CT: control target
= control target key end

     0   :  { %v1621_v22 = vmov 1966171168   ;;  %v168_v24 = vlaneseq  ;;  %vm1623_vm0 = vmmov 0   ;;  %vm806_vm1 = vcmask 523264   ;;  %s2015_s1 = inlined_call_operand.vmem [shape: bf16[1024,64], index: 1, kind: input, shape index: {}]   ;;  %s2016_s0 = inlined_call_operand.vmem [shape: bf16[2,1024], index: 0, kind: input, shape index: {}]   ;;  %s2017_s3 = inlined_call_operand.vmem [shape: bf16[64,64], index: 3, kind: input, shape index: {}]   ;;  %s2018_s5 = inlined_call_operand.vmem [shape: bf16[64,1024], index: 5, kind: input, shape index: {}]   ;;  %s2019_s2 = inlined_call_operand.vmem [shape: f32[1,64], index: 2, kind: input, shape index: {}]   ;;  %s2020_s4 = inlined_call_operand.vmem [shape: f32[1,64], index: 4, kind: input, shape index: {}]   ;;  %s2021_s6 = inlined_call_operand.vmem [shape: f32[1,1024], index: 6, kind: input, shape index: {}]   ;;  %s2022_s7 = inlined_call_operand.vmem [shape: bf16[2,1024], index: 7, kind: output, shape index: {}]  }
   0x1   :  { %v1552_v0 = vld [vmem:[%s2015_s1 + $0x40] sm:$0xff]   ;;  %v1556_v4 = vld [vmem:[%s2015_s1 + $0x48] sm:$0xff]   ;;  %v1560_v8 = vld [vmem:[%s2015_s1 + $0x50] sm:$0xff]   ;;  %v166_v23 = vunpack.c.l.s4 %v1621_v22 }
   0x2   :  { %v1553_v1 = vld [vmem:[%s2015_s1 + $0xc0] sm:$0xff]   ;;  %1443 = vmatprep.subr.bf16.mxu0 %v1552_v0  ;;  %v1557_v5 = vld [vmem:[%s2015_s1 + $0xc8] sm:$0xff]   ;;  %v1561_v9 = vld [vmem:[%s2015_s1 + $0xd0] sm:$0xff]   ;;  %v1743_v30 = vshrl.u32 %v168_v24, 7 }
   0x3   :  { %v1554_v2 = vld [vmem:[%s2015_s1] sm:$0xff]   ;;  %1465 = vmatprep.subr.bf16.mxu1 %v1553_v1  ;;  %v1558_v6 = vld [vmem:[%s2015_s1 + $0x8] sm:$0xff]   ;;  %v1562_v10 = vld [vmem:[%s2015_s1 + $0x10] sm:$0xff]   ;;  %v167_v29 = vunpack.c.0.s8 %v166_v23 }
   0x4   :  { %v1555_v3 = vld [vmem:[%s2015_s1 + $0x80] sm:$0xff]   ;;  %1444 = vmatpush3.bf16.msra.mxu0 %v1554_v2  ;;  %v1559_v7 = vld [vmem:[%s2015_s1 + $0x88] sm:$0xff]   ;;  %v1563_v11 = vld [vmem:[%s2015_s1 + $0x90] sm:$0xff]  }
   0x5   :  { %1466 = vmatpush3.bf16.msra.mxu1 %v1555_v3  ;;  %1445 = vmatprep.subr.bf16.mxu0 %v1556_v4  ;;  %v1564_v12 = vld [vmem:[%s2015_s1 + $0x58] sm:$0xff]   ;;  %v1568_v16 = vld [vmem:[%s2015_s1 + $0x60] sm:$0xff]   ;;  %v1572_v20 = vld [vmem:[%s2015_s1 + $0x68] sm:$0xff]   ;;  %v1758_v35 = vsub.s32 %v167_v29, %v1743_v30 }
   0x6   :  { %1467 = vmatprep.subr.bf16.mxu1 %v1557_v5  ;;  %v1565_v13 = vld [vmem:[%s2015_s1 + $0xd8] sm:$0xff]   ;;  %v1569_v17 = vld [vmem:[%s2015_s1 + $0xe0] sm:$0xff]   ;;  %v1573_v21 = vld [vmem:[%s2015_s1 + $0xe8] sm:$0xff]  }
   0x7   :  { %v1566_v14 = vld [vmem:[%s2015_s1 + $0x18] sm:$0xff]   ;;  %v1570_v18 = vld [vmem:[%s2015_s1 + $0x20] sm:$0xff]   ;;  %v1574_v25 = vld [vmem:[%s2015_s1 + $0x28] sm:$0xff]  }
   0x8   :  { %1446 = vmatpush3.bf16.msra.mxu0 %v1558_v6  ;;  %v1567_v15 = vld [vmem:[%s2015_s1 + $0x98] sm:$0xff]   ;;  %v1571_v19 = vld [vmem:[%s2015_s1 + $0xa0] sm:$0xff]   ;;  %v1575_v26 = vld [vmem:[%s2015_s1 + $0xa8] sm:$0xff]  }
   0x9   :  { %1468 = vmatpush3.bf16.msra.mxu1 %v1559_v7  ;;  %1447 = vmatprep.subr.bf16.mxu0 %v1560_v8  ;;  %v1576_v27 = vld [vmem:[%s2015_s1 + $0x70] sm:$0xff]   ;;  %v1580_v33 = vld [vmem:[%s2015_s1 + $0x78] sm:$0xff]   ;;  %v27_v38 = vld [vmem:[%s2016_s0] sm:$0xff] }
   0xa   :  { %1469 = vmatprep.subr.bf16.mxu1 %v1561_v9  ;;  %v1577_v28 = vld [vmem:[%s2015_s1 + $0xf0] sm:$0xff]   ;;  %v1581_v34 = vld [vmem:[%s2015_s1 + $0xf8] sm:$0xff]   ;;  %v164_v39 = vcombine.high %v27_v38, %v27_v38  ;;  %v171_v40 = vrot.slane %v27_v38, %v1758_v35  ;;  %v1585_v41 = vld [vmem:[%s2015_s1 + $0x140] sm:$0xff]  }
   0xb   :  { %v1578_v31 = vld [vmem:[%s2015_s1 + $0x30] sm:$0xff]   ;;  %v1582_v36 = vld [vmem:[%s2015_s1 + $0x38] sm:$0xff]   ;;  %v1586_v42 = vld [vmem:[%s2015_s1 + $0x1c0] sm:$0xff]  }
   0xc   :  { %1448 = vmatpush3.bf16.msra.mxu0 %v1562_v10  ;;  %v1579_v32 = vld [vmem:[%s2015_s1 + $0xb0] sm:$0xff]   ;;  %v1583_v37 = vld [vmem:[%s2015_s1 + $0xb8] sm:$0xff]   ;;  %v179_v43 = vcombine.high %v171_v40, %v171_v40  ;;  %v187_v44 = vrot.slane %v171_v40, %v1758_v35  ;;  %v1778_v45 = vrot.slane %v164_v39, %v1758_v35  ;;  %v1587_v47 = vld [vmem:[%s2015_s1 + $0x100] sm:$0xff]  }
   0xd   :  { %1470 = vmatpush3.bf16.msra.mxu1 %v1563_v11  ;;  %1449 = vmatprep.subr.bf16.mxu0 %v1564_v12  ;;  %v1589_v50 = vld [vmem:[%s2015_s1 + $0x148] sm:$0xff]   ;;  %v1588_v52 = vld [vmem:[%s2015_s1 + $0x180] sm:$0xff]   ;;  %v1593_v57 = vld [vmem:[%s2015_s1 + $0x150] sm:$0xff]  }
   0xe   :  { %1471 = vmatprep.subr.bf16.mxu1 %v1565_v13  ;;  %v201_v46 = vrot.slane %v179_v43, %v1758_v35  ;;  %v180_v48 = vcombine.high %v1778_v45, %v1778_v45  ;;  %v209_v49 = vcombine.high %v187_v44, %v187_v44  ;;  %v1590_v54 = vld [vmem:[%s2015_s1 + $0x1c8] sm:$0xff]   ;;  %v1594_v59 = vld [vmem:[%s2015_s1 + $0x1d0] sm:$0xff]   ;;  %v1597_v61 = vld [vmem:[%s2015_s1 + $0x158] sm:$0xff]  }
   0xf   :  { %v1591_v55 = vld [vmem:[%s2015_s1 + $0x108] sm:$0xff]   ;;  %v1595_v60 = vld [vmem:[%s2015_s1 + $0x110] sm:$0xff]   ;;  %v1598_v63 = vld [vmem:[%s2015_s1 + $0x1d8] sm:$0xff]  }
  0x10   :  { %1450 = vmatpush3.bf16.msra.mxu0 %v1566_v14  ;;  %637 = vmatprep.mubr.bf16.mxu0 %v201_v46  ;;  %v211_v51 = vcombine.high %v201_v46, %v201_v46  ;;  %v208_v53 = vrot.slane %v180_v48, %v1758_v35  ;;  %v1592_v58 = vld [vmem:[%s2015_s1 + $0x188] sm:$0xff]   ;;  %v1596_v62 = vld [vmem:[%s2015_s1 + $0x190] sm:$0xff]   ;;  %v1599_v0 = vld [vmem:[%s2015_s1 + $0x118] sm:$0xff]  }
  0x11   :  { %1472 = vmatpush3.bf16.msra.mxu1 %v1567_v15  ;;  %1451 = vmatprep.subr.bf16.mxu0 %v1568_v16  ;;  %v1601_v1 = vld [vmem:[%s2015_s1 + $0x160] sm:$0xff]   ;;  %v1600_v2 = vld [vmem:[%s2015_s1 + $0x198] sm:$0xff]   ;;  %v1605_v5 = vld [vmem:[%s2015_s1 + $0x168] sm:$0xff]  }
  0x12   :  { %1473 = vmatprep.subr.bf16.mxu1 %v1569_v17  ;;  %677 = vmatprep.mubr.bf16.mxu1 %v211_v51  ;;  %v212_v56 = vcombine.high %v208_v53, %v208_v53  ;;  %v1602_v3 = vld [vmem:[%s2015_s1 + $0x1e0] sm:$0xff]   ;;  %v1606_v7 = vld [vmem:[%s2015_s1 + $0x1e8] sm:$0xff]   ;;  %v1609_v9 = vld [vmem:[%s2015_s1 + $0x170] sm:$0xff]   ;;  %v194_v17 = vrot.slane %v1778_v45, %v1758_v35 }
  0x13   :  { %v1603_v4 = vld [vmem:[%s2015_s1 + $0x120] sm:$0xff]   ;;  %v1607_v8 = vld [vmem:[%s2015_s1 + $0x128] sm:$0xff]   ;;  %v1610_v11 = vld [vmem:[%s2015_s1 + $0x1f0] sm:$0xff]  }
  0x14   :  { %1452 = vmatpush3.bf16.msra.mxu0 %v1570_v18  ;;  %v1604_v6 = vld [vmem:[%s2015_s1 + $0x1a0] sm:$0xff]   ;;  %v1608_v10 = vld [vmem:[%s2015_s1 + $0x1a8] sm:$0xff]   ;;  %v1611_v12 = vld [vmem:[%s2015_s1 + $0x130] sm:$0xff]  }
  0x15   :  { %1474 = vmatpush3.bf16.msra.mxu1 %v1571_v19  ;;  %1453 = vmatprep.subr.bf16.mxu0 %v1572_v20  ;;  %v1613_v13 = vld [vmem:[%s2015_s1 + $0x178] sm:$0xff]   ;;  %v1612_v14 = vld [vmem:[%s2015_s1 + $0x1b0] sm:$0xff]   ;;  %v210_v19 = vcombine.high %v194_v17, %v194_v17  ;;  %v1622_v20 = vmov 0.0   ;;  %v1618_v22 = vld [vmem:[%s2017_s3 + $0x8] sm:$0xff]  }
  0x16   :  { %1475 = vmatprep.subr.bf16.mxu1 %v1573_v21  ;;  %v1614_v15 = vld [vmem:[%s2015_s1 + $0x1f8] sm:$0xff]   ;;  %v1617_v21 = vld [vmem:[%s2017_s3] sm:$0xff]   ;;  %v1619_v23 = vld [vmem:[%s2017_s3 + $0x10] sm:$0xff]  }
  0x17   :  { %v1615_v16 = vld [vmem:[%s2015_s1 + $0x138] sm:$0xff]   ;;  %v867_v39 = vld [vmem:[%s2018_s5 + $0x80] sm:$0xff] }
  0x18   :  { %1454 = vmatpush3.bf16.msra.mxu0 %v1574_v25  ;;  %v1616_v18 = vld [vmem:[%s2015_s1 + $0x1b8] sm:$0xff]   ;;  %v851_v25 = vld [vmem:[%s2018_s5] sm:$0xff] }
  0x19   :  { %1476 = vmatpush3.bf16.msra.mxu1 %v1575_v26  ;;  %1455 = vmatprep.subr.bf16.mxu0 %v1576_v27  ;;  %v1620_v24 = vld [vmem:[%s2017_s3 + $0x18] sm:$0xff]   ;;  %v855_v26 = vld [vmem:[%s2018_s5 + $0x20] sm:$0xff]  ;;  %v852_v27 = vld [vmem:[%s2018_s5 + $0x8] sm:$0xff] }
  0x1a   :  { %1477 = vmatprep.subr.bf16.mxu1 %v1577_v28  ;;  %v1403_v28 = vcombine.low %v851_v25, %v855_v26  ;;  %v1404_v29 = vcombine.high %v851_v25, %v855_v26  ;;  %v871_v40 = vld [vmem:[%s2018_s5 + $0xa0] sm:$0xff]  ;;  %v1624_v25 = vmov 0  }
  0x1c   :  { %1456 = vmatpush3.bf16.msra.mxu0 %v1578_v31  ;;  %v856_v31 = vld [vmem:[%s2018_s5 + $0x28] sm:$0xff] }
  0x1d   :  { %1478 = vmatpush3.bf16.msra.mxu1 %v1579_v32  ;;  %1457 = vmatprep.subr.bf16.mxu0 %v1580_v33  ;;  %v859_v32 = vld [vmem:[%s2018_s5 + $0x40] sm:$0xff] }
  0x1e   :  { %1479 = vmatprep.subr.bf16.mxu1 %v1581_v34  ;;  %v863_v33 = vld [vmem:[%s2018_s5 + $0x60] sm:$0xff]  ;;  %v1405_v34 = vcombine.low %v852_v27, %v856_v31 }
  0x1f   :  { %v1411_v38 = vcombine.low %v859_v32, %v863_v33 }
  0x20   :  { %1458 = vmatpush3.bf16.msra.mxu0 %v1582_v36  ;;  %v1406_v36 = vcombine.high %v852_v27, %v856_v31 }
  0x21   :  { %1480 = vmatpush3.bf16.msra.mxu1 %v1583_v37  ;;  %1487 = vmatprep.subr.bf16.mxu0 %v1585_v41  ;;  %v1412_v37 = vcombine.high %v859_v32, %v863_v33  ;;  %v1420_v41 = vcombine.high %v867_v39, %v871_v40  ;;  %v1397_v32 = vld [vmem:[%s2020_s4] ss:$0 sm:$0xff] }
  0x22   :  { %1509 = vmatprep.subr.bf16.mxu1 %v1586_v42  ;;  %v1419_v42 = vcombine.low %v867_v39, %v871_v40  ;;  %v865_v39 = vld [vmem:[%s2018_s5 + $0x70] sm:$0xff]  ;;  %v862_v40 = vld [vmem:[%s2018_s5 + $0x58] sm:$0xff] }
  0x23   :  { %638 = vmatmul.mubr.bf16.vlgmr.msra.gmra.mrb[0].mxu0 %v187_v44  ;;  %v1332_v44 = vld [vmem:[%s2019_s2] ss:$0 sm:$0xff] }
  0x24   :  { %1488 = vmatpush3.bf16.msra.mxu0 %v1587_v47  ;;  %678 = vmatmul.mubr.bf16.vlgmr.msra.gmra.mrb[0].mxu1 %v209_v49 }
  0x25   :  { %1489 = vmatprep.subr.bf16.mxu0 %v1589_v50  ;;  %1510 = vmatpush3.bf16.msra.mxu1 %v1588_v52 }
  0x26   :  { %717 = vmatprep.mubr.bf16.mxu0 %v208_v53  ;;  %1511 = vmatprep.subr.bf16.mxu1 %v1590_v54 }
  0x27   :  { %757 = vmatprep.mubr.bf16.mxu1 %v212_v56 }
  0x28   :  { %1490 = vmatpush3.bf16.msra.mxu0 %v1591_v55 }
  0x29   :  { %1491 = vmatprep.subr.bf16.mxu0 %v1593_v57  ;;  %1512 = vmatpush3.bf16.msra.mxu1 %v1592_v58 }
  0x2a   :  { %1513 = vmatprep.subr.bf16.mxu1 %v1594_v59 }
  0x2c   :  { %1492 = vmatpush3.bf16.msra.mxu0 %v1595_v60 }
  0x2d   :  { %1493 = vmatprep.subr.bf16.mxu0 %v1597_v61  ;;  %1514 = vmatpush3.bf16.msra.mxu1 %v1596_v62 }
  0x2e   :  { %1515 = vmatprep.subr.bf16.mxu1 %v1598_v63 }
  0x30   :  { %1494 = vmatpush3.bf16.msra.mxu0 %v1599_v0 }
  0x31   :  { %1495 = vmatprep.subr.bf16.mxu0 %v1601_v1  ;;  %1516 = vmatpush3.bf16.msra.mxu1 %v1600_v2 }
  0x32   :  { %1517 = vmatprep.subr.bf16.mxu1 %v1602_v3 }
  0x34   :  { %1496 = vmatpush3.bf16.msra.mxu0 %v1603_v4  ;;  %v860_v4 = vld [vmem:[%s2018_s5 + $0x48] sm:$0xff] }
  0x35   :  { %1497 = vmatprep.subr.bf16.mxu0 %v1605_v5  ;;  %1518 = vmatpush3.bf16.msra.mxu1 %v1604_v6  ;;  %v864_v5 = vld [vmem:[%s2018_s5 + $0x68] sm:$0xff] }
  0x36   :  { %1519 = vmatprep.subr.bf16.mxu1 %v1606_v7 }
  0x38   :  { %1498 = vmatpush3.bf16.msra.mxu0 %v1607_v8  ;;  %v1414_v8 = vcombine.high %v860_v4, %v864_v5 }
  0x39   :  { %1499 = vmatprep.subr.bf16.mxu0 %v1609_v9  ;;  %1520 = vmatpush3.bf16.msra.mxu1 %v1608_v10  ;;  %v868_v9 = vld [vmem:[%s2018_s5 + $0x88] sm:$0xff] }
  0x3a   :  { %1521 = vmatprep.subr.bf16.mxu1 %v1610_v11  ;;  %v872_v10 = vld [vmem:[%s2018_s5 + $0xa8] sm:$0xff]  ;;  %v1413_v11 = vcombine.low %v860_v4, %v864_v5  ;;  %v892_v4 = vsub.s32 1, %v1743_v30  ;;  %v900_v5 = vsub.s32 3, %v1743_v30 }
  0x3c   :  { %1500 = vmatpush3.bf16.msra.mxu0 %v1611_v12  ;;  %v1422_v12 = vcombine.high %v868_v9, %v872_v10 }
  0x3d   :  { %1501 = vmatprep.subr.bf16.mxu0 %v1613_v13  ;;  %1522 = vmatpush3.bf16.msra.mxu1 %v1612_v14  ;;  %v1421_v13 = vcombine.low %v868_v9, %v872_v10  ;;  %v875_v14 = vld [vmem:[%s2018_s5 + $0xc0] sm:$0xff] }
  0x3e   :  { %1523 = vmatprep.subr.bf16.mxu1 %v1614_v15  ;;  %v879_v15 = vld [vmem:[%s2018_s5 + $0xe0] sm:$0xff] }
  0x40   :  { %1502 = vmatpush3.bf16.msra.mxu0 %v1615_v16  ;;  %v876_v16 = vld [vmem:[%s2018_s5 + $0xc8] sm:$0xff] }
  0x41   :  { %1524 = vmatpush3.bf16.msra.mxu1 %v1616_v18  ;;  %1536 = vmatprep.subr.bf16.mxu0 %v1622_v20  ;;  %v880_v18 = vld [vmem:[%s2018_s5 + $0xe8] sm:$0xff] }
  0x42   :  { %1089 = vmatprep.subr.bf16.mxu1 %v1404_v29 }
  0x43   :  { %718 = vmatmul.mubr.bf16.vlgmr.msra.gmra.mrb[4].mxu0 %v194_v17  ;;  %v1428_v17 = vcombine.high %v875_v14, %v879_v15 }
  0x44   :  { %758 = vmatmul.mubr.bf16.vlgmr.msra.gmra.mrb[4].mxu1 %v210_v19  ;;  %1537 = vmatpush3.bf16.msra.mxu0 %v1617_v21  ;;  %v1427_v19 = vcombine.low %v875_v14, %v879_v15  ;;  %v1430_v21 = vcombine.high %v876_v16, %v880_v18 }
  0x45   :  { %1538 = vmatprep.subr.bf16.mxu0 %v1622_v20  ;;  %1544 = vmatprep.mubr.msk.bf16.mxu0 %vm1623_vm0, %v1622_v20 }
  0x46   :  { %1090 = vmatpush1.bf16.msra.mxu1 %v1403_v28  ;;  %1121 = vmatprep.mubr.bf16.mxu1 %v1624_v25  ;;  %v858_v28 = vld [vmem:[%s2018_s5 + $0x38] sm:$0xff] }
  0x47   :  { %1091 = vmatprep.subr.bf16.mxu1 %v1412_v37  ;;  %v861_v37 = vld [vmem:[%s2018_s5 + $0x50] sm:$0xff] }
  0x48   :  { %1539 = vmatpush3.bf16.msra.mxu0 %v1618_v22  ;;  %v853_v22 = vld [vmem:[%s2018_s5 + $0x10] sm:$0xff] }
  0x49   :  { %1540 = vmatprep.subr.bf16.mxu0 %v1622_v20 }
  0x4a   :  { %1092 = vmatpush1.bf16.msra.mxu1 %v1411_v38 }
  0x4b   :  { %1093 = vmatprep.subr.bf16.mxu1 %v1420_v41  ;;  %v866_v41 = vld [vmem:[%s2018_s5 + $0x78] sm:$0xff] }
  0x4c   :  { %1541 = vmatpush3.bf16.msra.mxu0 %v1619_v23  ;;  %v857_v23 = vld [vmem:[%s2018_s5 + $0x30] sm:$0xff] }
  0x4d   :  { %1542 = vmatprep.subr.bf16.mxu0 %v1622_v20  ;;  %v1429_v20 = vcombine.low %v876_v16, %v880_v18  ;;  %v1407_v26 = vcombine.low %v853_v22, %v857_v23  ;;  %v1408_v27 = vcombine.high %v853_v22, %v857_v23 }
  0x4e   :  { %1094 = vmatpush1.bf16.msra.mxu1 %v1419_v42 }
  0x4f   :  { %1095 = vmatprep.subr.bf16.mxu1 %v1428_v17 }
  0x50   :  { %1543 = vmatpush3.bf16.msra.mxu0 %v1620_v24  ;;  %v854_v24 = vld [vmem:[%s2018_s5 + $0x18] sm:$0xff] }
  0x51   :  { %1130 = vmatprep.subr.bf16.mxu0 %v1406_v36  ;;  %v1409_v29 = vcombine.low %v854_v24, %v858_v28  ;;  %v1410_v31 = vcombine.high %v854_v24, %v858_v28 }
  0x52   :  { %1096 = vmatpush1.bf16.msra.mxu1 %v1427_v19 }
  0x53   :  { %1171 = vmatprep.subr.bf16.mxu1 %v1408_v27 }
  0xf6   :  { %v1459_v43 = vpop.f32.mrb[0].mxu0 }
  0xf7   :  { %v1460_v45 = vpop.f32.mrb[1].mxu0  ;;  %v1481_v46 = vpop.f32.mrb[0].mxu1 }
  0xf8   :  { %v1461_v47 = vadd.f32 %v1460_v45, %v1459_v43  ;;  %v1462_v48 = vpop.f32.mrb[2].mxu0  ;;  %v1482_v49 = vpop.f32.mrb[1].mxu1  ;;  %v1416_v45 = vcombine.high %v861_v37, %v865_v39 }
  0xf9   :  { %v1463_v50 = vpop.f32.mrb[3].mxu0  ;;  %v1483_v52 = vadd.f32 %v1482_v49, %v1481_v46  ;;  %v1484_v53 = vpop.f32.mrb[2].mxu1  ;;  %v1418_v46 = vcombine.high %v862_v40, %v866_v41  ;;  %v873_v48 = vld [vmem:[%s2018_s5 + $0xb0] sm:$0xff]  ;;  %v870_v49 = vld [vmem:[%s2018_s5 + $0x98] sm:$0xff] }
  0xfa   :  { %v640_v51 = vadd.f32 %v1461_v47, %v1332_v44  ;;  %v1485_v54 = vpop.f32.mrb[3].mxu1  ;;  %v869_v47 = vld [vmem:[%s2018_s5 + $0x90] sm:$0xff]  ;;  %v874_v50 = vld [vmem:[%s2018_s5 + $0xb8] sm:$0xff] }
  0xfb   :  { %v1424_v53 = vcombine.high %v869_v47, %v873_v48  ;;  %v1426_v54 = vcombine.high %v870_v49, %v874_v50 }
  0xfc   :  { %v680_v55 = vadd.f32 %v1483_v52, %v640_v51  ;;  %v1415_v51 = vcombine.low %v861_v37, %v865_v39  ;;  %v1417_v52 = vcombine.low %v862_v40, %v866_v41 }
 0x116   :  { %v1503_v56 = vpop.f32.mrb[4].mxu0 }
 0x117   :  { %v1504_v57 = vpop.f32.mrb[5].mxu0  ;;  %v1525_v58 = vpop.f32.mrb[4].mxu1 }
 0x118   :  { %v1505_v59 = vadd.f32 %v1504_v57, %v1503_v56  ;;  %v1506_v60 = vpop.f32.mrb[6].mxu0  ;;  %v1526_v61 = vpop.f32.mrb[5].mxu1  ;;  %v881_v56 = vld [vmem:[%s2018_s5 + $0xf0] sm:$0xff]  ;;  %v878_v57 = vld [vmem:[%s2018_s5 + $0xd8] sm:$0xff] }
 0x119   :  { %v1507_v62 = vpop.f32.mrb[7].mxu0  ;;  %v1527_v0 = vadd.f32 %v1526_v61, %v1525_v58  ;;  %v1528_v1 = vpop.f32.mrb[6].mxu1  ;;  %v882_v58 = vld [vmem:[%s2018_s5 + $0xf8] sm:$0xff]  ;;  %v1425_v60 = vcombine.low %v870_v49, %v874_v50 }
 0x11a   :  { %v720_v63 = vadd.f32 %v1505_v59, %v680_v55  ;;  %v1529_v2 = vpop.f32.mrb[7].mxu1  ;;  %v877_v55 = vld [vmem:[%s2018_s5 + $0xd0] sm:$0xff]  ;;  %v1423_v59 = vcombine.low %v869_v47, %v873_v48  ;;  %v1434_v62 = vcombine.high %v878_v57, %v882_v58  ;;  %v888_v1 = vsub.s32 0, %v1743_v30 }
 0x11b   :  { %v1432_v61 = vcombine.high %v877_v55, %v881_v56  ;;  %v896_v2 = vsub.s32 2, %v1743_v30 }
 0x11c   :  { %v760_v3 = vadd.f32 %v1527_v0, %v720_v63  ;;  %v1431_v63 = vcombine.low %v877_v55, %v881_v56  ;;  %v1433_v0 = vcombine.low %v878_v57, %v882_v58 }
 0x11e   :  { %v765_v6 = vmax.f32 %v760_v3, 0.0  ;;  %v883_v3 = vld [vmem:[%s2021_s6] sm:$0xff] }
 0x11f   :  { %v901_v9 = vrot.slane %v883_v3, %v900_v5 }
 0x120   :  { %v775_v7 = vpack.c.bf16 %v765_v6, %v765_v6  ;;  %v889_v6 = vrot.slane %v883_v3, %v888_v1 }
 0x122   :  { %1545 = vmatmul.mubr.msk.bf16.vlgmr.msra.gmra.mrb[8].mxu0 %vm806_vm1, %v775_v7  ;;  %v897_v7 = vrot.slane %v883_v3, %v896_v2 }
 0x123   :  { %1131 = vmatpush1.bf16.msra.mxu0 %v1405_v34  ;;  %1162 = vmatprep.mubr.bf16.mxu0 %v1624_v25 }
 0x124   :  { %1132 = vmatprep.subr.bf16.mxu0 %v1414_v8  ;;  %v893_v8 = vrot.slane %v883_v3, %v892_v4 }
 0x127   :  { %1133 = vmatpush1.bf16.msra.mxu0 %v1413_v11 }
 0x128   :  { %1134 = vmatprep.subr.bf16.mxu0 %v1422_v12 }
 0x12b   :  { %1135 = vmatpush1.bf16.msra.mxu0 %v1421_v13 }
 0x12c   :  { %1136 = vmatprep.subr.bf16.mxu0 %v1430_v21 }
 0x12f   :  { %1137 = vmatpush1.bf16.msra.mxu0 %v1429_v20 }
 0x130   :  { %1212 = vmatprep.subr.bf16.mxu0 %v1410_v31  ;;  %v904_v31 = vsub.s32 4, %v1743_v30 }
 0x132   :  { %v905_v37 = vrot.slane %v883_v3, %v904_v31 }
 0x1f5   :  { %v844_v33 = vpop.f32.mrb[8].mxu0 }
 0x1f6   :  { %v845_v34 = vadd.f32 %v1397_v32, %v844_v33  ;;  %v1546_v36 = vpop.f32.mrb[9].mxu0  ;;  %v912_v32 = vsub.s32 6, %v1743_v30 }
 0x1f7   :  { %v847_v38 = vpop.f32.mrb[10].mxu0  ;;  %v916_v36 = vsub.s32 7, %v1743_v30 }
 0x1f8   :  { %v850_v42 = vmax.f32 %v845_v34, 0.0  ;;  %v1547_v43 = vpop.f32.mrb[11].mxu0  ;;  %v908_v34 = vsub.s32 5, %v1743_v30  ;;  %v913_v38 = vrot.slane %v883_v3, %v912_v32 }
 0x1f9   :  { %v917_v40 = vrot.slane %v883_v3, %v916_v36 }
 0x1fa   :  { %v884_v44 = vpack.c.bf16 %v850_v42, %v850_v42  ;;  %v909_v39 = vrot.slane %v883_v3, %v908_v34 }
 0x1fc   :  { %1435 = vmatmul.mubr.msk.bf16.vlgmr.msra.gmra.mrb[8].mxu1 %vm806_vm1, %v884_v44  ;;  %1436 = vmatmul.mubr.msk.bf16.vlgmr.msra.gmra.mrb[12].mxu0 %vm806_vm1, %v884_v44 }
 0x1fd   :  { %1172 = vmatpush1.bf16.msra.mxu1 %v1407_v26  ;;  %1213 = vmatpush1.bf16.msra.mxu0 %v1409_v29 }
 0x1fe   :  { %1173 = vmatprep.subr.bf16.mxu1 %v1416_v45  ;;  %1214 = vmatprep.subr.bf16.mxu0 %v1418_v46 }
 0x1ff   :  { %1203 = vmatprep.mubr.bf16.mxu1 %v1624_v25  ;;  %1244 = vmatprep.mubr.bf16.mxu0 %v1624_v25 }
 0x201   :  { %1174 = vmatpush1.bf16.msra.mxu1 %v1415_v51  ;;  %1215 = vmatpush1.bf16.msra.mxu0 %v1417_v52 }
 0x202   :  { %1175 = vmatprep.subr.bf16.mxu1 %v1424_v53  ;;  %1216 = vmatprep.subr.bf16.mxu0 %v1426_v54 }
 0x205   :  { %1176 = vmatpush1.bf16.msra.mxu1 %v1423_v59  ;;  %1217 = vmatpush1.bf16.msra.mxu0 %v1425_v60 }
 0x206   :  { %1177 = vmatprep.subr.bf16.mxu1 %v1432_v61  ;;  %1218 = vmatprep.subr.bf16.mxu0 %v1434_v62 }
 0x209   :  { %1178 = vmatpush1.bf16.msra.mxu1 %v1431_v63  ;;  %1219 = vmatpush1.bf16.msra.mxu0 %v1433_v0 }
 0x20c   :  { %1437 = vmatmul.mubr.msk.bf16.vlgmr.msra.gmra.mrb[12].mxu1 %vm806_vm1, %v884_v44  ;;  %1438 = vmatmul.mubr.msk.bf16.vlgmr.msra.gmra.mrb[16].mxu0 %vm806_vm1, %v884_v44 }
 0x2cf   :  { %v1123_v10 = vpop.f32.mrb[8].mxu1  ;;  %v1164_v11 = vpop.f32.mrb[12].mxu0 }
 0x2d0   :  { %v1124_v12 = vadd.f32 %v1123_v10, %v889_v6  ;;  %v1165_v13 = vadd.f32 %v1164_v11, %v897_v7  ;;  %v1125_v14 = vpop.f32.mrb[9].mxu1  ;;  %v1166_v15 = vpop.f32.mrb[13].mxu0 }
 0x2d1   :  { %v1126_v16 = vadd.f32 %v1125_v14, %v893_v8  ;;  %v1167_v17 = vadd.f32 %v1166_v15, %v901_v9  ;;  %v1127_v18 = vpop.f32.mrb[10].mxu1  ;;  %v1168_v19 = vpop.f32.mrb[14].mxu0 }
 0x2d2   :  { %v1253_v20 = vmax.f32 %v1124_v12, 0.0  ;;  %v1255_v21 = vmax.f32 %v1165_v13, 0.0  ;;  %v1128_v22 = vpop.f32.mrb[11].mxu1  ;;  %v1169_v23 = vpop.f32.mrb[15].mxu0 }
 0x2d3   :  { %v1254_v24 = vmax.f32 %v1126_v16, 0.0  ;;  %v1256_v25 = vmax.f32 %v1167_v17, 0.0 }
 0x2d5   :  { %v1439_v26 = vpack.c.bf16 %v1254_v24, %v1253_v20  ;;  %v1440_v27 = vpack.c.bf16 %v1256_v25, %v1255_v21 }
 0x2d7   :  { %v1287_v28 = vrot.slane %v1439_v26, %v1758_v35  ;;  %v1294_v29 = vrot.slane %v1440_v27, %v1758_v35 }
 0x2d9   :  { %v1309_v33 = vcombine.low %v1287_v28, %v1294_v29 }
 0x2db   :  { %v1317_v61 = vrot.slane %v1309_v33, %v1758_v35 }
 0x2df   :  { %v1205_v41 = vpop.f32.mrb[12].mxu1  ;;  %v1246_v42 = vpop.f32.mrb[16].mxu0 }
 0x2e0   :  { %v1206_v43 = vadd.f32 %v1205_v41, %v905_v37  ;;  %v1247_v44 = vadd.f32 %v1246_v42, %v913_v38  ;;  %v1207_v45 = vpop.f32.mrb[13].mxu1  ;;  %v1248_v46 = vpop.f32.mrb[17].mxu0 }
 0x2e1   :  { %v1208_v47 = vadd.f32 %v1207_v45, %v909_v39  ;;  %v1249_v48 = vadd.f32 %v1248_v46, %v917_v40  ;;  %v1209_v49 = vpop.f32.mrb[14].mxu1  ;;  %v1250_v50 = vpop.f32.mrb[18].mxu0 }
 0x2e2   :  { %v1257_v51 = vmax.f32 %v1206_v43, 0.0  ;;  %v1259_v52 = vmax.f32 %v1247_v44, 0.0  ;;  %v1210_v53 = vpop.f32.mrb[15].mxu1  ;;  %v1251_v54 = vpop.f32.mrb[19].mxu0 }
 0x2e3   :  { %v1258_v55 = vmax.f32 %v1208_v47, 0.0  ;;  %v1260_v30 = vmax.f32 %v1249_v48, 0.0 }
 0x2e5   :  { %v1441_v56 = vpack.c.bf16 %v1258_v55, %v1257_v51  ;;  %v1442_v57 = vpack.c.bf16 %v1260_v30, %v1259_v52 }
 0x2e7   :  { %v1301_v58 = vrot.slane %v1441_v56, %v1758_v35  ;;  %v1308_v59 = vrot.slane %v1442_v57, %v1758_v35 }
 0x2e9   :  { %v1310_v60 = vcombine.low %v1301_v58, %v1308_v59 }
 0x2eb   :  { %v1324_v62 = vrot.slane %v1310_v60, %v1758_v35 }
 0x2ed   :  { %v1325_v63 = vcombine.low %v1317_v61, %v1324_v62 }
 0x2ef   :  { %1327 = vst [vmem:[%s2022_s7] sm:$0xff] %v1325_v63 }

// kernel: minimonet_forward.28
= control target key start
LH: loop header
LB: loop body
LE: loop exit
PB: predicated region body
PF: predicated region fallthrough
CT: control target
= control target key end

     0   :  { %s1115_s15 = smov 0   ;;  %s1371_s0 = inlined_call_operand.vmem [shape: bf16[2,288,16], index: 0, kind: input, shape index: {}]   ;;  %s1372_s1 = inlined_call_operand.vmem [shape: bf16[64,288], index: 1, kind: input, shape index: {}]   ;;  %s1373_s2 = inlined_call_operand.vmem [shape: f32[64,1], index: 2, kind: input, shape index: {}]   ;;  %s1374_s3 = inlined_call_operand.vmem [shape: f32[64,1], index: 3, kind: input, shape index: {}]   ;;  %s1375_s4 = inlined_call_operand.vmem [shape: bf16[2,64,16], index: 4, kind: output, shape index: {}]  }
   0x1 LB: > { %s884_s16 = sadd.s32 4294967295, %s1087_s15   ;;  %p888_p0 = scmp.ge.s32.totalorder %s1087_s15, 1  ;;  %s1087_s15 = sphi %s1115_s15, %s14_s15  }
   0x2   : > { %p162_p1 = scmp.lt.s32.totalorder %s1087_s15, 3 }
   0x4   : > { %p163_p2 = pnand %p888_p0, %p162_p1 }
   0x5   : > { %p188_p3 = scmp.lt.s32.totalorder (!%p163_p2), %s884_s16, 1  ;;  %v1049_v0 = vld [vmem:[%s1372_s1 + $0x4] ss:$12 sps:$4 sm:$0xff] (!%p163_p2)   ;;  %v1052_v1 = vld [vmem:[%s1372_s1 + $0x4c] ss:$12 sps:$4 sm:$0xff] (!%p163_p2)   ;;  %vm419_vm0 = vcmask (!%p163_p2), 261120  }
   0x6   : > { %166 = sbr.rel (%p163_p2) target bundleno = 682 (0x2aa), region = 36  ;;  %464 = vmatprep.mubr.bf16.mxu0 (!%p163_p2), %v1049_v0  ;;  %488 = vmatprep.mubr.bf16.mxu1 (!%p163_p2), %v1052_v1  ;;  %v1047_v19 = vld [vmem:[%s1372_s1] ss:$12 sps:$4 sm:$0xff] (!%p163_p2)   ;;  %v1050_v20 = vld [vmem:[%s1372_s1 + $0x48] ss:$12 sps:$4 sm:$0xff] (!%p163_p2)   ;;  %v1089_v30 = vmov (!%p163_p2), 0  }
   0x7   : > { %v1055_v21 = vld [vmem:[%s1372_s1 + $0x1c] ss:$12 sps:$4 sm:$0xff] (!%p163_p2)   ;;  %v1058_v24 = vld [vmem:[%s1372_s1 + $0x18] ss:$12 sps:$4 sm:$0xff] (!%p163_p2)   ;;  %v1059_v25 = vld [vmem:[%s1372_s1 + $0x20] ss:$12 sps:$4 sm:$0xff] (!%p163_p2)   ;;  %1030 = vset.pattern.permute.xlu1 (!%p163_p2), %v1089_v30  ;;  %1029 = vset.pattern.permute.xlu0 (!%p163_p2), %v1089_v30 }
   0x8   : > { %v1057_v23 = vld [vmem:[%s1372_s1 + $0x8] ss:$12 sps:$4 sm:$0xff] (!%p163_p2)   ;;  %v1062_v27 = vld [vmem:[%s1372_s1 + $0x38] ss:$12 sps:$4 sm:$0xff] (!%p163_p2)   ;;  %v1063_v28 = vld [vmem:[%s1372_s1 + $0x30] ss:$12 sps:$4 sm:$0xff] (!%p163_p2)  }
   0x9   : > { %v1060_v26 = vld [vmem:[%s1372_s1 + $0x34] ss:$12 sps:$4 sm:$0xff] (!%p163_p2)   ;;  %v1064_v29 = vld [vmem:[%s1372_s1 + $0x50] ss:$12 sps:$4 sm:$0xff] (!%p163_p2)   ;;  %vm562_vm1 = vcmask (!%p163_p2), 130048   ;;  %vm820_vm2 = vcmask (!%p163_p2), 125952  }
   0xd   : > { %s1377_s16 = smov (!%p188_p3, %s884_s16), 1 }
   0xe   : > { %s1019_s21 = smul.u32 144, %s1377_s16  ;;  %s936_s29 = sshll.u32 %s1377_s16, 5 }
   0xf   : > { %s1338_s6 = scalar_lea.vmem %s1375_s4, %s936_s29 }
  0x10   : > { %s1135_s24 = scalar_lea.vmem %s1371_s0, %s1019_s21 }
  0x11   : > { %v1031_v2 = vld [vmem:[%s1135_s24 + $0x40] sm:$0xff]   ;;  %v1033_v4 = vld [vmem:[%s1135_s24 + $0x48] sm:$0xff]   ;;  %v1035_v6 = vld [vmem:[%s1135_s24 + $0x50] sm:$0xff]  }
  0x12   : > { %v1032_v3 = vld [vmem:[%s1135_s24] sm:$0xff]   ;;  %945 = vmatprep.subr.bf16.mxu0 %v1031_v2  ;;  %1003 = vmatprep.subr.bf16.mxu1 %v1031_v2  ;;  %v1034_v5 = vld [vmem:[%s1135_s24 + $0x8] sm:$0xff]   ;;  %v1036_v7 = vld [vmem:[%s1135_s24 + $0x10] sm:$0xff]  }
  0x13   : > { %946 = vmatpush3.bf16.msra.mxu0 %v1032_v3  ;;  %1011 = vmatpush3.bf16.msra.mxu1 %v1032_v3  ;;  %v1037_v8 = vld [vmem:[%s1135_s24 + $0x58] sm:$0xff]   ;;  %v1039_v10 = vld [vmem:[%s1135_s24 + $0x60] sm:$0xff]   ;;  %v1041_v12 = vld [vmem:[%s1135_s24 + $0x68] sm:$0xff]  }
  0x14   : > { %947 = vmatprep.subr.bf16.mxu0 %v1033_v4  ;;  %1004 = vmatprep.subr.bf16.mxu1 %v1033_v4  ;;  %v1038_v9 = vld [vmem:[%s1135_s24 + $0x18] sm:$0xff]   ;;  %v1040_v11 = vld [vmem:[%s1135_s24 + $0x20] sm:$0xff]   ;;  %v1042_v13 = vld [vmem:[%s1135_s24 + $0x28] sm:$0xff]  }
  0x15   : > { %v1043_v14 = vld [vmem:[%s1135_s24 + $0x70] sm:$0xff]   ;;  %v1045_v16 = vld [vmem:[%s1135_s24 + $0x78] sm:$0xff]   ;;  %v1053_v18 = vld [vmem:[%s1135_s24 + $0x80] sm:$0xff]  }
  0x16   : > { %v1044_v15 = vld [vmem:[%s1135_s24 + $0x30] sm:$0xff]   ;;  %v1046_v17 = vld [vmem:[%s1135_s24 + $0x38] sm:$0xff]   ;;  %v1054_v22 = vld [vmem:[%s1135_s24 + $0x88] sm:$0xff]  }
  0x17   : > { %948 = vmatpush3.bf16.msra.mxu0 %v1034_v5  ;;  %1012 = vmatpush3.bf16.msra.mxu1 %v1034_v5 }
  0x18   : > { %949 = vmatprep.subr.bf16.mxu0 %v1035_v6  ;;  %1005 = vmatprep.subr.bf16.mxu1 %v1035_v6 }
  0x1b   : > { %950 = vmatpush3.bf16.msra.mxu0 %v1036_v7  ;;  %1013 = vmatpush3.bf16.msra.mxu1 %v1036_v7 }
  0x1c   : > { %951 = vmatprep.subr.bf16.mxu0 %v1037_v8  ;;  %1006 = vmatprep.subr.bf16.mxu1 %v1037_v8 }
  0x1f   : > { %952 = vmatpush3.bf16.msra.mxu0 %v1038_v9  ;;  %1014 = vmatpush3.bf16.msra.mxu1 %v1038_v9 }
  0x20   : > { %953 = vmatprep.subr.bf16.mxu0 %v1039_v10  ;;  %1007 = vmatprep.subr.bf16.mxu1 %v1039_v10 }
  0x23   : > { %954 = vmatpush3.bf16.msra.mxu0 %v1040_v11  ;;  %1015 = vmatpush3.bf16.msra.mxu1 %v1040_v11 }
  0x24   : > { %955 = vmatprep.subr.bf16.mxu0 %v1041_v12  ;;  %1008 = vmatprep.subr.bf16.mxu1 %v1041_v12 }
  0x27   : > { %956 = vmatpush3.bf16.msra.mxu0 %v1042_v13  ;;  %1016 = vmatpush3.bf16.msra.mxu1 %v1042_v13 }
  0x28   : > { %957 = vmatprep.subr.bf16.mxu0 %v1043_v14  ;;  %1009 = vmatprep.subr.bf16.mxu1 %v1043_v14  ;;  %v669_v14 = vld [vmem:[%s1373_s2 + $0x8] sm:$0xff] }
  0x2b   : > { %958 = vmatpush3.bf16.msra.mxu0 %v1044_v15  ;;  %1017 = vmatpush3.bf16.msra.mxu1 %v1044_v15  ;;  %v670_v15 = vld [vmem:[%s1373_s2 + $0x10] sm:$0xff] }
  0x2c   : > { %959 = vmatprep.subr.bf16.mxu0 %v1045_v16  ;;  %1010 = vmatprep.subr.bf16.mxu1 %v1045_v16  ;;  %v668_v16 = vld [vmem:[%s1373_s2] sm:$0xff] }
  0x2f   : > { %960 = vmatpush3.bf16.msra.mxu0 %v1046_v17  ;;  %1018 = vmatpush3.bf16.msra.mxu1 %v1046_v17  ;;  %v671_v17 = vld [vmem:[%s1373_s2 + $0x18] sm:$0xff] }
  0x30   : > { %991 = vmatprep.subr.bf16.mxu1 %v1053_v18 }
  0x32   : > { %465 = vmatmul.mubr.bf16.vlgmr.msra.gmra.mrb[0].mxu0 %v1047_v19  ;;  %489 = vmatmul.mubr.bf16.vlgmr.msra.gmra.mrb[0].mxu1 %v1050_v20  ;;  %v672_v19 = vld [vmem:[%s1373_s2 + $0x20] sm:$0xff]  ;;  %v727_v20 = vld [vmem:[%s1374_s3 + $0x18] sm:$0xff] }
  0x33   : > { %992 = vmatpush3.bf16.msra.mxu1 %v1053_v18  ;;  %472 = vmatprep.mubr.bf16.mxu0 %v1055_v21  ;;  %v725_v18 = vld [vmem:[%s1374_s3 + $0x8] sm:$0xff] }
  0x34   : > { %993 = vmatprep.subr.bf16.mxu1 %v1054_v22  ;;  %995 = vmatprep.mubr.msk.bf16.mxu1 %vm419_vm0, %v1057_v23  ;;  %v673_v21 = vld [vmem:[%s1373_s2 + $0x28] sm:$0xff]  ;;  %v674_v23 = vld [vmem:[%s1373_s2 + $0x30] sm:$0xff] }
  0x37   : > { %994 = vmatpush3.bf16.msra.mxu1 %v1054_v22  ;;  %v729_v22 = vld [vmem:[%s1374_s3 + $0x28] sm:$0xff] }
  0x3a   : > { %473 = vmatmul.mubr.bf16.gmra.mrb[4].mxu0 %v1058_v24  ;;  %996 = vmatmul.mubr.msk.bf16.vlgmr.msra.gmra.mrb[4].mxu1 %vm419_vm0, %v1059_v25  ;;  %v675_v24 = vld [vmem:[%s1373_s2 + $0x38] sm:$0xff]  ;;  %v724_v25 = vld [vmem:[%s1374_s3] sm:$0xff] }
  0x3b   : > { %480 = vmatprep.mubr.bf16.mxu0 %v1060_v26  ;;  %999 = vmatprep.mubr.msk.bf16.mxu1 %vm419_vm0, %v1062_v27  ;;  %v726_v27 = vld [vmem:[%s1374_s3 + $0x10] sm:$0xff] }
  0x42   : > { %481 = vmatmul.mubr.bf16.gmra.mrb[8].mxu0 %v1063_v28  ;;  %1000 = vmatmul.mubr.msk.bf16.gmra.mrb[8].mxu1 %vm419_vm0, %v1064_v29  ;;  %v728_v28 = vld [vmem:[%s1374_s3 + $0x20] sm:$0xff] }
 0x105   : > { %v961_v31 = vpop.f32.mrb[0].mxu0  ;;  %v979_v32 = vpop.f32.mrb[0].mxu1 }
 0x106   : > { %v962_v33 = vpop.f32.mrb[1].mxu0  ;;  %v980_v34 = vpop.f32.mrb[1].mxu1 }
 0x107   : > { %v963_v35 = vadd.f32 %v962_v33, %v961_v31  ;;  %v981_v36 = vadd.f32 %v980_v34, %v979_v32  ;;  %v964_v37 = vpop.f32.mrb[2].mxu0  ;;  %v982_v38 = vpop.f32.mrb[2].mxu1 }
 0x108   : > { %v965_v39 = vpop.f32.mrb[3].mxu0  ;;  %v983_v40 = vpop.f32.mrb[3].mxu1 }
 0x109   : > { %v966_v41 = vadd.f32 %v965_v39, %v964_v37  ;;  %v984_v42 = vadd.f32 %v983_v40, %v982_v38 }
 0x10d   : > { %v967_v43 = vpop.f32.mrb[4].mxu0  ;;  %v997_v44 = vpop.f32.mrb[4].mxu1 }
 0x10e   : > { %v968_v45 = vpop.f32.mrb[5].mxu0  ;;  %v531_v46 = vpop.f32.mrb[5].mxu1 }
 0x10f   : > { %v969_v47 = vadd.f32 %v968_v45, %v967_v43  ;;  %v1189_v48 = vadd.f32 %v963_v35, %v531_v46  ;;  %v970_v49 = vpop.f32.mrb[6].mxu0  ;;  %v998_v50 = vpop.f32.mrb[6].mxu1 }
 0x110   : > { %v971_v51 = vpop.f32.mrb[7].mxu0  ;;  %v534_v52 = vpop.f32.mrb[7].mxu1 }
 0x111   : > { %v972_v53 = vadd.f32 %v971_v51, %v970_v49  ;;  %v1191_v54 = vadd.f32 %v966_v41, %v534_v52  ;;  %v563_v55 = vsel %vm562_vm1, %v1189_v48, 0.0  ;;  %v1195_v56 = vadd.f32 %v997_v44, %v969_v47 }
 0x112   : > { %564 = vadd.xlane.f32.xlu0 %v563_v55 }
 0x113   : > { %v569_v57 = vsel %vm562_vm1, %v1195_v56, 0.0  ;;  %v1199_v58 = vadd.f32 %v998_v50, %v972_v53  ;;  %v566_v61 = vsel %vm562_vm1, %v1191_v54, 0.0 }
 0x114   : > { %570 = vadd.xlane.f32.xlu1 %v569_v57 }
 0x115   : > { %v973_v59 = vpop.f32.mrb[8].mxu0  ;;  %v1001_v60 = vpop.f32.mrb[8].mxu1  ;;  %v572_v4 = vsel %vm562_vm1, %v1199_v58, 0.0 }
 0x116   : > { %v1203_v62 = vadd.f32 %v1001_v60, %v981_v36  ;;  %v974_v63 = vpop.f32.mrb[9].mxu0  ;;  %v547_v0 = vpop.f32.mrb[9].mxu1  ;;  %567 = vadd.xlane.f32.xlu0 %v566_v61 }
 0x117   : > { %v975_v1 = vadd.f32 %v974_v63, %v973_v59  ;;  %v976_v2 = vpop.f32.mrb[10].mxu0  ;;  %v1002_v3 = vpop.f32.mrb[10].mxu1 }
 0x118   : > { %v1207_v5 = vadd.f32 %v1002_v3, %v984_v42  ;;  %v977_v6 = vpop.f32.mrb[11].mxu0  ;;  %v550_v7 = vpop.f32.mrb[11].mxu1  ;;  %573 = vadd.xlane.f32.xlu1 %v572_v4  ;;  %v581_v8 = vsel %vm562_vm1, %v1203_v62, 0.0 }
 0x119   : > { %v1211_v9 = vadd.f32 %v975_v1, %v547_v0  ;;  %v978_v10 = vadd.f32 %v977_v6, %v976_v2  ;;  %v731_v0 = vld [vmem:[%s1374_s3 + $0x38] sm:$0xff] }
 0x11a   : > { %582 = vadd.xlane.f32.xlu0 %v581_v8  ;;  %v584_v11 = vsel %vm562_vm1, %v1207_v5, 0.0 }
 0x11b   : > { %v1215_v12 = vadd.f32 %v978_v10, %v550_v7  ;;  %v575_v13 = vsel %vm562_vm1, %v1211_v9, 0.0 }
 0x11c   : > { %585 = vadd.xlane.f32.xlu1 %v584_v11 }
 0x11d   : > { %v578_v26 = vsel %vm562_vm1, %v1215_v12, 0.0 }
 0x11e   : > { %576 = vadd.xlane.f32.xlu0 %v575_v13 }
 0x12d   : > { %683 = vperm.xlu1 %1030, %v669_v14  }
 0x131   : > { %688 = vperm.xlu1 %1030, %v670_v15   ;;  %v730_v15 = vld [vmem:[%s1374_s3 + $0x30] sm:$0xff] }
 0x134   : > { %678 = vperm.xlu0 %1029, %v668_v16  }
 0x135   : > { %693 = vperm.xlu1 %1030, %v671_v17  }
 0x138   : > { %739 = vperm.xlu0 %1029, %v725_v18  }
 0x139   : > { %698 = vperm.xlu1 %1030, %v672_v19  }
 0x13c   : > { %749 = vperm.xlu0 %1029, %v727_v20  }
 0x13d   : > { %703 = vperm.xlu1 %1030, %v673_v21  }
 0x140   : > { %759 = vperm.xlu0 %1029, %v729_v22  }
 0x141   : > { %708 = vperm.xlu1 %1030, %v674_v23  }
 0x145   : > { %713 = vperm.xlu1 %1030, %v675_v24  }
 0x149   : > { %734 = vperm.xlu1 %1030, %v724_v25  }
 0x16d   : > { %579 = vadd.xlane.f32.xlu1 %v578_v26 }
 0x17e   : > { %744 = vperm.xlu1 %1030, %v726_v27  }
 0x182   : > { %754 = vperm.xlu1 %1030, %v728_v28  }
 0x19f   : > { %v565_v29 = vpop.xlane.xlu0 %564 }
 0x1a0   : > { %v588_v30 = vmul.f32 0.0625, %v565_v29 }
 0x1a1   : > { %v571_v31 = vpop.xlane.xlu1 %570 }
 0x1a2   : > { %v1264_v32 = vsub.f32 %v1189_v48, %v588_v30  ;;  %v590_v33 = vmul.f32 0.0625, %v571_v31 }
 0x1a3   : > { %v568_v34 = vpop.xlane.xlu0 %567 }
 0x1a4   : > { %v1267_v35 = vsub.f32 %v1195_v56, %v590_v33  ;;  %v589_v36 = vmul.f32 0.0625, %v568_v34  ;;  %v604_v37 = vmul.f32 %v1264_v32, %v1264_v32 }
 0x1a5   : > { %v574_v38 = vpop.xlane.xlu1 %573 }
 0x1a6   : > { %v1272_v39 = vsub.f32 %v1191_v54, %v589_v36  ;;  %v591_v40 = vmul.f32 0.0625, %v574_v38  ;;  %v612_v41 = vsel %vm562_vm1, %v604_v37, 0.0  ;;  %v606_v42 = vmul.f32 %v1267_v35, %v1267_v35 }
 0x1a7   : > { %613 = vadd.xlane.f32.xlu0 %v612_v41  ;;  %v583_v43 = vpop.xlane.xlu0 %582 }
 0x1a8   : > { %v1278_v44 = vsub.f32 %v1199_v58, %v591_v40  ;;  %v594_v45 = vmul.f32 0.0625, %v583_v43  ;;  %v605_v46 = vmul.f32 %v1272_v39, %v1272_v39  ;;  %v618_v48 = vsel %vm562_vm1, %v606_v42, 0.0 }
 0x1a9   : > { %v586_v47 = vpop.xlane.xlu1 %585 }
 0x1aa   : > { %v1284_v49 = vsub.f32 %v1203_v62, %v594_v45  ;;  %v595_v50 = vmul.f32 0.0625, %v586_v47  ;;  %v615_v51 = vsel %vm562_vm1, %v605_v46, 0.0  ;;  %v607_v52 = vmul.f32 %v1278_v44, %v1278_v44 }
 0x1ab   : > { %619 = vadd.xlane.f32.xlu0 %v618_v48  ;;  %616 = vadd.xlane.f32.xlu1 %v615_v51  ;;  %v577_v53 = vpop.xlane.xlu0 %576 }
 0x1ac   : > { %v1290_v54 = vsub.f32 %v1207_v5, %v595_v50  ;;  %v592_v55 = vmul.f32 0.0625, %v577_v53  ;;  %v610_v56 = vmul.f32 %v1284_v49, %v1284_v49  ;;  %v621_v58 = vsel %vm562_vm1, %v607_v52, 0.0 }
 0x1ad   : > { %v684_v1 = vpop.permute.xlu1 %683 }
 0x1ae   : > { %v1295_v57 = vsub.f32 %v1211_v9, %v592_v55  ;;  %v630_v59 = vsel %vm562_vm1, %v610_v56, 0.0  ;;  %v611_v60 = vmul.f32 %v1290_v54, %v1290_v54 }
 0x1af   : > { %622 = vadd.xlane.f32.xlu1 %v621_v58  ;;  %631 = vadd.xlane.f32.xlu0 %v630_v59 }
 0x1b0   : > { %v608_v61 = vmul.f32 %v1295_v57, %v1295_v57  ;;  %v633_v62 = vsel %vm562_vm1, %v611_v60, 0.0 }
 0x1b1   : > { %v689_v2 = vpop.permute.xlu1 %688 }
 0x1b2   : > { %v624_v63 = vsel %vm562_vm1, %v608_v61, 0.0 }
 0x1b3   : > { %634 = vadd.xlane.f32.xlu1 %v633_v62  ;;  %625 = vadd.xlane.f32.xlu0 %v624_v63  ;;  %v679_v16 = vpop.permute.xlu0 %678 }
 0x1b5   : > { %v1308_v3 = vpop.permute.xlu1 %693 }
 0x1b7   : > { %v740_v17 = vpop.permute.xlu0 %739 }
 0x1b9   : > { %v1310_v4 = vpop.permute.xlu1 %698 }
 0x1bb   : > { %v750_v18 = vpop.permute.xlu0 %749 }
 0x1bd   : > { %v1312_v5 = vpop.permute.xlu1 %703 }
 0x1bf   : > { %v1327_v20 = vpop.permute.xlu0 %759 }
 0x1c1   : > { %v1314_v6 = vpop.permute.xlu1 %708 }
 0x1c5   : > { %v1316_v7 = vpop.permute.xlu1 %713 }
 0x1c9   : > { %769 = vperm.xlu0 %1029, %v731_v0   ;;  %v735_v8 = vpop.permute.xlu1 %734 }
 0x1fa   : > { %v580_v9 = vpop.xlane.xlu1 %579 }
 0x1fb   : > { %v593_v10 = vmul.f32 0.0625, %v580_v9 }
 0x1fd   : > { %v1319_v11 = vsub.f32 %v1215_v12, %v593_v10 }
 0x1fe   : > { %v745_v19 = vpop.permute.xlu1 %744 }
 0x1ff   : > { %v609_v13 = vmul.f32 %v1319_v11, %v1319_v11 }
 0x201   : > { %v627_v14 = vsel %vm562_vm1, %v609_v13, 0.0 }
 0x202   : > { %628 = vadd.xlane.f32.xlu1 %v627_v14  ;;  %v1329_v21 = vpop.permute.xlu1 %754 }
 0x213   : > { %764 = vperm.xlu1 %1030, %v730_v15  }
 0x234   : > { %v614_v12 = vpop.xlane.xlu0 %613 }
 0x235   : > { %v636_v22 = vmul.f32 0.0625, %v614_v12 }
 0x237   : > { %v644_v23 = vadd.f32 1e-05, %v636_v22 }
 0x238   : > { %v617_v24 = vpop.xlane.xlu1 %616  ;;  %v620_v25 = vpop.xlane.xlu0 %619 }
 0x239   : > { %1065 = vrsqrt.f32 %v644_v23  ;;  %v637_v26 = vmul.f32 0.0625, %v617_v24  ;;  %v638_v27 = vmul.f32 0.0625, %v620_v25 }
 0x23b   : > { %v645_v28 = vadd.f32 1e-05, %v637_v26  ;;  %v646_v29 = vadd.f32 1e-05, %v638_v27 }
 0x23c   : > { %v623_v30 = vpop.xlane.xlu1 %622  ;;  %v632_v31 = vpop.xlane.xlu0 %631 }
 0x23d   : > { %1067 = vrsqrt.f32 %v645_v28  ;;  %v639_v33 = vmul.f32 0.0625, %v623_v30 }
 0x23e   : > { %1069 = vrsqrt.f32 %v646_v29 }
 0x23f   : > { %v647_v34 = vadd.f32 1e-05, %v639_v33 }
 0x240   : > { %v635_v36 = vpop.xlane.xlu1 %634  ;;  %v626_v37 = vpop.xlane.xlu0 %625 }
 0x241   : > { %1071 = vrsqrt.f32 %v647_v34  ;;  %v643_v38 = vmul.f32 0.0625, %v635_v36  ;;  %v640_v40 = vmul.f32 0.0625, %v626_v37 }
 0x243   : > { %v1066_v41 = vpop.eup %1065  ;;  %v651_v42 = vadd.f32 1e-05, %v643_v38  ;;  %v648_v43 = vadd.f32 1e-05, %v640_v40 }
 0x244   : > { %v660_v45 = vmul.f32 %v1066_v41, %v1264_v32 }
 0x245   : > { %1073 = vrsqrt.f32 %v651_v42 }
 0x246   : > { %v716_v46 = vmul.f32 %v679_v16, %v660_v45  ;;  %1075 = vrsqrt.f32 %v648_v43 }
 0x247   : > { %v1068_v47 = vpop.eup %1067 }
 0x248   : > { %v1070_v48 = vpop.eup %1069  ;;  %v772_v50 = vadd.f32 %v735_v8, %v716_v46  ;;  %v661_v51 = vmul.f32 %v1068_v47, %v1272_v39  ;;  %v770_v14 = vpop.permute.xlu0 %769 }
 0x249   : > { %v662_v52 = vmul.f32 %v1070_v48, %v1267_v35 }
 0x24a   : > { %v780_v53 = vmax.f32 %v772_v50, 0.0  ;;  %v717_v55 = vmul.f32 %v684_v1, %v661_v51 }
 0x24b   : > { %v1072_v56 = vpop.eup %1071  ;;  %v718_v32 = vmul.f32 %v689_v2, %v662_v52 }
 0x24c   : > { %v937_v58 = vpack.c.bf16 %v780_v53, %v780_v53  ;;  %v773_v59 = vadd.f32 %v740_v17, %v717_v55  ;;  %v663_v60 = vmul.f32 %v1072_v56, %v1278_v44 }
 0x24d   : > { %v774_v39 = vadd.f32 %v745_v19, %v718_v32 }
 0x24e   : > { %821 = vst.msk [vmem:[%s1338_s6] sm:$0xf] %vm820_vm2, %v937_v58  ;;  %v781_v35 = vmax.f32 %v773_v59, 0.0  ;;  %v719_v61 = vmul.f32 %v1308_v3, %v663_v60 }
 0x24f   : > { %v1074_v62 = vpop.eup %1073  ;;  %v782_v63 = vmax.f32 %v774_v39, 0.0 }
 0x250   : > { %v1076_v0 = vpop.eup %1075  ;;  %v938_v1 = vpack.c.bf16 %v781_v35, %v781_v35  ;;  %v775_v8 = vadd.f32 %v750_v18, %v719_v61  ;;  %v667_v2 = vmul.f32 %v1074_v62, %v1290_v54 }
 0x251   : > { %v939_v9 = vpack.c.bf16 %v782_v63, %v782_v63  ;;  %v664_v10 = vmul.f32 %v1076_v0, %v1295_v57 }
 0x252   : > { %822 = vst.msk [vmem:[%s1338_s6 + $0x4] sm:$0xf] %vm820_vm2, %v938_v1  ;;  %v783_v44 = vmax.f32 %v775_v8, 0.0  ;;  %v723_v13 = vmul.f32 %v1316_v7, %v667_v2  ;;  %v642_v7 = vmul.f32 0.0625, %v632_v31 }
 0x253   : > { %823 = vst.msk [vmem:[%s1338_s6 + $0x8] sm:$0xf] %vm820_vm2, %v939_v9  ;;  %v720_v3 = vmul.f32 %v1310_v4, %v664_v10 }
 0x254   : > { %v940_v15 = vpack.c.bf16 %v783_v44, %v783_v44  ;;  %v779_v16 = vadd.f32 %v770_v14, %v723_v13  ;;  %v650_v12 = vadd.f32 1e-05, %v642_v7 }
 0x255   : > { %v776_v17 = vadd.f32 %v1329_v21, %v720_v3 }
 0x256   : > { %824 = vst.msk [vmem:[%s1338_s6 + $0xc] sm:$0xf] %vm820_vm2, %v940_v15  ;;  %v787_v54 = vmax.f32 %v779_v16, 0.0  ;;  %1077 = vrsqrt.f32 %v650_v12 }
 0x257   : > { %v784_v18 = vmax.f32 %v776_v17, 0.0 }
 0x258   : > { %v944_v57 = vpack.c.bf16 %v787_v54, %v787_v54 }
 0x259   : > { %v941_v19 = vpack.c.bf16 %v784_v18, %v784_v18 }
 0x25a   : > { %828 = vst.msk [vmem:[%s1338_s6 + $0x1c] sm:$0xf] %vm820_vm2, %v944_v57 }
 0x25b   : > { %825 = vst.msk [vmem:[%s1338_s6 + $0x10] sm:$0xf] %vm820_vm2, %v941_v19 }
 0x260   : > { %v1078_v4 = vpop.eup %1077 }
 0x261   : > { %v666_v22 = vmul.f32 %v1078_v4, %v1284_v49 }
 0x263   : > { %v722_v25 = vmul.f32 %v1314_v6, %v666_v22 }
 0x28f   : > { %v629_v23 = vpop.xlane.xlu1 %628 }
 0x290   : > { %v641_v21 = vmul.f32 0.0625, %v629_v23 }
 0x292   : > { %v649_v24 = vadd.f32 1e-05, %v641_v21 }
 0x293   : > { %v765_v26 = vpop.permute.xlu1 %764 }
 0x294   : > { %1079 = vrsqrt.f32 %v649_v24  ;;  %v778_v27 = vadd.f32 %v765_v26, %v722_v25 }
 0x296   : > { %v786_v28 = vmax.f32 %v778_v27, 0.0 }
 0x298   : > { %v943_v29 = vpack.c.bf16 %v786_v28, %v786_v28 }
 0x29a   : > { %827 = vst.msk [vmem:[%s1338_s6 + $0x18] sm:$0xf] %vm820_vm2, %v943_v29 }
 0x29e   : > { %v1080_v30 = vpop.eup %1079 }
 0x29f   : > { %v665_v31 = vmul.f32 %v1080_v30, %v1319_v11 }
 0x2a1   : > { %v721_v33 = vmul.f32 %v1312_v5, %v665_v31 }
 0x2a3   : > { %v777_v49 = vadd.f32 %v1327_v20, %v721_v33 }
 0x2a5   : > { %v785_v34 = vmax.f32 %v777_v49, 0.0 }
 0x2a7   : > { %v942_v36 = vpack.c.bf16 %v785_v34, %v785_v34 }
 0x2a9   : > { %826 = vst.msk [vmem:[%s1338_s6 + $0x14] sm:$0xf] %vm820_vm2, %v942_v36 }
 0x2aa PF: > { %s14_s15 = sadd.s32 1, %s1087_s15  }
 0x2ab   : > { %p11_p4 = scmp.ge.s32.totalorder %s14_s15, 4  }
 0x2ad   :  { %13 = sbr.rel (!%p11_p4) target bundleno = 1 (0x1), region = 66 }

// kernel: minimonet_forward.30
= control target key start
LH: loop header
LB: loop body
LE: loop exit
PB: predicated region body
PF: predicated region fallthrough
CT: control target
= control target key end

     0   :  { %s1725_s15 = smov 0   ;;  %s1910_s0 = inlined_call_operand.vmem [shape: bf16[2,1152,16], index: 0, kind: input, shape index: {}]   ;;  %s1911_s1 = inlined_call_operand.vmem [shape: bf16[32,1152], index: 1, kind: input, shape index: {}]   ;;  %s1912_s2 = inlined_call_operand.vmem [shape: f32[32,1], index: 2, kind: input, shape index: {}]   ;;  %s1913_s3 = inlined_call_operand.vmem [shape: f32[32,1], index: 3, kind: input, shape index: {}]   ;;  %s1914_s4 = inlined_call_operand.vmem [shape: bf16[2,32,16], index: 4, kind: output, shape index: {}]  }
   0x1 LB: > { %s1322_s16 = sadd.s32 4294967295, %s1697_s15   ;;  %p1326_p0 = scmp.ge.s32.totalorder %s1697_s15, 1  ;;  %s1697_s15 = sphi %s1725_s15, %s14_s15  }
   0x2   : > { %p162_p1 = scmp.lt.s32.totalorder %s1697_s15, 3 }
   0x4   : > { %p163_p2 = pnand %p1326_p0, %p162_p1 }
   0x5   : > { %p188_p3 = scmp.lt.s32.totalorder (!%p163_p2), %s1322_s16, 1  ;;  %v1619_v0 = vld [vmem:[%s1911_s1 + $0x4] ss:$36 sps:$4 sm:$0xff] (!%p163_p2)   ;;  %v1622_v1 = vld [vmem:[%s1911_s1 + $0xc] ss:$36 sps:$4 sm:$0xff] (!%p163_p2)   ;;  %vm1132_vm0 = vcmask (!%p163_p2), 130048  }
   0x6   : > { %166 = sbr.rel (%p163_p2) target bundleno = 655 (0x28f), region = 36  ;;  %919 = vmatprep.mubr.bf16.mxu0 (!%p163_p2), %v1619_v0  ;;  %968 = vmatprep.mubr.bf16.mxu1 (!%p163_p2), %v1622_v1  ;;  %v1617_v32 = vld [vmem:[%s1911_s1] ss:$36 sps:$4 sm:$0xff] (!%p163_p2)   ;;  %v1620_v34 = vld [vmem:[%s1911_s1 + $0x8] ss:$36 sps:$4 sm:$0xff] (!%p163_p2)   ;;  %vm1262_vm1 = vcmask (!%p163_p2), 125952  }
   0x7   : > { %v1644_v36 = vld [vmem:[%s1911_s1 + $0x4c] ss:$36 sps:$4 sm:$0xff] (!%p163_p2)   ;;  %v1646_v39 = vld [vmem:[%s1911_s1 + $0x54] ss:$36 sps:$4 sm:$0xff] (!%p163_p2)  }
   0x8   : > { %v1649_v44 = vld [vmem:[%s1911_s1 + $0x48] ss:$36 sps:$4 sm:$0xff] (!%p163_p2)   ;;  %v1650_v47 = vld [vmem:[%s1911_s1 + $0x50] ss:$36 sps:$4 sm:$0xff] (!%p163_p2)  }
   0x9   : > { %v1662_v48 = vld [vmem:[%s1911_s1 + $0x14] ss:$36 sps:$4 sm:$0xff] (!%p163_p2)  }
   0xd   : > { %s1916_s16 = smov (!%p188_p3, %s1322_s16), 1 }
   0xe   : > { %s1573_s21 = smul.u32 576, %s1916_s16  ;;  %s1426_s26 = sshll.u32 %s1916_s16, 4 }
   0xf   : > { %s197_s29 = scalar_lea.vmem %s1914_s4, %s1426_s26 }
  0x10   : > { %s1745_s24 = scalar_lea.vmem %s1910_s0, %s1573_s21 }
  0x11   : > { %v1585_v2 = vld [vmem:[%s1745_s24 + $0x40] sm:$0xff]   ;;  %v1589_v6 = vld [vmem:[%s1745_s24 + $0x48] sm:$0xff]   ;;  %v1593_v10 = vld [vmem:[%s1745_s24 + $0x50] sm:$0xff]  }
  0x12   : > { %v1586_v3 = vld [vmem:[%s1745_s24 + $0xc0] sm:$0xff]   ;;  %1431 = vmatprep.subr.bf16.mxu0 %v1585_v2  ;;  %v1590_v7 = vld [vmem:[%s1745_s24 + $0xc8] sm:$0xff]   ;;  %v1594_v11 = vld [vmem:[%s1745_s24 + $0xd0] sm:$0xff]  }
  0x13   : > { %v1587_v4 = vld [vmem:[%s1745_s24] sm:$0xff]   ;;  %1459 = vmatprep.subr.bf16.mxu1 %v1586_v3  ;;  %v1591_v8 = vld [vmem:[%s1745_s24 + $0x8] sm:$0xff]   ;;  %v1595_v12 = vld [vmem:[%s1745_s24 + $0x10] sm:$0xff]  }
  0x14   : > { %v1588_v5 = vld [vmem:[%s1745_s24 + $0x80] sm:$0xff]   ;;  %1432 = vmatpush3.bf16.msra.mxu0 %v1587_v4  ;;  %v1592_v9 = vld [vmem:[%s1745_s24 + $0x88] sm:$0xff]   ;;  %v1596_v13 = vld [vmem:[%s1745_s24 + $0x90] sm:$0xff]  }
  0x15   : > { %1460 = vmatpush3.bf16.msra.mxu1 %v1588_v5  ;;  %1433 = vmatprep.subr.bf16.mxu0 %v1589_v6  ;;  %v1597_v14 = vld [vmem:[%s1745_s24 + $0x58] sm:$0xff]   ;;  %v1601_v18 = vld [vmem:[%s1745_s24 + $0x60] sm:$0xff]   ;;  %v1605_v22 = vld [vmem:[%s1745_s24 + $0x68] sm:$0xff]  }
  0x16   : > { %1461 = vmatprep.subr.bf16.mxu1 %v1590_v7  ;;  %v1598_v15 = vld [vmem:[%s1745_s24 + $0xd8] sm:$0xff]   ;;  %v1602_v19 = vld [vmem:[%s1745_s24 + $0xe0] sm:$0xff]   ;;  %v1606_v23 = vld [vmem:[%s1745_s24 + $0xe8] sm:$0xff]  }
  0x17   : > { %v1599_v16 = vld [vmem:[%s1745_s24 + $0x18] sm:$0xff]   ;;  %v1603_v20 = vld [vmem:[%s1745_s24 + $0x20] sm:$0xff]   ;;  %v1607_v24 = vld [vmem:[%s1745_s24 + $0x28] sm:$0xff]  }
  0x18   : > { %1434 = vmatpush3.bf16.msra.mxu0 %v1591_v8  ;;  %v1600_v17 = vld [vmem:[%s1745_s24 + $0x98] sm:$0xff]   ;;  %v1604_v21 = vld [vmem:[%s1745_s24 + $0xa0] sm:$0xff]   ;;  %v1608_v25 = vld [vmem:[%s1745_s24 + $0xa8] sm:$0xff]  }
  0x19   : > { %1462 = vmatpush3.bf16.msra.mxu1 %v1592_v9  ;;  %1435 = vmatprep.subr.bf16.mxu0 %v1593_v10  ;;  %v1609_v26 = vld [vmem:[%s1745_s24 + $0x70] sm:$0xff]   ;;  %v1613_v30 = vld [vmem:[%s1745_s24 + $0x78] sm:$0xff]   ;;  %v1623_v37 = vld [vmem:[%s1745_s24 + $0x140] sm:$0xff]  }
  0x1a   : > { %1463 = vmatprep.subr.bf16.mxu1 %v1594_v11  ;;  %v1610_v27 = vld [vmem:[%s1745_s24 + $0xf0] sm:$0xff]   ;;  %v1614_v31 = vld [vmem:[%s1745_s24 + $0xf8] sm:$0xff]   ;;  %v1624_v38 = vld [vmem:[%s1745_s24 + $0x100] sm:$0xff]  }
  0x1b   : > { %v1611_v28 = vld [vmem:[%s1745_s24 + $0x30] sm:$0xff]   ;;  %v1615_v33 = vld [vmem:[%s1745_s24 + $0x38] sm:$0xff]   ;;  %v1625_v40 = vld [vmem:[%s1745_s24 + $0x1c0] sm:$0xff]  }
  0x1c   : > { %1436 = vmatpush3.bf16.msra.mxu0 %v1595_v12  ;;  %v1612_v29 = vld [vmem:[%s1745_s24 + $0xb0] sm:$0xff]   ;;  %v1616_v35 = vld [vmem:[%s1745_s24 + $0xb8] sm:$0xff]   ;;  %v1626_v41 = vld [vmem:[%s1745_s24 + $0x180] sm:$0xff]  }
  0x1d   : > { %1464 = vmatpush3.bf16.msra.mxu1 %v1596_v13  ;;  %1437 = vmatprep.subr.bf16.mxu0 %v1597_v14  ;;  %v1627_v42 = vld [vmem:[%s1745_s24 + $0x148] sm:$0xff]   ;;  %v1631_v49 = vld [vmem:[%s1745_s24 + $0x150] sm:$0xff]   ;;  %v1635_v53 = vld [vmem:[%s1745_s24 + $0x158] sm:$0xff]  }
  0x1e   : > { %1465 = vmatprep.subr.bf16.mxu1 %v1598_v15  ;;  %v1628_v43 = vld [vmem:[%s1745_s24 + $0x108] sm:$0xff]   ;;  %v1632_v50 = vld [vmem:[%s1745_s24 + $0x110] sm:$0xff]   ;;  %v1636_v54 = vld [vmem:[%s1745_s24 + $0x118] sm:$0xff]  }
  0x1f   : > { %v1629_v45 = vld [vmem:[%s1745_s24 + $0x1c8] sm:$0xff]   ;;  %v1633_v51 = vld [vmem:[%s1745_s24 + $0x1d0] sm:$0xff]   ;;  %v1637_v55 = vld [vmem:[%s1745_s24 + $0x1d8] sm:$0xff]  }
  0x20   : > { %1438 = vmatpush3.bf16.msra.mxu0 %v1599_v16  ;;  %v1630_v46 = vld [vmem:[%s1745_s24 + $0x188] sm:$0xff]   ;;  %v1634_v52 = vld [vmem:[%s1745_s24 + $0x190] sm:$0xff]   ;;  %v1638_v56 = vld [vmem:[%s1745_s24 + $0x198] sm:$0xff]  }
  0x21   : > { %1466 = vmatpush3.bf16.msra.mxu1 %v1600_v17  ;;  %1439 = vmatprep.subr.bf16.mxu0 %v1601_v18  ;;  %v1639_v57 = vld [vmem:[%s1745_s24 + $0x160] sm:$0xff]   ;;  %v1643_v61 = vld [vmem:[%s1745_s24 + $0x168] sm:$0xff]   ;;  %v1653_v1 = vld [vmem:[%s1745_s24 + $0x170] sm:$0xff]  }
  0x22   : > { %1467 = vmatprep.subr.bf16.mxu1 %v1602_v19  ;;  %v1640_v58 = vld [vmem:[%s1745_s24 + $0x120] sm:$0xff]   ;;  %v1648_v62 = vld [vmem:[%s1745_s24 + $0x128] sm:$0xff]   ;;  %v1654_v2 = vld [vmem:[%s1745_s24 + $0x130] sm:$0xff]  }
  0x23   : > { %v1641_v59 = vld [vmem:[%s1745_s24 + $0x1e0] sm:$0xff]   ;;  %v1651_v63 = vld [vmem:[%s1745_s24 + $0x1e8] sm:$0xff]   ;;  %v1655_v3 = vld [vmem:[%s1745_s24 + $0x1f0] sm:$0xff]  }
  0x24   : > { %1440 = vmatpush3.bf16.msra.mxu0 %v1603_v20  ;;  %v1642_v60 = vld [vmem:[%s1745_s24 + $0x1a0] sm:$0xff]   ;;  %v1652_v0 = vld [vmem:[%s1745_s24 + $0x1a8] sm:$0xff]   ;;  %v1656_v4 = vld [vmem:[%s1745_s24 + $0x1b0] sm:$0xff]  }
  0x25   : > { %1468 = vmatpush3.bf16.msra.mxu1 %v1604_v21  ;;  %1441 = vmatprep.subr.bf16.mxu0 %v1605_v22  ;;  %v1657_v5 = vld [vmem:[%s1745_s24 + $0x178] sm:$0xff]   ;;  %v1660_v7 = vld [vmem:[%s1911_s1 + $0x10] ss:$36 sps:$4 sm:$0xff]   ;;  %v1664_v10 = vld [vmem:[%s1745_s24 + $0x200] sm:$0xff]  }
  0x26   : > { %1469 = vmatprep.subr.bf16.mxu1 %v1606_v23  ;;  %v1658_v6 = vld [vmem:[%s1745_s24 + $0x138] sm:$0xff]   ;;  %v1668_v13 = vld [vmem:[%s1745_s24 + $0x208] sm:$0xff]   ;;  %v1672_v15 = vld [vmem:[%s1745_s24 + $0x210] sm:$0xff]  }
  0x27   : > { %v1659_v8 = vld [vmem:[%s1745_s24 + $0x1f8] sm:$0xff]   ;;  %v1673_v16 = vld [vmem:[%s1911_s1 + $0x64] ss:$36 sps:$4 sm:$0xff]   ;;  %v1679_v23 = vld [vmem:[%s1745_s24 + $0x230] sm:$0xff]  }
  0x28   : > { %1442 = vmatpush3.bf16.msra.mxu0 %v1607_v24  ;;  %v1663_v9 = vld [vmem:[%s1745_s24 + $0x1b8] sm:$0xff]   ;;  %v1675_v18 = vld [vmem:[%s1911_s1 + $0x60] ss:$36 sps:$4 sm:$0xff]   ;;  %v1678_v22 = vld [vmem:[%s1745_s24 + $0x228] sm:$0xff]  }
  0x29   : > { %1470 = vmatpush3.bf16.msra.mxu1 %v1608_v25  ;;  %1443 = vmatprep.subr.bf16.mxu0 %v1609_v26  ;;  %v1665_v11 = vld [vmem:[%s1911_s1 + $0x18] ss:$36 sps:$4 sm:$0xff]   ;;  %v1681_v20 = vld [vmem:[%s1911_s1 + $0x20] ss:$36 sps:$4 sm:$0xff]   ;;  %v1682_v25 = vld [vmem:[%s1911_s1 + $0x68] ss:$36 sps:$4 sm:$0xff]  }
  0x2a   : > { %1471 = vmatprep.subr.bf16.mxu1 %v1610_v27  ;;  %v1667_v12 = vld [vmem:[%s1911_s1 + $0x1c] ss:$36 sps:$4 sm:$0xff]   ;;  %v1699_v26 = vmov 0  }
  0x2b   : > { %v1669_v14 = vld [vmem:[%s1911_s1 + $0x5c] ss:$36 sps:$4 sm:$0xff]   ;;  %1584 = vset.pattern.permute.xlu1 %v1699_v26  ;;  %1583 = vset.pattern.permute.xlu0 %v1699_v26 }
  0x2c   : > { %1444 = vmatpush3.bf16.msra.mxu0 %v1611_v28  ;;  %v1671_v17 = vld [vmem:[%s1911_s1 + $0x58] ss:$36 sps:$4 sm:$0xff]   ;;  %v1677_v21 = vld [vmem:[%s1745_s24 + $0x220] sm:$0xff]  }
  0x2d   : > { %1472 = vmatpush3.bf16.msra.mxu1 %v1612_v29  ;;  %1445 = vmatprep.subr.bf16.mxu0 %v1613_v30  ;;  %v1676_v19 = vld [vmem:[%s1745_s24 + $0x218] sm:$0xff]  }
  0x2e   : > { %1473 = vmatprep.subr.bf16.mxu1 %v1614_v31  ;;  %v1680_v24 = vld [vmem:[%s1745_s24 + $0x238] sm:$0xff]  }
  0x30   : > { %1446 = vmatpush3.bf16.msra.mxu0 %v1615_v33 }
  0x31   : > { %1474 = vmatpush3.bf16.msra.mxu1 %v1616_v35  ;;  %1487 = vmatprep.subr.bf16.mxu0 %v1623_v37 }
  0x32   : > { %1515 = vmatprep.subr.bf16.mxu1 %v1625_v40 }
  0x33   : > { %920 = vmatmul.mubr.bf16.vlgmr.msra.gmra.mrb[0].mxu0 %v1617_v32 }
  0x34   : > { %969 = vmatmul.mubr.bf16.vlgmr.msra.gmra.mrb[0].mxu1 %v1620_v34  ;;  %1488 = vmatpush3.bf16.msra.mxu0 %v1624_v38 }
  0x35   : > { %927 = vmatprep.mubr.bf16.mxu0 %v1644_v36  ;;  %1516 = vmatpush3.bf16.msra.mxu1 %v1626_v41 }
  0x36   : > { %1489 = vmatprep.subr.bf16.mxu0 %v1627_v42  ;;  %976 = vmatprep.mubr.bf16.mxu1 %v1646_v39 }
  0x37   : > { %1517 = vmatprep.subr.bf16.mxu1 %v1629_v45 }
  0x38   : > { %1490 = vmatpush3.bf16.msra.mxu0 %v1628_v43 }
  0x39   : > { %1518 = vmatpush3.bf16.msra.mxu1 %v1630_v46  ;;  %1491 = vmatprep.subr.bf16.mxu0 %v1631_v49 }
  0x3a   : > { %1519 = vmatprep.subr.bf16.mxu1 %v1633_v51 }
  0x3b   : > { %928 = vmatmul.mubr.bf16.gmra.mrb[4].mxu0 %v1649_v44 }
  0x3c   : > { %1492 = vmatpush3.bf16.msra.mxu0 %v1632_v50  ;;  %977 = vmatmul.mubr.bf16.gmra.mrb[4].mxu1 %v1650_v47 }
  0x3d   : > { %1017 = vmatprep.mubr.bf16.mxu0 %v1662_v48  ;;  %1520 = vmatpush3.bf16.msra.mxu1 %v1634_v52 }
  0x3e   : > { %1493 = vmatprep.subr.bf16.mxu0 %v1635_v53  ;;  %1521 = vmatprep.subr.bf16.mxu1 %v1637_v55 }
  0x3f   : > { %1066 = vmatprep.mubr.bf16.mxu1 %v1667_v12 }
  0x40   : > { %1494 = vmatpush3.bf16.msra.mxu0 %v1636_v54 }
  0x41   : > { %1522 = vmatpush3.bf16.msra.mxu1 %v1638_v56  ;;  %1495 = vmatprep.subr.bf16.mxu0 %v1639_v57 }
  0x42   : > { %1523 = vmatprep.subr.bf16.mxu1 %v1641_v59 }
  0x44   : > { %1496 = vmatpush3.bf16.msra.mxu0 %v1640_v58 }
  0x45   : > { %1524 = vmatpush3.bf16.msra.mxu1 %v1642_v60  ;;  %1497 = vmatprep.subr.bf16.mxu0 %v1643_v61 }
  0x46   : > { %1525 = vmatprep.subr.bf16.mxu1 %v1651_v63 }
  0x48   : > { %1498 = vmatpush3.bf16.msra.mxu0 %v1648_v62 }
  0x49   : > { %1526 = vmatpush3.bf16.msra.mxu1 %v1652_v0  ;;  %1499 = vmatprep.subr.bf16.mxu0 %v1653_v1 }
  0x4a   : > { %1527 = vmatprep.subr.bf16.mxu1 %v1655_v3 }
  0x4c   : > { %1500 = vmatpush3.bf16.msra.mxu0 %v1654_v2 }
  0x4d   : > { %1528 = vmatpush3.bf16.msra.mxu1 %v1656_v4  ;;  %1501 = vmatprep.subr.bf16.mxu0 %v1657_v5 }
  0x4e   : > { %1529 = vmatprep.subr.bf16.mxu1 %v1659_v8 }
  0x50   : > { %1502 = vmatpush3.bf16.msra.mxu0 %v1658_v6 }
  0x51   : > { %1530 = vmatpush3.bf16.msra.mxu1 %v1663_v9  ;;  %1553 = vmatprep.subr.bf16.mxu0 %v1664_v10 }
  0x53   : > { %1018 = vmatmul.mubr.bf16.vlgmr.msra.gmra.mrb[8].mxu0 %v1660_v7 }
  0x54   : > { %1554 = vmatpush3.bf16.msra.mxu0 %v1664_v10  ;;  %1067 = vmatmul.mubr.bf16.vlgmr.msra.gmra.mrb[8].mxu1 %v1665_v11 }
  0x55   : > { %1555 = vmatprep.subr.bf16.mxu0 %v1668_v13  ;;  %1025 = vmatprep.mubr.bf16.mxu0 %v1669_v14 }
  0x56   : > { %1074 = vmatprep.mubr.bf16.mxu1 %v1673_v16 }
  0x58   : > { %1556 = vmatpush3.bf16.msra.mxu0 %v1668_v13 }
  0x59   : > { %1557 = vmatprep.subr.bf16.mxu0 %v1672_v15 }
  0x5b   : > { %1026 = vmatmul.mubr.bf16.gmra.mrb[12].mxu0 %v1671_v17 }
  0x5c   : > { %1558 = vmatpush3.bf16.msra.mxu0 %v1672_v15  ;;  %1075 = vmatmul.mubr.bf16.gmra.mrb[12].mxu1 %v1675_v18 }
  0x5d   : > { %1559 = vmatprep.subr.bf16.mxu0 %v1676_v19  ;;  %1569 = vmatprep.mubr.bf16.mxu0 %v1681_v20 }
  0x60   : > { %1560 = vmatpush3.bf16.msra.mxu0 %v1676_v19 }
  0x61   : > { %1561 = vmatprep.subr.bf16.mxu0 %v1677_v21 }
  0x64   : > { %1562 = vmatpush3.bf16.msra.mxu0 %v1677_v21 }
  0x65   : > { %1563 = vmatprep.subr.bf16.mxu0 %v1678_v22 }
  0x68   : > { %1564 = vmatpush3.bf16.msra.mxu0 %v1678_v22 }
  0x69   : > { %1565 = vmatprep.subr.bf16.mxu0 %v1679_v23 }
  0x6c   : > { %1566 = vmatpush3.bf16.msra.mxu0 %v1679_v23 }
  0x6d   : > { %1567 = vmatprep.subr.bf16.mxu0 %v1680_v24 }
  0x70   : > { %1568 = vmatpush3.bf16.msra.mxu0 %v1680_v24 }
  0x73   : > { %1570 = vmatmul.mubr.bf16.vlgmr.msra.gmra.mrb[16].mxu0 %v1682_v25 }
 0x106   : > { %v1447_v27 = vpop.f32.mrb[0].mxu0 }
 0x107   : > { %v1475_v28 = vpop.f32.mrb[0].mxu1  ;;  %v1448_v29 = vpop.f32.mrb[1].mxu0 }
 0x108   : > { %v1449_v30 = vadd.f32 %v1448_v29, %v1447_v27  ;;  %v1476_v31 = vpop.f32.mrb[1].mxu1  ;;  %v1450_v32 = vpop.f32.mrb[2].mxu0 }
 0x109   : > { %v1477_v33 = vadd.f32 %v1476_v31, %v1475_v28  ;;  %v1478_v34 = vpop.f32.mrb[2].mxu1  ;;  %v1451_v35 = vpop.f32.mrb[3].mxu0 }
 0x10a   : > { %v1452_v36 = vadd.f32 %v1451_v35, %v1450_v32  ;;  %v1479_v37 = vpop.f32.mrb[3].mxu1  ;;  %v1187_v35 = vld [vmem:[%s1912_s2 + $0x8] sm:$0xff] }
 0x10b   : > { %v971_v38 = vadd.f32 %v1477_v33, %v1449_v30  ;;  %v1480_v39 = vadd.f32 %v1479_v37, %v1478_v34  ;;  %v1189_v37 = vld [vmem:[%s1912_s2 + $0x18] sm:$0xff] }
 0x10d   : > { %v974_v40 = vadd.f32 %v1480_v39, %v1452_v36  ;;  %v1188_v36 = vld [vmem:[%s1912_s2 + $0x10] sm:$0xff]  ;;  %v1215_v39 = vld [vmem:[%s1913_s3 + $0x8] sm:$0xff] }
 0x10e   : > { %v1453_v41 = vpop.f32.mrb[4].mxu0 }
 0x10f   : > { %v1454_v42 = vpop.f32.mrb[5].mxu0  ;;  %v1481_v43 = vpop.f32.mrb[4].mxu1 }
 0x110   : > { %v1455_v44 = vadd.f32 %v1454_v42, %v1453_v41  ;;  %v1456_v45 = vpop.f32.mrb[6].mxu0  ;;  %v1482_v46 = vpop.f32.mrb[5].mxu1 }
 0x111   : > { %v1457_v47 = vpop.f32.mrb[7].mxu0  ;;  %v1483_v48 = vadd.f32 %v1482_v46, %v1481_v43  ;;  %v1484_v49 = vpop.f32.mrb[6].mxu1 }
 0x112   : > { %v1458_v50 = vadd.f32 %v1457_v47, %v1456_v45  ;;  %v1485_v51 = vpop.f32.mrb[7].mxu1 }
 0x113   : > { %v979_v52 = vadd.f32 %v1483_v48, %v1455_v44  ;;  %v1486_v53 = vadd.f32 %v1485_v51, %v1484_v49 }
 0x115   : > { %v982_v54 = vadd.f32 %v1486_v53, %v1458_v50 }
 0x126   : > { %v1503_v55 = vpop.f32.mrb[8].mxu0 }
 0x127   : > { %v1504_v56 = vpop.f32.mrb[9].mxu0  ;;  %v1531_v59 = vpop.f32.mrb[8].mxu1 }
 0x128   : > { %v1505_v57 = vadd.f32 %v1504_v56, %v1503_v55  ;;  %v1506_v58 = vpop.f32.mrb[10].mxu0  ;;  %v1532_v61 = vpop.f32.mrb[9].mxu1 }
 0x129   : > { %v1507_v60 = vpop.f32.mrb[11].mxu0  ;;  %v1533_v0 = vadd.f32 %v1532_v61, %v1531_v59  ;;  %v1534_v1 = vpop.f32.mrb[10].mxu1  ;;  %v1217_v61 = vld [vmem:[%s1913_s3 + $0x18] sm:$0xff] }
 0x12a   : > { %v1020_v62 = vadd.f32 %v1505_v57, %v971_v38  ;;  %v1508_v63 = vadd.f32 %v1507_v60, %v1506_v58  ;;  %v1535_v2 = vpop.f32.mrb[11].mxu1  ;;  %v1214_v38 = vld [vmem:[%s1913_s3] sm:$0xff] }
 0x12b   : > { %v1536_v4 = vadd.f32 %v1535_v2, %v1534_v1 }
 0x12c   : > { %v1023_v3 = vadd.f32 %v1508_v63, %v974_v40  ;;  %v1069_v5 = vadd.f32 %v1533_v0, %v1020_v62  ;;  %v1216_v40 = vld [vmem:[%s1913_s3 + $0x10] sm:$0xff]  ;;  %v1186_v62 = vld [vmem:[%s1912_s2] sm:$0xff] }
 0x12e   : > { %v1509_v6 = vpop.f32.mrb[12].mxu0  ;;  %v1072_v7 = vadd.f32 %v1536_v4, %v1023_v3 }
 0x12f   : > { %v1510_v8 = vpop.f32.mrb[13].mxu0  ;;  %v1537_v11 = vpop.f32.mrb[12].mxu1 }
 0x130   : > { %v1511_v9 = vadd.f32 %v1510_v8, %v1509_v6  ;;  %v1512_v10 = vpop.f32.mrb[14].mxu0  ;;  %v1538_v13 = vpop.f32.mrb[13].mxu1 }
 0x131   : > { %v1513_v12 = vpop.f32.mrb[15].mxu0  ;;  %v1539_v16 = vadd.f32 %v1538_v13, %v1537_v11  ;;  %v1540_v17 = vpop.f32.mrb[14].mxu1 }
 0x132   : > { %v1028_v14 = vadd.f32 %v1511_v9, %v979_v52  ;;  %v1514_v15 = vadd.f32 %v1513_v12, %v1512_v10  ;;  %v1541_v18 = vpop.f32.mrb[15].mxu1 }
 0x133   : > { %v1542_v20 = vadd.f32 %v1541_v18, %v1540_v17 }
 0x134   : > { %v1031_v19 = vadd.f32 %v1514_v15, %v982_v54  ;;  %v1077_v21 = vadd.f32 %v1539_v16, %v1028_v14 }
 0x136   : > { %v1080_v22 = vadd.f32 %v1542_v20, %v1031_v19 }
 0x146   : > { %v1571_v23 = vpop.f32.mrb[16].mxu0 }
 0x147   : > { %v1126_v24 = vadd.f32 %v1571_v23, %v1077_v21  ;;  %v1117_v25 = vpop.f32.mrb[17].mxu0 }
 0x148   : > { %v1118_v26 = vadd.f32 %v1117_v25, %v1069_v5  ;;  %v1572_v27 = vpop.f32.mrb[18].mxu0 }
 0x149   : > { %v1129_v28 = vadd.f32 %v1572_v27, %v1080_v22  ;;  %v1120_v29 = vpop.f32.mrb[19].mxu0  ;;  %v1139_v30 = vsel %vm1132_vm0, %v1126_v24, 0.0 }
 0x14a   : > { %v1121_v31 = vadd.f32 %v1120_v29, %v1072_v7  ;;  %1140 = vadd.xlane.f32.xlu1 %v1139_v30  ;;  %v1133_v32 = vsel %vm1132_vm0, %v1118_v26, 0.0 }
 0x14b   : > { %1134 = vadd.xlane.f32.xlu0 %v1133_v32  ;;  %v1142_v33 = vsel %vm1132_vm0, %v1129_v28, 0.0 }
 0x14c   : > { %v1136_v34 = vsel %vm1132_vm0, %v1121_v31, 0.0 }
 0x14e   : > { %1143 = vadd.xlane.f32.xlu1 %v1142_v33 }
 0x14f   : > { %1137 = vadd.xlane.f32.xlu0 %v1136_v34 }
 0x15f   : > { %1197 = vperm.xlu1 %1584, %v1187_v35  }
 0x163   : > { %1202 = vperm.xlu1 %1584, %v1188_v36  }
 0x167   : > { %1207 = vperm.xlu1 %1584, %v1189_v37  }
 0x16b   : > { %1220 = vperm.xlu1 %1584, %v1214_v38  }
 0x16f   : > { %1225 = vperm.xlu1 %1584, %v1215_v39  }
 0x173   : > { %1230 = vperm.xlu1 %1584, %v1216_v40  }
 0x1d7   : > { %v1141_v41 = vpop.xlane.xlu1 %1140 }
 0x1d8   : > { %v1148_v42 = vmul.f32 0.0625, %v1141_v41  ;;  %v1135_v43 = vpop.xlane.xlu0 %1134 }
 0x1d9   : > { %v1146_v44 = vmul.f32 0.0625, %v1135_v43 }
 0x1da   : > { %v1152_v45 = vsub.f32 %v1126_v24, %v1148_v42 }
 0x1db   : > { %v1150_v46 = vsub.f32 %v1118_v26, %v1146_v44  ;;  %v1144_v47 = vpop.xlane.xlu1 %1143 }
 0x1dc   : > { %v1149_v48 = vmul.f32 0.0625, %v1144_v47  ;;  %v1138_v49 = vpop.xlane.xlu0 %1137  ;;  %v1156_v50 = vmul.f32 %v1152_v45, %v1152_v45 }
 0x1dd   : > { %v1147_v51 = vmul.f32 0.0625, %v1138_v49  ;;  %v1154_v54 = vmul.f32 %v1150_v46, %v1150_v46 }
 0x1de   : > { %v1153_v52 = vsub.f32 %v1129_v28, %v1149_v48  ;;  %v1164_v53 = vsel %vm1132_vm0, %v1156_v50, 0.0 }
 0x1df   : > { %v1151_v55 = vsub.f32 %v1121_v31, %v1147_v51  ;;  %1165 = vadd.xlane.f32.xlu0 %v1164_v53  ;;  %v1158_v58 = vsel %vm1132_vm0, %v1154_v54, 0.0  ;;  %v1198_v63 = vpop.permute.xlu1 %1197 }
 0x1e0   : > { %v1157_v56 = vmul.f32 %v1153_v52, %v1153_v52 }
 0x1e1   : > { %v1155_v59 = vmul.f32 %v1151_v55, %v1151_v55 }
 0x1e2   : > { %v1167_v57 = vsel %vm1132_vm0, %v1157_v56, 0.0 }
 0x1e3   : > { %1168 = vadd.xlane.f32.xlu1 %v1167_v57  ;;  %1159 = vadd.xlane.f32.xlu0 %v1158_v58  ;;  %v1161_v60 = vsel %vm1132_vm0, %v1155_v59, 0.0  ;;  %v1203_v0 = vpop.permute.xlu1 %1202 }
 0x1e7   : > { %1162 = vadd.xlane.f32.xlu1 %v1161_v60  ;;  %v1208_v1 = vpop.permute.xlu1 %1207 }
 0x1eb   : > { %v1221_v2 = vpop.permute.xlu1 %1220 }
 0x1ef   : > { %v1226_v3 = vpop.permute.xlu1 %1225 }
 0x1f3   : > { %v1231_v4 = vpop.permute.xlu1 %1230 }
 0x1f8   : > { %1235 = vperm.xlu1 %1584, %v1217_v61  }
 0x1f9   : > { %1192 = vperm.xlu0 %1583, %v1186_v62  }
 0x26c   : > { %v1166_v5 = vpop.xlane.xlu0 %1165 }
 0x26d   : > { %v1172_v6 = vmul.f32 0.0625, %v1166_v5 }
 0x26f   : > { %v1176_v7 = vadd.f32 1e-05, %v1172_v6 }
 0x270   : > { %v1169_v8 = vpop.xlane.xlu1 %1168  ;;  %v1160_v9 = vpop.xlane.xlu0 %1159 }
 0x271   : > { %1683 = vrsqrt.f32 %v1176_v7  ;;  %v1173_v10 = vmul.f32 0.0625, %v1169_v8  ;;  %v1170_v11 = vmul.f32 0.0625, %v1160_v9 }
 0x273   : > { %v1177_v12 = vadd.f32 1e-05, %v1173_v10  ;;  %v1174_v13 = vadd.f32 1e-05, %v1170_v11 }
 0x274   : > { %v1163_v14 = vpop.xlane.xlu1 %1162 }
 0x275   : > { %1685 = vrsqrt.f32 %v1177_v12  ;;  %v1171_v15 = vmul.f32 0.0625, %v1163_v14 }
 0x276   : > { %1687 = vrsqrt.f32 %v1174_v13 }
 0x277   : > { %v1175_v16 = vadd.f32 1e-05, %v1171_v15 }
 0x278   : > { %v1193_v24 = vpop.permute.xlu0 %1192  ;;  %v1236_v29 = vpop.permute.xlu1 %1235 }
 0x279   : > { %1689 = vrsqrt.f32 %v1175_v16 }
 0x27b   : > { %v1684_v17 = vpop.eup %1683 }
 0x27c   : > { %v1184_v18 = vmul.f32 %v1684_v17, %v1152_v45 }
 0x27e   : > { %v1212_v19 = vmul.f32 %v1203_v0, %v1184_v18 }
 0x27f   : > { %v1686_v20 = vpop.eup %1685 }
 0x280   : > { %v1688_v21 = vpop.eup %1687  ;;  %v1240_v22 = vadd.f32 %v1231_v4, %v1212_v19  ;;  %v1185_v23 = vmul.f32 %v1686_v20, %v1153_v52 }
 0x281   : > { %v1182_v25 = vmul.f32 %v1688_v21, %v1150_v46 }
 0x282   : > { %v1244_v26 = vmax.f32 %v1240_v22, 0.0  ;;  %v1213_v27 = vmul.f32 %v1208_v1, %v1185_v23 }
 0x283   : > { %v1690_v28 = vpop.eup %1689  ;;  %v1210_v30 = vmul.f32 %v1193_v24, %v1182_v25 }
 0x284   : > { %v1429_v31 = vpack.c.bf16 %v1244_v26, %v1244_v26  ;;  %v1183_v32 = vmul.f32 %v1690_v28, %v1151_v55  ;;  %v1241_v33 = vadd.f32 %v1236_v29, %v1213_v27 }
 0x285   : > { %v1238_v34 = vadd.f32 %v1221_v2, %v1210_v30 }
 0x286   : > { %v1211_v35 = vmul.f32 %v1198_v63, %v1183_v32  ;;  %v1245_v36 = vmax.f32 %v1241_v33, 0.0  ;;  %1265 = vst.msk [vmem:[%s197_s29 + $0x8] sm:$0xf] %vm1262_vm1, %v1429_v31 }
 0x287   : > { %v1242_v37 = vmax.f32 %v1238_v34, 0.0 }
 0x288   : > { %v1239_v38 = vadd.f32 %v1226_v3, %v1211_v35  ;;  %v1430_v39 = vpack.c.bf16 %v1245_v36, %v1245_v36 }
 0x289   : > { %v1427_v40 = vpack.c.bf16 %v1242_v37, %v1242_v37 }
 0x28a   : > { %v1243_v41 = vmax.f32 %v1239_v38, 0.0  ;;  %1266 = vst.msk [vmem:[%s197_s29 + $0xc] sm:$0xf] %vm1262_vm1, %v1430_v39 }
 0x28b   : > { %1263 = vst.msk [vmem:[%s197_s29] sm:$0xf] %vm1262_vm1, %v1427_v40 }
 0x28c   : > { %v1428_v42 = vpack.c.bf16 %v1243_v41, %v1243_v41 }
 0x28e   : > { %1264 = vst.msk [vmem:[%s197_s29 + $0x4] sm:$0xf] %vm1262_vm1, %v1428_v42 }
 0x28f PF: > { %s14_s15 = sadd.s32 1, %s1697_s15  }
 0x290   : > { %p11_p4 = scmp.ge.s32.totalorder %s14_s15, 4  }
 0x292   :  { %13 = sbr.rel (!%p11_p4) target bundleno = 1 (0x1), region = 66 }

// kernel: minimonet_forward.31
= control target key start
LH: loop header
LB: loop body
LE: loop exit
PB: predicated region body
PF: predicated region fallthrough
CT: control target
= control target key end

     0   :  { %s983_s15 = smov 0   ;;  %s1074_s0 = inlined_call_operand.vmem [shape: bf16[2,576,64], index: 0, kind: input, shape index: {}]   ;;  %s1075_s1 = inlined_call_operand.vmem [shape: bf16[16,576], index: 1, kind: input, shape index: {}]   ;;  %s1076_s2 = inlined_call_operand.vmem [shape: f32[16,1], index: 2, kind: input, shape index: {}]   ;;  %s1077_s3 = inlined_call_operand.vmem [shape: f32[16,1], index: 3, kind: input, shape index: {}]   ;;  %s1078_s4 = inlined_call_operand.vmem [shape: bf16[2,16,64], index: 4, kind: output, shape index: {}]  }
   0x1 LB: > { %s768_s16 = sadd.s32 4294967295, %s953_s15   ;;  %p772_p0 = scmp.ge.s32.totalorder %s953_s15, 1  ;;  %s953_s15 = sphi %s983_s15, %s14_s15  }
   0x2   : > { %p162_p1 = scmp.lt.s32.totalorder %s953_s15, 3 }
   0x4   : > { %p163_p2 = pnand %p772_p0, %p162_p1 }
   0x5   : > { %p188_p3 = scmp.lt.s32.totalorder (!%p163_p2), %s768_s16, 1  ;;  %v934_v0 = vld [vmem:[%s1075_s1 + $0x4] ss:$20 sps:$4 sm:$0xff] (!%p163_p2)   ;;  %v937_v1 = vld [vmem:[%s1075_s1 + $0xc] ss:$20 sps:$4 sm:$0xff] (!%p163_p2)   ;;  %v955_v37 = vmov (!%p163_p2), 0.0  }
   0x6   : > { %166 = sbr.rel (%p163_p2) target bundleno = 603 (0x25b), region = 36  ;;  %554 = vmatprep.mubr.bf16.mxu0 (!%p163_p2), %v934_v0  ;;  %595 = vmatprep.mubr.bf16.mxu1 (!%p163_p2), %v937_v1  ;;  %v932_v32 = vld [vmem:[%s1075_s1] ss:$20 sps:$4 sm:$0xff] (!%p163_p2)   ;;  %v935_v34 = vld [vmem:[%s1075_s1 + $0x8] ss:$20 sps:$4 sm:$0xff] (!%p163_p2)   ;;  %vm956_vm0 = vmmov (!%p163_p2), 0  }
   0x7   : > { %v942_v41 = vld [vmem:[%s1075_s1 + $0x10] ss:$20 sps:$4 sm:$0xff] (!%p163_p2)   ;;  %vm518_vm1 = vcmask (!%p163_p2), 523264   ;;  %v673_v42 = vld [vmem:[%s1076_s2 + $0x8] sm:$0xff] (!%p163_p2)  ;;  %v957_v43 = vmov (!%p163_p2), 0   ;;  %vm710_vm2 = vcmask (!%p163_p2), 519168  }
   0x8   : > { %899 = vset.pattern.permute.xlu1 (!%p163_p2), %v957_v43  ;;  %898 = vset.pattern.permute.xlu0 (!%p163_p2), %v957_v43  ;;  %v686_v44 = vld [vmem:[%s1077_s3] sm:$0xff] (!%p163_p2) }
   0x9   : > { %681 = vperm.xlu1 (!%p163_p2), %899, %v673_v42  }
   0xd   : > { %s1080_s16 = smov (!%p188_p3, %s768_s16), 1  ;;  %690 = vperm.xlu1 %899, %v686_v44  }
   0xe   : > { %s886_s21 = smul.u32 288, %s1080_s16  ;;  %s822_s13 = sshll.u32 %s1080_s16, 3 }
   0xf   : > { %s197_s18 = scalar_lea.vmem %s1078_s4, %s822_s13 }
  0x10   : > { %s1003_s24 = scalar_lea.vmem %s1074_s0, %s886_s21 }
  0x11   : > { %v900_v2 = vld [vmem:[%s1003_s24 + $0x40] sm:$0xff]   ;;  %v904_v6 = vld [vmem:[%s1003_s24 + $0x48] sm:$0xff]   ;;  %v908_v10 = vld [vmem:[%s1003_s24 + $0x50] sm:$0xff]  }
  0x12   : > { %v901_v3 = vld [vmem:[%s1003_s24 + $0xc0] sm:$0xff]   ;;  %825 = vmatprep.subr.bf16.mxu0 %v900_v2  ;;  %v905_v7 = vld [vmem:[%s1003_s24 + $0xc8] sm:$0xff]   ;;  %v909_v11 = vld [vmem:[%s1003_s24 + $0xd0] sm:$0xff]  }
  0x13   : > { %v902_v4 = vld [vmem:[%s1003_s24] sm:$0xff]   ;;  %847 = vmatprep.subr.bf16.mxu1 %v901_v3  ;;  %v906_v8 = vld [vmem:[%s1003_s24 + $0x8] sm:$0xff]   ;;  %v910_v12 = vld [vmem:[%s1003_s24 + $0x10] sm:$0xff]  }
  0x14   : > { %v903_v5 = vld [vmem:[%s1003_s24 + $0x80] sm:$0xff]   ;;  %826 = vmatpush3.bf16.msra.mxu0 %v902_v4  ;;  %v907_v9 = vld [vmem:[%s1003_s24 + $0x88] sm:$0xff]   ;;  %v911_v13 = vld [vmem:[%s1003_s24 + $0x90] sm:$0xff]  }
  0x15   : > { %848 = vmatpush3.bf16.msra.mxu1 %v903_v5  ;;  %827 = vmatprep.subr.bf16.mxu0 %v904_v6  ;;  %v912_v14 = vld [vmem:[%s1003_s24 + $0x58] sm:$0xff]   ;;  %v916_v18 = vld [vmem:[%s1003_s24 + $0x60] sm:$0xff]   ;;  %v920_v22 = vld [vmem:[%s1003_s24 + $0x68] sm:$0xff]  }
  0x16   : > { %849 = vmatprep.subr.bf16.mxu1 %v905_v7  ;;  %v913_v15 = vld [vmem:[%s1003_s24 + $0xd8] sm:$0xff]   ;;  %v917_v19 = vld [vmem:[%s1003_s24 + $0xe0] sm:$0xff]   ;;  %v921_v23 = vld [vmem:[%s1003_s24 + $0xe8] sm:$0xff]  }
  0x17   : > { %v914_v16 = vld [vmem:[%s1003_s24 + $0x18] sm:$0xff]   ;;  %v918_v20 = vld [vmem:[%s1003_s24 + $0x20] sm:$0xff]   ;;  %v922_v24 = vld [vmem:[%s1003_s24 + $0x28] sm:$0xff]  }
  0x18   : > { %828 = vmatpush3.bf16.msra.mxu0 %v906_v8  ;;  %v915_v17 = vld [vmem:[%s1003_s24 + $0x98] sm:$0xff]   ;;  %v919_v21 = vld [vmem:[%s1003_s24 + $0xa0] sm:$0xff]   ;;  %v923_v25 = vld [vmem:[%s1003_s24 + $0xa8] sm:$0xff]  }
  0x19   : > { %850 = vmatpush3.bf16.msra.mxu1 %v907_v9  ;;  %829 = vmatprep.subr.bf16.mxu0 %v908_v10  ;;  %v924_v26 = vld [vmem:[%s1003_s24 + $0x70] sm:$0xff]   ;;  %v928_v30 = vld [vmem:[%s1003_s24 + $0x78] sm:$0xff]   ;;  %v938_v36 = vld [vmem:[%s1003_s24 + $0x100] sm:$0xff]  }
  0x1a   : > { %851 = vmatprep.subr.bf16.mxu1 %v909_v11  ;;  %v925_v27 = vld [vmem:[%s1003_s24 + $0xf0] sm:$0xff]   ;;  %v929_v31 = vld [vmem:[%s1003_s24 + $0xf8] sm:$0xff]   ;;  %v939_v38 = vld [vmem:[%s1003_s24 + $0x108] sm:$0xff]  }
  0x1b   : > { %v926_v28 = vld [vmem:[%s1003_s24 + $0x30] sm:$0xff]   ;;  %v930_v33 = vld [vmem:[%s1003_s24 + $0x38] sm:$0xff]   ;;  %v672_v3 = vld [vmem:[%s1076_s2] sm:$0xff] }
  0x1c   : > { %830 = vmatpush3.bf16.msra.mxu0 %v910_v12  ;;  %v927_v29 = vld [vmem:[%s1003_s24 + $0xb0] sm:$0xff]   ;;  %v931_v35 = vld [vmem:[%s1003_s24 + $0xb8] sm:$0xff]  }
  0x1d   : > { %852 = vmatpush3.bf16.msra.mxu1 %v911_v13  ;;  %831 = vmatprep.subr.bf16.mxu0 %v912_v14  ;;  %v940_v39 = vld [vmem:[%s1003_s24 + $0x110] sm:$0xff]   ;;  %v941_v40 = vld [vmem:[%s1003_s24 + $0x118] sm:$0xff]   ;;  %v687_v14 = vld [vmem:[%s1077_s3 + $0x8] sm:$0xff] }
  0x1e   : > { %853 = vmatprep.subr.bf16.mxu1 %v913_v15 }
  0x20   : > { %832 = vmatpush3.bf16.msra.mxu0 %v914_v16 }
  0x21   : > { %854 = vmatpush3.bf16.msra.mxu1 %v915_v17  ;;  %833 = vmatprep.subr.bf16.mxu0 %v916_v18 }
  0x22   : > { %855 = vmatprep.subr.bf16.mxu1 %v917_v19 }
  0x24   : > { %834 = vmatpush3.bf16.msra.mxu0 %v918_v20 }
  0x25   : > { %856 = vmatpush3.bf16.msra.mxu1 %v919_v21  ;;  %835 = vmatprep.subr.bf16.mxu0 %v920_v22 }
  0x26   : > { %857 = vmatprep.subr.bf16.mxu1 %v921_v23 }
  0x28   : > { %836 = vmatpush3.bf16.msra.mxu0 %v922_v24 }
  0x29   : > { %858 = vmatpush3.bf16.msra.mxu1 %v923_v25  ;;  %837 = vmatprep.subr.bf16.mxu0 %v924_v26 }
  0x2a   : > { %859 = vmatprep.subr.bf16.mxu1 %v925_v27 }
  0x2c   : > { %838 = vmatpush3.bf16.msra.mxu0 %v926_v28 }
  0x2d   : > { %860 = vmatpush3.bf16.msra.mxu1 %v927_v29  ;;  %839 = vmatprep.subr.bf16.mxu0 %v928_v30 }
  0x2e   : > { %861 = vmatprep.subr.bf16.mxu1 %v929_v31 }
  0x30   : > { %840 = vmatpush3.bf16.msra.mxu0 %v930_v33 }
  0x31   : > { %862 = vmatpush3.bf16.msra.mxu1 %v931_v35  ;;  %874 = vmatprep.subr.bf16.mxu0 %v955_v37 }
  0x33   : > { %555 = vmatmul.mubr.bf16.vlgmr.msra.gmra.mrb[0].mxu0 %v932_v32 }
  0x34   : > { %596 = vmatmul.mubr.bf16.vlgmr.msra.gmra.mrb[0].mxu1 %v935_v34  ;;  %875 = vmatpush3.bf16.msra.mxu0 %v938_v36 }
  0x35   : > { %876 = vmatprep.subr.bf16.mxu0 %v955_v37  ;;  %882 = vmatprep.mubr.msk.bf16.mxu0 %vm956_vm0, %v955_v37 }
  0x38   : > { %877 = vmatpush3.bf16.msra.mxu0 %v939_v38 }
  0x39   : > { %878 = vmatprep.subr.bf16.mxu0 %v955_v37 }
  0x3c   : > { %879 = vmatpush3.bf16.msra.mxu0 %v940_v39 }
  0x3d   : > { %880 = vmatprep.subr.bf16.mxu0 %v955_v37 }
  0x40   : > { %881 = vmatpush3.bf16.msra.mxu0 %v941_v40 }
  0x43   : > { %883 = vmatmul.mubr.msk.bf16.vlgmr.msra.gmra.mrb[4].mxu0 %vm518_vm1, %v942_v41 }
  0x88   : > { %v682_v15 = vpop.permute.xlu1 %681 }
  0x8c   : > { %v691_v16 = vpop.permute.xlu1 %690 }
 0x106   : > { %v841_v45 = vpop.f32.mrb[0].mxu0 }
 0x107   : > { %v863_v46 = vpop.f32.mrb[0].mxu1  ;;  %v842_v47 = vpop.f32.mrb[1].mxu0 }
 0x108   : > { %v843_v48 = vadd.f32 %v842_v47, %v841_v45  ;;  %v864_v49 = vpop.f32.mrb[1].mxu1  ;;  %v844_v50 = vpop.f32.mrb[2].mxu0 }
 0x109   : > { %v865_v51 = vadd.f32 %v864_v49, %v863_v46  ;;  %v866_v52 = vpop.f32.mrb[2].mxu1  ;;  %v845_v53 = vpop.f32.mrb[3].mxu0 }
 0x10a   : > { %v846_v54 = vadd.f32 %v845_v53, %v844_v50  ;;  %v867_v55 = vpop.f32.mrb[3].mxu1 }
 0x10b   : > { %v868_v56 = vadd.f32 %v867_v55, %v866_v52  ;;  %v598_v57 = vadd.f32 %v865_v51, %v843_v48 }
 0x10d   : > { %v601_v58 = vadd.f32 %v868_v56, %v846_v54 }
 0x116   : > { %v638_v59 = vpop.f32.mrb[4].mxu0 }
 0x117   : > { %v639_v60 = vadd.f32 %v638_v59, %v598_v57  ;;  %v884_v61 = vpop.f32.mrb[5].mxu0 }
 0x118   : > { %v641_v62 = vpop.f32.mrb[6].mxu0 }
 0x119   : > { %v642_v63 = vadd.f32 %v641_v62, %v601_v58  ;;  %v885_v0 = vpop.f32.mrb[7].mxu0  ;;  %v645_v1 = vsel %vm518_vm1, %v639_v60, 0.0 }
 0x11a   : > { %646 = vadd.xlane.f32.xlu0 %v645_v1 }
 0x11b   : > { %v648_v2 = vsel %vm518_vm1, %v642_v63, 0.0 }
 0x11e   : > { %649 = vadd.xlane.f32.xlu0 %v648_v2 }
 0x134   : > { %676 = vperm.xlu0 %898, %v672_v3  }
 0x1a7   : > { %v647_v4 = vpop.xlane.xlu0 %646 }
 0x1a8   : > { %v652_v5 = vmul.f32 0.015625, %v647_v4 }
 0x1aa   : > { %v654_v6 = vsub.f32 %v639_v60, %v652_v5 }
 0x1ab   : > { %v650_v7 = vpop.xlane.xlu0 %649 }
 0x1ac   : > { %v653_v8 = vmul.f32 0.015625, %v650_v7  ;;  %v656_v9 = vmul.f32 %v654_v6, %v654_v6 }
 0x1ae   : > { %v655_v10 = vsub.f32 %v642_v63, %v653_v8  ;;  %v658_v11 = vsel %vm518_vm1, %v656_v9, 0.0 }
 0x1af   : > { %659 = vadd.xlane.f32.xlu1 %v658_v11 }
 0x1b0   : > { %v657_v12 = vmul.f32 %v655_v10, %v655_v10 }
 0x1b2   : > { %v661_v13 = vsel %vm518_vm1, %v657_v12, 0.0 }
 0x1b3   : > { %662 = vadd.xlane.f32.xlu1 %v661_v13  ;;  %v677_v24 = vpop.permute.xlu0 %676 }
 0x1c4   : > { %695 = vperm.xlu1 %899, %v687_v14  }
 0x23c   : > { %v660_v17 = vpop.xlane.xlu1 %659 }
 0x23d   : > { %v664_v18 = vmul.f32 0.015625, %v660_v17 }
 0x23f   : > { %v666_v19 = vadd.f32 1e-05, %v664_v18 }
 0x240   : > { %v663_v20 = vpop.xlane.xlu1 %662 }
 0x241   : > { %943 = vrsqrt.f32 %v666_v19  ;;  %v665_v21 = vmul.f32 0.015625, %v663_v20 }
 0x243   : > { %v667_v22 = vadd.f32 1e-05, %v665_v21 }
 0x244   : > { %v696_v32 = vpop.permute.xlu1 %695 }
 0x245   : > { %945 = vrsqrt.f32 %v667_v22 }
 0x24b   : > { %v944_v23 = vpop.eup %943 }
 0x24c   : > { %v670_v25 = vmul.f32 %v944_v23, %v654_v6 }
 0x24e   : > { %v684_v26 = vmul.f32 %v677_v24, %v670_v25 }
 0x24f   : > { %v946_v27 = vpop.eup %945 }
 0x250   : > { %v671_v28 = vmul.f32 %v946_v27, %v655_v10  ;;  %v698_v29 = vadd.f32 %v691_v16, %v684_v26 }
 0x252   : > { %v685_v30 = vmul.f32 %v682_v15, %v671_v28  ;;  %v700_v31 = vmax.f32 %v698_v29, 0.0 }
 0x254   : > { %v699_v33 = vadd.f32 %v696_v32, %v685_v30  ;;  %v823_v34 = vpack.c.bf16 %v700_v31, %v700_v31 }
 0x256   : > { %v701_v35 = vmax.f32 %v699_v33, 0.0  ;;  %711 = vst.msk [vmem:[%s197_s18] sm:$0xf] %vm710_vm2, %v823_v34 }
 0x258   : > { %v824_v36 = vpack.c.bf16 %v701_v35, %v701_v35 }
 0x25a   : > { %712 = vst.msk [vmem:[%s197_s18 + $0x4] sm:$0xf] %vm710_vm2, %v824_v36 }
 0x25b PF: > { %s14_s15 = sadd.s32 1, %s953_s15  }
 0x25c   : > { %p11_p4 = scmp.ge.s32.totalorder %s14_s15, 4  }
 0x25e   :  { %13 = sbr.rel (!%p11_p4) target bundleno = 1 (0x1), region = 66 }

// kernel: minimonet_forward.32
= control target key start
LH: loop header
LB: loop body
LE: loop exit
PB: predicated region body
PF: predicated region fallthrough
CT: control target
= control target key end

     0   :  { %s772_s15 = smov 0   ;;  %s849_s0 = inlined_call_operand.vmem [shape: bf16[2,288,256], index: 0, kind: input, shape index: {}]   ;;  %s850_s1 = inlined_call_operand.vmem [shape: bf16[8,288], index: 1, kind: input, shape index: {}]   ;;  %s851_s2 = inlined_call_operand.vmem [shape: f32[8,1], index: 2, kind: input, shape index: {}]   ;;  %s852_s3 = inlined_call_operand.vmem [shape: f32[8,1], index: 3, kind: input, shape index: {}]   ;;  %s853_s4 = inlined_call_operand.vmem [shape: bf16[2,8,256], index: 4, kind: output, shape index: {}]  }
   0x1 LB: > { %s612_s16 = sadd.s32 4294967295, %s744_s15   ;;  %p616_p0 = scmp.ge.s32.totalorder %s744_s15, 1  ;;  %s744_s15 = sphi %s772_s15, %s14_s15  }
   0x2   : > { %p162_p1 = scmp.lt.s32.totalorder %s744_s15, 3 }
   0x4   : > { %p163_p2 = pnand %p616_p0, %p162_p1 }
   0x5   : > { %p188_p3 = scmp.lt.s32.totalorder (!%p163_p2), %s612_s16, 1  ;;  %v746_v0 = vmov (!%p163_p2), 0   ;;  %v783_v1 = vld [vmem:[%s850_s1] sm:$0xff] (!%p163_p2)  ;;  %v733_v22 = vld [vmem:[%s850_s1 + $0x8] ss:$0 sps:$4 sm:$0xff] (!%p163_p2)   ;;  %vm427_vm0 = vcmask (!%p163_p2), 261120  }
   0x6   : > { %166 = sbr.rel (%p163_p2) target bundleno = 617 (0x269), region = 36  ;;  %504 = vmatprep.mubr.bf16.mxu0 (!%p163_p2), %v746_v0  ;;  %677 = vset.pattern.permute.xlu1 (!%p163_p2), %v746_v0  ;;  %v621_v2 = vcombine.high (!%p163_p2), %v783_v1, %v783_v1  ;;  %v620_v40 = vcombine.low (!%p163_p2), %v783_v1, %v783_v1  ;;  %v530_v52 = vld [vmem:[%s851_s2] sm:$0xff] (!%p163_p2) }
   0x7   : > { %678 = vset.pattern.permute.xlu0 (!%p163_p2), %v746_v0  ;;  %533 = vperm.xlu1 (!%p163_p2), %677, %v530_v52   ;;  %v538_v53 = vld [vmem:[%s852_s3] sm:$0xff] (!%p163_p2) }
   0x8   : > { %463 = vmatprep.mubr.bf16.mxu1 (!%p163_p2), %v621_v2 }
   0xb   : > { %541 = vperm.xlu1 (!%p163_p2), %677, %v538_v53  }
   0xd   : > { %s855_s16 = smov (!%p188_p3, %s612_s16), 1 }
   0xe   : > { %s667_s19 = smul.u32 288, %s855_s16  ;;  %s663_s29 = sshll.u32 %s855_s16, 3 }
   0xf   : > { %s197_s6 = scalar_lea.vmem %s853_s4, %s663_s29 }
  0x10   : > { %s793_s22 = scalar_lea.vmem %s849_s0, %s667_s19 }
  0x11   : > { %v679_v3 = vld [vmem:[%s793_s22 + $0x4] ss:$8 sps:$4 sm:$0xff]   ;;  %v681_v4 = vld [vmem:[%s793_s22] ss:$8 sps:$4 sm:$0xff]   ;;  %v682_v5 = vld [vmem:[%s793_s22 + $0x14] ss:$8 sps:$4 sm:$0xff]  }
  0x12   : > { %431 = vmatprep.subr.bf16.mxu1 %v679_v3  ;;  %v684_v6 = vld [vmem:[%s793_s22 + $0x10] ss:$8 sps:$4 sm:$0xff]   ;;  %v685_v7 = vld [vmem:[%s793_s22 + $0x24] ss:$8 sps:$4 sm:$0xff]   ;;  %v687_v8 = vld [vmem:[%s793_s22 + $0x20] ss:$8 sps:$4 sm:$0xff]  }
  0x13   : > { %432 = vmatpush1.bf16.msra.mxu1 %v681_v4  ;;  %v688_v9 = vld [vmem:[%s793_s22 + $0x34] ss:$8 sps:$4 sm:$0xff]   ;;  %v690_v10 = vld [vmem:[%s793_s22 + $0x30] ss:$8 sps:$4 sm:$0xff]   ;;  %v691_v11 = vld [vmem:[%s793_s22 + $0x44] ss:$8 sps:$4 sm:$0xff]  }
  0x14   : > { %433 = vmatprep.subr.bf16.mxu1 %v682_v5  ;;  %v693_v12 = vld [vmem:[%s793_s22 + $0x40] ss:$8 sps:$4 sm:$0xff]   ;;  %v694_v13 = vld [vmem:[%s793_s22 + $0x54] ss:$8 sps:$4 sm:$0xff]   ;;  %v696_v14 = vld [vmem:[%s793_s22 + $0x50] ss:$8 sps:$4 sm:$0xff]  }
  0x15   : > { %v721_v15 = vld [vmem:[%s793_s22 + $0x104] ss:$8 sps:$4 sm:$0xff]   ;;  %v723_v16 = vld [vmem:[%s793_s22 + $0x100] ss:$8 sps:$4 sm:$0xff]   ;;  %v727_v18 = vld [vmem:[%s793_s22 + $0x114] ss:$8 sps:$4 sm:$0xff]  }
  0x16   : > { %v697_v17 = vld [vmem:[%s793_s22 + $0x64] ss:$8 sps:$4 sm:$0xff]   ;;  %472 = vmatprep.subr.bf16.mxu0 %v721_v15  ;;  %v729_v19 = vld [vmem:[%s793_s22 + $0x110] ss:$8 sps:$4 sm:$0xff]   ;;  %v699_v20 = vld [vmem:[%s793_s22 + $0x60] ss:$8 sps:$4 sm:$0xff]  }
  0x17   : > { %434 = vmatpush1.bf16.msra.mxu1 %v684_v6  ;;  %473 = vmatpush1.bf16.msra.mxu0 %v723_v16  ;;  %v700_v21 = vld [vmem:[%s793_s22 + $0x74] ss:$8 sps:$4 sm:$0xff]   ;;  %v702_v23 = vld [vmem:[%s793_s22 + $0x70] ss:$8 sps:$4 sm:$0xff]   ;;  %v703_v24 = vld [vmem:[%s793_s22 + $0x84] ss:$8 sps:$4 sm:$0xff]  }
  0x18   : > { %435 = vmatprep.subr.bf16.mxu1 %v685_v7  ;;  %474 = vmatprep.subr.bf16.mxu0 %v727_v18  ;;  %v705_v25 = vld [vmem:[%s793_s22 + $0x80] ss:$8 sps:$4 sm:$0xff]   ;;  %v706_v26 = vld [vmem:[%s793_s22 + $0x94] ss:$8 sps:$4 sm:$0xff]   ;;  %v708_v27 = vld [vmem:[%s793_s22 + $0x90] ss:$8 sps:$4 sm:$0xff]  }
  0x19   : > { %v709_v28 = vld [vmem:[%s793_s22 + $0xa4] ss:$8 sps:$4 sm:$0xff]   ;;  %v711_v29 = vld [vmem:[%s793_s22 + $0xa0] ss:$8 sps:$4 sm:$0xff]   ;;  %v712_v30 = vld [vmem:[%s793_s22 + $0xb4] ss:$8 sps:$4 sm:$0xff]  }
  0x1a   : > { %v714_v31 = vld [vmem:[%s793_s22 + $0xb0] ss:$8 sps:$4 sm:$0xff]   ;;  %v715_v32 = vld [vmem:[%s793_s22 + $0xc4] ss:$8 sps:$4 sm:$0xff]   ;;  %v717_v33 = vld [vmem:[%s793_s22 + $0xc0] ss:$8 sps:$4 sm:$0xff]  }
  0x1b   : > { %436 = vmatpush1.bf16.msra.mxu1 %v687_v8  ;;  %475 = vmatpush1.bf16.msra.mxu0 %v729_v19  ;;  %v718_v34 = vld [vmem:[%s793_s22 + $0xd4] ss:$8 sps:$4 sm:$0xff]   ;;  %v720_v35 = vld [vmem:[%s793_s22 + $0xd0] ss:$8 sps:$4 sm:$0xff]   ;;  %v724_v36 = vld [vmem:[%s793_s22 + $0xe4] ss:$8 sps:$4 sm:$0xff]  }
  0x1c   : > { %437 = vmatprep.subr.bf16.mxu1 %v688_v9  ;;  %v726_v37 = vld [vmem:[%s793_s22 + $0xe0] ss:$8 sps:$4 sm:$0xff]   ;;  %v730_v38 = vld [vmem:[%s793_s22 + $0xf4] ss:$8 sps:$4 sm:$0xff]   ;;  %v732_v39 = vld [vmem:[%s793_s22 + $0xf0] ss:$8 sps:$4 sm:$0xff]  }
  0x1e   : > { %659 = vmatmul.mubr.msk.bf16.vlgmr.msra.gmra.mrb[0].mxu0 %vm427_vm0, %v733_v22 }
  0x1f   : > { %438 = vmatpush1.bf16.msra.mxu1 %v690_v10 }
  0x20   : > { %439 = vmatprep.subr.bf16.mxu1 %v691_v11 }
  0x23   : > { %440 = vmatpush1.bf16.msra.mxu1 %v693_v12 }
  0x24   : > { %441 = vmatprep.subr.bf16.mxu1 %v694_v13 }
  0x27   : > { %442 = vmatpush1.bf16.msra.mxu1 %v696_v14 }
  0x28   : > { %443 = vmatprep.subr.bf16.mxu1 %v697_v17 }
  0x2b   : > { %444 = vmatpush1.bf16.msra.mxu1 %v699_v20 }
  0x2c   : > { %445 = vmatprep.subr.bf16.mxu1 %v700_v21 }
  0x2f   : > { %446 = vmatpush1.bf16.msra.mxu1 %v702_v23 }
  0x30   : > { %447 = vmatprep.subr.bf16.mxu1 %v703_v24 }
  0x33   : > { %448 = vmatpush1.bf16.msra.mxu1 %v705_v25 }
  0x34   : > { %449 = vmatprep.subr.bf16.mxu1 %v706_v26 }
  0x37   : > { %450 = vmatpush1.bf16.msra.mxu1 %v708_v27 }
  0x38   : > { %451 = vmatprep.subr.bf16.mxu1 %v709_v28 }
  0x3b   : > { %452 = vmatpush1.bf16.msra.mxu1 %v711_v29 }
  0x3c   : > { %453 = vmatprep.subr.bf16.mxu1 %v712_v30 }
  0x3f   : > { %454 = vmatpush1.bf16.msra.mxu1 %v714_v31 }
  0x40   : > { %455 = vmatprep.subr.bf16.mxu1 %v715_v32 }
  0x43   : > { %456 = vmatpush1.bf16.msra.mxu1 %v717_v33 }
  0x44   : > { %457 = vmatprep.subr.bf16.mxu1 %v718_v34 }
  0x47   : > { %458 = vmatpush1.bf16.msra.mxu1 %v720_v35 }
  0x48   : > { %459 = vmatprep.subr.bf16.mxu1 %v724_v36 }
  0x4b   : > { %460 = vmatpush1.bf16.msra.mxu1 %v726_v37 }
  0x4c   : > { %461 = vmatprep.subr.bf16.mxu1 %v730_v38 }
  0x4f   : > { %462 = vmatpush1.bf16.msra.mxu1 %v732_v39 }
  0x52   : > { %464 = vmatmul.mubr.bf16.vlgmr.msra.gmra.mrb[0].mxu1 %v620_v40 }
  0x86   : > { %v534_v0 = vpop.permute.xlu1 %533 }
  0x8a   : > { %v542_v6 = vpop.permute.xlu1 %541 }
  0xf1   : > { %v506_v41 = vpop.f32.mrb[0].mxu0 }
  0xf2   : > { %v508_v42 = vpop.f32.mrb[1].mxu0 }
  0xf3   : > { %v510_v43 = vpop.f32.mrb[2].mxu0 }
  0xf4   : > { %v511_v44 = vpop.f32.mrb[3].mxu0 }
 0x125   : > { %v465_v45 = vpop.f32.mrb[0].mxu1 }
 0x126   : > { %v507_v46 = vadd.f32 %v506_v41, %v465_v45  ;;  %v467_v47 = vpop.f32.mrb[1].mxu1 }
 0x127   : > { %v509_v48 = vadd.f32 %v508_v42, %v467_v47  ;;  %v469_v49 = vpop.f32.mrb[2].mxu1 }
 0x128   : > { %v470_v50 = vpop.f32.mrb[3].mxu1 }
 0x129   : > { %v513_v51 = vadd.f32 %v509_v48, %v507_v46 }
 0x12b   : > { %514 = vadd.xlane.f32.xlu0 %v513_v51 }
 0x1b8   : > { %v515_v54 = vpop.xlane.xlu0 %514 }
 0x1b9   : > { %v517_v55 = vmul.f32 0.00390625, %v515_v54 }
 0x1bb   : > { %v518_v56 = vsub.f32 %v507_v46, %v517_v55  ;;  %v519_v57 = vsub.f32 %v509_v48, %v517_v55 }
 0x1bd   : > { %v520_v58 = vmul.f32 %v518_v56, %v518_v56  ;;  %v521_v59 = vmul.f32 %v519_v57, %v519_v57 }
 0x1bf   : > { %v522_v60 = vadd.f32 %v521_v59, %v520_v58 }
 0x1c1   : > { %523 = vadd.xlane.f32.xlu0 %v522_v60 }
 0x24e   : > { %v524_v61 = vpop.xlane.xlu0 %523 }
 0x24f   : > { %v525_v62 = vmul.f32 0.00390625, %v524_v61 }
 0x251   : > { %v526_v63 = vadd.f32 1e-05, %v525_v62 }
 0x253   : > { %736 = vrsqrt.f32 %v526_v63 }
 0x25d   : > { %v737_v1 = vpop.eup %736 }
 0x25e   : > { %v528_v2 = vmul.f32 %v737_v1, %v518_v56  ;;  %v529_v3 = vmul.f32 %v737_v1, %v519_v57 }
 0x260   : > { %v536_v4 = vmul.f32 %v534_v0, %v528_v2  ;;  %v537_v5 = vmul.f32 %v534_v0, %v529_v3 }
 0x262   : > { %v544_v7 = vadd.f32 %v542_v6, %v536_v4  ;;  %v545_v8 = vadd.f32 %v542_v6, %v537_v5 }
 0x264   : > { %v546_v9 = vmax.f32 %v544_v7, 0.0  ;;  %v547_v10 = vmax.f32 %v545_v8, 0.0 }
 0x266   : > { %v664_v11 = vpack.c.bf16 %v547_v10, %v546_v9 }
 0x268   : > { %556 = vst [vmem:[%s197_s6] sm:$0xff] %v664_v11 }
 0x269 PF: > { %s14_s15 = sadd.s32 1, %s744_s15  }
 0x26a   : > { %p11_p4 = scmp.ge.s32.totalorder %s14_s15, 4  }
 0x26c   :  { %13 = sbr.rel (!%p11_p4) target bundleno = 1 (0x1), region = 66 }

// kernel: minimonet_forward.33
= control target key start
LH: loop header
LB: loop body
LE: loop exit
PB: predicated region body
PF: predicated region fallthrough
CT: control target
= control target key end

     0   :  { %s1664_s29 = smov 0   ;;  %s1965_s0 = inlined_call_operand.vmem [shape: bf16[2,144,1024], index: 0, kind: input, shape index: {}]   ;;  %s1966_s1 = inlined_call_operand.vmem [shape: bf16[4,144], index: 1, kind: input, shape index: {}]   ;;  %s1967_s2 = inlined_call_operand.vmem [shape: f32[4,1], index: 2, kind: input, shape index: {}]   ;;  %s1968_s3 = inlined_call_operand.vmem [shape: f32[4,1], index: 3, kind: input, shape index: {}]   ;;  %s1969_s4 = inlined_call_operand.vmem [shape: f32[4,1], index: 4, kind: input, shape index: {}]   ;;  %s1970_s5 = inlined_call_operand.<no memory space> [shape: f32[1,1], index: 5, kind: input, shape index: {}]   ;;  %s1971_s6 = inlined_call_operand.vmem [shape: f32[2,1,1024], index: 6, kind: input, shape index: {}]   ;;  %s1972_s7 = inlined_call_operand.vmem [shape: f32[2,1,1024], index: 7, kind: output, shape index: {0}]   ;;  %s1973_s8 = inlined_call_operand.vmem [shape: f32[2,1,1024], index: 8, kind: output, shape index: {1}]  }
   0x1   :  { %v14_v0 = vstv %s1970_s5 }
   0x2   :  { %15 = vst [vmem:[#allocation2] sm:$0x1] %v14_v0 }
   0x3 LB: > { %s1471_s30 = sadd.s32 4294967295, %s1612_s29   ;;  %p1475_p0 = scmp.ge.s32.totalorder %s1612_s29, 1  ;;  %s1612_s29 = sphi %s1664_s29, %s21_s29  }
   0x4   : > { %p276_p1 = scmp.lt.s32.totalorder %s1612_s29, 3 }
   0x6   : > { %p277_p2 = pnand %p1475_p0, %p276_p1 }
   0x7   : > { %p317_p3 = scmp.lt.s32.totalorder (!%p277_p2), %s1471_s30, 1  ;;  %v1675_v1 = vld.sshfl [vmem:[%s1966_s1] sm:$0x33 pattern:$0x76325410] (!%p277_p2)  ;;  %vm778_vm0 = vcmask (!%p277_p2), 130048  }
   0x8   : > { %280 = sbr.rel (%p277_p2) target bundleno = 719 (0x2cf), region = 48  ;;  %v1679_v2 = vcombine.high (!%p277_p2), %v1675_v1, %v1675_v1  ;;  %vm946_vm1 = vcmask (!%p277_p2), 1043456  }
   0xa   : > { %1553 = vmatprep.mubr.msk.bf16.mxu0 (!%p277_p2), %vm778_vm0, %v1679_v2  ;;  %1554 = vmatprep.mubr.msk.bf16.mxu1 (!%p277_p2), %vm778_vm0, %v1679_v2 }
   0xf   : > { %s1985_s30 = smov (!%p317_p3, %s1471_s30), 1 }
  0x10   : > { %s1559_s5 = smul.u32 576, %s1985_s30  ;;  %s1477_s20 = sshll.u32 %s1985_s30, 3 }
  0x11   : > { %s325_s23 = scalar_lea.vmem %s1971_s6, %s1477_s20  ;;  %s333_s26 = scalar_lea.vmem %s1973_s8, %s1477_s20 }
  0x12   : > { %s1691_s13 = scalar_lea.vmem %s1965_s0, %s1559_s5  ;;  %s329_s30 = scalar_lea.vmem %s1972_s7, %s1477_s20 }
  0x13   : > { %v336_v3 = vld [vmem:[%s1691_s13] sm:$0xff]  ;;  %v337_v5 = vld [vmem:[%s1691_s13 + $0x8] sm:$0xff] }
  0x14   : > { %v340_v4 = vld [vmem:[%s1691_s13 + $0x20] sm:$0xff]  ;;  %v341_v8 = vld [vmem:[%s1691_s13 + $0x28] sm:$0xff] }
  0x15   : > { %v1482_v6 = vcombine.high %v336_v3, %v340_v4  ;;  %v1481_v7 = vcombine.low %v336_v3, %v340_v4  ;;  %v344_v9 = vld [vmem:[%s1691_s13 + $0x40] sm:$0xff]  ;;  %v1484_v11 = vcombine.high %v337_v5, %v341_v8  ;;  %v1483_v12 = vcombine.low %v337_v5, %v341_v8  ;;  %v345_v14 = vld [vmem:[%s1691_s13 + $0x48] sm:$0xff] }
  0x16   : > { %v348_v10 = vld [vmem:[%s1691_s13 + $0x60] sm:$0xff]  ;;  %v349_v15 = vld [vmem:[%s1691_s13 + $0x68] sm:$0xff] }
  0x17   : > { %v1490_v13 = vcombine.high %v344_v9, %v348_v10  ;;  %v352_v16 = vld [vmem:[%s1691_s13 + $0x80] sm:$0xff]  ;;  %782 = vmatprep.subr.bf16.mxu0 %v1482_v6  ;;  %v1492_v17 = vcombine.high %v345_v14, %v349_v15  ;;  %v353_v19 = vld [vmem:[%s1691_s13 + $0x88] sm:$0xff]  ;;  %823 = vmatprep.subr.bf16.mxu1 %v1484_v11  ;;  %v1489_v21 = vcombine.low %v344_v9, %v348_v10  ;;  %v338_v11 = vld [vmem:[%s1691_s13 + $0x10] sm:$0xff] }
  0x18   : > { %v356_v18 = vld [vmem:[%s1691_s13 + $0xa0] sm:$0xff]  ;;  %v357_v20 = vld [vmem:[%s1691_s13 + $0xa8] sm:$0xff]  ;;  %783 = vmatpush1.bf16.msra.mxu0 %v1481_v7  ;;  %824 = vmatpush1.bf16.msra.mxu1 %v1483_v12  ;;  %v1491_v22 = vcombine.low %v345_v14, %v349_v15  ;;  %v342_v12 = vld [vmem:[%s1691_s13 + $0x30] sm:$0xff] }
  0x19   : > { %784 = vmatprep.subr.bf16.mxu0 %v1490_v13  ;;  %v1498_v23 = vcombine.high %v352_v16, %v356_v18  ;;  %825 = vmatprep.subr.bf16.mxu1 %v1492_v17  ;;  %v1500_v24 = vcombine.high %v353_v19, %v357_v20  ;;  %v360_v25 = vld [vmem:[%s1691_s13 + $0xc0] sm:$0xff]  ;;  %v361_v27 = vld [vmem:[%s1691_s13 + $0xc8] sm:$0xff]  ;;  %v1497_v29 = vcombine.low %v352_v16, %v356_v18  ;;  %v339_v13 = vld [vmem:[%s1691_s13 + $0x18] sm:$0xff] }
  0x1a   : > { %v364_v26 = vld [vmem:[%s1691_s13 + $0xe0] sm:$0xff]  ;;  %v365_v28 = vld [vmem:[%s1691_s13 + $0xe8] sm:$0xff]  ;;  %v1499_v30 = vcombine.low %v353_v19, %v357_v20  ;;  %v343_v14 = vld [vmem:[%s1691_s13 + $0x38] sm:$0xff]  ;;  %v1486_v17 = vcombine.high %v338_v11, %v342_v12 }
  0x1b   : > { %v1506_v31 = vcombine.high %v360_v25, %v364_v26  ;;  %v1508_v32 = vcombine.high %v361_v27, %v365_v28  ;;  %v368_v33 = vld [vmem:[%s1691_s13 + $0x100] sm:$0xff]  ;;  %v369_v35 = vld [vmem:[%s1691_s13 + $0x108] sm:$0xff]  ;;  %v1505_v37 = vcombine.low %v360_v25, %v364_v26  ;;  %v1507_v38 = vcombine.low %v361_v27, %v365_v28  ;;  %v346_v19 = vld [vmem:[%s1691_s13 + $0x50] sm:$0xff] }
  0x1c   : > { %785 = vmatpush1.bf16.msra.mxu0 %v1489_v21  ;;  %826 = vmatpush1.bf16.msra.mxu1 %v1491_v22  ;;  %v372_v34 = vld [vmem:[%s1691_s13 + $0x120] sm:$0xff]  ;;  %v373_v36 = vld [vmem:[%s1691_s13 + $0x128] sm:$0xff]  ;;  %v1488_v18 = vcombine.high %v339_v13, %v343_v14  ;;  %v350_v20 = vld [vmem:[%s1691_s13 + $0x70] sm:$0xff] }
  0x1d   : > { %786 = vmatprep.subr.bf16.mxu0 %v1498_v23  ;;  %827 = vmatprep.subr.bf16.mxu1 %v1500_v24  ;;  %v1514_v39 = vcombine.high %v368_v33, %v372_v34  ;;  %v1516_v40 = vcombine.high %v369_v35, %v373_v36  ;;  %v376_v41 = vld [vmem:[%s1691_s13 + $0x140] sm:$0xff]  ;;  %v377_v43 = vld [vmem:[%s1691_s13 + $0x148] sm:$0xff]  ;;  %v1513_v45 = vcombine.low %v368_v33, %v372_v34  ;;  %v347_v21 = vld [vmem:[%s1691_s13 + $0x58] sm:$0xff] }
  0x1e   : > { %v380_v42 = vld [vmem:[%s1691_s13 + $0x160] sm:$0xff]  ;;  %v381_v44 = vld [vmem:[%s1691_s13 + $0x168] sm:$0xff]  ;;  %v1515_v46 = vcombine.low %v369_v35, %v373_v36  ;;  %v351_v22 = vld [vmem:[%s1691_s13 + $0x78] sm:$0xff]  ;;  %v1485_v23 = vcombine.low %v338_v11, %v342_v12  ;;  %v1487_v24 = vcombine.low %v339_v13, %v343_v14  ;;  %v1494_v25 = vcombine.high %v346_v19, %v350_v20 }
  0x1f   : > { %v1522_v47 = vcombine.high %v376_v41, %v380_v42  ;;  %v1524_v48 = vcombine.high %v377_v43, %v381_v44  ;;  %v384_v49 = vld [vmem:[%s1691_s13 + $0x180] sm:$0xff]  ;;  %v385_v51 = vld [vmem:[%s1691_s13 + $0x188] sm:$0xff]  ;;  %v1521_v53 = vcombine.low %v376_v41, %v380_v42  ;;  %v1523_v54 = vcombine.low %v377_v43, %v381_v44  ;;  %v354_v27 = vld [vmem:[%s1691_s13 + $0x90] sm:$0xff] }
  0x20   : > { %787 = vmatpush1.bf16.msra.mxu0 %v1497_v29  ;;  %828 = vmatpush1.bf16.msra.mxu1 %v1499_v30  ;;  %v388_v50 = vld [vmem:[%s1691_s13 + $0x1a0] sm:$0xff]  ;;  %v389_v52 = vld [vmem:[%s1691_s13 + $0x1a8] sm:$0xff]  ;;  %v1496_v26 = vcombine.high %v347_v21, %v351_v22  ;;  %v358_v28 = vld [vmem:[%s1691_s13 + $0xb0] sm:$0xff] }
  0x21   : > { %788 = vmatprep.subr.bf16.mxu0 %v1506_v31  ;;  %829 = vmatprep.subr.bf16.mxu1 %v1508_v32  ;;  %v1530_v55 = vcombine.high %v384_v49, %v388_v50  ;;  %v1532_v56 = vcombine.high %v385_v51, %v389_v52  ;;  %v392_v57 = vld [vmem:[%s1691_s13 + $0x1c0] sm:$0xff]  ;;  %v393_v59 = vld [vmem:[%s1691_s13 + $0x1c8] sm:$0xff]  ;;  %v1529_v61 = vcombine.low %v384_v49, %v388_v50  ;;  %v355_v29 = vld [vmem:[%s1691_s13 + $0x98] sm:$0xff] }
  0x22   : > { %v396_v58 = vld [vmem:[%s1691_s13 + $0x1e0] sm:$0xff]  ;;  %v397_v60 = vld [vmem:[%s1691_s13 + $0x1e8] sm:$0xff]  ;;  %v1531_v62 = vcombine.low %v385_v51, %v389_v52  ;;  %v359_v30 = vld [vmem:[%s1691_s13 + $0xb8] sm:$0xff]  ;;  %v1493_v31 = vcombine.low %v346_v19, %v350_v20  ;;  %v1495_v32 = vcombine.low %v347_v21, %v351_v22  ;;  %v1502_v33 = vcombine.high %v354_v27, %v358_v28 }
  0x23   : > { %v1538_v63 = vcombine.high %v392_v57, %v396_v58  ;;  %v1540_v0 = vcombine.high %v393_v59, %v397_v60  ;;  %v400_v3 = vld [vmem:[%s1691_s13 + $0x200] sm:$0xff]  ;;  %v401_v5 = vld [vmem:[%s1691_s13 + $0x208] sm:$0xff]  ;;  %v1537_v7 = vcombine.low %v392_v57, %v396_v58  ;;  %v1539_v8 = vcombine.low %v393_v59, %v397_v60  ;;  %v362_v35 = vld [vmem:[%s1691_s13 + $0xd0] sm:$0xff] }
  0x24   : > { %789 = vmatpush1.bf16.msra.mxu0 %v1505_v37  ;;  %830 = vmatpush1.bf16.msra.mxu1 %v1507_v38  ;;  %v404_v4 = vld [vmem:[%s1691_s13 + $0x220] sm:$0xff]  ;;  %v405_v6 = vld [vmem:[%s1691_s13 + $0x228] sm:$0xff]  ;;  %v1504_v34 = vcombine.high %v355_v29, %v359_v30  ;;  %v366_v36 = vld [vmem:[%s1691_s13 + $0xf0] sm:$0xff] }
  0x25   : > { %790 = vmatprep.subr.bf16.mxu0 %v1514_v39  ;;  %831 = vmatprep.subr.bf16.mxu1 %v1516_v40  ;;  %v1546_v9 = vcombine.high %v400_v3, %v404_v4  ;;  %v1548_v10 = vcombine.high %v401_v5, %v405_v6  ;;  %v1545_v15 = vcombine.low %v400_v3, %v404_v4  ;;  %v363_v37 = vld [vmem:[%s1691_s13 + $0xd8] sm:$0xff]  ;;  %v370_v43 = vld [vmem:[%s1691_s13 + $0x110] sm:$0xff] }
  0x26   : > { %v1547_v16 = vcombine.low %v401_v5, %v405_v6  ;;  %v367_v38 = vld [vmem:[%s1691_s13 + $0xf8] sm:$0xff]  ;;  %v1501_v39 = vcombine.low %v354_v27, %v358_v28  ;;  %v1503_v40 = vcombine.low %v355_v29, %v359_v30  ;;  %v1510_v41 = vcombine.high %v362_v35, %v366_v36  ;;  %v374_v44 = vld [vmem:[%s1691_s13 + $0x130] sm:$0xff] }
  0x27   : > { %v1512_v42 = vcombine.high %v363_v37, %v367_v38  ;;  %v378_v50 = vld [vmem:[%s1691_s13 + $0x150] sm:$0xff]  ;;  %v379_v52 = vld [vmem:[%s1691_s13 + $0x158] sm:$0xff] }
  0x28   : > { %791 = vmatpush1.bf16.msra.mxu0 %v1513_v45  ;;  %832 = vmatpush1.bf16.msra.mxu1 %v1515_v46  ;;  %v371_v45 = vld [vmem:[%s1691_s13 + $0x118] sm:$0xff]  ;;  %v382_v51 = vld [vmem:[%s1691_s13 + $0x170] sm:$0xff] }
  0x29   : > { %792 = vmatprep.subr.bf16.mxu0 %v1522_v47  ;;  %833 = vmatprep.subr.bf16.mxu1 %v1524_v48  ;;  %v375_v46 = vld [vmem:[%s1691_s13 + $0x138] sm:$0xff]  ;;  %v1509_v47 = vcombine.low %v362_v35, %v366_v36  ;;  %v1518_v48 = vcombine.high %v370_v43, %v374_v44  ;;  %v386_v58 = vld [vmem:[%s1691_s13 + $0x190] sm:$0xff] }
  0x2a   : > { %v1520_v49 = vcombine.high %v371_v45, %v375_v46  ;;  %v390_v59 = vld [vmem:[%s1691_s13 + $0x1b0] sm:$0xff]  ;;  %v387_v60 = vld [vmem:[%s1691_s13 + $0x198] sm:$0xff] }
  0x2b   : > { %v394_v4 = vld [vmem:[%s1691_s13 + $0x1d0] sm:$0xff]  ;;  %v395_v6 = vld [vmem:[%s1691_s13 + $0x1d8] sm:$0xff] }
  0x2c   : > { %793 = vmatpush1.bf16.msra.mxu0 %v1521_v53  ;;  %834 = vmatpush1.bf16.msra.mxu1 %v1523_v54  ;;  %v383_v53 = vld [vmem:[%s1691_s13 + $0x178] sm:$0xff]  ;;  %v1517_v54 = vcombine.low %v370_v43, %v374_v44  ;;  %v398_v5 = vld [vmem:[%s1691_s13 + $0x1f0] sm:$0xff] }
  0x2d   : > { %794 = vmatprep.subr.bf16.mxu0 %v1530_v55  ;;  %835 = vmatprep.subr.bf16.mxu1 %v1532_v56  ;;  %v1519_v55 = vcombine.low %v371_v45, %v375_v46  ;;  %v1526_v56 = vcombine.high %v378_v50, %v382_v51  ;;  %v1528_v57 = vcombine.high %v379_v52, %v383_v53  ;;  %v402_v12 = vld [vmem:[%s1691_s13 + $0x210] sm:$0xff]  ;;  %v403_v14 = vld [vmem:[%s1691_s13 + $0x218] sm:$0xff] }
  0x2e   : > { %v406_v13 = vld [vmem:[%s1691_s13 + $0x230] sm:$0xff] }
  0x2f   : > { %v1549_v20 = vcombine.low %v402_v12, %v406_v13 }
  0x30   : > { %795 = vmatpush1.bf16.msra.mxu0 %v1529_v61  ;;  %836 = vmatpush1.bf16.msra.mxu1 %v1531_v62  ;;  %v391_v61 = vld [vmem:[%s1691_s13 + $0x1b8] sm:$0xff]  ;;  %v1525_v62 = vcombine.low %v378_v50, %v382_v51  ;;  %v1010_v51 = vld [vmem:[%s1967_s2] sm:$0xf] }
  0x31   : > { %796 = vmatprep.subr.bf16.mxu0 %v1538_v63  ;;  %837 = vmatprep.subr.bf16.mxu1 %v1540_v0  ;;  %v1527_v63 = vcombine.low %v379_v52, %v383_v53  ;;  %v1534_v0 = vcombine.high %v386_v58, %v390_v59  ;;  %v1536_v3 = vcombine.high %v387_v60, %v391_v61  ;;  %v1614_v52 = vmov 0   ;;  %v1024_v53 = vld [vmem:[%s1968_s3] sm:$0xf] }
  0x32   : > { %1570 = vset.pattern.permute.xlu1 %v1614_v52  ;;  %1571 = vset.pattern.permute.xlu0 %v1614_v52 }
  0x33   : > { %1013 = vperm.xlu1 %1570, %v1010_v51  }
  0x34   : > { %797 = vmatpush1.bf16.msra.mxu0 %v1537_v7  ;;  %838 = vmatpush1.bf16.msra.mxu1 %v1539_v8  ;;  %v399_v7 = vld [vmem:[%s1691_s13 + $0x1f8] sm:$0xff]  ;;  %v1533_v8 = vcombine.low %v386_v58, %v390_v59 }
  0x35   : > { %798 = vmatprep.subr.bf16.mxu0 %v1546_v9  ;;  %839 = vmatprep.subr.bf16.mxu1 %v1548_v10  ;;  %v1535_v9 = vcombine.low %v387_v60, %v391_v61  ;;  %v1542_v10 = vcombine.high %v394_v4, %v398_v5  ;;  %v1544_v11 = vcombine.high %v395_v6, %v399_v7 }
  0x37   : > { %1027 = vperm.xlu1 %1570, %v1024_v53  }
  0x38   : > { %799 = vmatpush1.bf16.msra.mxu0 %v1545_v15  ;;  %840 = vmatpush1.bf16.msra.mxu1 %v1547_v16  ;;  %v407_v15 = vld [vmem:[%s1691_s13 + $0x238] sm:$0xff]  ;;  %v1541_v16 = vcombine.low %v394_v4, %v398_v5 }
  0x39   : > { %864 = vmatprep.subr.bf16.mxu0 %v1486_v17  ;;  %905 = vmatprep.subr.bf16.mxu1 %v1488_v18  ;;  %v1543_v17 = vcombine.low %v395_v6, %v399_v7  ;;  %v1550_v18 = vcombine.high %v402_v12, %v406_v13  ;;  %v1552_v19 = vcombine.high %v403_v14, %v407_v15 }
  0x3a   : > { %v1551_v21 = vcombine.low %v403_v14, %v407_v15 }
  0x3b   : > { %815 = vmatmul.mubr.bf16.vlgmr.msra.gmra.mrb[0].mxu0 %v1675_v1  ;;  %856 = vmatmul.mubr.bf16.vlgmr.msra.gmra.mrb[0].mxu1 %v1675_v1 }
  0x3c   : > { %865 = vmatpush1.bf16.msra.mxu0 %v1485_v23  ;;  %906 = vmatpush1.bf16.msra.mxu1 %v1487_v24 }
  0x3d   : > { %866 = vmatprep.subr.bf16.mxu0 %v1494_v25  ;;  %907 = vmatprep.subr.bf16.mxu1 %v1496_v26 }
  0x3e   : > { %1555 = vmatprep.mubr.msk.bf16.mxu0 %vm778_vm0, %v1679_v2  ;;  %1556 = vmatprep.mubr.msk.bf16.mxu1 %vm778_vm0, %v1679_v2  ;;  %v1511_v2 = vcombine.low %v363_v37, %v367_v38 }
  0x40   : > { %867 = vmatpush1.bf16.msra.mxu0 %v1493_v31  ;;  %908 = vmatpush1.bf16.msra.mxu1 %v1495_v32 }
  0x41   : > { %868 = vmatprep.subr.bf16.mxu0 %v1502_v33  ;;  %909 = vmatprep.subr.bf16.mxu1 %v1504_v34 }
  0x44   : > { %869 = vmatpush1.bf16.msra.mxu0 %v1501_v39  ;;  %910 = vmatpush1.bf16.msra.mxu1 %v1503_v40 }
  0x45   : > { %870 = vmatprep.subr.bf16.mxu0 %v1510_v41  ;;  %911 = vmatprep.subr.bf16.mxu1 %v1512_v42 }
  0x48   : > { %871 = vmatpush1.bf16.msra.mxu0 %v1509_v47  ;;  %912 = vmatpush1.bf16.msra.mxu1 %v1511_v2 }
  0x49   : > { %872 = vmatprep.subr.bf16.mxu0 %v1518_v48  ;;  %913 = vmatprep.subr.bf16.mxu1 %v1520_v49 }
  0x4c   : > { %873 = vmatpush1.bf16.msra.mxu0 %v1517_v54  ;;  %914 = vmatpush1.bf16.msra.mxu1 %v1519_v55  ;;  %v1116_v54 = vld [vmem:[#allocation2] sm:$0x1] }
  0x4d   : > { %874 = vmatprep.subr.bf16.mxu0 %v1526_v56  ;;  %915 = vmatprep.subr.bf16.mxu1 %v1528_v57 }
  0x4e   : > { %1119 = vperm.xlu1 %1570, %v1116_v54  }
  0x50   : > { %875 = vmatpush1.bf16.msra.mxu0 %v1525_v62  ;;  %916 = vmatpush1.bf16.msra.mxu1 %v1527_v63 }
  0x51   : > { %876 = vmatprep.subr.bf16.mxu0 %v1534_v0  ;;  %917 = vmatprep.subr.bf16.mxu1 %v1536_v3 }
  0x54   : > { %877 = vmatpush1.bf16.msra.mxu0 %v1533_v8  ;;  %918 = vmatpush1.bf16.msra.mxu1 %v1535_v9 }
  0x55   : > { %878 = vmatprep.subr.bf16.mxu0 %v1542_v10  ;;  %919 = vmatprep.subr.bf16.mxu1 %v1544_v11 }
  0x58   : > { %879 = vmatpush1.bf16.msra.mxu0 %v1541_v16  ;;  %920 = vmatpush1.bf16.msra.mxu1 %v1543_v17 }
  0x59   : > { %880 = vmatprep.subr.bf16.mxu0 %v1550_v18  ;;  %921 = vmatprep.subr.bf16.mxu1 %v1552_v19 }
  0x5c   : > { %881 = vmatpush1.bf16.msra.mxu0 %v1549_v20  ;;  %922 = vmatpush1.bf16.msra.mxu1 %v1551_v21 }
  0x5f   : > { %897 = vmatmul.mubr.bf16.vlgmr.msra.gmra.mrb[4].mxu0 %v1675_v1  ;;  %938 = vmatmul.mubr.bf16.vlgmr.msra.gmra.mrb[4].mxu1 %v1675_v1 }
 0x10e   : > { %v816_v22 = vpop.f32.mrb[0].mxu0  ;;  %v857_v25 = vpop.f32.mrb[0].mxu1 }
 0x10f   : > { %v947_v23 = vsel %vm946_vm1, %v816_v22, 0.0  ;;  %v818_v24 = vpop.f32.mrb[1].mxu0  ;;  %v950_v28 = vsel %vm946_vm1, %v857_v25, 0.0  ;;  %v859_v29 = vpop.f32.mrb[1].mxu1 }
 0x110   : > { %v948_v26 = vsel %vm946_vm1, %v818_v24, 0.0  ;;  %v820_v27 = vpop.f32.mrb[2].mxu0  ;;  %v861_v32 = vpop.f32.mrb[2].mxu1  ;;  %v952_v33 = vsel %vm946_vm1, %v859_v29, 0.0 }
 0x111   : > { %v949_v30 = vadd.f32 %v948_v26, %v947_v23  ;;  %v821_v31 = vpop.f32.mrb[3].mxu0  ;;  %v862_v34 = vpop.f32.mrb[3].mxu1  ;;  %v1046_v26 = vld [vmem:[%s1969_s4] sm:$0xf] }
 0x112   : > { %v1122_v31 = vlaneseq }
 0x113   : > { %v951_v35 = vadd.f32 %v950_v28, %v949_v30  ;;  %v1014_v28 = vpop.permute.xlu1 %1013 }
 0x115   : > { %v953_v1 = vadd.f32 %v952_v33, %v951_v35  ;;  %v1798_v33 = vshrl.u32 %v1122_v31, 7 }
 0x117   : > { %v1028_v32 = vpop.permute.xlu1 %1027  ;;  %v1124_v34 = vsub.s32 0, %v1798_v33 }
 0x11b   : > { %v1120_v35 = vpop.permute.xlu1 %1119 }
 0x132   : > { %v898_v36 = vpop.f32.mrb[4].mxu0  ;;  %v939_v39 = vpop.f32.mrb[4].mxu1 }
 0x133   : > { %v954_v37 = vsel %vm946_vm1, %v898_v36, 0.0  ;;  %v900_v38 = vpop.f32.mrb[5].mxu0  ;;  %v941_v43 = vpop.f32.mrb[5].mxu1  ;;  %v958_v44 = vsel %vm946_vm1, %v939_v39, 0.0 }
 0x134   : > { %v955_v40 = vadd.f32 %v954_v37, %v953_v1  ;;  %v956_v41 = vsel %vm946_vm1, %v900_v38, 0.0  ;;  %v902_v42 = vpop.f32.mrb[6].mxu0  ;;  %v943_v46 = vpop.f32.mrb[6].mxu1  ;;  %v960_v49 = vsel %vm946_vm1, %v941_v43, 0.0 }
 0x135   : > { %v903_v45 = vpop.f32.mrb[7].mxu0  ;;  %v944_v2 = vpop.f32.mrb[7].mxu1 }
 0x136   : > { %v957_v47 = vadd.f32 %v956_v41, %v955_v40 }
 0x138   : > { %v959_v48 = vadd.f32 %v958_v44, %v957_v47 }
 0x13a   : > { %v961_v50 = vadd.f32 %v960_v49, %v959_v48 }
 0x13c   : > { %962 = vadd.xlane.f32.xlu0 %v961_v50 }
 0x1c9   : > { %v963_v55 = vpop.xlane.xlu0 %962 }
 0x1ca   : > { %v965_v56 = vmul.f32 0.0009765625, %v963_v55 }
 0x1cc   : > { %v966_v57 = vsub.f32 %v816_v22, %v965_v56  ;;  %v967_v58 = vsub.f32 %v818_v24, %v965_v56  ;;  %v968_v59 = vsub.f32 %v857_v25, %v965_v56  ;;  %v969_v60 = vsub.f32 %v859_v29, %v965_v56 }
 0x1cd   : > { %v970_v61 = vsub.f32 %v898_v36, %v965_v56  ;;  %v971_v3 = vsub.f32 %v900_v38, %v965_v56  ;;  %v972_v8 = vsub.f32 %v939_v39, %v965_v56  ;;  %v973_v12 = vsub.f32 %v941_v43, %v965_v56 }
 0x1ce   : > { %v974_v62 = vmul.f32 %v966_v57, %v966_v57  ;;  %v975_v63 = vmul.f32 %v967_v58, %v967_v58  ;;  %v976_v0 = vmul.f32 %v968_v59, %v968_v59  ;;  %v977_v4 = vmul.f32 %v969_v60, %v969_v60 }
 0x1cf   : > { %v978_v9 = vmul.f32 %v970_v61, %v970_v61  ;;  %v979_v13 = vmul.f32 %v971_v3, %v971_v3  ;;  %v980_v16 = vmul.f32 %v972_v8, %v972_v8  ;;  %v981_v19 = vmul.f32 %v973_v12, %v973_v12 }
 0x1d0   : > { %v982_v5 = vsel %vm946_vm1, %v974_v62, 0.0  ;;  %v983_v6 = vsel %vm946_vm1, %v975_v63, 0.0  ;;  %v985_v10 = vsel %vm946_vm1, %v976_v0, 0.0  ;;  %v987_v14 = vsel %vm946_vm1, %v977_v4, 0.0 }
 0x1d1   : > { %v984_v7 = vadd.f32 %v983_v6, %v982_v5  ;;  %v989_v17 = vsel %vm946_vm1, %v978_v9, 0.0  ;;  %v991_v20 = vsel %vm946_vm1, %v979_v13, 0.0  ;;  %v993_v22 = vsel %vm946_vm1, %v980_v16, 0.0 }
 0x1d2   : > { %v995_v24 = vsel %vm946_vm1, %v981_v19, 0.0  ;;  %v1801_v36 = vrot.slane %v1120_v35, %v1124_v34 }
 0x1d3   : > { %v986_v11 = vadd.f32 %v985_v10, %v984_v7 }
 0x1d5   : > { %v988_v15 = vadd.f32 %v987_v14, %v986_v11 }
 0x1d7   : > { %v990_v18 = vadd.f32 %v989_v17, %v988_v15 }
 0x1d9   : > { %v992_v21 = vadd.f32 %v991_v20, %v990_v18 }
 0x1db   : > { %v994_v23 = vadd.f32 %v993_v22, %v992_v21 }
 0x1dd   : > { %v996_v25 = vadd.f32 %v995_v24, %v994_v23 }
 0x1df   : > { %997 = vadd.xlane.f32.xlu0 %v996_v25 }
 0x1f5   : > { %1049 = vperm.xlu0 %1571, %v1046_v26  }
 0x26c   : > { %v998_v27 = vpop.xlane.xlu0 %997 }
 0x26d   : > { %v999_v29 = vmul.f32 0.0009765625, %v998_v27 }
 0x26f   : > { %v1000_v30 = vadd.f32 1e-05, %v999_v29 }
 0x271   : > { %1572 = vrsqrt.f32 %v1000_v30 }
 0x27b   : > { %v1573_v1 = vpop.eup %1572 }
 0x27c   : > { %v1002_v37 = vmul.f32 %v1573_v1, %v966_v57  ;;  %v1003_v38 = vmul.f32 %v1573_v1, %v967_v58  ;;  %v1004_v39 = vmul.f32 %v1573_v1, %v968_v59  ;;  %v1005_v40 = vmul.f32 %v1573_v1, %v969_v60  ;;  %v1050_v60 = vpop.permute.xlu0 %1049 }
 0x27d   : > { %v1006_v41 = vmul.f32 %v1573_v1, %v970_v61  ;;  %v1007_v42 = vmul.f32 %v1573_v1, %v971_v3  ;;  %v1008_v43 = vmul.f32 %v1573_v1, %v972_v8  ;;  %v1009_v44 = vmul.f32 %v1573_v1, %v973_v12 }
 0x27e   : > { %v1016_v45 = vmul.f32 %v1014_v28, %v1002_v37  ;;  %v1017_v46 = vmul.f32 %v1014_v28, %v1003_v38  ;;  %v1018_v47 = vmul.f32 %v1014_v28, %v1004_v39  ;;  %v1019_v2 = vmul.f32 %v1014_v28, %v1005_v40 }
 0x27f   : > { %v1020_v48 = vmul.f32 %v1014_v28, %v1006_v41  ;;  %v1021_v49 = vmul.f32 %v1014_v28, %v1007_v42  ;;  %v1022_v50 = vmul.f32 %v1014_v28, %v1008_v43  ;;  %v1023_v51 = vmul.f32 %v1014_v28, %v1009_v44 }
 0x280   : > { %v1030_v52 = vadd.f32 %v1028_v32, %v1016_v45  ;;  %v1031_v53 = vadd.f32 %v1028_v32, %v1017_v46  ;;  %v1032_v54 = vadd.f32 %v1028_v32, %v1018_v47  ;;  %v1033_v55 = vadd.f32 %v1028_v32, %v1019_v2 }
 0x281   : > { %v1034_v56 = vadd.f32 %v1028_v32, %v1020_v48  ;;  %v1035_v57 = vadd.f32 %v1028_v32, %v1021_v49  ;;  %v1036_v58 = vadd.f32 %v1028_v32, %v1022_v50  ;;  %v1037_v59 = vadd.f32 %v1028_v32, %v1023_v51 }
 0x282   : > { %v1038_v61 = vmax.f32 %v1030_v52, 0.0  ;;  %v1039_v62 = vmax.f32 %v1031_v53, 0.0  ;;  %v1040_v63 = vmax.f32 %v1032_v54, 0.0  ;;  %v1041_v0 = vmax.f32 %v1033_v55, 0.0 }
 0x283   : > { %v1042_v3 = vmax.f32 %v1034_v56, 0.0  ;;  %v1043_v4 = vmax.f32 %v1035_v57, 0.0  ;;  %v1044_v5 = vmax.f32 %v1036_v58, 0.0  ;;  %v1045_v6 = vmax.f32 %v1037_v59, 0.0 }
 0x284   : > { %v1052_v7 = vmul.f32 %v1050_v60, %v1038_v61  ;;  %v1053_v8 = vmul.f32 %v1050_v60, %v1039_v62  ;;  %v1054_v9 = vmul.f32 %v1050_v60, %v1040_v63  ;;  %v1055_v10 = vmul.f32 %v1050_v60, %v1041_v0 }
 0x285   : > { %v1056_v11 = vmul.f32 %v1050_v60, %v1042_v3  ;;  %v1057_v12 = vmul.f32 %v1050_v60, %v1043_v4  ;;  %v1058_v13 = vmul.f32 %v1050_v60, %v1044_v5  ;;  %v1059_v14 = vmul.f32 %v1050_v60, %v1045_v6 }
 0x286   : > { %v1060_v15 = vsel %vm946_vm1, %v1052_v7, 0.0  ;;  %v1067_v16 = vsel %vm946_vm1, %v1053_v8, 0.0  ;;  %v1074_v17 = vsel %vm946_vm1, %v1054_v9, 0.0  ;;  %v1081_v18 = vsel %vm946_vm1, %v1055_v10, 0.0 }
 0x287   : > { %v1061_v19 = vrot.slane %v1060_v15, 4  ;;  %v1068_v20 = vrot.slane %v1067_v16, 4  ;;  %v1075_v21 = vrot.slane %v1074_v17, 4  ;;  %v1082_v22 = vrot.slane %v1081_v18, 4 }
 0x288   : > { %v1088_v23 = vsel %vm946_vm1, %v1056_v11, 0.0  ;;  %v1095_v24 = vsel %vm946_vm1, %v1057_v12, 0.0  ;;  %v1102_v25 = vsel %vm946_vm1, %v1058_v13, 0.0  ;;  %v1109_v26 = vsel %vm946_vm1, %v1059_v14, 0.0 }
 0x289   : > { %v1062_v27 = vadd.f32 %v1061_v19, %v1060_v15  ;;  %v1069_v28 = vadd.f32 %v1068_v20, %v1067_v16  ;;  %v1076_v29 = vadd.f32 %v1075_v21, %v1074_v17  ;;  %v1083_v30 = vadd.f32 %v1082_v22, %v1081_v18 }
 0x28a   : > { %v1089_v31 = vrot.slane %v1088_v23, 4  ;;  %v1096_v32 = vrot.slane %v1095_v24, 4  ;;  %v1103_v34 = vrot.slane %v1102_v25, 4  ;;  %v1110_v35 = vrot.slane %v1109_v26, 4 }
 0x28b   : > { %v1063_v1 = vrot.slane %v1062_v27, 2  ;;  %v1070_v37 = vrot.slane %v1069_v28, 2  ;;  %v1077_v38 = vrot.slane %v1076_v29, 2  ;;  %v1084_v39 = vrot.slane %v1083_v30, 2 }
 0x28c   : > { %v1090_v40 = vadd.f32 %v1089_v31, %v1088_v23  ;;  %v1097_v41 = vadd.f32 %v1096_v32, %v1095_v24  ;;  %v1104_v42 = vadd.f32 %v1103_v34, %v1102_v25  ;;  %v1111_v43 = vadd.f32 %v1110_v35, %v1109_v26 }
 0x28d   : > { %v1064_v44 = vadd.f32 %v1063_v1, %v1062_v27  ;;  %v1071_v45 = vadd.f32 %v1070_v37, %v1069_v28  ;;  %v1078_v46 = vadd.f32 %v1077_v38, %v1076_v29  ;;  %v1085_v47 = vadd.f32 %v1084_v39, %v1083_v30 }
 0x28e   : > { %v1091_v2 = vrot.slane %v1090_v40, 2  ;;  %v1098_v48 = vrot.slane %v1097_v41, 2  ;;  %v1105_v49 = vrot.slane %v1104_v42, 2  ;;  %v1112_v50 = vrot.slane %v1111_v43, 2 }
 0x28f   : > { %v1065_v51 = vrot.slane %v1064_v44, 1  ;;  %v1072_v52 = vrot.slane %v1071_v45, 1  ;;  %v1079_v53 = vrot.slane %v1078_v46, 1  ;;  %v1086_v54 = vrot.slane %v1085_v47, 1 }
 0x290   : > { %v1092_v55 = vadd.f32 %v1091_v2, %v1090_v40  ;;  %v1099_v56 = vadd.f32 %v1098_v48, %v1097_v41  ;;  %v1106_v57 = vadd.f32 %v1105_v49, %v1104_v42  ;;  %v1113_v58 = vadd.f32 %v1112_v50, %v1111_v43 }
 0x291   : > { %v1066_v59 = vadd.f32 %v1065_v51, %v1064_v44  ;;  %v1073_v60 = vadd.f32 %v1072_v52, %v1071_v45  ;;  %v1080_v61 = vadd.f32 %v1079_v53, %v1078_v46  ;;  %v1087_v62 = vadd.f32 %v1086_v54, %v1085_v47 }
 0x292   : > { %v1093_v63 = vrot.slane %v1092_v55, 1  ;;  %v1100_v0 = vrot.slane %v1099_v56, 1  ;;  %v1107_v3 = vrot.slane %v1106_v57, 1  ;;  %v1114_v4 = vrot.slane %v1113_v58, 1 }
 0x293   : > { %v1812_v5 = vadd.f32 %v1801_v36, %v1066_v59  ;;  %v1815_v6 = vadd.f32 %v1801_v36, %v1073_v60  ;;  %v1818_v7 = vadd.f32 %v1801_v36, %v1080_v61  ;;  %v1821_v12 = vadd.f32 %v1801_v36, %v1087_v62 }
 0x294   : > { %v1094_v8 = vadd.f32 %v1093_v63, %v1092_v55  ;;  %v1101_v9 = vadd.f32 %v1100_v0, %v1099_v56  ;;  %v1108_v10 = vadd.f32 %v1107_v3, %v1106_v57  ;;  %v1115_v11 = vadd.f32 %v1114_v4, %v1113_v58 }
 0x295   : > { %v1143_v17 = vand.u32 2147483647, %v1812_v5  ;;  %v1144_v18 = vand.u32 2147483647, %v1815_v6  ;;  %v1145_v19 = vand.u32 2147483647, %v1818_v7 }
 0x296   : > { %v1824_v13 = vadd.f32 %v1801_v36, %v1094_v8  ;;  %v1827_v14 = vadd.f32 %v1801_v36, %v1101_v9  ;;  %v1830_v15 = vadd.f32 %v1801_v36, %v1108_v10  ;;  %v1833_v16 = vadd.f32 %v1801_v36, %v1115_v11 }
 0x297   : > { %v1146_v20 = vand.u32 2147483647, %v1821_v12  ;;  %v1151_v24 = vsub.f32 0.0, %v1143_v17  ;;  %v1152_v25 = vsub.f32 0.0, %v1144_v18  ;;  %v1153_v36 = vsub.f32 0.0, %v1145_v19 }
 0x298   : > { %v1147_v21 = vand.u32 2147483647, %v1824_v13  ;;  %v1148_v22 = vand.u32 2147483647, %v1827_v14  ;;  %v1149_v23 = vand.u32 2147483647, %v1830_v15 }
 0x299   : > { %v1150_v26 = vand.u32 2147483647, %v1833_v16  ;;  %v1154_v27 = vsub.f32 0.0, %v1146_v20  ;;  %v1159_v30 = vmul.f32 1.442695, %v1151_v24  ;;  %v1135_v52 = vmin.f32 %v1812_v5, 0.0 }
 0x29a   : > { %v1155_v28 = vsub.f32 0.0, %v1147_v21  ;;  %v1156_v29 = vsub.f32 0.0, %v1148_v22  ;;  %v1161_v31 = vmul.f32 1.442695, %v1152_v25  ;;  %v1157_v32 = vsub.f32 0.0, %v1149_v23 }
 0x29b   : > { %v1163_v34 = vmul.f32 1.442695, %v1153_v36  ;;  %v1165_v35 = vmul.f32 1.442695, %v1154_v27  ;;  %1574 = vpow2.f32 %v1159_v30  ;;  %v1158_v37 = vsub.f32 0.0, %v1150_v26 }
 0x29c   : > { %v1167_v1 = vmul.f32 1.442695, %v1155_v28  ;;  %1576 = vpow2.f32 %v1161_v31  ;;  %v1169_v38 = vmul.f32 1.442695, %v1156_v29  ;;  %v1171_v39 = vmul.f32 1.442695, %v1157_v32 }
 0x29d   : > { %1578 = vpow2.f32 %v1163_v34  ;;  %v1173_v40 = vmul.f32 1.442695, %v1158_v37  ;;  %v1615_v41 = vmov 1966171168   ;;  %v1136_v57 = vmin.f32 %v1815_v6, 0.0 }
 0x29e   : > { %1580 = vpow2.f32 %v1165_v35  ;;  %v1268_v42 = vunpack.c.l.s4 %v1615_v41  ;;  %v1137_v58 = vmin.f32 %v1818_v7, 0.0  ;;  %v1138_v59 = vmin.f32 %v1821_v12, 0.0 }
 0x29f   : > { %1582 = vpow2.f32 %v1167_v1  ;;  %v1139_v0 = vmin.f32 %v1824_v13, 0.0  ;;  %v1140_v3 = vmin.f32 %v1827_v14, 0.0  ;;  %v1141_v18 = vmin.f32 %v1830_v15, 0.0 }
 0x2a0   : > { %1584 = vpow2.f32 %v1169_v38  ;;  %v1269_v44 = vunpack.c.0.s8 %v1268_v42  ;;  %v1142_v19 = vmin.f32 %v1833_v16, 0.0  ;;  %v1324_v24 = vcombine.low %v1818_v7, %v1821_v12 }
 0x2a1   : > { %1586 = vpow2.f32 %v1171_v39 }
 0x2a2   : > { %1588 = vpow2.f32 %v1173_v40  ;;  %v1848_v51 = vsub.s32 %v1269_v44, %v1798_v33  ;;  %v1323_v33 = vcombine.low %v1812_v5, %v1815_v6 }
 0x2a5   : > { %v1575_v43 = vpop.eup %1574 }
 0x2a6   : > { %v1577_v45 = vpop.eup %1576  ;;  %v1175_v46 = vadd.f32 1.0, %v1575_v43  ;;  %v1178_v53 = vmul.f32 -0.5, %v1575_v43  ;;  %v1181_v61 = vand.u32 2147483647, %v1575_v43 }
 0x2a7   : > { %v1579_v47 = vpop.eup %1578  ;;  %v1184_v2 = vadd.f32 1.0, %v1577_v45  ;;  %v1187_v54 = vmul.f32 -0.5, %v1577_v45  ;;  %v1190_v4 = vand.u32 2147483647, %v1577_v45 }
 0x2a8   : > { %v1843_v48 = vpop.eup %1580  ;;  %1590 = vlog2.f32 %v1175_v46  ;;  %v1193_v49 = vadd.f32 1.0, %v1579_v47  ;;  %v1196_v62 = vmul.f32 -0.5, %v1579_v47  ;;  %v1179_v10 = vadd.f32 1.0, %v1178_v53 }
 0x2a9   : > { %v1845_v50 = vpop.eup %1582  ;;  %1592 = vlog2.f32 %v1184_v2  ;;  %v1202_v55 = vadd.f32 1.0, %v1843_v48  ;;  %v1205_v8 = vmul.f32 -0.5, %v1843_v48  ;;  %v1188_v11 = vadd.f32 1.0, %v1187_v54 }
 0x2aa   : > { %1594 = vlog2.f32 %v1193_v49  ;;  %v1852_v56 = vpop.eup %1584  ;;  %v1211_v63 = vadd.f32 1.0, %v1845_v50  ;;  %v1199_v20 = vand.u32 2147483647, %v1579_v47  ;;  %vm1871_vm2 = vcmp.lt.f32.partialorder %v1181_v61, 0.0004427343 }
 0x2ab   : > { %v1859_v60 = vpop.eup %1586  ;;  %1596 = vlog2.f32 %v1202_v55  ;;  %v1220_v17 = vadd.f32 1.0, %v1852_v56  ;;  %v1197_v23 = vadd.f32 1.0, %v1196_v62  ;;  %v1206_v25 = vadd.f32 1.0, %v1205_v8 }
 0x2ac   : > { %v1865_v9 = vpop.eup %1588  ;;  %1598 = vlog2.f32 %v1211_v63  ;;  %v1229_v21 = vadd.f32 1.0, %v1859_v60  ;;  %v1214_v26 = vmul.f32 -0.5, %v1845_v50  ;;  %v1180_v28 = vmul.f32 %v1575_v43, %v1179_v10 }
 0x2ad   : > { %1600 = vlog2.f32 %v1220_v17  ;;  %v1238_v36 = vadd.f32 1.0, %v1865_v9  ;;  %v1189_v29 = vmul.f32 %v1577_v45, %v1188_v11  ;;  %vm1879_vm3 = vcmp.lt.f32.partialorder %v1190_v4, 0.0004427343 }
 0x2ae   : > { %1602 = vlog2.f32 %v1229_v21  ;;  %v1223_v31 = vmul.f32 -0.5, %v1852_v56  ;;  %vm1884_vm4 = vcmp.lt.f32.partialorder %v1199_v20, 0.0004427343  ;;  %v1208_v1 = vand.u32 2147483647, %v1843_v48 }
 0x2af   : > { %1604 = vlog2.f32 %v1238_v36  ;;  %v1198_v39 = vmul.f32 %v1579_v47, %v1197_v23  ;;  %v1217_v40 = vand.u32 2147483647, %v1845_v50  ;;  %v1232_v41 = vmul.f32 -0.5, %v1859_v60 }
 0x2b0   : > { %v1207_v44 = vmul.f32 %v1843_v48, %v1206_v25  ;;  %v1215_v45 = vadd.f32 1.0, %v1214_v26  ;;  %v1224_v49 = vadd.f32 1.0, %v1223_v31  ;;  %v1226_v53 = vand.u32 2147483647, %v1852_v56 }
 0x2b1   : > { %v1241_v47 = vmul.f32 -0.5, %v1865_v9  ;;  %vm1209_vm5 = vcmp.lt.f32.partialorder %v1208_v1, 0.0004427343  ;;  %vm1902_vm6 = vcmp.lt.f32.partialorder %v1217_v40, 0.0004427343  ;;  %v1233_v4 = vadd.f32 1.0, %v1232_v41 }
 0x2b2   : > { %v1591_v27 = vpop.eup %1590  ;;  %v1216_v17 = vmul.f32 %v1845_v50, %v1215_v45  ;;  %v1235_v20 = vand.u32 2147483647, %v1859_v60  ;;  %v1225_v22 = vmul.f32 %v1852_v56, %v1224_v49  ;;  %vm1909_vm7 = vcmp.lt.f32.partialorder %v1226_v53, 0.0004427343 }
 0x2b3   : > { %v1593_v32 = vpop.eup %1592  ;;  %v1177_v34 = vmul.f32 0.6931472, %v1591_v27  ;;  %v1244_v50 = vand.u32 2147483647, %v1865_v9  ;;  %v1333_v40 = vrot.slane %v1323_v33, %v1848_v51 }
 0x2b4   : > { %v1595_v37 = vpop.eup %1594  ;;  %v1186_v38 = vmul.f32 0.6931472, %v1593_v32  ;;  %vm1236_vm8 = vcmp.lt.f32.partialorder %v1235_v20, 0.0004427343  ;;  %v1326_v32 = vcombine.low %v1830_v15, %v1833_v16  ;;  %v1340_v15 = vrot.slane %v1324_v24, %v1848_v51 }
 0x2b5   : > { %v1183_v42 = vsel %vm1871_vm2, %v1180_v28, %v1177_v34  ;;  %v1195_v43 = vmul.f32 0.6931472, %v1595_v37  ;;  %v1597_v46 = vpop.eup %1596  ;;  %v1234_v28 = vmul.f32 %v1859_v60, %v1233_v4  ;;  %vm1245_vm9 = vcmp.lt.f32.partialorder %v1244_v50, 0.0004427343 }
 0x2b6   : > { %v1192_v2 = vsel %vm1879_vm3, %v1189_v29, %v1186_v38  ;;  %v1204_v55 = vmul.f32 0.6931472, %v1597_v46  ;;  %v1247_v61 = vsub.f32 %v1135_v52, %v1183_v42  ;;  %v1599_v63 = vpop.eup %1598  ;;  %v1355_v6 = vcombine.low %v1333_v40, %v1340_v15 }
 0x2b7   : > { %v1201_v54 = vsel %vm1884_vm4, %v1198_v39, %v1195_v43  ;;  %v1248_v62 = vsub.f32 %v1136_v57, %v1192_v2  ;;  %v1213_v11 = vmul.f32 0.6931472, %v1599_v63  ;;  %v1601_v21 = vpop.eup %1600  ;;  %v1242_v57 = vadd.f32 1.0, %v1241_v47  ;;  %v1134_v43 = vld [vmem:[%s325_s23] sm:$0xff] }
 0x2b8   : > { %v1249_v8 = vsub.f32 %v1137_v58, %v1201_v54  ;;  %v1210_v10 = vsel %vm1209_vm5, %v1207_v44, %v1204_v55  ;;  %v1603_v25 = vpop.eup %1602  ;;  %v1222_v26 = vmul.f32 0.6931472, %v1601_v21 }
 0x2b9   : > { %v1250_v23 = vsub.f32 %v1138_v59, %v1210_v10  ;;  %v1219_v58 = vsel %vm1902_vm6, %v1216_v17, %v1213_v11  ;;  %v1263_v36 = vcombine.low %v1247_v61, %v1248_v62  ;;  %v1231_v27 = vmul.f32 0.6931472, %v1603_v25  ;;  %v1605_v30 = vpop.eup %1604 }
 0x2ba   : > { %v1251_v56 = vsub.f32 %v1139_v0, %v1219_v58  ;;  %v1228_v31 = vsel %vm1909_vm7, %v1225_v22, %v1222_v26  ;;  %v1325_v59 = vcombine.low %v1824_v13, %v1827_v14  ;;  %v1240_v35 = vmul.f32 0.6931472, %v1605_v30 }
 0x2bb   : > { %v1264_v29 = vcombine.low %v1249_v8, %v1250_v23  ;;  %v1237_v34 = vsel %vm1236_vm8, %v1234_v28, %v1231_v27  ;;  %v1243_v1 = vmul.f32 %v1865_v9, %v1242_v57  ;;  %v1252_v60 = vsub.f32 %v1140_v3, %v1228_v31 }
 0x2bc   : > { %v1253_v0 = vsub.f32 %v1141_v18, %v1237_v34  ;;  %v1273_v37 = vrot.slane %v1263_v36, %v1848_v51  ;;  %v1347_v3 = vrot.slane %v1325_v59, %v1848_v51  ;;  %v1354_v9 = vrot.slane %v1326_v32, %v1848_v51 }
 0x2bd   : > { %v1280_v38 = vrot.slane %v1264_v29, %v1848_v51  ;;  %v1246_v13 = vsel %vm1245_vm9, %v1243_v1, %v1240_v35  ;;  %v1265_v39 = vcombine.low %v1251_v56, %v1252_v60 }
 0x2be   : > { %v1254_v14 = vsub.f32 %v1142_v19, %v1246_v13  ;;  %v1356_v33 = vcombine.low %v1347_v3, %v1354_v9  ;;  %v1363_v19 = vrot.slane %v1355_v6, %v1848_v51 }
 0x2bf   : > { %v1287_v41 = vrot.slane %v1265_v39, %v1848_v51  ;;  %v1295_v42 = vcombine.low %v1273_v37, %v1280_v38 }
 0x2c0   : > { %v1266_v18 = vcombine.low %v1253_v0, %v1254_v14  ;;  %v1370_v24 = vrot.slane %v1356_v33, %v1848_v51 }
 0x2c1   : > { %v1303_v7 = vrot.slane %v1295_v42, %v1848_v51 }
 0x2c2   : > { %v1294_v5 = vrot.slane %v1266_v18, %v1848_v51  ;;  %v1371_v46 = vcombine.low %v1363_v19, %v1370_v24 }
 0x2c4   : > { %v1296_v16 = vcombine.low %v1287_v41, %v1294_v5 }
 0x2c6   : > { %v1310_v12 = vrot.slane %v1296_v16, %v1848_v51 }
 0x2c8   : > { %v1311_v44 = vcombine.low %v1303_v7, %v1310_v12 }
 0x2ca   : > { %v1313_v45 = vadd.f32 %v1311_v44, %v1134_v43 }
 0x2cc   : > { %1314 = vst [vmem:[%s333_s26] sm:$0xff] %v1313_v45  ;;  %v1373_v2 = vsub.f32 %v1313_v45, %v1371_v46 }
 0x2ce   : > { %1374 = vst [vmem:[%s329_s30] sm:$0xff] %v1373_v2 }
 0x2cf PF: > { %s21_s29 = sadd.s32 1, %s1612_s29  }
 0x2d0   : > { %p18_p4 = scmp.ge.s32.totalorder %s21_s29, 4  }
 0x2d2   :  { %20 = sbr.rel (!%p18_p4) target bundleno = 3 (0x3), region = 93 }

// kernel: minimonet_forward.43
= control target key start
LH: loop header
LB: loop body
LE: loop exit
PB: predicated region body
PF: predicated region fallthrough
CT: control target
= control target key end

     0   :  { %s421_s12 = smov 0   ;;  %s451_s0 = inlined_call_operand.vmem [shape: bf16[6,36,256], index: 0, kind: input, shape index: {}]   ;;  %s452_s1 = inlined_call_operand.vmem [shape: bf16[16,36], index: 1, kind: input, shape index: {}]   ;;  %s453_s2 = inlined_call_operand.vmem [shape: f32[16,1], index: 2, kind: input, shape index: {}]   ;;  %s454_s3 = inlined_call_operand.vmem [shape: bf16[6,16,256], index: 3, kind: output, shape index: {}]  }
   0x1 LB: > { %s348_s13 = sadd.s32 4294967295, %s398_s12   ;;  %p352_p0 = scmp.ge.s32.totalorder %s398_s12, 1  ;;  %s398_s12 = sphi %s421_s12, %s13_s12  }
   0x2   : > { %p137_p1 = scmp.lt.s32.totalorder %s398_s12, 7 }
   0x4   : > { %p138_p2 = pnand %p352_p0, %p137_p1 }
   0x5   : > { %p161_p3 = scmp.lt.s32.totalorder (!%p138_p2), %s348_s13, 5  ;;  %v400_v0 = vmov (!%p138_p2), 0   ;;  %v179_v1 = vld [vmem:[%s453_s2] sm:$0xff] (!%p138_p2)  ;;  %v180_v2 = vld [vmem:[%s453_s2 + $0x8] sm:$0xff] (!%p138_p2)  ;;  %vm225_vm0 = vcmask (!%p138_p2), 1041408   ;;  %vm221_vm1 = vcmask (!%p138_p2), 293888  }
   0x6   : > { %141 = sbr.rel (%p138_p2) target bundleno = 252 (0xfc), region = 32  ;;  %264 = vmatprep.mubr.bf16.mxu0 (!%p138_p2), %v400_v0  ;;  %382 = vset.pattern.permute.xlu0 (!%p138_p2), %v400_v0  ;;  %v391_v11 = vld [vmem:[%s452_s1] sm:$0xff] (!%p138_p2)  }
   0x7   : > { %183 = vperm.xlu0 (!%p138_p2), %382, %v179_v1  }
   0xb   : > { %188 = vperm.xlu0 (!%p138_p2), %382, %v180_v2  }
   0xd   : > { %s456_s13 = smov (!%p161_p3, %s348_s13), 5 }
   0xe   : > { %s372_s18 = smul.u32 40, %s456_s13  ;;  %s369_s24 = sshll.u32 %s456_s13, 4 }
   0xf   : > { %s170_s27 = scalar_lea.vmem %s454_s3, %s369_s24 }
  0x10   : > { %s165_s21 = scalar_lea.vmem %s451_s0, %s372_s18 }
  0x11   : > { %v383_v3 = vld [vmem:[%s165_s21 + $0x4] ss:$8 sps:$4 sm:$0xff]   ;;  %v385_v4 = vld [vmem:[%s165_s21] ss:$8 sps:$4 sm:$0xff]   ;;  %v386_v5 = vld [vmem:[%s165_s21 + $0x14] ss:$8 sps:$4 sm:$0xff]  }
  0x12   : > { %232 = vmatprep.subr.bf16.mxu0 %v383_v3  ;;  %v176_v6 = vld [vmem:[%s165_s21 + $0x20] sm:$0x33]  ;;  %v388_v7 = vld [vmem:[%s165_s21 + $0x10] ss:$8 sps:$4 sm:$0xff]  }
  0x13   : > { %233 = vmatpush1.bf16.msra.mxu0 %v385_v4  ;;  %v362_v8 = vcombine.high %v176_v6, %v176_v6  ;;  %v361_v9 = vcombine.low %v176_v6, %v176_v6 }
  0x14   : > { %234 = vmatprep.subr.bf16.mxu0 %v386_v5 }
  0x15   : > { %v227_v10 = vsel %vm225_vm0, %v361_v9, 0 }
  0x17   : > { %235 = vmatpush1.bf16.msra.mxu0 %v388_v7 }
  0x18   : > { %363 = vmatprep.subr.msk.bf16.mxu0 %vm225_vm0, %v362_v8 }
  0x1b   : > { %237 = vmatpush1.bf16.msra.mxu0 %v227_v10 }
  0x1e   : > { %364 = vmatmul.mubr.msk.bf16.vlgmr.msra.gmra.mrb[0].mxu0 %vm221_vm1, %v391_v11 }
  0x86   : > { %v184_v12 = vpop.permute.xlu0 %183 }
  0x8a   : > { %v189_v16 = vpop.permute.xlu0 %188 }
  0xf1   : > { %v266_v13 = vpop.f32.mrb[0].mxu0 }
  0xf2   : > { %v267_v14 = vadd.f32 %v266_v13, %v184_v12  ;;  %v268_v15 = vpop.f32.mrb[1].mxu0 }
  0xf3   : > { %v269_v17 = vadd.f32 %v268_v15, %v184_v12  ;;  %v270_v18 = vpop.f32.mrb[2].mxu0 }
  0xf4   : > { %v275_v19 = vmax.f32 %v267_v14, 0.0  ;;  %v271_v20 = vadd.f32 %v270_v18, %v189_v16  ;;  %v272_v21 = vpop.f32.mrb[3].mxu0 }
  0xf5   : > { %v276_v22 = vmax.f32 %v269_v17, 0.0  ;;  %v273_v23 = vadd.f32 %v272_v21, %v189_v16 }
  0xf6   : > { %v277_v24 = vmax.f32 %v271_v20, 0.0 }
  0xf7   : > { %v370_v25 = vpack.c.bf16 %v276_v22, %v275_v19  ;;  %v278_v26 = vmax.f32 %v273_v23, 0.0 }
  0xf9   : > { %291 = vst [vmem:[%s170_s27] sm:$0xff] %v370_v25  ;;  %v371_v27 = vpack.c.bf16 %v278_v26, %v277_v24 }
  0xfb   : > { %292 = vst [vmem:[%s170_s27 + $0x8] sm:$0xff] %v371_v27 }
  0xfc PF: > { %s13_s12 = sadd.s32 1, %s398_s12  }
  0xfd   : > { %p10_p4 = scmp.ge.s32.totalorder %s13_s12, 8  }
  0xff   :  { %12 = sbr.rel (!%p10_p4) target bundleno = 1 (0x1), region = 62 }

// kernel: minimonet_forward.44
= control target key start
LH: loop header
LB: loop body
LE: loop exit
PB: predicated region body
PF: predicated region fallthrough
CT: control target
= control target key end

     0   :  { %s534_s12 = smov 0   ;;  %s590_s0 = inlined_call_operand.vmem [shape: bf16[6,144,64], index: 0, kind: input, shape index: {}]   ;;  %s591_s1 = inlined_call_operand.vmem [shape: bf16[32,144], index: 1, kind: input, shape index: {}]   ;;  %s592_s2 = inlined_call_operand.vmem [shape: f32[32,1], index: 2, kind: input, shape index: {}]   ;;  %s593_s3 = inlined_call_operand.vmem [shape: bf16[6,32,64], index: 3, kind: output, shape index: {}]  }
   0x1 LB: > { %s426_s13 = sadd.s32 4294967295, %s511_s12   ;;  %p430_p0 = scmp.ge.s32.totalorder %s511_s12, 1  ;;  %s511_s12 = sphi %s534_s12, %s13_s12  }
   0x2   : > { %p137_p1 = scmp.lt.s32.totalorder %s511_s12, 7 }
   0x4   : > { %p138_p2 = pnand %p430_p0, %p137_p1 }
   0x5   : > { %p161_p3 = scmp.lt.s32.totalorder (!%p138_p2), %s426_s13, 5  ;;  %v513_v0 = vmov (!%p138_p2), 0   ;;  %v501_v1 = vld [vmem:[%s591_s1 + $0x4] ss:$8 sps:$4 sm:$0xff] (!%p138_p2)   ;;  %vm290_vm0 = vcmask (!%p138_p2), 130048   ;;  %v196_v3 = vld [vmem:[%s592_s2 + $0x10] sm:$0xff] (!%p138_p2) }
   0x6   : > { %141 = sbr.rel (%p138_p2) target bundleno = 274 (0x112), region = 32  ;;  %297 = vmatprep.subr.bf16.mxu0 (!%p138_p2), %v513_v0  ;;  %460 = vmatprep.subr.bf16.mxu1 (!%p138_p2), %v513_v0  ;;  %v504_v2 = vld [vmem:[%s591_s1 + $0x14] ss:$8 sps:$4 sm:$0xff] (!%p138_p2)   ;;  %v194_v4 = vld [vmem:[%s592_s2] sm:$0xff] (!%p138_p2)  ;;  %v195_v6 = vld [vmem:[%s592_s2 + $0x8] sm:$0xff] (!%p138_p2)  ;;  %vm366_vm1 = vcmask (!%p138_p2), 519168  }
   0x7   : > { %489 = vset.pattern.permute.xlu1 (!%p138_p2), %v513_v0  ;;  %488 = vset.pattern.permute.xlu0 (!%p138_p2), %v513_v0  ;;  %v197_v5 = vld [vmem:[%s592_s2 + $0x18] sm:$0xff] (!%p138_p2)  ;;  %v499_v16 = vld [vmem:[%s591_s1] ss:$8 sps:$4 sm:$0xff] (!%p138_p2)  }
   0x8   : > { %447 = vmatprep.mubr.msk.bf16.mxu0 (!%p138_p2), %vm290_vm0, %v501_v1  ;;  %210 = vperm.xlu1 (!%p138_p2), %489, %v196_v3   ;;  %v502_v17 = vld [vmem:[%s591_s1 + $0x10] ss:$8 sps:$4 sm:$0xff] (!%p138_p2)  }
   0x9   : > { %448 = vmatprep.mubr.msk.bf16.mxu1 (!%p138_p2), %vm290_vm0, %v504_v2  ;;  %200 = vperm.xlu0 (!%p138_p2), %488, %v194_v4  }
   0xc   : > { %215 = vperm.xlu1 (!%p138_p2), %489, %v197_v5  }
   0xd   : > { %s595_s13 = smov (!%p161_p3, %s426_s13), 5  ;;  %205 = vperm.xlu0 %488, %v195_v6  }
   0xe   : > { %s478_s22 = smul.u32 72, %s595_s13  ;;  %s455_s7 = sshll.u32 %s595_s13, 4 }
   0xf   : > { %s170_s10 = scalar_lea.vmem %s593_s3, %s455_s7 }
  0x10   : > { %s566_s29 = scalar_lea.vmem %s590_s0, %s478_s22 }
  0x11   : > { %v490_v7 = vld [vmem:[%s566_s29] sm:$0xff]   ;;  %v491_v8 = vld [vmem:[%s566_s29 + $0x8] sm:$0xff]   ;;  %v492_v9 = vld [vmem:[%s566_s29 + $0x10] sm:$0xff]  }
  0x12   : > { %298 = vmatpush1.bf16.msra.mxu0 %v490_v7  ;;  %469 = vmatpush1.bf16.msra.mxu1 %v490_v7  ;;  %v493_v10 = vld [vmem:[%s566_s29 + $0x18] sm:$0xff]   ;;  %v494_v11 = vld [vmem:[%s566_s29 + $0x20] sm:$0xff]   ;;  %v495_v12 = vld [vmem:[%s566_s29 + $0x28] sm:$0xff]  }
  0x13   : > { %299 = vmatprep.subr.bf16.mxu0 %v513_v0  ;;  %461 = vmatprep.subr.bf16.mxu1 %v513_v0  ;;  %v496_v13 = vld [vmem:[%s566_s29 + $0x30] sm:$0xff]   ;;  %v497_v14 = vld [vmem:[%s566_s29 + $0x38] sm:$0xff]   ;;  %v498_v15 = vld [vmem:[%s566_s29 + $0x40] sm:$0xff]  }
  0x16   : > { %300 = vmatpush1.bf16.msra.mxu0 %v491_v8  ;;  %470 = vmatpush1.bf16.msra.mxu1 %v491_v8 }
  0x17   : > { %301 = vmatprep.subr.bf16.mxu0 %v513_v0  ;;  %462 = vmatprep.subr.bf16.mxu1 %v513_v0 }
  0x1a   : > { %302 = vmatpush1.bf16.msra.mxu0 %v492_v9  ;;  %471 = vmatpush1.bf16.msra.mxu1 %v492_v9 }
  0x1b   : > { %303 = vmatprep.subr.bf16.mxu0 %v513_v0  ;;  %463 = vmatprep.subr.bf16.mxu1 %v513_v0 }
  0x1e   : > { %304 = vmatpush1.bf16.msra.mxu0 %v493_v10  ;;  %472 = vmatpush1.bf16.msra.mxu1 %v493_v10 }
  0x1f   : > { %305 = vmatprep.subr.bf16.mxu0 %v513_v0  ;;  %464 = vmatprep.subr.bf16.mxu1 %v513_v0 }
  0x22   : > { %306 = vmatpush1.bf16.msra.mxu0 %v494_v11  ;;  %473 = vmatpush1.bf16.msra.mxu1 %v494_v11 }
  0x23   : > { %307 = vmatprep.subr.bf16.mxu0 %v513_v0  ;;  %465 = vmatprep.subr.bf16.mxu1 %v513_v0 }
  0x26   : > { %308 = vmatpush1.bf16.msra.mxu0 %v495_v12  ;;  %474 = vmatpush1.bf16.msra.mxu1 %v495_v12 }
  0x27   : > { %309 = vmatprep.subr.bf16.mxu0 %v513_v0  ;;  %466 = vmatprep.subr.bf16.mxu1 %v513_v0 }
  0x2a   : > { %310 = vmatpush1.bf16.msra.mxu0 %v496_v13  ;;  %475 = vmatpush1.bf16.msra.mxu1 %v496_v13 }
  0x2b   : > { %311 = vmatprep.subr.bf16.mxu0 %v513_v0  ;;  %467 = vmatprep.subr.bf16.mxu1 %v513_v0 }
  0x2e   : > { %312 = vmatpush1.bf16.msra.mxu0 %v497_v14  ;;  %476 = vmatpush1.bf16.msra.mxu1 %v497_v14 }
  0x2f   : > { %313 = vmatprep.subr.bf16.mxu0 %v513_v0  ;;  %468 = vmatprep.subr.bf16.mxu1 %v513_v0 }
  0x32   : > { %314 = vmatpush1.bf16.msra.mxu0 %v498_v15  ;;  %477 = vmatpush1.bf16.msra.mxu1 %v498_v15 }
  0x35   : > { %330 = vmatmul.mubr.bf16.vlgmr.msra.gmra.mrb[0].mxu0 %v499_v16  ;;  %338 = vmatmul.mubr.bf16.vlgmr.msra.gmra.mrb[0].mxu1 %v502_v17 }
  0x87   : > { %v211_v18 = vpop.permute.xlu1 %210 }
  0x88   : > { %v201_v19 = vpop.permute.xlu0 %200 }
  0x8b   : > { %v216_v20 = vpop.permute.xlu1 %215 }
  0x8c   : > { %v206_v21 = vpop.permute.xlu0 %205 }
 0x108   : > { %v331_v22 = vpop.f32.mrb[0].mxu0  ;;  %v339_v23 = vpop.f32.mrb[0].mxu1 }
 0x109   : > { %v332_v24 = vadd.f32 %v331_v22, %v201_v19  ;;  %v340_v25 = vadd.f32 %v339_v23, %v211_v18  ;;  %v333_v26 = vpop.f32.mrb[1].mxu0  ;;  %v341_v27 = vpop.f32.mrb[1].mxu1 }
 0x10a   : > { %v334_v28 = vpop.f32.mrb[2].mxu0  ;;  %v342_v29 = vpop.f32.mrb[2].mxu1 }
 0x10b   : > { %v346_v30 = vmax.f32 %v332_v24, 0.0  ;;  %v348_v31 = vmax.f32 %v340_v25, 0.0  ;;  %v335_v32 = vadd.f32 %v334_v28, %v206_v21  ;;  %v343_v33 = vadd.f32 %v342_v29, %v216_v20  ;;  %v336_v34 = vpop.f32.mrb[3].mxu0  ;;  %v344_v35 = vpop.f32.mrb[3].mxu1 }
 0x10d   : > { %v456_v36 = vpack.c.bf16 %v346_v30, %v346_v30  ;;  %v458_v37 = vpack.c.bf16 %v348_v31, %v348_v31  ;;  %v347_v38 = vmax.f32 %v335_v32, 0.0  ;;  %v349_v39 = vmax.f32 %v343_v33, 0.0 }
 0x10f   : > { %367 = vst.msk [vmem:[%s170_s10] sm:$0xf] %vm366_vm1, %v456_v36  ;;  %369 = vst.msk [vmem:[%s170_s10 + $0x8] sm:$0xf] %vm366_vm1, %v458_v37  ;;  %v457_v40 = vpack.c.bf16 %v347_v38, %v347_v38  ;;  %v459_v41 = vpack.c.bf16 %v349_v39, %v349_v39 }
 0x111   : > { %368 = vst.msk [vmem:[%s170_s10 + $0x4] sm:$0xf] %vm366_vm1, %v457_v40  ;;  %370 = vst.msk [vmem:[%s170_s10 + $0xc] sm:$0xf] %vm366_vm1, %v459_v41 }
 0x112 PF: > { %s13_s12 = sadd.s32 1, %s511_s12  }
 0x113   : > { %p10_p4 = scmp.ge.s32.totalorder %s13_s12, 8  }
 0x115   :  { %12 = sbr.rel (!%p10_p4) target bundleno = 1 (0x1), region = 62 }

// kernel: minimonet_forward.45
= control target key start
LH: loop header
LB: loop body
LE: loop exit
PB: predicated region body
PF: predicated region fallthrough
CT: control target
= control target key end

     0   :  { %s715_s12 = smov 0   ;;  %s792_s0 = inlined_call_operand.vmem [shape: bf16[6,288,16], index: 0, kind: input, shape index: {}]   ;;  %s793_s1 = inlined_call_operand.vmem [shape: bf16[32,288], index: 1, kind: input, shape index: {}]   ;;  %s794_s2 = inlined_call_operand.vmem [shape: f32[32,1], index: 2, kind: input, shape index: {}]   ;;  %s795_s3 = inlined_call_operand.vmem [shape: bf16[6,32,16], index: 3, kind: output, shape index: {}]  }
   0x1 LB: > { %s563_s13 = sadd.s32 4294967295, %s692_s12   ;;  %p567_p0 = scmp.ge.s32.totalorder %s692_s12, 1  ;;  %s692_s12 = sphi %s715_s12, %s13_s12  }
   0x2   : > { %p137_p1 = scmp.lt.s32.totalorder %s692_s12, 7 }
   0x4   : > { %p138_p2 = pnand %p567_p0, %p137_p1 }
   0x5   : > { %p161_p3 = scmp.lt.s32.totalorder (!%p138_p2), %s563_s13, 5  ;;  %vm378_vm0 = vcmask (!%p138_p2), 261120   ;;  %v679_v0 = vld [vmem:[%s793_s1 + $0x4] ss:$12 sps:$4 sm:$0xff] (!%p138_p2)   ;;  %v681_v1 = vld [vmem:[%s793_s1 + $0x8] ss:$12 sps:$4 sm:$0xff] (!%p138_p2)  }
   0x6   : > { %141 = sbr.rel (%p138_p2) target bundleno = 284 (0x11c), region = 32  ;;  %417 = vmatprep.mubr.bf16.mxu0 (!%p138_p2), %v679_v0  ;;  %644 = vmatprep.mubr.msk.bf16.mxu1 (!%p138_p2), %vm378_vm0, %v681_v1  ;;  %v694_v2 = vmov (!%p138_p2), 0   ;;  %v216_v3 = vld [vmem:[%s794_s2] sm:$0xff] (!%p138_p2)  ;;  %v218_v4 = vld [vmem:[%s794_s2 + $0x10] sm:$0xff] (!%p138_p2)  ;;  %v217_v5 = vld [vmem:[%s794_s2 + $0x8] sm:$0xff] (!%p138_p2)  ;;  %vm503_vm1 = vcmask (!%p138_p2), 125952  }
   0x7   : > { %658 = vset.pattern.permute.xlu0 (!%p138_p2), %v694_v2  ;;  %659 = vset.pattern.permute.xlu1 (!%p138_p2), %v694_v2  ;;  %v219_v6 = vld [vmem:[%s794_s2 + $0x18] sm:$0xff] (!%p138_p2)  ;;  %v682_v22 = vld [vmem:[%s793_s1 + $0x20] ss:$12 sps:$4 sm:$0xff] (!%p138_p2)  }
   0x8   : > { %222 = vperm.xlu0 (!%p138_p2), %658, %v216_v3   ;;  %232 = vperm.xlu1 (!%p138_p2), %659, %v218_v4   ;;  %v677_v26 = vld [vmem:[%s793_s1] ss:$12 sps:$4 sm:$0xff] (!%p138_p2)   ;;  %v683_v27 = vld [vmem:[%s793_s1 + $0x1c] ss:$12 sps:$4 sm:$0xff] (!%p138_p2)   ;;  %v685_v28 = vld [vmem:[%s793_s1 + $0x18] ss:$12 sps:$4 sm:$0xff] (!%p138_p2)  }
   0xc   : > { %227 = vperm.xlu0 (!%p138_p2), %658, %v217_v5   ;;  %237 = vperm.xlu1 (!%p138_p2), %659, %v219_v6  }
   0xd   : > { %s797_s13 = smov (!%p161_p3, %s563_s13), 5 }
   0xe   : > { %s648_s18 = smul.u32 144, %s797_s13  ;;  %s603_s11 = sshll.u32 %s797_s13, 4 }
   0xf   : > { %s170_s16 = scalar_lea.vmem %s795_s3, %s603_s11 }
  0x10   : > { %s742_s25 = scalar_lea.vmem %s792_s0, %s648_s18 }
  0x11   : > { %v660_v7 = vld [vmem:[%s742_s25 + $0x40] sm:$0xff]   ;;  %v662_v9 = vld [vmem:[%s742_s25 + $0x48] sm:$0xff]   ;;  %v664_v11 = vld [vmem:[%s742_s25 + $0x50] sm:$0xff]  }
  0x12   : > { %v661_v8 = vld [vmem:[%s742_s25] sm:$0xff]   ;;  %608 = vmatprep.subr.bf16.mxu0 %v660_v7  ;;  %v663_v10 = vld [vmem:[%s742_s25 + $0x8] sm:$0xff]   ;;  %v665_v12 = vld [vmem:[%s742_s25 + $0x10] sm:$0xff]  }
  0x13   : > { %609 = vmatpush3.bf16.msra.mxu0 %v661_v8  ;;  %v666_v13 = vld [vmem:[%s742_s25 + $0x58] sm:$0xff]   ;;  %v668_v15 = vld [vmem:[%s742_s25 + $0x60] sm:$0xff]   ;;  %v670_v18 = vld [vmem:[%s742_s25 + $0x68] sm:$0xff]  }
  0x14   : > { %610 = vmatprep.subr.bf16.mxu0 %v662_v9  ;;  %v667_v14 = vld [vmem:[%s742_s25 + $0x18] sm:$0xff]   ;;  %v669_v16 = vld [vmem:[%s742_s25 + $0x20] sm:$0xff]   ;;  %v680_v19 = vld [vmem:[%s742_s25 + $0x88] sm:$0xff]  }
  0x15   : > { %v675_v17 = vld [vmem:[%s742_s25 + $0x80] sm:$0xff]   ;;  %v671_v20 = vld [vmem:[%s742_s25 + $0x28] sm:$0xff]   ;;  %v672_v21 = vld [vmem:[%s742_s25 + $0x70] sm:$0xff]  }
  0x16   : > { %640 = vmatprep.subr.bf16.mxu1 %v675_v17  ;;  %v673_v23 = vld [vmem:[%s742_s25 + $0x30] sm:$0xff]   ;;  %v674_v24 = vld [vmem:[%s742_s25 + $0x78] sm:$0xff]  }
  0x17   : > { %611 = vmatpush3.bf16.msra.mxu0 %v663_v10  ;;  %641 = vmatpush3.bf16.msra.mxu1 %v675_v17  ;;  %v676_v25 = vld [vmem:[%s742_s25 + $0x38] sm:$0xff]  }
  0x18   : > { %612 = vmatprep.subr.bf16.mxu0 %v664_v11  ;;  %642 = vmatprep.subr.bf16.mxu1 %v680_v19 }
  0x1b   : > { %613 = vmatpush3.bf16.msra.mxu0 %v665_v12  ;;  %643 = vmatpush3.bf16.msra.mxu1 %v680_v19 }
  0x1c   : > { %614 = vmatprep.subr.bf16.mxu0 %v666_v13 }
  0x1e   : > { %645 = vmatmul.mubr.msk.bf16.vlgmr.msra.gmra.mrb[0].mxu1 %vm378_vm0, %v682_v22 }
  0x1f   : > { %615 = vmatpush3.bf16.msra.mxu0 %v667_v14 }
  0x20   : > { %616 = vmatprep.subr.bf16.mxu0 %v668_v15 }
  0x23   : > { %617 = vmatpush3.bf16.msra.mxu0 %v669_v16 }
  0x24   : > { %618 = vmatprep.subr.bf16.mxu0 %v670_v18 }
  0x27   : > { %619 = vmatpush3.bf16.msra.mxu0 %v671_v20 }
  0x28   : > { %620 = vmatprep.subr.bf16.mxu0 %v672_v21 }
  0x2b   : > { %621 = vmatpush3.bf16.msra.mxu0 %v673_v23 }
  0x2c   : > { %622 = vmatprep.subr.bf16.mxu0 %v674_v24 }
  0x2f   : > { %623 = vmatpush3.bf16.msra.mxu0 %v676_v25 }
  0x32   : > { %418 = vmatmul.mubr.bf16.vlgmr.msra.gmra.mrb[0].mxu0 %v677_v26 }
  0x33   : > { %425 = vmatprep.mubr.bf16.mxu0 %v683_v27 }
  0x3a   : > { %426 = vmatmul.mubr.bf16.gmra.mrb[4].mxu0 %v685_v28 }
  0x87   : > { %v223_v33 = vpop.permute.xlu0 %222  ;;  %v233_v44 = vpop.permute.xlu1 %232 }
  0x8b   : > { %v228_v39 = vpop.permute.xlu0 %227  ;;  %v238_v57 = vpop.permute.xlu1 %237 }
  0xf1   : > { %v646_v29 = vpop.f32.mrb[0].mxu1 }
  0xf2   : > { %v468_v30 = vpop.f32.mrb[1].mxu1 }
  0xf3   : > { %v647_v31 = vpop.f32.mrb[2].mxu1 }
  0xf4   : > { %v471_v32 = vpop.f32.mrb[3].mxu1 }
 0x105   : > { %v624_v34 = vpop.f32.mrb[0].mxu0 }
 0x106   : > { %v625_v35 = vpop.f32.mrb[1].mxu0 }
 0x107   : > { %v626_v36 = vadd.f32 %v625_v35, %v624_v34  ;;  %v627_v37 = vpop.f32.mrb[2].mxu0 }
 0x108   : > { %v628_v38 = vpop.f32.mrb[3].mxu0 }
 0x109   : > { %v629_v40 = vadd.f32 %v628_v38, %v627_v37  ;;  %v420_v41 = vadd.f32 %v626_v36, %v223_v33 }
 0x10b   : > { %v423_v42 = vadd.f32 %v629_v40, %v228_v39  ;;  %v469_v43 = vadd.f32 %v468_v30, %v420_v41 }
 0x10d   : > { %v483_v45 = vmax.f32 %v469_v43, 0.0  ;;  %v472_v46 = vadd.f32 %v471_v32, %v423_v42  ;;  %v630_v47 = vpop.f32.mrb[4].mxu0 }
 0x10e   : > { %v631_v48 = vpop.f32.mrb[5].mxu0 }
 0x10f   : > { %v604_v49 = vpack.c.bf16 %v483_v45, %v483_v45  ;;  %v484_v50 = vmax.f32 %v472_v46, 0.0  ;;  %v632_v51 = vadd.f32 %v631_v48, %v630_v47  ;;  %v633_v52 = vpop.f32.mrb[6].mxu0 }
 0x110   : > { %v634_v53 = vpop.f32.mrb[7].mxu0 }
 0x111   : > { %504 = vst.msk [vmem:[%s170_s16] sm:$0xf] %vm503_vm1, %v604_v49  ;;  %v605_v54 = vpack.c.bf16 %v484_v50, %v484_v50  ;;  %v428_v55 = vadd.f32 %v632_v51, %v233_v44  ;;  %v635_v56 = vadd.f32 %v634_v53, %v633_v52 }
 0x113   : > { %505 = vst.msk [vmem:[%s170_s16 + $0x4] sm:$0xf] %vm503_vm1, %v605_v54  ;;  %v477_v58 = vadd.f32 %v646_v29, %v428_v55  ;;  %v431_v59 = vadd.f32 %v635_v56, %v238_v57 }
 0x115   : > { %v485_v60 = vmax.f32 %v477_v58, 0.0  ;;  %v480_v61 = vadd.f32 %v647_v31, %v431_v59 }
 0x117   : > { %v606_v62 = vpack.c.bf16 %v485_v60, %v485_v60  ;;  %v486_v63 = vmax.f32 %v480_v61, 0.0 }
 0x119   : > { %506 = vst.msk [vmem:[%s170_s16 + $0x8] sm:$0xf] %vm503_vm1, %v606_v62  ;;  %v607_v0 = vpack.c.bf16 %v486_v63, %v486_v63 }
 0x11b   : > { %507 = vst.msk [vmem:[%s170_s16 + $0xc] sm:$0xf] %vm503_vm1, %v607_v0 }
 0x11c PF: > { %s13_s12 = sadd.s32 1, %s692_s12  }
 0x11d   : > { %p10_p4 = scmp.ge.s32.totalorder %s13_s12, 8  }
 0x11f   :  { %12 = sbr.rel (!%p10_p4) target bundleno = 1 (0x1), region = 62 }

// kernel: minimonet_forward.46
= control target key start
LH: loop header
LB: loop body
LE: loop exit
PB: predicated region body
PF: predicated region fallthrough
CT: control target
= control target key end

     0   :  { %v663_v39 = vmov 0.0   ;;  %vm664_vm0 = vmmov 0   ;;  %vm492_vm1 = vcmask 259072   ;;  %s830_s1 = inlined_call_operand.vmem [shape: bf16[512,128], index: 1, kind: input, shape index: {}]   ;;  %s831_s0 = inlined_call_operand.vmem [shape: bf16[6,512], index: 0, kind: input, shape index: {}]   ;;  %s832_s3 = inlined_call_operand.vmem [shape: bf16[128,32], index: 3, kind: input, shape index: {}]   ;;  %s833_s2 = inlined_call_operand.vmem [shape: f32[1,128], index: 2, kind: input, shape index: {}]   ;;  %s834_s4 = inlined_call_operand.vmem [shape: f32[1,32], index: 4, kind: input, shape index: {}]   ;;  %s835_s5 = inlined_call_operand.vmem [shape: f32[6,32], index: 5, kind: output, shape index: {}]  }
   0x1   :  { %v619_v0 = vld [vmem:[%s830_s1 + $0x40] sm:$0xff]   ;;  %v623_v4 = vld [vmem:[%s830_s1 + $0x48] sm:$0xff]   ;;  %v627_v8 = vld [vmem:[%s830_s1 + $0x50] sm:$0xff]  }
   0x2   :  { %v620_v1 = vld [vmem:[%s830_s1 + $0xc0] sm:$0xff]   ;;  %544 = vmatprep.subr.bf16.mxu0 %v619_v0  ;;  %v624_v5 = vld [vmem:[%s830_s1 + $0xc8] sm:$0xff]   ;;  %v628_v9 = vld [vmem:[%s830_s1 + $0xd0] sm:$0xff]  }
   0x3   :  { %v621_v2 = vld [vmem:[%s830_s1] sm:$0xff]   ;;  %566 = vmatprep.subr.bf16.mxu1 %v620_v1  ;;  %v625_v6 = vld [vmem:[%s830_s1 + $0x8] sm:$0xff]   ;;  %v629_v10 = vld [vmem:[%s830_s1 + $0x10] sm:$0xff]  }
   0x4   :  { %v622_v3 = vld [vmem:[%s830_s1 + $0x80] sm:$0xff]   ;;  %545 = vmatpush3.bf16.msra.mxu0 %v621_v2  ;;  %v626_v7 = vld [vmem:[%s830_s1 + $0x88] sm:$0xff]   ;;  %v630_v11 = vld [vmem:[%s830_s1 + $0x90] sm:$0xff]  }
   0x5   :  { %567 = vmatpush3.bf16.msra.mxu1 %v622_v3  ;;  %546 = vmatprep.subr.bf16.mxu0 %v623_v4  ;;  %v631_v12 = vld [vmem:[%s830_s1 + $0x58] sm:$0xff]   ;;  %v635_v16 = vld [vmem:[%s830_s1 + $0x60] sm:$0xff]   ;;  %v639_v20 = vld [vmem:[%s830_s1 + $0x68] sm:$0xff]  }
   0x6   :  { %568 = vmatprep.subr.bf16.mxu1 %v624_v5  ;;  %v632_v13 = vld [vmem:[%s830_s1 + $0xd8] sm:$0xff]   ;;  %v636_v17 = vld [vmem:[%s830_s1 + $0xe0] sm:$0xff]   ;;  %v640_v21 = vld [vmem:[%s830_s1 + $0xe8] sm:$0xff]  }
   0x7   :  { %v633_v14 = vld [vmem:[%s830_s1 + $0x18] sm:$0xff]   ;;  %v637_v18 = vld [vmem:[%s830_s1 + $0x20] sm:$0xff]   ;;  %v641_v22 = vld [vmem:[%s830_s1 + $0x28] sm:$0xff]  }
   0x8   :  { %547 = vmatpush3.bf16.msra.mxu0 %v625_v6  ;;  %v634_v15 = vld [vmem:[%s830_s1 + $0x98] sm:$0xff]   ;;  %v638_v19 = vld [vmem:[%s830_s1 + $0xa0] sm:$0xff]   ;;  %v642_v23 = vld [vmem:[%s830_s1 + $0xa8] sm:$0xff]  }
   0x9   :  { %569 = vmatpush3.bf16.msra.mxu1 %v626_v7  ;;  %548 = vmatprep.subr.bf16.mxu0 %v627_v8  ;;  %v643_v24 = vld [vmem:[%s830_s1 + $0x70] sm:$0xff]   ;;  %v647_v28 = vld [vmem:[%s830_s1 + $0x78] sm:$0xff]   ;;  %v21_v32 = vld [vmem:[%s831_s0] sm:$0x77] }
   0xa   :  { %570 = vmatprep.subr.bf16.mxu1 %v628_v9  ;;  %v644_v25 = vld [vmem:[%s830_s1 + $0xf0] sm:$0xff]   ;;  %v648_v29 = vld [vmem:[%s830_s1 + $0xf8] sm:$0xff]   ;;  %v22_v33 = vld [vmem:[%s831_s0 + $0x8] sm:$0x77]  ;;  %v499_v34 = vcombine.low %v21_v32, %v21_v32  ;;  %v500_v35 = vcombine.high %v21_v32, %v21_v32 }
   0xb   :  { %v645_v26 = vld [vmem:[%s830_s1 + $0x30] sm:$0xff]   ;;  %v649_v30 = vld [vmem:[%s830_s1 + $0x38] sm:$0xff]   ;;  %v501_v36 = vcombine.low %v22_v33, %v22_v33  ;;  %v502_v37 = vcombine.high %v22_v33, %v22_v33  ;;  %v655_v38 = vld [vmem:[%s832_s3] sm:$0xff]  }
   0xc   :  { %549 = vmatpush3.bf16.msra.mxu0 %v629_v10  ;;  %v646_v27 = vld [vmem:[%s830_s1 + $0xb0] sm:$0xff]   ;;  %v650_v31 = vld [vmem:[%s830_s1 + $0xb8] sm:$0xff]   ;;  %332 = vmatprep.mubr.bf16.mxu0 %v500_v35  ;;  %v656_v40 = vld [vmem:[%s832_s3 + $0x8] sm:$0xff]  }
   0xd   :  { %571 = vmatpush3.bf16.msra.mxu1 %v630_v11  ;;  %550 = vmatprep.subr.bf16.mxu0 %v631_v12  ;;  %v657_v41 = vld [vmem:[%s832_s3 + $0x10] sm:$0xff]   ;;  %v658_v42 = vld [vmem:[%s832_s3 + $0x18] sm:$0xff]   ;;  %v659_v43 = vld [vmem:[%s832_s3 + $0x20] sm:$0xff]  }
   0xe   :  { %572 = vmatprep.subr.bf16.mxu1 %v632_v13  ;;  %372 = vmatprep.mubr.bf16.mxu1 %v502_v37  ;;  %v660_v44 = vld [vmem:[%s832_s3 + $0x28] sm:$0xff]   ;;  %v661_v45 = vld [vmem:[%s832_s3 + $0x30] sm:$0xff]   ;;  %v662_v46 = vld [vmem:[%s832_s3 + $0x38] sm:$0xff]  }
   0xf   :  { %v498_v49 = vld [vmem:[%s833_s2] ss:$0 sm:$0xff] }
  0x10   :  { %551 = vmatpush3.bf16.msra.mxu0 %v633_v14  ;;  %v535_v61 = vld [vmem:[%s834_s4] ss:$0 sm:$0xff] }
  0x11   :  { %573 = vmatpush3.bf16.msra.mxu1 %v634_v15  ;;  %552 = vmatprep.subr.bf16.mxu0 %v635_v16 }
  0x12   :  { %574 = vmatprep.subr.bf16.mxu1 %v636_v17 }
  0x14   :  { %553 = vmatpush3.bf16.msra.mxu0 %v637_v18 }
  0x15   :  { %575 = vmatpush3.bf16.msra.mxu1 %v638_v19  ;;  %554 = vmatprep.subr.bf16.mxu0 %v639_v20 }
  0x16   :  { %576 = vmatprep.subr.bf16.mxu1 %v640_v21 }
  0x18   :  { %555 = vmatpush3.bf16.msra.mxu0 %v641_v22 }
  0x19   :  { %577 = vmatpush3.bf16.msra.mxu1 %v642_v23  ;;  %556 = vmatprep.subr.bf16.mxu0 %v643_v24 }
  0x1a   :  { %578 = vmatprep.subr.bf16.mxu1 %v644_v25 }
  0x1c   :  { %557 = vmatpush3.bf16.msra.mxu0 %v645_v26 }
  0x1d   :  { %579 = vmatpush3.bf16.msra.mxu1 %v646_v27  ;;  %558 = vmatprep.subr.bf16.mxu0 %v647_v28 }
  0x1e   :  { %580 = vmatprep.subr.bf16.mxu1 %v648_v29 }
  0x20   :  { %559 = vmatpush3.bf16.msra.mxu0 %v649_v30 }
  0x21   :  { %581 = vmatpush3.bf16.msra.mxu1 %v650_v31  ;;  %597 = vmatprep.subr.bf16.mxu0 %v663_v39 }
  0x23   :  { %333 = vmatmul.mubr.bf16.vlgmr.msra.gmra.mrb[0].mxu0 %v499_v34 }
  0x24   :  { %373 = vmatmul.mubr.bf16.vlgmr.msra.gmra.mrb[0].mxu1 %v501_v36  ;;  %598 = vmatpush3.bf16.msra.mxu0 %v655_v38 }
  0x25   :  { %599 = vmatprep.subr.bf16.mxu0 %v663_v39  ;;  %613 = vmatprep.mubr.msk.bf16.mxu0 %vm664_vm0, %v663_v39 }
  0x28   :  { %600 = vmatpush3.bf16.msra.mxu0 %v656_v40 }
  0x29   :  { %601 = vmatprep.subr.bf16.mxu0 %v663_v39 }
  0x2c   :  { %602 = vmatpush3.bf16.msra.mxu0 %v657_v41 }
  0x2d   :  { %603 = vmatprep.subr.bf16.mxu0 %v663_v39 }
  0x30   :  { %604 = vmatpush3.bf16.msra.mxu0 %v658_v42 }
  0x31   :  { %605 = vmatprep.subr.bf16.mxu0 %v663_v39 }
  0x34   :  { %606 = vmatpush3.bf16.msra.mxu0 %v659_v43 }
  0x35   :  { %607 = vmatprep.subr.bf16.mxu0 %v663_v39 }
  0x38   :  { %608 = vmatpush3.bf16.msra.mxu0 %v660_v44 }
  0x39   :  { %609 = vmatprep.subr.bf16.mxu0 %v663_v39 }
  0x3c   :  { %610 = vmatpush3.bf16.msra.mxu0 %v661_v45 }
  0x3d   :  { %611 = vmatprep.subr.bf16.mxu0 %v663_v39 }
  0x40   :  { %612 = vmatpush3.bf16.msra.mxu0 %v662_v46 }
  0xf6   :  { %v560_v47 = vpop.f32.mrb[0].mxu0 }
  0xf7   :  { %v582_v48 = vpop.f32.mrb[0].mxu1  ;;  %v561_v50 = vpop.f32.mrb[1].mxu0 }
  0xf8   :  { %v583_v51 = vpop.f32.mrb[1].mxu1  ;;  %v562_v52 = vadd.f32 %v561_v50, %v560_v47  ;;  %v563_v54 = vpop.f32.mrb[2].mxu0 }
  0xf9   :  { %v584_v53 = vadd.f32 %v583_v51, %v582_v48  ;;  %v585_v55 = vpop.f32.mrb[2].mxu1  ;;  %v564_v56 = vpop.f32.mrb[3].mxu0 }
  0xfa   :  { %v586_v57 = vpop.f32.mrb[3].mxu1  ;;  %v335_v58 = vadd.f32 %v562_v52, %v498_v49 }
  0xfc   :  { %v375_v59 = vadd.f32 %v584_v53, %v335_v58 }
  0xfe   :  { %v397_v60 = vpack.c.bf16 %v375_v59, %v375_v59 }
 0x100   :  { %614 = vmatmul.mubr.bf16.vlgmr.msra.gmra.mrb[4].mxu0 %v397_v60 }
 0x1d3   :  { %v486_v62 = vpop.f32.mrb[4].mxu0 }
 0x1d4   :  { %v487_v63 = vadd.f32 %v535_v61, %v486_v62  ;;  %v615_v0 = vpop.f32.mrb[5].mxu0 }
 0x1d5   :  { %v489_v1 = vpop.f32.mrb[6].mxu0 }
 0x1d6   :  { %493 = vst.msk [vmem:[%s835_s5] sm:$0x3f] %vm492_vm1, %v487_v63  ;;  %v616_v2 = vpop.f32.mrb[7].mxu0 }

// kernel: minimonet_forward.47
= control target key start
LH: loop header
LB: loop body
LE: loop exit
PB: predicated region body
PF: predicated region fallthrough
CT: control target
= control target key end

     0   :  { %s1965_s12 = smov 0   ;;  %s2278_s0 = inlined_call_operand.vmem [shape: bf16[6,162,1296], index: 0, kind: input, shape index: {}]   ;;  %s2279_s1 = inlined_call_operand.vmem [shape: bf16[32,162], index: 1, kind: input, shape index: {}]   ;;  %s2280_s2 = inlined_call_operand.vmem [shape: f32[32,1], index: 2, kind: input, shape index: {}]   ;;  %s2281_s3 = inlined_call_operand.vmem [shape: bf16[6,32,1296], index: 3, kind: output, shape index: {}]  }
   0x1 LB: > { %s1547_s13 = sadd.s32 4294967295, %s1942_s12   ;;  %p1551_p0 = scmp.ge.s32.totalorder %s1942_s12, 1  ;;  %s1942_s12 = sphi %s1965_s12, %s13_s12  }
   0x2   : > { %p137_p1 = scmp.lt.s32.totalorder %s1942_s12, 7 }
   0x4   : > { %p138_p2 = pnand %p1551_p0, %p137_p1 }
   0x5   : > { %p161_p3 = scmp.lt.s32.totalorder (!%p138_p2), %s1547_s13, 5  ;;  %v1976_v0 = vld [vmem:[%s2279_s1 + $0x4] ss:$8 sps:$4 sm:$0xff] (!%p138_p2)   ;;  %vm932_vm0 = vcmask (!%p138_p2), 277504   ;;  %v1944_v1 = vmov (!%p138_p2), 0   ;;  %vm939_vm1 = vcmask (!%p138_p2), 1040384  }
   0x6   : > { %141 = sbr.rel (%p138_p2) target bundleno = 380 (0x17c), region = 32  ;;  %1680 = vmatprep.mubr.msk.bf16.mxu0 (!%p138_p2), %vm932_vm0, %v1976_v0  ;;  %1683 = vmatprep.mubr.msk.bf16.mxu1 (!%p138_p2), %vm932_vm0, %v1976_v0  ;;  %v2043_v52 = vld [vmem:[%s2279_s1] ss:$8 sps:$4 sm:$0xff] (!%p138_p2)   ;;  %v2052_v57 = vld [vmem:[%s2279_s1 + $0x14] ss:$8 sps:$4 sm:$0xff] (!%p138_p2)   ;;  %vm1472_vm2 = vcmask (!%p138_p2), 125952  }
   0x7   : > { %1757 = vset.pattern.permute.xlu0 (!%p138_p2), %v1944_v1  ;;  %1758 = vset.pattern.permute.xlu1 (!%p138_p2), %v1944_v1  ;;  %v2067_v62 = vld [vmem:[%s2279_s1 + $0x10] ss:$8 sps:$4 sm:$0xff] (!%p138_p2)  }
   0xd   : > { %s2283_s13 = smov (!%p161_p3, %s1547_s13), 5 }
   0xe   : > { %s1746_s16 = smul.u32 924, %s2283_s13 }
   0xf   : > { %s1747_s7 = smul.u32 176, %s2283_s13 }
  0x10   : > { %s1990_s19 = scalar_lea.vmem %s2278_s0, %s1746_s16 }
  0x11   : > { %v1759_v2 = vld [vmem:[%s1990_s19 + $0x4] ss:$44 sps:$4 sm:$0xff]   ;;  %v1761_v3 = vld [vmem:[%s1990_s19 + $0xc] ss:$44 sps:$4 sm:$0xff]   ;;  %v1764_v5 = vld [vmem:[%s1990_s19 + $0x8] ss:$44 sps:$4 sm:$0xff]   ;;  %s2207_s10 = scalar_lea.vmem %s2281_s3, %s1747_s7 }
  0x12   : > { %973 = vmatprep.subr.bf16.mxu0 %v1759_v2  ;;  %v1763_v4 = vld [vmem:[%s1990_s19] ss:$44 sps:$4 sm:$0xff]   ;;  %1026 = vmatprep.subr.bf16.mxu1 %v1761_v3  ;;  %v1765_v6 = vld [vmem:[%s1990_s19 + $0x5c] ss:$44 sps:$4 sm:$0xff]   ;;  %v1767_v7 = vld [vmem:[%s1990_s19 + $0x64] ss:$44 sps:$4 sm:$0xff]  }
  0x13   : > { %974 = vmatpush1.bf16.msra.mxu0 %v1763_v4  ;;  %1027 = vmatpush1.bf16.msra.mxu1 %v1764_v5  ;;  %v1769_v8 = vld [vmem:[%s1990_s19 + $0x58] ss:$44 sps:$4 sm:$0xff]   ;;  %v1770_v9 = vld [vmem:[%s1990_s19 + $0x60] ss:$44 sps:$4 sm:$0xff]   ;;  %v1773_v11 = vld [vmem:[%s1990_s19 + $0xbc] ss:$44 sps:$4 sm:$0xff]  }
  0x14   : > { %975 = vmatprep.subr.bf16.mxu0 %v1765_v6  ;;  %1028 = vmatprep.subr.bf16.mxu1 %v1767_v7  ;;  %v1771_v10 = vld [vmem:[%s1990_s19 + $0xb4] ss:$44 sps:$4 sm:$0xff]   ;;  %v1775_v12 = vld [vmem:[%s1990_s19 + $0xb0] ss:$44 sps:$4 sm:$0xff]   ;;  %v1776_v13 = vld [vmem:[%s1990_s19 + $0xb8] ss:$44 sps:$4 sm:$0xff]  }
  0x15   : > { %v1777_v14 = vld [vmem:[%s1990_s19 + $0x10c] ss:$44 sps:$4 sm:$0xff]   ;;  %v1779_v15 = vld [vmem:[%s1990_s19 + $0x114] ss:$44 sps:$4 sm:$0xff]   ;;  %v1782_v17 = vld [vmem:[%s1990_s19 + $0x110] ss:$44 sps:$4 sm:$0xff]  }
  0x16   : > { %v1781_v16 = vld [vmem:[%s1990_s19 + $0x108] ss:$44 sps:$4 sm:$0xff]   ;;  %v1783_v18 = vld [vmem:[%s1990_s19 + $0x164] ss:$44 sps:$4 sm:$0xff]   ;;  %v1785_v19 = vld [vmem:[%s1990_s19 + $0x16c] ss:$44 sps:$4 sm:$0xff]  }
  0x17   : > { %976 = vmatpush1.bf16.msra.mxu0 %v1769_v8  ;;  %1029 = vmatpush1.bf16.msra.mxu1 %v1770_v9  ;;  %v1787_v20 = vld [vmem:[%s1990_s19 + $0x160] ss:$44 sps:$4 sm:$0xff]   ;;  %v1788_v21 = vld [vmem:[%s1990_s19 + $0x168] ss:$44 sps:$4 sm:$0xff]   ;;  %v1791_v23 = vld [vmem:[%s1990_s19 + $0x1c4] ss:$44 sps:$4 sm:$0xff]  }
  0x18   : > { %977 = vmatprep.subr.bf16.mxu0 %v1771_v10  ;;  %1030 = vmatprep.subr.bf16.mxu1 %v1773_v11  ;;  %v1789_v22 = vld [vmem:[%s1990_s19 + $0x1bc] ss:$44 sps:$4 sm:$0xff]   ;;  %v1793_v24 = vld [vmem:[%s1990_s19 + $0x1b8] ss:$44 sps:$4 sm:$0xff]   ;;  %v1794_v25 = vld [vmem:[%s1990_s19 + $0x1c0] ss:$44 sps:$4 sm:$0xff]  }
  0x19   : > { %v1795_v26 = vld [vmem:[%s1990_s19 + $0x214] ss:$44 sps:$4 sm:$0xff]   ;;  %v1797_v27 = vld [vmem:[%s1990_s19 + $0x21c] ss:$44 sps:$4 sm:$0xff]   ;;  %v1800_v29 = vld [vmem:[%s1990_s19 + $0x218] ss:$44 sps:$4 sm:$0xff]  }
  0x1a   : > { %v1799_v28 = vld [vmem:[%s1990_s19 + $0x210] ss:$44 sps:$4 sm:$0xff]   ;;  %v1801_v30 = vld [vmem:[%s1990_s19 + $0x26c] ss:$44 sps:$4 sm:$0xff]   ;;  %v1803_v31 = vld [vmem:[%s1990_s19 + $0x274] ss:$44 sps:$4 sm:$0xff]  }
  0x1b   : > { %978 = vmatpush1.bf16.msra.mxu0 %v1775_v12  ;;  %1031 = vmatpush1.bf16.msra.mxu1 %v1776_v13  ;;  %v1805_v32 = vld [vmem:[%s1990_s19 + $0x268] ss:$44 sps:$4 sm:$0xff]   ;;  %v1806_v33 = vld [vmem:[%s1990_s19 + $0x270] ss:$44 sps:$4 sm:$0xff]   ;;  %v1809_v35 = vld [vmem:[%s1990_s19 + $0x2cc] ss:$44 sps:$4 sm:$0xff]  }
  0x1c   : > { %979 = vmatprep.subr.bf16.mxu0 %v1777_v14  ;;  %1032 = vmatprep.subr.bf16.mxu1 %v1779_v15  ;;  %v1807_v34 = vld [vmem:[%s1990_s19 + $0x2c4] ss:$44 sps:$4 sm:$0xff]   ;;  %v1811_v36 = vld [vmem:[%s1990_s19 + $0x2c0] ss:$44 sps:$4 sm:$0xff]   ;;  %v1812_v37 = vld [vmem:[%s1990_s19 + $0x2c8] ss:$44 sps:$4 sm:$0xff]  }
  0x1d   : > { %v1813_v38 = vld [vmem:[%s1990_s19 + $0x31c] ss:$44 sps:$4 sm:$0xff]   ;;  %v1815_v39 = vld [vmem:[%s1990_s19 + $0x324] ss:$44 sps:$4 sm:$0xff]   ;;  %v1818_v43 = vld [vmem:[%s1990_s19 + $0x320] ss:$44 sps:$4 sm:$0xff]  }
  0x1e   : > { %v292_v40 = vld [vmem:[%s1990_s19 + $0x370] sm:$0x11]  ;;  %v293_v41 = vld [vmem:[%s1990_s19 + $0x378] sm:$0x11]  ;;  %v1838_v63 = vld [vmem:[%s1990_s19 + $0xc0] ss:$44 sps:$4 sm:$0xff]  }
  0x1f   : > { %980 = vmatpush1.bf16.msra.mxu0 %v1781_v16  ;;  %1033 = vmatpush1.bf16.msra.mxu1 %v1782_v17  ;;  %v1817_v42 = vld [vmem:[%s1990_s19 + $0x318] ss:$44 sps:$4 sm:$0xff]   ;;  %v1669_v44 = vcombine.high %v292_v40, %v292_v40  ;;  %v1671_v45 = vcombine.high %v293_v41, %v293_v41  ;;  %v1668_v46 = vcombine.low %v292_v40, %v292_v40  ;;  %v1828_v48 = vld [vmem:[%s1990_s19 + $0x14] ss:$44 sps:$4 sm:$0xff]   ;;  %v1831_v51 = vld [vmem:[%s1990_s19 + $0x1c] ss:$44 sps:$4 sm:$0xff]  }
  0x20   : > { %981 = vmatprep.subr.bf16.mxu0 %v1783_v18  ;;  %1034 = vmatprep.subr.bf16.mxu1 %v1785_v19  ;;  %v1670_v47 = vcombine.low %v293_v41, %v293_v41  ;;  %v1826_v53 = vld [vmem:[%s1990_s19 + $0x10] ss:$44 sps:$4 sm:$0xff]   ;;  %v1829_v54 = vld [vmem:[%s1990_s19 + $0x18] ss:$44 sps:$4 sm:$0xff]   ;;  %v1837_v56 = vld [vmem:[%s1990_s19 + $0x74] ss:$44 sps:$4 sm:$0xff]  }
  0x21   : > { %v941_v49 = vsel %vm939_vm1, %v1668_v46, 0  ;;  %v1834_v55 = vld [vmem:[%s1990_s19 + $0x6c] ss:$44 sps:$4 sm:$0xff]   ;;  %v1832_v58 = vld [vmem:[%s1990_s19 + $0x68] ss:$44 sps:$4 sm:$0xff]  }
  0x22   : > { %v947_v50 = vsel %vm939_vm1, %v1670_v47, 0  ;;  %v1835_v59 = vld [vmem:[%s1990_s19 + $0x70] ss:$44 sps:$4 sm:$0xff]   ;;  %v1843_v61 = vld [vmem:[%s1990_s19 + $0xcc] ss:$44 sps:$4 sm:$0xff]  }
  0x23   : > { %982 = vmatpush1.bf16.msra.mxu0 %v1787_v20  ;;  %1035 = vmatpush1.bf16.msra.mxu1 %v1788_v21  ;;  %v1840_v60 = vld [vmem:[%s1990_s19 + $0xc4] ss:$44 sps:$4 sm:$0xff]   ;;  %v1841_v2 = vld [vmem:[%s1990_s19 + $0xc8] ss:$44 sps:$4 sm:$0xff]   ;;  %v1847_v6 = vld [vmem:[%s1990_s19 + $0x120] ss:$44 sps:$4 sm:$0xff]  }
  0x24   : > { %983 = vmatprep.subr.bf16.mxu0 %v1789_v22  ;;  %1036 = vmatprep.subr.bf16.mxu1 %v1791_v23  ;;  %v1846_v3 = vld [vmem:[%s1990_s19 + $0x11c] ss:$44 sps:$4 sm:$0xff]   ;;  %v1849_v4 = vld [vmem:[%s1990_s19 + $0x124] ss:$44 sps:$4 sm:$0xff]   ;;  %v1852_v7 = vld [vmem:[%s1990_s19 + $0x174] ss:$44 sps:$4 sm:$0xff]  }
  0x25   : > { %v1844_v5 = vld [vmem:[%s1990_s19 + $0x118] ss:$44 sps:$4 sm:$0xff]   ;;  %v1855_v8 = vld [vmem:[%s1990_s19 + $0x17c] ss:$44 sps:$4 sm:$0xff]   ;;  %v1861_v12 = vld [vmem:[%s1990_s19 + $0x1d4] ss:$44 sps:$4 sm:$0xff]  }
  0x26   : > { %v1850_v9 = vld [vmem:[%s1990_s19 + $0x170] ss:$44 sps:$4 sm:$0xff]   ;;  %v1853_v10 = vld [vmem:[%s1990_s19 + $0x178] ss:$44 sps:$4 sm:$0xff]   ;;  %v1856_v13 = vld [vmem:[%s1990_s19 + $0x1c8] ss:$44 sps:$4 sm:$0xff]  }
  0x27   : > { %984 = vmatpush1.bf16.msra.mxu0 %v1793_v24  ;;  %1037 = vmatpush1.bf16.msra.mxu1 %v1794_v25  ;;  %v1858_v11 = vld [vmem:[%s1990_s19 + $0x1cc] ss:$44 sps:$4 sm:$0xff]   ;;  %v1859_v14 = vld [vmem:[%s1990_s19 + $0x1d0] ss:$44 sps:$4 sm:$0xff]   ;;  %v1865_v18 = vld [vmem:[%s1990_s19 + $0x228] ss:$44 sps:$4 sm:$0xff]  }
  0x28   : > { %985 = vmatprep.subr.bf16.mxu0 %v1795_v26  ;;  %1038 = vmatprep.subr.bf16.mxu1 %v1797_v27  ;;  %v1864_v15 = vld [vmem:[%s1990_s19 + $0x224] ss:$44 sps:$4 sm:$0xff]   ;;  %v1867_v16 = vld [vmem:[%s1990_s19 + $0x22c] ss:$44 sps:$4 sm:$0xff]   ;;  %v1870_v19 = vld [vmem:[%s1990_s19 + $0x27c] ss:$44 sps:$4 sm:$0xff]  }
  0x29   : > { %v1862_v17 = vld [vmem:[%s1990_s19 + $0x220] ss:$44 sps:$4 sm:$0xff]   ;;  %v1873_v20 = vld [vmem:[%s1990_s19 + $0x284] ss:$44 sps:$4 sm:$0xff]   ;;  %v1879_v24 = vld [vmem:[%s1990_s19 + $0x2dc] ss:$44 sps:$4 sm:$0xff]  }
  0x2a   : > { %v1868_v21 = vld [vmem:[%s1990_s19 + $0x278] ss:$44 sps:$4 sm:$0xff]   ;;  %v1871_v22 = vld [vmem:[%s1990_s19 + $0x280] ss:$44 sps:$4 sm:$0xff]   ;;  %v1874_v25 = vld [vmem:[%s1990_s19 + $0x2d0] ss:$44 sps:$4 sm:$0xff]  }
  0x2b   : > { %986 = vmatpush1.bf16.msra.mxu0 %v1799_v28  ;;  %1039 = vmatpush1.bf16.msra.mxu1 %v1800_v29  ;;  %v1876_v23 = vld [vmem:[%s1990_s19 + $0x2d4] ss:$44 sps:$4 sm:$0xff]   ;;  %v1877_v26 = vld [vmem:[%s1990_s19 + $0x2d8] ss:$44 sps:$4 sm:$0xff]   ;;  %v1899_v46 = vld [vmem:[%s1990_s19 + $0x7c] ss:$44 sps:$4 sm:$0xff]  }
  0x2c   : > { %987 = vmatprep.subr.bf16.mxu0 %v1801_v30  ;;  %1040 = vmatprep.subr.bf16.mxu1 %v1803_v31  ;;  %v1885_v27 = vld [vmem:[%s1990_s19 + $0x32c] ss:$44 sps:$4 sm:$0xff]   ;;  %v1888_v28 = vld [vmem:[%s1990_s19 + $0x334] ss:$44 sps:$4 sm:$0xff]  }
  0x2d   : > { %v294_v29 = vld [vmem:[%s1990_s19 + $0x380] sm:$0x11]  ;;  %v295_v30 = vld [vmem:[%s1990_s19 + $0x388] sm:$0x11]  ;;  %v305_v40 = vld [vmem:[%s2280_s2 + $0x18] sm:$0xff] }
  0x2e   : > { %v302_v31 = vld [vmem:[%s2280_s2] sm:$0xff] }
  0x2f   : > { %988 = vmatpush1.bf16.msra.mxu0 %v1805_v32  ;;  %1041 = vmatpush1.bf16.msra.mxu1 %v1806_v33  ;;  %v304_v32 = vld [vmem:[%s2280_s2 + $0x10] sm:$0xff]  ;;  %v1897_v47 = vld [vmem:[%s1990_s19 + $0x78] ss:$44 sps:$4 sm:$0xff]  }
  0x30   : > { %989 = vmatprep.subr.bf16.mxu0 %v1807_v34  ;;  %1042 = vmatprep.subr.bf16.mxu1 %v1809_v35  ;;  %v1883_v33 = vld [vmem:[%s1990_s19 + $0x328] ss:$44 sps:$4 sm:$0xff]   ;;  %v1886_v34 = vld [vmem:[%s1990_s19 + $0x330] ss:$44 sps:$4 sm:$0xff]   ;;  %v1673_v35 = vcombine.high %v294_v29, %v294_v29 }
  0x31   : > { %308 = vperm.xlu0 %1757, %v302_v31   ;;  %318 = vperm.xlu1 %1758, %v304_v32  }
  0x33   : > { %990 = vmatpush1.bf16.msra.mxu0 %v1811_v36  ;;  %1043 = vmatpush1.bf16.msra.mxu1 %v1812_v37  ;;  %v303_v36 = vld [vmem:[%s2280_s2 + $0x8] sm:$0xff]  ;;  %v1675_v37 = vcombine.high %v295_v30, %v295_v30 }
  0x34   : > { %991 = vmatprep.subr.bf16.mxu0 %v1813_v38  ;;  %1044 = vmatprep.subr.bf16.mxu1 %v1815_v39  ;;  %v1672_v38 = vcombine.low %v294_v29, %v294_v29  ;;  %v1674_v39 = vcombine.low %v295_v30, %v295_v30 }
  0x35   : > { %313 = vperm.xlu0 %1757, %v303_v36   ;;  %323 = vperm.xlu1 %1758, %v305_v40  }
  0x36   : > { %v953_v41 = vsel %vm939_vm1, %v1672_v38, 0 }
  0x37   : > { %992 = vmatpush1.bf16.msra.mxu0 %v1817_v42  ;;  %1045 = vmatpush1.bf16.msra.mxu1 %v1818_v43  ;;  %v959_v42 = vsel %vm939_vm1, %v1674_v39, 0  ;;  %v1895_v43 = vld [vmem:[%s1990_s19 + $0x24] ss:$44 sps:$4 sm:$0xff]  }
  0x38   : > { %1679 = vmatprep.subr.msk.bf16.mxu0 %vm939_vm1, %v1669_v44  ;;  %1682 = vmatprep.subr.msk.bf16.mxu1 %vm939_vm1, %v1671_v45  ;;  %v1893_v44 = vld [vmem:[%s1990_s19 + $0x20] ss:$44 sps:$4 sm:$0xff]   ;;  %v1896_v45 = vld [vmem:[%s1990_s19 + $0x28] ss:$44 sps:$4 sm:$0xff]  }
  0x3b   : > { %994 = vmatpush1.bf16.msra.mxu0 %v941_v49  ;;  %1047 = vmatpush1.bf16.msra.mxu1 %v947_v50  ;;  %v1903_v49 = vld [vmem:[%s1990_s19 + $0xd4] ss:$44 sps:$4 sm:$0xff]   ;;  %v1901_v50 = vld [vmem:[%s1990_s19 + $0xd0] ss:$44 sps:$4 sm:$0xff]  }
  0x3c   : > { %1079 = vmatprep.subr.bf16.mxu0 %v1828_v48  ;;  %1132 = vmatprep.subr.bf16.mxu1 %v1831_v51  ;;  %v1900_v48 = vld [vmem:[%s1990_s19 + $0x80] ss:$44 sps:$4 sm:$0xff]   ;;  %v1904_v51 = vld [vmem:[%s1990_s19 + $0xd8] ss:$44 sps:$4 sm:$0xff]  }
  0x3e   : > { %1006 = vmatmul.mubr.bf16.vlgmr.msra.gmra.mrb[0].mxu0 %v2043_v52  ;;  %1059 = vmatmul.mubr.bf16.vlgmr.msra.gmra.mrb[0].mxu1 %v2043_v52 }
  0x3f   : > { %1080 = vmatpush1.bf16.msra.mxu0 %v1826_v53  ;;  %1133 = vmatpush1.bf16.msra.mxu1 %v1829_v54  ;;  %v1907_v53 = vld [vmem:[%s1990_s19 + $0x12c] ss:$44 sps:$4 sm:$0xff]   ;;  %v1905_v54 = vld [vmem:[%s1990_s19 + $0x128] ss:$44 sps:$4 sm:$0xff]  }
  0x40   : > { %1081 = vmatprep.subr.bf16.mxu0 %v1834_v55  ;;  %1134 = vmatprep.subr.bf16.mxu1 %v1837_v56  ;;  %v1908_v55 = vld [vmem:[%s1990_s19 + $0x130] ss:$44 sps:$4 sm:$0xff]  }
  0x41   : > { %1681 = vmatprep.mubr.msk.bf16.mxu0 %vm932_vm0, %v2052_v57  ;;  %1684 = vmatprep.mubr.msk.bf16.mxu1 %vm932_vm0, %v2052_v57  ;;  %v1911_v56 = vld [vmem:[%s1990_s19 + $0x184] ss:$44 sps:$4 sm:$0xff]  }
  0x43   : > { %1082 = vmatpush1.bf16.msra.mxu0 %v1832_v58  ;;  %1135 = vmatpush1.bf16.msra.mxu1 %v1835_v59  ;;  %v1909_v58 = vld [vmem:[%s1990_s19 + $0x180] ss:$44 sps:$4 sm:$0xff]   ;;  %v1912_v59 = vld [vmem:[%s1990_s19 + $0x188] ss:$44 sps:$4 sm:$0xff]  }
  0x44   : > { %1083 = vmatprep.subr.bf16.mxu0 %v1840_v60  ;;  %1136 = vmatprep.subr.bf16.mxu1 %v1843_v61  ;;  %v1915_v60 = vld [vmem:[%s1990_s19 + $0x1dc] ss:$44 sps:$4 sm:$0xff]   ;;  %v1913_v61 = vld [vmem:[%s1990_s19 + $0x1d8] ss:$44 sps:$4 sm:$0xff]  }
  0x46   : > { %1016 = vmatmul.mubr.bf16.gmra.mrb[4].mxu0 %v2067_v62  ;;  %1069 = vmatmul.mubr.bf16.gmra.mrb[4].mxu1 %v2067_v62 }
  0x47   : > { %1084 = vmatpush1.bf16.msra.mxu0 %v1838_v63  ;;  %1137 = vmatpush1.bf16.msra.mxu1 %v1841_v2  ;;  %v1916_v63 = vld [vmem:[%s1990_s19 + $0x1e0] ss:$44 sps:$4 sm:$0xff]   ;;  %v1917_v2 = vld [vmem:[%s1990_s19 + $0x230] ss:$44 sps:$4 sm:$0xff]  }
  0x48   : > { %1085 = vmatprep.subr.bf16.mxu0 %v1846_v3  ;;  %1138 = vmatprep.subr.bf16.mxu1 %v1849_v4  ;;  %v1920_v3 = vld [vmem:[%s1990_s19 + $0x238] ss:$44 sps:$4 sm:$0xff]  }
  0x49   : > { %1686 = vmatprep.mubr.msk.bf16.mxu0 %vm932_vm0, %v1976_v0  ;;  %1689 = vmatprep.mubr.msk.bf16.mxu1 %vm932_vm0, %v1976_v0  ;;  %v1923_v4 = vld [vmem:[%s1990_s19 + $0x28c] ss:$44 sps:$4 sm:$0xff]  }
  0x4b   : > { %1086 = vmatpush1.bf16.msra.mxu0 %v1844_v5  ;;  %1139 = vmatpush1.bf16.msra.mxu1 %v1847_v6  ;;  %v1921_v5 = vld [vmem:[%s1990_s19 + $0x288] ss:$44 sps:$4 sm:$0xff]   ;;  %v1924_v6 = vld [vmem:[%s1990_s19 + $0x290] ss:$44 sps:$4 sm:$0xff]  }
  0x4c   : > { %1087 = vmatprep.subr.bf16.mxu0 %v1852_v7  ;;  %1140 = vmatprep.subr.bf16.mxu1 %v1855_v8  ;;  %v1927_v7 = vld [vmem:[%s1990_s19 + $0x2e4] ss:$44 sps:$4 sm:$0xff]   ;;  %v1925_v8 = vld [vmem:[%s1990_s19 + $0x2e0] ss:$44 sps:$4 sm:$0xff]  }
  0x4f   : > { %1088 = vmatpush1.bf16.msra.mxu0 %v1850_v9  ;;  %1141 = vmatpush1.bf16.msra.mxu1 %v1853_v10  ;;  %v1928_v9 = vld [vmem:[%s1990_s19 + $0x2e8] ss:$44 sps:$4 sm:$0xff]  }
  0x50   : > { %1089 = vmatprep.subr.bf16.mxu0 %v1858_v11  ;;  %1142 = vmatprep.subr.bf16.mxu1 %v1861_v12  ;;  %v1931_v10 = vld [vmem:[%s1990_s19 + $0x33c] ss:$44 sps:$4 sm:$0xff]   ;;  %v296_v11 = vld [vmem:[%s1990_s19 + $0x390] sm:$0x11]  ;;  %v1929_v12 = vld [vmem:[%s1990_s19 + $0x338] ss:$44 sps:$4 sm:$0xff]  }
  0x53   : > { %1090 = vmatpush1.bf16.msra.mxu0 %v1856_v13  ;;  %1143 = vmatpush1.bf16.msra.mxu1 %v1859_v14  ;;  %v1932_v13 = vld [vmem:[%s1990_s19 + $0x340] ss:$44 sps:$4 sm:$0xff]   ;;  %v1677_v14 = vcombine.high %v296_v11, %v296_v11 }
  0x54   : > { %1091 = vmatprep.subr.bf16.mxu0 %v1864_v15  ;;  %1144 = vmatprep.subr.bf16.mxu1 %v1867_v16  ;;  %v1676_v15 = vcombine.low %v296_v11, %v296_v11  ;;  %v1935_v16 = vld [vmem:[%s1990_s19 + $0x398] ss:$0 sps:$4 sm:$0x11]  }
  0x57   : > { %1092 = vmatpush1.bf16.msra.mxu0 %v1862_v17  ;;  %1145 = vmatpush1.bf16.msra.mxu1 %v1865_v18  ;;  %v965_v17 = vsel %vm939_vm1, %v1676_v15, 0  ;;  %v971_v18 = vsel %vm939_vm1, %v1935_v16, 0 }
  0x58   : > { %1093 = vmatprep.subr.bf16.mxu0 %v1870_v19  ;;  %1146 = vmatprep.subr.bf16.mxu1 %v1873_v20 }
  0x5b   : > { %1094 = vmatpush1.bf16.msra.mxu0 %v1868_v21  ;;  %1147 = vmatpush1.bf16.msra.mxu1 %v1871_v22 }
  0x5c   : > { %1095 = vmatprep.subr.bf16.mxu0 %v1876_v23  ;;  %1148 = vmatprep.subr.bf16.mxu1 %v1879_v24 }
  0x5f   : > { %1096 = vmatpush1.bf16.msra.mxu0 %v1874_v25  ;;  %1149 = vmatpush1.bf16.msra.mxu1 %v1877_v26 }
  0x60   : > { %1097 = vmatprep.subr.bf16.mxu0 %v1885_v27  ;;  %1150 = vmatprep.subr.bf16.mxu1 %v1888_v28 }
  0x63   : > { %1098 = vmatpush1.bf16.msra.mxu0 %v1883_v33  ;;  %1151 = vmatpush1.bf16.msra.mxu1 %v1886_v34 }
  0x64   : > { %1685 = vmatprep.subr.msk.bf16.mxu0 %vm939_vm1, %v1673_v35  ;;  %1688 = vmatprep.subr.msk.bf16.mxu1 %vm939_vm1, %v1675_v37 }
  0x67   : > { %1100 = vmatpush1.bf16.msra.mxu0 %v953_v41  ;;  %1153 = vmatpush1.bf16.msra.mxu1 %v959_v42 }
  0x68   : > { %1185 = vmatprep.subr.bf16.mxu0 %v1895_v43  ;;  %1238 = vmatprep.subr.bf16.mxu1 %v1944_v1 }
  0x6a   : > { %1112 = vmatmul.mubr.bf16.vlgmr.msra.gmra.mrb[8].mxu0 %v2043_v52  ;;  %1165 = vmatmul.mubr.bf16.vlgmr.msra.gmra.mrb[8].mxu1 %v2043_v52 }
  0x6b   : > { %1186 = vmatpush1.bf16.msra.mxu0 %v1893_v44  ;;  %1239 = vmatpush1.bf16.msra.mxu1 %v1896_v45 }
  0x6c   : > { %1187 = vmatprep.subr.bf16.mxu0 %v1899_v46  ;;  %1240 = vmatprep.subr.bf16.mxu1 %v1944_v1 }
  0x6d   : > { %1687 = vmatprep.mubr.msk.bf16.mxu0 %vm932_vm0, %v2052_v57  ;;  %1690 = vmatprep.mubr.msk.bf16.mxu1 %vm932_vm0, %v2052_v57 }
  0x6f   : > { %1188 = vmatpush1.bf16.msra.mxu0 %v1897_v47  ;;  %1241 = vmatpush1.bf16.msra.mxu1 %v1900_v48 }
  0x70   : > { %1189 = vmatprep.subr.bf16.mxu0 %v1903_v49  ;;  %1242 = vmatprep.subr.bf16.mxu1 %v1944_v1 }
  0x72   : > { %1122 = vmatmul.mubr.bf16.gmra.mrb[12].mxu0 %v2067_v62  ;;  %1175 = vmatmul.mubr.bf16.gmra.mrb[12].mxu1 %v2067_v62 }
  0x73   : > { %1190 = vmatpush1.bf16.msra.mxu0 %v1901_v50  ;;  %1243 = vmatpush1.bf16.msra.mxu1 %v1904_v51 }
  0x74   : > { %1191 = vmatprep.subr.bf16.mxu0 %v1907_v53  ;;  %1244 = vmatprep.subr.bf16.mxu1 %v1944_v1 }
  0x75   : > { %1692 = vmatprep.mubr.msk.bf16.mxu0 %vm932_vm0, %v1976_v0  ;;  %1694 = vmatprep.mubr.msk.bf16.mxu1 %vm932_vm0, %v1976_v0  ;;  %v1919_v0 = vld [vmem:[%s1990_s19 + $0x234] ss:$44 sps:$4 sm:$0xff]  }
  0x77   : > { %1192 = vmatpush1.bf16.msra.mxu0 %v1905_v54  ;;  %1245 = vmatpush1.bf16.msra.mxu1 %v1908_v55 }
  0x78   : > { %1193 = vmatprep.subr.bf16.mxu0 %v1911_v56  ;;  %1246 = vmatprep.subr.bf16.mxu1 %v1944_v1 }
  0x7b   : > { %1194 = vmatpush1.bf16.msra.mxu0 %v1909_v58  ;;  %1247 = vmatpush1.bf16.msra.mxu1 %v1912_v59 }
  0x7c   : > { %1195 = vmatprep.subr.bf16.mxu0 %v1915_v60  ;;  %1248 = vmatprep.subr.bf16.mxu1 %v1944_v1 }
  0x7f   : > { %1196 = vmatpush1.bf16.msra.mxu0 %v1913_v61  ;;  %1249 = vmatpush1.bf16.msra.mxu1 %v1916_v63 }
  0x80   : > { %1197 = vmatprep.subr.bf16.mxu0 %v1919_v0  ;;  %1250 = vmatprep.subr.bf16.mxu1 %v1944_v1 }
  0x83   : > { %1198 = vmatpush1.bf16.msra.mxu0 %v1917_v2  ;;  %1251 = vmatpush1.bf16.msra.mxu1 %v1920_v3 }
  0x84   : > { %1199 = vmatprep.subr.bf16.mxu0 %v1923_v4  ;;  %1252 = vmatprep.subr.bf16.mxu1 %v1944_v1 }
  0x87   : > { %1200 = vmatpush1.bf16.msra.mxu0 %v1921_v5  ;;  %1253 = vmatpush1.bf16.msra.mxu1 %v1924_v6 }
  0x88   : > { %1201 = vmatprep.subr.bf16.mxu0 %v1927_v7  ;;  %1254 = vmatprep.subr.bf16.mxu1 %v1944_v1 }
  0x8b   : > { %1202 = vmatpush1.bf16.msra.mxu0 %v1925_v8  ;;  %1255 = vmatpush1.bf16.msra.mxu1 %v1928_v9 }
  0x8c   : > { %1203 = vmatprep.subr.bf16.mxu0 %v1931_v10  ;;  %1256 = vmatprep.subr.bf16.mxu1 %v1944_v1 }
  0x8f   : > { %1204 = vmatpush1.bf16.msra.mxu0 %v1929_v12  ;;  %1257 = vmatpush1.bf16.msra.mxu1 %v1932_v13 }
  0x90   : > { %1691 = vmatprep.subr.msk.bf16.mxu0 %vm939_vm1, %v1677_v14  ;;  %1258 = vmatprep.subr.bf16.mxu1 %v1944_v1 }
  0x93   : > { %1206 = vmatpush1.bf16.msra.mxu0 %v965_v17  ;;  %1259 = vmatpush1.bf16.msra.mxu1 %v971_v18 }
  0x96   : > { %1218 = vmatmul.mubr.bf16.vlgmr.msra.gmra.mrb[16].mxu0 %v2043_v52  ;;  %1271 = vmatmul.mubr.bf16.vlgmr.msra.gmra.mrb[16].mxu1 %v2043_v52 }
  0x97   : > { %1693 = vmatprep.mubr.msk.bf16.mxu0 %vm932_vm0, %v2052_v57  ;;  %1695 = vmatprep.mubr.msk.bf16.mxu1 %vm932_vm0, %v2052_v57 }
  0x9e   : > { %1228 = vmatmul.mubr.bf16.gmra.mrb[20].mxu0 %v2067_v62  ;;  %1279 = vmatmul.mubr.bf16.gmra.mrb[20].mxu1 %v2067_v62 }
  0xb0   : > { %v2189_v1 = vpop.permute.xlu0 %308  ;;  %v2193_v20 = vpop.permute.xlu1 %318 }
  0xb4   : > { %v2191_v19 = vpop.permute.xlu0 %313  ;;  %v2209_v44 = vpop.permute.xlu1 %323 }
 0x111   : > { %v1007_v21 = vpop.f32.mrb[0].mxu0  ;;  %v1060_v22 = vpop.f32.mrb[0].mxu1 }
 0x112   : > { %v1008_v52 = vadd.f32 %v1007_v21, %v2189_v1  ;;  %v1061_v23 = vadd.f32 %v1060_v22, %v2189_v1  ;;  %v1009_v24 = vpop.f32.mrb[1].mxu0  ;;  %v1062_v25 = vpop.f32.mrb[1].mxu1 }
 0x113   : > { %v1010_v57 = vadd.f32 %v1009_v24, %v2189_v1  ;;  %v1063_v26 = vadd.f32 %v1062_v25, %v2189_v1  ;;  %v1011_v62 = vpop.f32.mrb[2].mxu0  ;;  %v1064_v27 = vpop.f32.mrb[2].mxu1 }
 0x114   : > { %v1287_v28 = vmax.f32 %v1008_v52, 0.0  ;;  %v1289_v29 = vmax.f32 %v1061_v23, 0.0  ;;  %v1012_v30 = vadd.f32 %v1011_v62, %v2191_v19  ;;  %v1065_v31 = vadd.f32 %v1064_v27, %v2191_v19  ;;  %v1013_v32 = vpop.f32.mrb[3].mxu0  ;;  %v1066_v33 = vpop.f32.mrb[3].mxu1 }
 0x115   : > { %v1288_v34 = vmax.f32 %v1010_v57, 0.0  ;;  %v1290_v35 = vmax.f32 %v1063_v26, 0.0  ;;  %v1014_v36 = vadd.f32 %v1013_v32, %v2191_v19  ;;  %v1067_v37 = vadd.f32 %v1066_v33, %v2191_v19 }
 0x116   : > { %v1298_v38 = vmax.f32 %v1012_v30, 0.0  ;;  %v1300_v39 = vmax.f32 %v1065_v31, 0.0 }
 0x117   : > { %v1722_v40 = vpack.c.bf16 %v1288_v34, %v1287_v28  ;;  %v1723_v41 = vpack.c.bf16 %v1290_v35, %v1289_v29  ;;  %v1299_v42 = vmax.f32 %v1014_v36, 0.0  ;;  %v1301_v43 = vmax.f32 %v1067_v37, 0.0 }
 0x119   : > { %1467 = vst [vmem:[%s2207_s10] sm:$0xff] %v1722_v40  ;;  %1468 = vst [vmem:[%s2207_s10 + $0x8] sm:$0xff] %v1723_v41  ;;  %v1728_v45 = vpack.c.bf16 %v1299_v42, %v1298_v38  ;;  %v1729_v46 = vpack.c.bf16 %v1301_v43, %v1300_v39  ;;  %v1017_v47 = vpop.f32.mrb[4].mxu0  ;;  %v1070_v48 = vpop.f32.mrb[4].mxu1 }
 0x11a   : > { %v1018_v49 = vadd.f32 %v1017_v47, %v2193_v20  ;;  %v1019_v50 = vpop.f32.mrb[5].mxu0  ;;  %v1071_v51 = vadd.f32 %v1070_v48, %v2193_v20  ;;  %v1072_v53 = vpop.f32.mrb[5].mxu1 }
 0x11b   : > { %1474 = vst [vmem:[%s2207_s10 + $0x2c] sm:$0xff] %v1728_v45  ;;  %1475 = vst [vmem:[%s2207_s10 + $0x34] sm:$0xff] %v1729_v46  ;;  %v1020_v54 = vadd.f32 %v1019_v50, %v2193_v20  ;;  %v1021_v55 = vpop.f32.mrb[6].mxu0  ;;  %v1073_v56 = vadd.f32 %v1072_v53, %v2193_v20  ;;  %v1074_v58 = vpop.f32.mrb[6].mxu1 }
 0x11c   : > { %v1309_v59 = vmax.f32 %v1018_v49, 0.0  ;;  %v1311_v60 = vmax.f32 %v1071_v51, 0.0  ;;  %v1022_v61 = vadd.f32 %v1021_v55, %v2209_v44  ;;  %v1023_v63 = vpop.f32.mrb[7].mxu0  ;;  %v1075_v0 = vadd.f32 %v1074_v58, %v2209_v44  ;;  %v1076_v2 = vpop.f32.mrb[7].mxu1 }
 0x11d   : > { %v1310_v3 = vmax.f32 %v1020_v54, 0.0  ;;  %v1312_v4 = vmax.f32 %v1073_v56, 0.0  ;;  %v1024_v5 = vadd.f32 %v1023_v63, %v2209_v44  ;;  %v1077_v6 = vadd.f32 %v1076_v2, %v2209_v44 }
 0x11e   : > { %v1320_v7 = vmax.f32 %v1022_v61, 0.0  ;;  %v1322_v8 = vmax.f32 %v1075_v0, 0.0 }
 0x11f   : > { %v1734_v9 = vpack.c.bf16 %v1310_v3, %v1309_v59  ;;  %v1735_v10 = vpack.c.bf16 %v1312_v4, %v1311_v60  ;;  %v1321_v11 = vmax.f32 %v1024_v5, 0.0  ;;  %v1323_v12 = vmax.f32 %v1077_v6, 0.0 }
 0x121   : > { %1480 = vst [vmem:[%s2207_s10 + $0x58] sm:$0xff] %v1734_v9  ;;  %1481 = vst [vmem:[%s2207_s10 + $0x60] sm:$0xff] %v1735_v10  ;;  %v1740_v13 = vpack.c.bf16 %v1321_v11, %v1320_v7  ;;  %v1741_v14 = vpack.c.bf16 %v1323_v12, %v1322_v8 }
 0x123   : > { %1486 = vst [vmem:[%s2207_s10 + $0x84] sm:$0xff] %v1740_v13  ;;  %1487 = vst [vmem:[%s2207_s10 + $0x8c] sm:$0xff] %v1741_v14 }
 0x13d   : > { %v1113_v15 = vpop.f32.mrb[8].mxu0  ;;  %v1166_v16 = vpop.f32.mrb[8].mxu1 }
 0x13e   : > { %v1114_v17 = vadd.f32 %v1113_v15, %v2189_v1  ;;  %v1167_v18 = vadd.f32 %v1166_v16, %v2189_v1  ;;  %v1115_v21 = vpop.f32.mrb[9].mxu0  ;;  %v1168_v22 = vpop.f32.mrb[9].mxu1 }
 0x13f   : > { %v1116_v52 = vadd.f32 %v1115_v21, %v2189_v1  ;;  %v1169_v23 = vadd.f32 %v1168_v22, %v2189_v1  ;;  %v1117_v24 = vpop.f32.mrb[10].mxu0  ;;  %v1170_v25 = vpop.f32.mrb[10].mxu1 }
 0x140   : > { %v1291_v57 = vmax.f32 %v1114_v17, 0.0  ;;  %v1293_v26 = vmax.f32 %v1167_v18, 0.0  ;;  %v1118_v62 = vadd.f32 %v1117_v24, %v2191_v19  ;;  %v1171_v27 = vadd.f32 %v1170_v25, %v2191_v19  ;;  %v1119_v28 = vpop.f32.mrb[11].mxu0  ;;  %v1172_v29 = vpop.f32.mrb[11].mxu1 }
 0x141   : > { %v1292_v30 = vmax.f32 %v1116_v52, 0.0  ;;  %v1294_v31 = vmax.f32 %v1169_v23, 0.0  ;;  %v1120_v32 = vadd.f32 %v1119_v28, %v2191_v19  ;;  %v1173_v33 = vadd.f32 %v1172_v29, %v2191_v19 }
 0x142   : > { %v1302_v34 = vmax.f32 %v1118_v62, 0.0  ;;  %v1304_v35 = vmax.f32 %v1171_v27, 0.0 }
 0x143   : > { %v1724_v36 = vpack.c.bf16 %v1292_v30, %v1291_v57  ;;  %v1725_v37 = vpack.c.bf16 %v1294_v31, %v1293_v26  ;;  %v1303_v38 = vmax.f32 %v1120_v32, 0.0  ;;  %v1305_v39 = vmax.f32 %v1173_v33, 0.0 }
 0x145   : > { %1469 = vst [vmem:[%s2207_s10 + $0x10] sm:$0xff] %v1724_v36  ;;  %1470 = vst [vmem:[%s2207_s10 + $0x18] sm:$0xff] %v1725_v37  ;;  %v1730_v40 = vpack.c.bf16 %v1303_v38, %v1302_v34  ;;  %v1731_v41 = vpack.c.bf16 %v1305_v39, %v1304_v35  ;;  %v1123_v42 = vpop.f32.mrb[12].mxu0  ;;  %v1176_v43 = vpop.f32.mrb[12].mxu1 }
 0x146   : > { %v1124_v45 = vadd.f32 %v1123_v42, %v2193_v20  ;;  %v1125_v46 = vpop.f32.mrb[13].mxu0  ;;  %v1177_v47 = vadd.f32 %v1176_v43, %v2193_v20  ;;  %v1178_v48 = vpop.f32.mrb[13].mxu1 }
 0x147   : > { %1476 = vst [vmem:[%s2207_s10 + $0x3c] sm:$0xff] %v1730_v40  ;;  %1477 = vst [vmem:[%s2207_s10 + $0x44] sm:$0xff] %v1731_v41  ;;  %v1126_v49 = vadd.f32 %v1125_v46, %v2193_v20  ;;  %v1127_v50 = vpop.f32.mrb[14].mxu0  ;;  %v1179_v51 = vadd.f32 %v1178_v48, %v2193_v20  ;;  %v1180_v53 = vpop.f32.mrb[14].mxu1 }
 0x148   : > { %v1313_v54 = vmax.f32 %v1124_v45, 0.0  ;;  %v1315_v55 = vmax.f32 %v1177_v47, 0.0  ;;  %v1128_v56 = vadd.f32 %v1127_v50, %v2209_v44  ;;  %v1129_v58 = vpop.f32.mrb[15].mxu0  ;;  %v1181_v59 = vadd.f32 %v1180_v53, %v2209_v44  ;;  %v1182_v60 = vpop.f32.mrb[15].mxu1 }
 0x149   : > { %v1314_v61 = vmax.f32 %v1126_v49, 0.0  ;;  %v1316_v63 = vmax.f32 %v1179_v51, 0.0  ;;  %v1130_v0 = vadd.f32 %v1129_v58, %v2209_v44  ;;  %v1183_v2 = vadd.f32 %v1182_v60, %v2209_v44 }
 0x14a   : > { %v1324_v3 = vmax.f32 %v1128_v56, 0.0  ;;  %v1326_v4 = vmax.f32 %v1181_v59, 0.0 }
 0x14b   : > { %v1736_v5 = vpack.c.bf16 %v1314_v61, %v1313_v54  ;;  %v1737_v6 = vpack.c.bf16 %v1316_v63, %v1315_v55  ;;  %v1325_v7 = vmax.f32 %v1130_v0, 0.0  ;;  %v1327_v8 = vmax.f32 %v1183_v2, 0.0 }
 0x14d   : > { %1482 = vst [vmem:[%s2207_s10 + $0x68] sm:$0xff] %v1736_v5  ;;  %1483 = vst [vmem:[%s2207_s10 + $0x70] sm:$0xff] %v1737_v6  ;;  %v1742_v9 = vpack.c.bf16 %v1325_v7, %v1324_v3  ;;  %v1743_v10 = vpack.c.bf16 %v1327_v8, %v1326_v4 }
 0x14f   : > { %1488 = vst [vmem:[%s2207_s10 + $0x94] sm:$0xff] %v1742_v9  ;;  %1489 = vst [vmem:[%s2207_s10 + $0x9c] sm:$0xff] %v1743_v10 }
 0x169   : > { %v1219_v11 = vpop.f32.mrb[16].mxu0  ;;  %v1272_v12 = vpop.f32.mrb[16].mxu1 }
 0x16a   : > { %v1220_v13 = vadd.f32 %v1219_v11, %v2189_v1  ;;  %v1273_v14 = vadd.f32 %v1272_v12, %v2189_v1  ;;  %v1221_v15 = vpop.f32.mrb[17].mxu0  ;;  %v1274_v16 = vpop.f32.mrb[17].mxu1 }
 0x16b   : > { %v1222_v17 = vadd.f32 %v1221_v15, %v2189_v1  ;;  %v1223_v18 = vpop.f32.mrb[18].mxu0  ;;  %v1275_v21 = vpop.f32.mrb[18].mxu1 }
 0x16c   : > { %v1295_v22 = vmax.f32 %v1220_v13, 0.0  ;;  %v1297_v52 = vmax.f32 %v1273_v14, 0.0  ;;  %v1224_v23 = vadd.f32 %v1223_v18, %v2191_v19  ;;  %v1276_v24 = vadd.f32 %v1275_v21, %v2191_v19  ;;  %v1225_v25 = vpop.f32.mrb[19].mxu0  ;;  %v1277_v57 = vpop.f32.mrb[19].mxu1 }
 0x16d   : > { %v1296_v26 = vmax.f32 %v1222_v17, 0.0  ;;  %v1226_v62 = vadd.f32 %v1225_v25, %v2191_v19 }
 0x16e   : > { %v1727_v27 = vpack.c.bf16 %v1297_v52, %v1297_v52  ;;  %v1306_v1 = vmax.f32 %v1224_v23, 0.0  ;;  %v1308_v28 = vmax.f32 %v1276_v24, 0.0 }
 0x16f   : > { %v1726_v29 = vpack.c.bf16 %v1296_v26, %v1295_v22  ;;  %v1307_v30 = vmax.f32 %v1226_v62, 0.0 }
 0x170   : > { %1473 = vst.msk [vmem:[%s2207_s10 + $0x28] sm:$0xf] %vm1472_vm2, %v1727_v27  ;;  %v1733_v31 = vpack.c.bf16 %v1308_v28, %v1308_v28 }
 0x171   : > { %1471 = vst [vmem:[%s2207_s10 + $0x20] sm:$0xff] %v1726_v29  ;;  %v1732_v32 = vpack.c.bf16 %v1307_v30, %v1306_v1  ;;  %v1229_v33 = vpop.f32.mrb[20].mxu0  ;;  %v1280_v34 = vpop.f32.mrb[20].mxu1 }
 0x172   : > { %1479 = vst.msk [vmem:[%s2207_s10 + $0x54] sm:$0xf] %vm1472_vm2, %v1733_v31  ;;  %v1230_v35 = vadd.f32 %v1229_v33, %v2193_v20  ;;  %v1281_v36 = vadd.f32 %v1280_v34, %v2193_v20  ;;  %v1231_v19 = vpop.f32.mrb[21].mxu0  ;;  %v1282_v37 = vpop.f32.mrb[21].mxu1 }
 0x173   : > { %1478 = vst [vmem:[%s2207_s10 + $0x4c] sm:$0xff] %v1732_v32  ;;  %v1232_v38 = vadd.f32 %v1231_v19, %v2193_v20  ;;  %v1233_v39 = vpop.f32.mrb[22].mxu0  ;;  %v1283_v40 = vpop.f32.mrb[22].mxu1 }
 0x174   : > { %v1317_v41 = vmax.f32 %v1230_v35, 0.0  ;;  %v1319_v42 = vmax.f32 %v1281_v36, 0.0  ;;  %v1234_v43 = vadd.f32 %v1233_v39, %v2209_v44  ;;  %v1284_v45 = vadd.f32 %v1283_v40, %v2209_v44  ;;  %v1235_v46 = vpop.f32.mrb[23].mxu0  ;;  %v1285_v47 = vpop.f32.mrb[23].mxu1 }
 0x175   : > { %v1318_v48 = vmax.f32 %v1232_v38, 0.0  ;;  %v1236_v49 = vadd.f32 %v1235_v46, %v2209_v44 }
 0x176   : > { %v1739_v50 = vpack.c.bf16 %v1319_v42, %v1319_v42  ;;  %v1328_v51 = vmax.f32 %v1234_v43, 0.0  ;;  %v1330_v20 = vmax.f32 %v1284_v45, 0.0 }
 0x177   : > { %v1738_v53 = vpack.c.bf16 %v1318_v48, %v1317_v41  ;;  %v1329_v54 = vmax.f32 %v1236_v49, 0.0 }
 0x178   : > { %1485 = vst.msk [vmem:[%s2207_s10 + $0x80] sm:$0xf] %vm1472_vm2, %v1739_v50  ;;  %v1745_v55 = vpack.c.bf16 %v1330_v20, %v1330_v20 }
 0x179   : > { %1484 = vst [vmem:[%s2207_s10 + $0x78] sm:$0xff] %v1738_v53  ;;  %v1744_v56 = vpack.c.bf16 %v1329_v54, %v1328_v51 }
 0x17a   : > { %1491 = vst.msk [vmem:[%s2207_s10 + $0xac] sm:$0xf] %vm1472_vm2, %v1745_v55 }
 0x17b   : > { %1490 = vst [vmem:[%s2207_s10 + $0xa4] sm:$0xff] %v1744_v56 }
 0x17c PF: > { %s13_s12 = sadd.s32 1, %s1942_s12  }
 0x17d   : > { %p10_p4 = scmp.ge.s32.totalorder %s13_s12, 8  }
 0x17f   :  { %12 = sbr.rel (!%p10_p4) target bundleno = 1 (0x1), region = 62 }

// kernel: minimonet_forward.48
= control target key start
LH: loop header
LB: loop body
LE: loop exit
PB: predicated region body
PF: predicated region fallthrough
CT: control target
= control target key end

     0   :  { %s2736_s12 = smov 0   ;;  %s3157_s0 = inlined_call_operand.vmem [shape: bf16[6,288,1156], index: 0, kind: input, shape index: {}]   ;;  %s3158_s1 = inlined_call_operand.vmem [shape: bf16[32,288], index: 1, kind: input, shape index: {}]   ;;  %s3159_s2 = inlined_call_operand.vmem [shape: f32[32,1], index: 2, kind: input, shape index: {}]   ;;  %s3160_s3 = inlined_call_operand.vmem [shape: bf16[6,32,1156], index: 3, kind: output, shape index: {}]  }
   0x1 LB: > { %s2089_s13 = sadd.s32 4294967295, %s2713_s12   ;;  %p2093_p0 = scmp.ge.s32.totalorder %s2713_s12, 1  ;;  %s2713_s12 = sphi %s2736_s12, %s13_s12  }
   0x2   : > { %p137_p1 = scmp.lt.s32.totalorder %s2713_s12, 7 }
   0x4   : > { %p138_p2 = pnand %p2093_p0, %p137_p1 }
   0x5   : > { %p161_p3 = scmp.lt.s32.totalorder (!%p138_p2), %s2089_s13, 5  ;;  %v2715_v0 = vmov (!%p138_p2), 0   ;;  %v2752_v1 = vld [vmem:[%s3158_s1 + $0x4] ss:$12 sps:$4 sm:$0xff] (!%p138_p2)   ;;  %v2773_v11 = vld [vmem:[%s3158_s1 + $0x8] ss:$12 sps:$4 sm:$0xff] (!%p138_p2)  }
   0x6   : > { %141 = sbr.rel (%p138_p2) target bundleno = 449 (0x1c1), region = 32  ;;  %1406 = vmatprep.mubr.bf16.mxu0 (!%p138_p2), %v2715_v0  ;;  %2425 = vset.pattern.permute.xlu0 (!%p138_p2), %v2715_v0  ;;  %vm1314_vm0 = vcmask (!%p138_p2), 261120   ;;  %v2790_v21 = vld [vmem:[%s3158_s1 + $0x20] ss:$12 sps:$4 sm:$0xff] (!%p138_p2)   ;;  %vm2015_vm1 = vcmask (!%p138_p2), 1043456   ;;  %vm2016_vm2 = vcmask (!%p138_p2), 31748  }
   0x7   : > { %2426 = vset.pattern.permute.xlu1 (!%p138_p2), %v2715_v0  ;;  %1353 = vmatprep.mubr.bf16.mxu1 (!%p138_p2), %v2752_v1  ;;  %vm3130_vm3 = vmor (!%p138_p2), %vm2016_vm2, %vm2015_vm1 }
   0xd   : > { %s3164_s13 = smov (!%p161_p3, %s2089_s13), 5 }
   0xe   : > { %s2414_s16 = smul.u32 1440, %s3164_s13 }
   0xf   : > { %s2415_s17 = smul.u32 160, %s3164_s13 }
  0x10   : > { %s2759_s19 = scalar_lea.vmem %s3157_s0, %s2414_s16 }
  0x11   : > { %v2427_v2 = vld [vmem:[%s2759_s19 + $0x4] ss:$40 sps:$4 sm:$0xff]   ;;  %v2431_v4 = vld [vmem:[%s2759_s19] ss:$40 sps:$4 sm:$0xff]   ;;  %v2433_v6 = vld [vmem:[%s2759_s19 + $0x54] ss:$40 sps:$4 sm:$0xff]   ;;  %s3060_s20 = scalar_lea.vmem %s3160_s3, %s2415_s17 }
  0x12   : > { %v2429_v3 = vld [vmem:[%s2759_s19 + $0x504] ss:$40 sps:$4 sm:$0xff]   ;;  %1321 = vmatprep.subr.bf16.mxu1 %v2427_v2  ;;  %v2432_v5 = vld [vmem:[%s2759_s19 + $0x500] ss:$40 sps:$4 sm:$0xff]   ;;  %v2435_v7 = vld [vmem:[%s2759_s19 + $0x554] ss:$40 sps:$4 sm:$0xff]  }
  0x13   : > { %1374 = vmatprep.subr.bf16.mxu0 %v2429_v3  ;;  %1322 = vmatpush1.bf16.msra.mxu1 %v2431_v4  ;;  %v2437_v8 = vld [vmem:[%s2759_s19 + $0x50] ss:$40 sps:$4 sm:$0xff]   ;;  %v2439_v10 = vld [vmem:[%s2759_s19 + $0xa4] ss:$40 sps:$4 sm:$0xff]   ;;  %v2445_v14 = vld [vmem:[%s2759_s19 + $0xa0] ss:$40 sps:$4 sm:$0xff]  }
  0x14   : > { %1375 = vmatpush1.bf16.msra.mxu0 %v2432_v5  ;;  %1323 = vmatprep.subr.bf16.mxu1 %v2433_v6  ;;  %v2438_v9 = vld [vmem:[%s2759_s19 + $0x550] ss:$40 sps:$4 sm:$0xff]   ;;  %v2444_v13 = vld [vmem:[%s2759_s19 + $0x50c] ss:$40 sps:$4 sm:$0xff]   ;;  %v2454_v17 = vld [vmem:[%s2759_s19 + $0x55c] ss:$40 sps:$4 sm:$0xff]  }
  0x15   : > { %1376 = vmatprep.subr.bf16.mxu0 %v2435_v7  ;;  %v2442_v12 = vld [vmem:[%s2759_s19 + $0x508] ss:$40 sps:$4 sm:$0xff]   ;;  %v2446_v15 = vld [vmem:[%s2759_s19 + $0xf4] ss:$40 sps:$4 sm:$0xff]   ;;  %v2452_v18 = vld [vmem:[%s2759_s19 + $0x558] ss:$40 sps:$4 sm:$0xff]  }
  0x16   : > { %v2448_v16 = vld [vmem:[%s2759_s19 + $0xf0] ss:$40 sps:$4 sm:$0xff]   ;;  %v2449_v19 = vld [vmem:[%s2759_s19 + $0x144] ss:$40 sps:$4 sm:$0xff]   ;;  %v2461_v20 = vld [vmem:[%s2759_s19 + $0x14] ss:$40 sps:$4 sm:$0xff]  }
  0x17   : > { %1324 = vmatpush1.bf16.msra.mxu1 %v2437_v8  ;;  %v2455_v22 = vld [vmem:[%s2759_s19 + $0x140] ss:$40 sps:$4 sm:$0xff]   ;;  %v2456_v23 = vld [vmem:[%s2759_s19 + $0x194] ss:$40 sps:$4 sm:$0xff]   ;;  %v2458_v24 = vld [vmem:[%s2759_s19 + $0x190] ss:$40 sps:$4 sm:$0xff]  }
  0x18   : > { %1377 = vmatpush1.bf16.msra.mxu0 %v2438_v9  ;;  %1325 = vmatprep.subr.bf16.mxu1 %v2439_v10  ;;  %v2462_v25 = vld [vmem:[%s2759_s19 + $0x1e4] ss:$40 sps:$4 sm:$0xff]   ;;  %v2459_v26 = vld [vmem:[%s2759_s19 + $0x10] ss:$40 sps:$4 sm:$0xff]   ;;  %v2464_v27 = vld [vmem:[%s2759_s19 + $0x1e0] ss:$40 sps:$4 sm:$0xff]  }
  0x19   : > { %1480 = vmatprep.subr.bf16.mxu0 %v2444_v13  ;;  %v2467_v28 = vld [vmem:[%s2759_s19 + $0x64] ss:$40 sps:$4 sm:$0xff]   ;;  %v2468_v29 = vld [vmem:[%s2759_s19 + $0x234] ss:$40 sps:$4 sm:$0xff]   ;;  %v2465_v30 = vld [vmem:[%s2759_s19 + $0x60] ss:$40 sps:$4 sm:$0xff]  }
  0x1a   : > { %v2470_v31 = vld [vmem:[%s2759_s19 + $0x230] ss:$40 sps:$4 sm:$0xff]   ;;  %v2473_v32 = vld [vmem:[%s2759_s19 + $0xb4] ss:$40 sps:$4 sm:$0xff]   ;;  %v2474_v33 = vld [vmem:[%s2759_s19 + $0x284] ss:$40 sps:$4 sm:$0xff]  }
  0x1b   : > { %2282 = vmatmul.mubr.msk.bf16.vlgmr.msra.gmra.mrb[0].mxu0 %vm1314_vm0, %v2773_v11  ;;  %1326 = vmatpush1.bf16.msra.mxu1 %v2445_v14  ;;  %v2471_v34 = vld [vmem:[%s2759_s19 + $0xb0] ss:$40 sps:$4 sm:$0xff]   ;;  %v2476_v35 = vld [vmem:[%s2759_s19 + $0x280] ss:$40 sps:$4 sm:$0xff]   ;;  %v2479_v36 = vld [vmem:[%s2759_s19 + $0x104] ss:$40 sps:$4 sm:$0xff]  }
  0x1c   : > { %1481 = vmatpush1.bf16.msra.mxu0 %v2442_v12  ;;  %1327 = vmatprep.subr.bf16.mxu1 %v2446_v15  ;;  %v2480_v37 = vld [vmem:[%s2759_s19 + $0x2d4] ss:$40 sps:$4 sm:$0xff]   ;;  %v2477_v38 = vld [vmem:[%s2759_s19 + $0x100] ss:$40 sps:$4 sm:$0xff]   ;;  %v2482_v39 = vld [vmem:[%s2759_s19 + $0x2d0] ss:$40 sps:$4 sm:$0xff]  }
  0x1d   : > { %1416 = vmatprep.mubr.bf16.mxu0 %v2715_v0  ;;  %1482 = vmatprep.subr.bf16.mxu0 %v2454_v17  ;;  %v2485_v40 = vld [vmem:[%s2759_s19 + $0x154] ss:$40 sps:$4 sm:$0xff]   ;;  %v2486_v41 = vld [vmem:[%s2759_s19 + $0x324] ss:$40 sps:$4 sm:$0xff]   ;;  %v2483_v42 = vld [vmem:[%s2759_s19 + $0x150] ss:$40 sps:$4 sm:$0xff]  }
  0x1e   : > { %v2488_v43 = vld [vmem:[%s2759_s19 + $0x320] ss:$40 sps:$4 sm:$0xff]   ;;  %v2491_v44 = vld [vmem:[%s2759_s19 + $0x1a4] ss:$40 sps:$4 sm:$0xff]   ;;  %v2492_v45 = vld [vmem:[%s2759_s19 + $0x374] ss:$40 sps:$4 sm:$0xff]  }
  0x1f   : > { %1328 = vmatpush1.bf16.msra.mxu1 %v2448_v16  ;;  %v2489_v46 = vld [vmem:[%s2759_s19 + $0x1a0] ss:$40 sps:$4 sm:$0xff]   ;;  %v2494_v47 = vld [vmem:[%s2759_s19 + $0x370] ss:$40 sps:$4 sm:$0xff]   ;;  %v2497_v48 = vld [vmem:[%s2759_s19 + $0x1f4] ss:$40 sps:$4 sm:$0xff]  }
  0x20   : > { %1483 = vmatpush1.bf16.msra.mxu0 %v2452_v18  ;;  %1329 = vmatprep.subr.bf16.mxu1 %v2449_v19  ;;  %v2498_v49 = vld [vmem:[%s2759_s19 + $0x3c4] ss:$40 sps:$4 sm:$0xff]   ;;  %v2495_v50 = vld [vmem:[%s2759_s19 + $0x1f0] ss:$40 sps:$4 sm:$0xff]   ;;  %v2500_v51 = vld [vmem:[%s2759_s19 + $0x3c0] ss:$40 sps:$4 sm:$0xff]  }
  0x21   : > { %1533 = vmatprep.subr.bf16.mxu0 %v2461_v20  ;;  %v2503_v52 = vld [vmem:[%s2759_s19 + $0x244] ss:$40 sps:$4 sm:$0xff]   ;;  %v2504_v53 = vld [vmem:[%s2759_s19 + $0x414] ss:$40 sps:$4 sm:$0xff]   ;;  %v2501_v54 = vld [vmem:[%s2759_s19 + $0x240] ss:$40 sps:$4 sm:$0xff]  }
  0x22   : > { %v2506_v55 = vld [vmem:[%s2759_s19 + $0x410] ss:$40 sps:$4 sm:$0xff]   ;;  %v2509_v56 = vld [vmem:[%s2759_s19 + $0x294] ss:$40 sps:$4 sm:$0xff]   ;;  %v2510_v57 = vld [vmem:[%s2759_s19 + $0x464] ss:$40 sps:$4 sm:$0xff]  }
  0x23   : > { %2283 = vmatmul.mubr.msk.bf16.gmra.mrb[4].mxu0 %vm1314_vm0, %v2790_v21  ;;  %1330 = vmatpush1.bf16.msra.mxu1 %v2455_v22  ;;  %v2507_v58 = vld [vmem:[%s2759_s19 + $0x290] ss:$40 sps:$4 sm:$0xff]   ;;  %v2512_v59 = vld [vmem:[%s2759_s19 + $0x460] ss:$40 sps:$4 sm:$0xff]   ;;  %v2515_v60 = vld [vmem:[%s2759_s19 + $0x2e4] ss:$40 sps:$4 sm:$0xff]  }
  0x24   : > { %1512 = vmatprep.mubr.bf16.mxu0 %v2715_v0  ;;  %1331 = vmatprep.subr.bf16.mxu1 %v2456_v23  ;;  %v2516_v61 = vld [vmem:[%s2759_s19 + $0x4b4] ss:$40 sps:$4 sm:$0xff]   ;;  %v2513_v62 = vld [vmem:[%s2759_s19 + $0x2e0] ss:$40 sps:$4 sm:$0xff]   ;;  %v2518_v63 = vld [vmem:[%s2759_s19 + $0x4b0] ss:$40 sps:$4 sm:$0xff]  }
  0x25   : > { %v2523_v2 = vld [vmem:[%s2759_s19 + $0x334] ss:$40 sps:$4 sm:$0xff]   ;;  %v2848_v4 = vld [vmem:[%s3158_s1] ss:$12 sps:$4 sm:$0xff]   ;;  %v2521_v5 = vld [vmem:[%s2759_s19 + $0x330] ss:$40 sps:$4 sm:$0xff]  }
  0x26   : > { %v2527_v3 = vld [vmem:[%s2759_s19 + $0xc] ss:$40 sps:$4 sm:$0xff]   ;;  %v2525_v6 = vld [vmem:[%s2759_s19 + $0x8] ss:$40 sps:$4 sm:$0xff]   ;;  %v2533_v8 = vld [vmem:[%s2759_s19 + $0x5c] ss:$40 sps:$4 sm:$0xff]  }
  0x27   : > { %1332 = vmatpush1.bf16.msra.mxu1 %v2458_v24  ;;  %v2530_v7 = vld [vmem:[%s2759_s19 + $0x384] ss:$40 sps:$4 sm:$0xff]   ;;  %v2857_v9 = vld [vmem:[%s3158_s1 + $0x1c] ss:$12 sps:$4 sm:$0xff]   ;;  %v2531_v12 = vld [vmem:[%s2759_s19 + $0x58] ss:$40 sps:$4 sm:$0xff]  }
  0x28   : > { %1333 = vmatprep.subr.bf16.mxu1 %v2462_v25  ;;  %v2528_v10 = vld [vmem:[%s2759_s19 + $0x380] ss:$40 sps:$4 sm:$0xff]   ;;  %v2538_v13 = vld [vmem:[%s2759_s19 + $0x3d4] ss:$40 sps:$4 sm:$0xff]   ;;  %v2868_v15 = vld [vmem:[%s3158_s1 + $0x18] ss:$12 sps:$4 sm:$0xff]  }
  0x29   : > { %v2542_v14 = vld [vmem:[%s2759_s19 + $0xac] ss:$40 sps:$4 sm:$0xff]   ;;  %v2536_v16 = vld [vmem:[%s2759_s19 + $0x3d0] ss:$40 sps:$4 sm:$0xff]   ;;  %v2548_v19 = vld [vmem:[%s2759_s19 + $0xfc] ss:$40 sps:$4 sm:$0xff]  }
  0x2a   : > { %v2540_v17 = vld [vmem:[%s2759_s19 + $0xa8] ss:$40 sps:$4 sm:$0xff]   ;;  %v2545_v18 = vld [vmem:[%s2759_s19 + $0x424] ss:$40 sps:$4 sm:$0xff]   ;;  %v2546_v22 = vld [vmem:[%s2759_s19 + $0xf8] ss:$40 sps:$4 sm:$0xff]  }
  0x2b   : > { %2284 = vmatmul.mubr.msk.bf16.vlgmr.msra.gmra.mrb[8].mxu0 %vm1314_vm0, %v2773_v11  ;;  %1334 = vmatpush1.bf16.msra.mxu1 %v2464_v27  ;;  %v2543_v20 = vld [vmem:[%s2759_s19 + $0x420] ss:$40 sps:$4 sm:$0xff]   ;;  %v2551_v23 = vld [vmem:[%s2759_s19 + $0x474] ss:$40 sps:$4 sm:$0xff]   ;;  %v2549_v25 = vld [vmem:[%s2759_s19 + $0x470] ss:$40 sps:$4 sm:$0xff]  }
  0x2c   : > { %1534 = vmatpush1.bf16.msra.mxu0 %v2459_v26  ;;  %1335 = vmatprep.subr.bf16.mxu1 %v2468_v29  ;;  %v2554_v24 = vld [vmem:[%s2759_s19 + $0x14c] ss:$40 sps:$4 sm:$0xff]   ;;  %v2552_v26 = vld [vmem:[%s2759_s19 + $0x148] ss:$40 sps:$4 sm:$0xff]  }
  0x2d   : > { %1535 = vmatprep.subr.bf16.mxu0 %v2467_v28  ;;  %1522 = vmatprep.mubr.bf16.mxu0 %v2715_v0  ;;  %v2557_v27 = vld [vmem:[%s2759_s19 + $0x4c4] ss:$40 sps:$4 sm:$0xff]   ;;  %v2555_v29 = vld [vmem:[%s2759_s19 + $0x4c0] ss:$40 sps:$4 sm:$0xff]  }
  0x2e   : > { %v2560_v28 = vld [vmem:[%s2759_s19 + $0x19c] ss:$40 sps:$4 sm:$0xff]  }
  0x2f   : > { %1336 = vmatpush1.bf16.msra.mxu1 %v2470_v31  ;;  %v2563_v31 = vld [vmem:[%s2759_s19 + $0x514] ss:$40 sps:$4 sm:$0xff]  }
  0x30   : > { %1536 = vmatpush1.bf16.msra.mxu0 %v2465_v30  ;;  %1337 = vmatprep.subr.bf16.mxu1 %v2474_v33  ;;  %v2558_v30 = vld [vmem:[%s2759_s19 + $0x198] ss:$40 sps:$4 sm:$0xff]  }
  0x31   : > { %1537 = vmatprep.subr.bf16.mxu0 %v2473_v32  ;;  %v2566_v32 = vld [vmem:[%s2759_s19 + $0x1ec] ss:$40 sps:$4 sm:$0xff]   ;;  %v2561_v33 = vld [vmem:[%s2759_s19 + $0x510] ss:$40 sps:$4 sm:$0xff]  }
  0x33   : > { %2285 = vmatmul.mubr.msk.bf16.gmra.mrb[12].mxu0 %vm1314_vm0, %v2790_v21  ;;  %1338 = vmatpush1.bf16.msra.mxu1 %v2476_v35  ;;  %v2569_v35 = vld [vmem:[%s2759_s19 + $0x23c] ss:$40 sps:$4 sm:$0xff]  }
  0x34   : > { %1538 = vmatpush1.bf16.msra.mxu0 %v2471_v34  ;;  %1339 = vmatprep.subr.bf16.mxu1 %v2480_v37  ;;  %v2564_v34 = vld [vmem:[%s2759_s19 + $0x1e8] ss:$40 sps:$4 sm:$0xff]   ;;  %v360_v37 = vld [vmem:[%s3159_s2] sm:$0xff] }
  0x35   : > { %1539 = vmatprep.subr.bf16.mxu0 %v2479_v36  ;;  %1565 = vmatprep.mubr.bf16.mxu0 %v2752_v1  ;;  %v2572_v36 = vld [vmem:[%s2759_s19 + $0x564] ss:$40 sps:$4 sm:$0xff]  }
  0x36   : > { %366 = vperm.xlu0 %2425, %v360_v37   ;;  %v2651_v37 = vld [vmem:[%s2759_s19 + $0x2f0] ss:$40 sps:$4 sm:$0xff]  }
  0x37   : > { %1340 = vmatpush1.bf16.msra.mxu1 %v2482_v39  ;;  %v2570_v39 = vld [vmem:[%s2759_s19 + $0x560] ss:$40 sps:$4 sm:$0xff]  }
  0x38   : > { %1540 = vmatpush1.bf16.msra.mxu0 %v2477_v38  ;;  %1341 = vmatprep.subr.bf16.mxu1 %v2486_v41  ;;  %v2567_v38 = vld [vmem:[%s2759_s19 + $0x238] ss:$40 sps:$4 sm:$0xff]   ;;  %v2581_v41 = vld [vmem:[%s2759_s19 + $0x51c] ss:$40 sps:$4 sm:$0xff]  }
  0x39   : > { %1541 = vmatprep.subr.bf16.mxu0 %v2485_v40  ;;  %v2575_v40 = vld [vmem:[%s2759_s19 + $0x28c] ss:$40 sps:$4 sm:$0xff]  }
  0x3b   : > { %1342 = vmatpush1.bf16.msra.mxu1 %v2488_v43  ;;  %v2573_v43 = vld [vmem:[%s2759_s19 + $0x288] ss:$40 sps:$4 sm:$0xff]  }
  0x3c   : > { %1542 = vmatpush1.bf16.msra.mxu0 %v2483_v42  ;;  %1343 = vmatprep.subr.bf16.mxu1 %v2492_v45  ;;  %v361_v42 = vld [vmem:[%s3159_s2 + $0x8] sm:$0xff]  ;;  %v2578_v45 = vld [vmem:[%s2759_s19 + $0x2dc] ss:$40 sps:$4 sm:$0xff]  }
  0x3d   : > { %1543 = vmatprep.subr.bf16.mxu0 %v2491_v44  ;;  %371 = vperm.xlu0 %2425, %v361_v42   ;;  %v362_v44 = vld [vmem:[%s3159_s2 + $0x10] sm:$0xff]  ;;  %v2660_v42 = vld [vmem:[%s2759_s19 + $0x298] ss:$40 sps:$4 sm:$0xff]  }
  0x3e   : > { %376 = vperm.xlu1 %2426, %v362_v44   ;;  %v2668_v44 = vld [vmem:[%s2759_s19 + $0x2ec] ss:$40 sps:$4 sm:$0xff]  }
  0x3f   : > { %1344 = vmatpush1.bf16.msra.mxu1 %v2494_v47  ;;  %v2576_v47 = vld [vmem:[%s2759_s19 + $0x2d8] ss:$40 sps:$4 sm:$0xff]  }
  0x40   : > { %1544 = vmatpush1.bf16.msra.mxu0 %v2489_v46  ;;  %1345 = vmatprep.subr.bf16.mxu1 %v2498_v49  ;;  %v363_v46 = vld [vmem:[%s3159_s2 + $0x18] sm:$0xff] }
  0x41   : > { %1545 = vmatprep.subr.bf16.mxu0 %v2497_v48  ;;  %v2584_v48 = vld [vmem:[%s2759_s19 + $0x32c] ss:$40 sps:$4 sm:$0xff]   ;;  %v2579_v49 = vld [vmem:[%s2759_s19 + $0x518] ss:$40 sps:$4 sm:$0xff]  }
  0x42   : > { %381 = vperm.xlu1 %2426, %v363_v46   ;;  %v2666_v46 = vld [vmem:[%s2759_s19 + $0x2e8] ss:$40 sps:$4 sm:$0xff]  }
  0x43   : > { %1346 = vmatpush1.bf16.msra.mxu1 %v2500_v51  ;;  %v2587_v51 = vld [vmem:[%s2759_s19 + $0x37c] ss:$40 sps:$4 sm:$0xff]  }
  0x44   : > { %1546 = vmatpush1.bf16.msra.mxu0 %v2495_v50  ;;  %1347 = vmatprep.subr.bf16.mxu1 %v2504_v53  ;;  %v2582_v50 = vld [vmem:[%s2759_s19 + $0x328] ss:$40 sps:$4 sm:$0xff]   ;;  %v2585_v53 = vld [vmem:[%s2759_s19 + $0x378] ss:$40 sps:$4 sm:$0xff]  }
  0x45   : > { %1547 = vmatprep.subr.bf16.mxu0 %v2503_v52  ;;  %v2590_v52 = vld [vmem:[%s2759_s19 + $0x56c] ss:$40 sps:$4 sm:$0xff]  }
  0x47   : > { %1348 = vmatpush1.bf16.msra.mxu1 %v2506_v55  ;;  %v2593_v55 = vld [vmem:[%s2759_s19 + $0x3cc] ss:$40 sps:$4 sm:$0xff]  }
  0x48   : > { %1548 = vmatpush1.bf16.msra.mxu0 %v2501_v54  ;;  %1349 = vmatprep.subr.bf16.mxu1 %v2510_v57  ;;  %v2588_v54 = vld [vmem:[%s2759_s19 + $0x568] ss:$40 sps:$4 sm:$0xff]  }
  0x49   : > { %1549 = vmatprep.subr.bf16.mxu0 %v2509_v56  ;;  %v2599_v56 = vld [vmem:[%s2759_s19 + $0x24] ss:$40 sps:$4 sm:$0xff]   ;;  %v2591_v57 = vld [vmem:[%s2759_s19 + $0x3c8] ss:$40 sps:$4 sm:$0xff]  }
  0x4b   : > { %1350 = vmatpush1.bf16.msra.mxu1 %v2512_v59  ;;  %v2594_v59 = vld [vmem:[%s2759_s19 + $0x418] ss:$40 sps:$4 sm:$0xff]  }
  0x4c   : > { %1550 = vmatpush1.bf16.msra.mxu0 %v2507_v58  ;;  %1351 = vmatprep.subr.bf16.mxu1 %v2516_v61  ;;  %v2596_v58 = vld [vmem:[%s2759_s19 + $0x41c] ss:$40 sps:$4 sm:$0xff]   ;;  %v2597_v61 = vld [vmem:[%s2759_s19 + $0x20] ss:$40 sps:$4 sm:$0xff]  }
  0x4d   : > { %1551 = vmatprep.subr.bf16.mxu0 %v2515_v60  ;;  %v2602_v60 = vld [vmem:[%s2759_s19 + $0x46c] ss:$40 sps:$4 sm:$0xff]  }
  0x4f   : > { %1352 = vmatpush1.bf16.msra.mxu1 %v2518_v63  ;;  %v2605_v63 = vld [vmem:[%s2759_s19 + $0x74] ss:$40 sps:$4 sm:$0xff]  }
  0x50   : > { %1552 = vmatpush1.bf16.msra.mxu0 %v2513_v62  ;;  %1427 = vmatprep.subr.bf16.mxu1 %v2527_v3  ;;  %v2600_v62 = vld [vmem:[%s2759_s19 + $0x468] ss:$40 sps:$4 sm:$0xff]  }
  0x51   : > { %1553 = vmatprep.subr.bf16.mxu0 %v2523_v2  ;;  %v2608_v2 = vld [vmem:[%s2759_s19 + $0x4bc] ss:$40 sps:$4 sm:$0xff]   ;;  %v2603_v3 = vld [vmem:[%s2759_s19 + $0x70] ss:$40 sps:$4 sm:$0xff]  }
  0x52   : > { %1354 = vmatmul.mubr.bf16.vlgmr.msra.gmra.mrb[0].mxu1 %v2848_v4 }
  0x53   : > { %1428 = vmatpush1.bf16.msra.mxu1 %v2525_v6  ;;  %1363 = vmatprep.mubr.bf16.mxu1 %v2857_v9  ;;  %v2611_v6 = vld [vmem:[%s2759_s19 + $0xc4] ss:$40 sps:$4 sm:$0xff]  }
  0x54   : > { %1554 = vmatpush1.bf16.msra.mxu0 %v2521_v5  ;;  %1429 = vmatprep.subr.bf16.mxu1 %v2533_v8  ;;  %v2606_v5 = vld [vmem:[%s2759_s19 + $0x4b8] ss:$40 sps:$4 sm:$0xff]  }
  0x55   : > { %1555 = vmatprep.subr.bf16.mxu0 %v2530_v7  ;;  %v2614_v7 = vld [vmem:[%s2759_s19 + $0x1c] ss:$40 sps:$4 sm:$0xff]   ;;  %v2609_v8 = vld [vmem:[%s2759_s19 + $0xc0] ss:$40 sps:$4 sm:$0xff]  }
  0x57   : > { %1430 = vmatpush1.bf16.msra.mxu1 %v2531_v12  ;;  %v2620_v12 = vld [vmem:[%s2759_s19 + $0x6c] ss:$40 sps:$4 sm:$0xff]  }
  0x58   : > { %1556 = vmatpush1.bf16.msra.mxu0 %v2528_v10  ;;  %1431 = vmatprep.subr.bf16.mxu1 %v2542_v14  ;;  %v2617_v10 = vld [vmem:[%s2759_s19 + $0x114] ss:$40 sps:$4 sm:$0xff]   ;;  %v2618_v14 = vld [vmem:[%s2759_s19 + $0x68] ss:$40 sps:$4 sm:$0xff]  }
  0x59   : > { %1557 = vmatprep.subr.bf16.mxu0 %v2538_v13  ;;  %v2615_v13 = vld [vmem:[%s2759_s19 + $0x110] ss:$40 sps:$4 sm:$0xff]  }
  0x5a   : > { %1364 = vmatmul.mubr.bf16.gmra.mrb[4].mxu1 %v2868_v15 }
  0x5b   : > { %1432 = vmatpush1.bf16.msra.mxu1 %v2540_v17  ;;  %1459 = vmatprep.mubr.bf16.mxu1 %v2752_v1  ;;  %v2626_v17 = vld [vmem:[%s2759_s19 + $0xbc] ss:$40 sps:$4 sm:$0xff]  }
  0x5c   : > { %1558 = vmatpush1.bf16.msra.mxu0 %v2536_v16  ;;  %1433 = vmatprep.subr.bf16.mxu1 %v2548_v19  ;;  %v2623_v16 = vld [vmem:[%s2759_s19 + $0x164] ss:$40 sps:$4 sm:$0xff]   ;;  %v2629_v19 = vld [vmem:[%s2759_s19 + $0x1b4] ss:$40 sps:$4 sm:$0xff]  }
  0x5d   : > { %1559 = vmatprep.subr.bf16.mxu0 %v2545_v18  ;;  %v2624_v18 = vld [vmem:[%s2759_s19 + $0xb8] ss:$40 sps:$4 sm:$0xff]  }
  0x5f   : > { %1434 = vmatpush1.bf16.msra.mxu1 %v2546_v22  ;;  %v2627_v22 = vld [vmem:[%s2759_s19 + $0x1b0] ss:$40 sps:$4 sm:$0xff]  }
  0x60   : > { %1560 = vmatpush1.bf16.msra.mxu0 %v2543_v20  ;;  %1435 = vmatprep.subr.bf16.mxu1 %v2554_v24  ;;  %v2632_v20 = vld [vmem:[%s2759_s19 + $0x10c] ss:$40 sps:$4 sm:$0xff]  }
  0x61   : > { %1561 = vmatprep.subr.bf16.mxu0 %v2551_v23  ;;  %v2630_v23 = vld [vmem:[%s2759_s19 + $0x108] ss:$40 sps:$4 sm:$0xff]   ;;  %v2635_v24 = vld [vmem:[%s2759_s19 + $0x204] ss:$40 sps:$4 sm:$0xff]  }
  0x63   : > { %1436 = vmatpush1.bf16.msra.mxu1 %v2552_v26  ;;  %v2633_v26 = vld [vmem:[%s2759_s19 + $0x200] ss:$40 sps:$4 sm:$0xff]  }
  0x64   : > { %1562 = vmatpush1.bf16.msra.mxu0 %v2549_v25  ;;  %1437 = vmatprep.subr.bf16.mxu1 %v2560_v28  ;;  %v2638_v25 = vld [vmem:[%s2759_s19 + $0x15c] ss:$40 sps:$4 sm:$0xff]  }
  0x65   : > { %1563 = vmatprep.subr.bf16.mxu0 %v2557_v27  ;;  %v2636_v27 = vld [vmem:[%s2759_s19 + $0x158] ss:$40 sps:$4 sm:$0xff]   ;;  %v2641_v28 = vld [vmem:[%s2759_s19 + $0x254] ss:$40 sps:$4 sm:$0xff]  }
  0x67   : > { %1438 = vmatpush1.bf16.msra.mxu1 %v2558_v30  ;;  %v2639_v30 = vld [vmem:[%s2759_s19 + $0x250] ss:$40 sps:$4 sm:$0xff]  }
  0x68   : > { %1564 = vmatpush1.bf16.msra.mxu0 %v2555_v29  ;;  %1439 = vmatprep.subr.bf16.mxu1 %v2566_v32  ;;  %v2644_v29 = vld [vmem:[%s2759_s19 + $0x1ac] ss:$40 sps:$4 sm:$0xff]   ;;  %v2650_v32 = vld [vmem:[%s2759_s19 + $0x1fc] ss:$40 sps:$4 sm:$0xff]  }
  0x69   : > { %1586 = vmatprep.subr.bf16.mxu0 %v2563_v31  ;;  %v2642_v31 = vld [vmem:[%s2759_s19 + $0x1a8] ss:$40 sps:$4 sm:$0xff]  }
  0x6b   : > { %1566 = vmatmul.mubr.bf16.vlgmr.msra.gmra.mrb[16].mxu0 %v2848_v4  ;;  %1440 = vmatpush1.bf16.msra.mxu1 %v2564_v34  ;;  %v2648_v34 = vld [vmem:[%s2759_s19 + $0x1f8] ss:$40 sps:$4 sm:$0xff]  }
  0x6c   : > { %1587 = vmatpush1.bf16.msra.mxu0 %v2561_v33  ;;  %1441 = vmatprep.subr.bf16.mxu1 %v2569_v35  ;;  %v2645_v33 = vld [vmem:[%s2759_s19 + $0x2a0] ss:$40 sps:$4 sm:$0xff]   ;;  %v2653_v35 = vld [vmem:[%s2759_s19 + $0x2f4] ss:$40 sps:$4 sm:$0xff]  }
  0x6d   : > { %1575 = vmatprep.mubr.bf16.mxu0 %v2857_v9  ;;  %1588 = vmatprep.subr.bf16.mxu0 %v2572_v36  ;;  %v2656_v36 = vld [vmem:[%s2759_s19 + $0x24c] ss:$40 sps:$4 sm:$0xff]  }
  0x6f   : > { %1442 = vmatpush1.bf16.msra.mxu1 %v2567_v38  ;;  %v2654_v38 = vld [vmem:[%s2759_s19 + $0x248] ss:$40 sps:$4 sm:$0xff]  }
  0x70   : > { %1589 = vmatpush1.bf16.msra.mxu0 %v2570_v39  ;;  %1443 = vmatprep.subr.bf16.mxu1 %v2575_v40  ;;  %v2659_v39 = vld [vmem:[%s2759_s19 + $0x344] ss:$40 sps:$4 sm:$0xff]  }
  0x71   : > { %1692 = vmatprep.subr.bf16.mxu0 %v2581_v41  ;;  %v2662_v40 = vld [vmem:[%s2759_s19 + $0x29c] ss:$40 sps:$4 sm:$0xff]   ;;  %v2657_v41 = vld [vmem:[%s2759_s19 + $0x340] ss:$40 sps:$4 sm:$0xff]  }
  0x73   : > { %1576 = vmatmul.mubr.bf16.gmra.mrb[20].mxu0 %v2868_v15  ;;  %1444 = vmatpush1.bf16.msra.mxu1 %v2573_v43  ;;  %v2665_v43 = vld [vmem:[%s2759_s19 + $0x394] ss:$40 sps:$4 sm:$0xff]  }
  0x74   : > { %1618 = vmatprep.mubr.bf16.mxu0 %v2715_v0  ;;  %1445 = vmatprep.subr.bf16.mxu1 %v2578_v45  ;;  %v2663_v45 = vld [vmem:[%s2759_s19 + $0x390] ss:$40 sps:$4 sm:$0xff]  }
  0x77   : > { %1446 = vmatpush1.bf16.msra.mxu1 %v2576_v47  ;;  %v2671_v47 = vld [vmem:[%s2759_s19 + $0x3e4] ss:$40 sps:$4 sm:$0xff]  }
  0x78   : > { %1447 = vmatprep.subr.bf16.mxu1 %v2584_v48  ;;  %v2674_v48 = vld [vmem:[%s2759_s19 + $0x33c] ss:$40 sps:$4 sm:$0xff]  }
  0x7b   : > { %2286 = vmatmul.mubr.msk.bf16.vlgmr.msra.gmra.mrb[16].mxu0 %vm1314_vm0, %v2773_v11  ;;  %1448 = vmatpush1.bf16.msra.mxu1 %v2582_v50  ;;  %v2672_v50 = vld [vmem:[%s2759_s19 + $0x338] ss:$40 sps:$4 sm:$0xff]  }
  0x7c   : > { %1693 = vmatpush1.bf16.msra.mxu0 %v2579_v49  ;;  %1449 = vmatprep.subr.bf16.mxu1 %v2587_v51  ;;  %v2669_v49 = vld [vmem:[%s2759_s19 + $0x3e0] ss:$40 sps:$4 sm:$0xff]   ;;  %v2677_v51 = vld [vmem:[%s2759_s19 + $0x434] ss:$40 sps:$4 sm:$0xff]  }
  0x7d   : > { %1628 = vmatprep.mubr.bf16.mxu0 %v2715_v0  ;;  %1694 = vmatprep.subr.bf16.mxu0 %v2590_v52  ;;  %v2680_v52 = vld [vmem:[%s2759_s19 + $0x38c] ss:$40 sps:$4 sm:$0xff]  }
  0x7f   : > { %1450 = vmatpush1.bf16.msra.mxu1 %v2585_v53  ;;  %v2675_v53 = vld [vmem:[%s2759_s19 + $0x430] ss:$40 sps:$4 sm:$0xff]  }
  0x80   : > { %1695 = vmatpush1.bf16.msra.mxu0 %v2588_v54  ;;  %1451 = vmatprep.subr.bf16.mxu1 %v2593_v55  ;;  %v2678_v54 = vld [vmem:[%s2759_s19 + $0x388] ss:$40 sps:$4 sm:$0xff]   ;;  %v2683_v55 = vld [vmem:[%s2759_s19 + $0x484] ss:$40 sps:$4 sm:$0xff]  }
  0x81   : > { %1745 = vmatprep.subr.bf16.mxu0 %v2599_v56  ;;  %v2686_v56 = vld [vmem:[%s2759_s19 + $0x3dc] ss:$40 sps:$4 sm:$0xff]  }
  0x83   : > { %2287 = vmatmul.mubr.msk.bf16.gmra.mrb[20].mxu0 %vm1314_vm0, %v2790_v21  ;;  %1452 = vmatpush1.bf16.msra.mxu1 %v2591_v57  ;;  %v2681_v57 = vld [vmem:[%s2759_s19 + $0x480] ss:$40 sps:$4 sm:$0xff]  }
  0x84   : > { %1724 = vmatprep.mubr.bf16.mxu0 %v2715_v0  ;;  %1453 = vmatprep.subr.bf16.mxu1 %v2596_v58  ;;  %v2684_v58 = vld [vmem:[%s2759_s19 + $0x3d8] ss:$40 sps:$4 sm:$0xff]  }
  0x87   : > { %1454 = vmatpush1.bf16.msra.mxu1 %v2594_v59  ;;  %v2689_v59 = vld [vmem:[%s2759_s19 + $0x4d4] ss:$40 sps:$4 sm:$0xff]  }
  0x88   : > { %1455 = vmatprep.subr.bf16.mxu1 %v2602_v60  ;;  %v2692_v60 = vld [vmem:[%s2759_s19 + $0x42c] ss:$40 sps:$4 sm:$0xff]  }
  0x8b   : > { %2288 = vmatmul.mubr.msk.bf16.vlgmr.msra.gmra.mrb[24].mxu0 %vm1314_vm0, %v2773_v11  ;;  %1456 = vmatpush1.bf16.msra.mxu1 %v2600_v62  ;;  %v2612_v11 = vld [vmem:[%s2759_s19 + $0x18] ss:$40 sps:$4 sm:$0xff]   ;;  %v2690_v62 = vld [vmem:[%s2759_s19 + $0x428] ss:$40 sps:$4 sm:$0xff]  }
  0x8c   : > { %1746 = vmatpush1.bf16.msra.mxu0 %v2597_v61  ;;  %1457 = vmatprep.subr.bf16.mxu1 %v2608_v2  ;;  %v2687_v61 = vld [vmem:[%s2759_s19 + $0x4d0] ss:$40 sps:$4 sm:$0xff]   ;;  %v2698_v2 = vld [vmem:[%s2759_s19 + $0x47c] ss:$40 sps:$4 sm:$0xff]  }
  0x8d   : > { %1747 = vmatprep.subr.bf16.mxu0 %v2605_v63  ;;  %1734 = vmatprep.mubr.bf16.mxu0 %v2715_v0  ;;  %v2695_v63 = vld [vmem:[%s2759_s19 + $0x524] ss:$40 sps:$4 sm:$0xff]  }
  0x8f   : > { %1458 = vmatpush1.bf16.msra.mxu1 %v2606_v5  ;;  %v2696_v5 = vld [vmem:[%s2759_s19 + $0x478] ss:$40 sps:$4 sm:$0xff]  }
  0x90   : > { %1748 = vmatpush1.bf16.msra.mxu0 %v2603_v3  ;;  %1639 = vmatprep.subr.bf16.mxu1 %v2614_v7  ;;  %v2693_v3 = vld [vmem:[%s2759_s19 + $0x520] ss:$40 sps:$4 sm:$0xff]   ;;  %v2704_v7 = vld [vmem:[%s2759_s19 + $0x574] ss:$40 sps:$4 sm:$0xff]  }
  0x91   : > { %1749 = vmatprep.subr.bf16.mxu0 %v2611_v6  ;;  %v2701_v6 = vld [vmem:[%s2759_s19 + $0x4cc] ss:$40 sps:$4 sm:$0xff]  }
  0x92   : > { %1460 = vmatmul.mubr.bf16.vlgmr.msra.gmra.mrb[8].mxu1 %v2848_v4 }
  0x93   : > { %2289 = vmatmul.mubr.msk.bf16.gmra.mrb[28].mxu0 %vm1314_vm0, %v2790_v21  ;;  %1640 = vmatpush1.bf16.msra.mxu1 %v2612_v11  ;;  %v2621_v21 = vld [vmem:[%s2759_s19 + $0x160] ss:$40 sps:$4 sm:$0xff]   ;;  %v2702_v11 = vld [vmem:[%s2759_s19 + $0x570] ss:$40 sps:$4 sm:$0xff]  }
  0x94   : > { %1750 = vmatpush1.bf16.msra.mxu0 %v2609_v8  ;;  %1641 = vmatprep.subr.bf16.mxu1 %v2620_v12  ;;  %v2699_v8 = vld [vmem:[%s2759_s19 + $0x4c8] ss:$40 sps:$4 sm:$0xff]   ;;  %v2706_v12 = vld [vmem:[%s3158_s1 + $0x20] ss:$12 sps:$4 sm:$0xff]  }
  0x95   : > { %1751 = vmatprep.subr.bf16.mxu0 %v2617_v10  ;;  %1469 = vmatprep.mubr.bf16.mxu1 %v2857_v9  ;;  %v2705_v10 = vld [vmem:[%s3158_s1 + $0x8] ss:$12 sps:$4 sm:$0xff]  }
  0x96   : > { %1777 = vmatprep.mubr.bf16.mxu0 %v2752_v1 }
  0x97   : > { %1642 = vmatpush1.bf16.msra.mxu1 %v2618_v14 }
  0x98   : > { %1752 = vmatpush1.bf16.msra.mxu0 %v2615_v13  ;;  %1643 = vmatprep.subr.bf16.mxu1 %v2626_v17 }
  0x99   : > { %1753 = vmatprep.subr.bf16.mxu0 %v2623_v16 }
  0x9a   : > { %1470 = vmatmul.mubr.bf16.gmra.mrb[12].mxu1 %v2868_v15 }
  0x9b   : > { %1644 = vmatpush1.bf16.msra.mxu1 %v2624_v18  ;;  %1671 = vmatprep.mubr.bf16.mxu1 %v2752_v1  ;;  %v2647_v1 = vld [vmem:[%s2759_s19 + $0x2a4] ss:$40 sps:$4 sm:$0xff]  }
  0x9c   : > { %1754 = vmatpush1.bf16.msra.mxu0 %v2621_v21  ;;  %1645 = vmatprep.subr.bf16.mxu1 %v2632_v20 }
  0x9d   : > { %1755 = vmatprep.subr.bf16.mxu0 %v2629_v19 }
  0x9f   : > { %1646 = vmatpush1.bf16.msra.mxu1 %v2630_v23 }
  0xa0   : > { %1756 = vmatpush1.bf16.msra.mxu0 %v2627_v22  ;;  %1647 = vmatprep.subr.bf16.mxu1 %v2638_v25 }
  0xa1   : > { %1757 = vmatprep.subr.bf16.mxu0 %v2635_v24 }
  0xa3   : > { %1648 = vmatpush1.bf16.msra.mxu1 %v2636_v27 }
  0xa4   : > { %1758 = vmatpush1.bf16.msra.mxu0 %v2633_v26  ;;  %1649 = vmatprep.subr.bf16.mxu1 %v2644_v29 }
  0xa5   : > { %1759 = vmatprep.subr.bf16.mxu0 %v2641_v28 }
  0xa7   : > { %1650 = vmatpush1.bf16.msra.mxu1 %v2642_v31 }
  0xa8   : > { %1760 = vmatpush1.bf16.msra.mxu0 %v2639_v30  ;;  %1651 = vmatprep.subr.bf16.mxu1 %v2650_v32 }
  0xa9   : > { %1761 = vmatprep.subr.bf16.mxu0 %v2647_v1 }
  0xab   : > { %1652 = vmatpush1.bf16.msra.mxu1 %v2648_v34 }
  0xac   : > { %1762 = vmatpush1.bf16.msra.mxu0 %v2645_v33  ;;  %1653 = vmatprep.subr.bf16.mxu1 %v2656_v36 }
  0xad   : > { %1763 = vmatprep.subr.bf16.mxu0 %v2653_v35 }
  0xaf   : > { %1654 = vmatpush1.bf16.msra.mxu1 %v2654_v38 }
  0xb0   : > { %1764 = vmatpush1.bf16.msra.mxu0 %v2651_v37  ;;  %1655 = vmatprep.subr.bf16.mxu1 %v2662_v40 }
  0xb1   : > { %1765 = vmatprep.subr.bf16.mxu0 %v2659_v39 }
  0xb3   : > { %1656 = vmatpush1.bf16.msra.mxu1 %v2660_v42 }
  0xb4   : > { %1766 = vmatpush1.bf16.msra.mxu0 %v2657_v41  ;;  %1657 = vmatprep.subr.bf16.mxu1 %v2668_v44 }
  0xb5   : > { %1767 = vmatprep.subr.bf16.mxu0 %v2665_v43  ;;  %v3046_v26 = vpop.permute.xlu0 %366 }
  0xb7   : > { %1658 = vmatpush1.bf16.msra.mxu1 %v2666_v46 }
  0xb8   : > { %1768 = vmatpush1.bf16.msra.mxu0 %v2663_v45  ;;  %1659 = vmatprep.subr.bf16.mxu1 %v2674_v48 }
  0xb9   : > { %1769 = vmatprep.subr.bf16.mxu0 %v2671_v47 }
  0xbb   : > { %1660 = vmatpush1.bf16.msra.mxu1 %v2672_v50 }
  0xbc   : > { %1770 = vmatpush1.bf16.msra.mxu0 %v2669_v49  ;;  %1661 = vmatprep.subr.bf16.mxu1 %v2680_v52  ;;  %v3048_v28 = vpop.permute.xlu0 %371 }
  0xbd   : > { %1771 = vmatprep.subr.bf16.mxu0 %v2677_v51  ;;  %v3052_v32 = vpop.permute.xlu1 %376 }
  0xbf   : > { %1662 = vmatpush1.bf16.msra.mxu1 %v2678_v54 }
  0xc0   : > { %1772 = vmatpush1.bf16.msra.mxu0 %v2675_v53  ;;  %1663 = vmatprep.subr.bf16.mxu1 %v2686_v56 }
  0xc1   : > { %1773 = vmatprep.subr.bf16.mxu0 %v2683_v55  ;;  %v3062_v46 = vpop.permute.xlu1 %381 }
  0xc3   : > { %1664 = vmatpush1.bf16.msra.mxu1 %v2684_v58 }
  0xc4   : > { %1774 = vmatpush1.bf16.msra.mxu0 %v2681_v57  ;;  %1665 = vmatprep.subr.bf16.mxu1 %v2692_v60 }
  0xc5   : > { %1775 = vmatprep.subr.bf16.mxu0 %v2689_v59 }
  0xc7   : > { %1666 = vmatpush1.bf16.msra.mxu1 %v2690_v62 }
  0xc8   : > { %1776 = vmatpush1.bf16.msra.mxu0 %v2687_v61  ;;  %1667 = vmatprep.subr.bf16.mxu1 %v2698_v2 }
  0xc9   : > { %1798 = vmatprep.subr.bf16.mxu0 %v2695_v63 }
  0xcb   : > { %1778 = vmatmul.mubr.bf16.vlgmr.msra.gmra.mrb[32].mxu0 %v2848_v4  ;;  %1668 = vmatpush1.bf16.msra.mxu1 %v2696_v5 }
  0xcc   : > { %1799 = vmatpush1.bf16.msra.mxu0 %v2693_v3  ;;  %1669 = vmatprep.subr.bf16.mxu1 %v2701_v6 }
  0xcd   : > { %1787 = vmatprep.mubr.bf16.mxu0 %v2857_v9  ;;  %1800 = vmatprep.subr.bf16.mxu0 %v2704_v7 }
  0xcf   : > { %1670 = vmatpush1.bf16.msra.mxu1 %v2699_v8 }
  0xd0   : > { %1801 = vmatpush1.bf16.msra.mxu0 %v2702_v11 }
  0xd2   : > { %1672 = vmatmul.mubr.bf16.vlgmr.msra.gmra.mrb[16].mxu1 %v2848_v4 }
  0xd3   : > { %1788 = vmatmul.mubr.bf16.gmra.mrb[36].mxu0 %v2868_v15  ;;  %1681 = vmatprep.mubr.bf16.mxu1 %v2857_v9 }
  0xd4   : > { %1830 = vmatprep.mubr.bf16.mxu0 %v2715_v0 }
  0xda   : > { %1682 = vmatmul.mubr.bf16.gmra.mrb[20].mxu1 %v2868_v15 }
  0xdb   : > { %2290 = vmatmul.mubr.msk.bf16.vlgmr.msra.gmra.mrb[32].mxu0 %vm1314_vm0, %v2705_v10 }
  0xdc   : > { %1840 = vmatprep.mubr.bf16.mxu0 %v2715_v0 }
  0xe3   : > { %2291 = vmatmul.mubr.msk.bf16.gmra.mrb[36].mxu0 %vm1314_vm0, %v2706_v12 }
  0xee   : > { %v1408_v4 = vpop.f32.mrb[0].mxu0 }
  0xef   : > { %v1410_v13 = vpop.f32.mrb[1].mxu0 }
  0xf0   : > { %v1412_v14 = vpop.f32.mrb[2].mxu0 }
  0xf1   : > { %v1414_v9 = vpop.f32.mrb[3].mxu0 }
  0xf6   : > { %v1418_v16 = vpop.f32.mrb[4].mxu0 }
  0xf7   : > { %v1420_v17 = vpop.f32.mrb[5].mxu0 }
  0xf8   : > { %v1422_v21 = vpop.f32.mrb[6].mxu0 }
  0xf9   : > { %v1424_v18 = vpop.f32.mrb[7].mxu0 }
  0xfe   : > { %v3030_v19 = vpop.f32.mrb[8].mxu0 }
  0xff   : > { %v3032_v20 = vpop.f32.mrb[9].mxu0 }
 0x100   : > { %v3034_v0 = vpop.f32.mrb[10].mxu0 }
 0x101   : > { %v3036_v15 = vpop.f32.mrb[11].mxu0 }
 0x106   : > { %v3038_v22 = vpop.f32.mrb[12].mxu0 }
 0x107   : > { %v3040_v23 = vpop.f32.mrb[13].mxu0 }
 0x108   : > { %v3042_v24 = vpop.f32.mrb[14].mxu0 }
 0x109   : > { %v3044_v25 = vpop.f32.mrb[15].mxu0 }
 0x125   : > { %v1355_v27 = vpop.f32.mrb[0].mxu1 }
 0x126   : > { %v1356_v29 = vadd.f32 %v1355_v27, %v3046_v26  ;;  %v1357_v30 = vpop.f32.mrb[1].mxu1 }
 0x127   : > { %v1358_v31 = vadd.f32 %v1357_v30, %v3046_v26  ;;  %v1359_v1 = vpop.f32.mrb[2].mxu1 }
 0x128   : > { %v1409_v33 = vadd.f32 %v1408_v4, %v1356_v29  ;;  %v1360_v34 = vadd.f32 %v1359_v1, %v3048_v28  ;;  %v1361_v35 = vpop.f32.mrb[3].mxu1 }
 0x129   : > { %v1411_v36 = vadd.f32 %v1410_v13, %v1358_v31  ;;  %v1362_v37 = vadd.f32 %v1361_v35, %v3048_v28 }
 0x12a   : > { %v1851_v38 = vmax.f32 %v1409_v33, 0.0  ;;  %v1413_v39 = vadd.f32 %v1412_v14, %v1360_v34 }
 0x12b   : > { %v1852_v40 = vmax.f32 %v1411_v36, 0.0  ;;  %v1415_v41 = vadd.f32 %v1414_v9, %v1362_v37 }
 0x12c   : > { %v1861_v42 = vmax.f32 %v1413_v39, 0.0 }
 0x12d   : > { %v2314_v43 = vpack.c.bf16 %v1852_v40, %v1851_v38  ;;  %v1862_v44 = vmax.f32 %v1415_v41, 0.0  ;;  %v1365_v45 = vpop.f32.mrb[4].mxu1 }
 0x12e   : > { %v1366_v47 = vadd.f32 %v1365_v45, %v3052_v32  ;;  %v1367_v48 = vpop.f32.mrb[5].mxu1 }
 0x12f   : > { %2011 = vst [vmem:[%s3060_s20] sm:$0xff] %v2314_v43  ;;  %v2319_v49 = vpack.c.bf16 %v1862_v44, %v1861_v42  ;;  %v1368_v50 = vadd.f32 %v1367_v48, %v3052_v32  ;;  %v1369_v51 = vpop.f32.mrb[6].mxu1 }
 0x130   : > { %v1419_v52 = vadd.f32 %v1418_v16, %v1366_v47  ;;  %v1370_v53 = vadd.f32 %v1369_v51, %v3062_v46  ;;  %v1371_v54 = vpop.f32.mrb[7].mxu1 }
 0x131   : > { %2019 = vst [vmem:[%s3060_s20 + $0x28] sm:$0xff] %v2319_v49  ;;  %v1421_v55 = vadd.f32 %v1420_v17, %v1368_v50  ;;  %v1372_v56 = vadd.f32 %v1371_v54, %v3062_v46 }
 0x132   : > { %v1871_v57 = vmax.f32 %v1419_v52, 0.0  ;;  %v1423_v58 = vadd.f32 %v1422_v21, %v1370_v53 }
 0x133   : > { %v1872_v59 = vmax.f32 %v1421_v55, 0.0  ;;  %v1425_v60 = vadd.f32 %v1424_v18, %v1372_v56 }
 0x134   : > { %v1881_v61 = vmax.f32 %v1423_v58, 0.0 }
 0x135   : > { %v2324_v62 = vpack.c.bf16 %v1872_v59, %v1871_v57  ;;  %v1882_v63 = vmax.f32 %v1425_v60, 0.0 }
 0x137   : > { %2024 = vst [vmem:[%s3060_s20 + $0x50] sm:$0xff] %v2324_v62  ;;  %v2329_v2 = vpack.c.bf16 %v1882_v63, %v1881_v61 }
 0x139   : > { %2029 = vst [vmem:[%s3060_s20 + $0x78] sm:$0xff] %v2329_v2 }
 0x14e   : > { %v1620_v3 = vpop.f32.mrb[16].mxu0 }
 0x14f   : > { %v2366_v5 = vadd.f32 %v1620_v3, %v3046_v26  ;;  %v1622_v6 = vpop.f32.mrb[17].mxu0 }
 0x150   : > { %v2367_v7 = vadd.f32 %v1622_v6, %v3046_v26  ;;  %v1624_v8 = vpop.f32.mrb[18].mxu0 }
 0x151   : > { %v1855_v11 = vmax.f32 %v2366_v5, 0.0  ;;  %v2368_v10 = vadd.f32 %v1624_v8, %v3048_v28  ;;  %v1626_v12 = vpop.f32.mrb[19].mxu0 }
 0x152   : > { %v1856_v4 = vmax.f32 %v2367_v7, 0.0  ;;  %v2369_v13 = vadd.f32 %v1626_v12, %v3048_v28 }
 0x153   : > { %v1865_v14 = vmax.f32 %v2368_v10, 0.0 }
 0x154   : > { %v2316_v9 = vpack.c.bf16 %v1856_v4, %v1855_v11  ;;  %v1866_v16 = vmax.f32 %v2369_v13, 0.0 }
 0x156   : > { %2013 = vst [vmem:[%s3060_s20 + $0x10] sm:$0xff] %v2316_v9  ;;  %v2321_v17 = vpack.c.bf16 %v1866_v16, %v1865_v14  ;;  %v1630_v21 = vpop.f32.mrb[20].mxu0 }
 0x157   : > { %v2370_v18 = vadd.f32 %v1630_v21, %v3052_v32  ;;  %v1632_v27 = vpop.f32.mrb[21].mxu0 }
 0x158   : > { %2021 = vst [vmem:[%s3060_s20 + $0x38] sm:$0xff] %v2321_v17  ;;  %v2371_v29 = vadd.f32 %v1632_v27, %v3052_v32  ;;  %v1634_v30 = vpop.f32.mrb[22].mxu0 }
 0x159   : > { %v1875_v31 = vmax.f32 %v2370_v18, 0.0  ;;  %v2372_v1 = vadd.f32 %v1634_v30, %v3062_v46  ;;  %v1636_v33 = vpop.f32.mrb[23].mxu0 }
 0x15a   : > { %v1876_v34 = vmax.f32 %v2371_v29, 0.0  ;;  %v2373_v35 = vadd.f32 %v1636_v33, %v3062_v46 }
 0x15b   : > { %v1885_v36 = vmax.f32 %v2372_v1, 0.0 }
 0x15c   : > { %v2326_v37 = vpack.c.bf16 %v1876_v34, %v1875_v31  ;;  %v1886_v38 = vmax.f32 %v2373_v35, 0.0 }
 0x15e   : > { %2026 = vst [vmem:[%s3060_s20 + $0x60] sm:$0xff] %v2326_v37  ;;  %v2331_v39 = vpack.c.bf16 %v1886_v38, %v1885_v36  ;;  %v1726_v40 = vpop.f32.mrb[24].mxu0 }
 0x15f   : > { %v1728_v41 = vpop.f32.mrb[25].mxu0 }
 0x160   : > { %2031 = vst [vmem:[%s3060_s20 + $0x88] sm:$0xff] %v2331_v39  ;;  %v1730_v42 = vpop.f32.mrb[26].mxu0 }
 0x161   : > { %v1732_v43 = vpop.f32.mrb[27].mxu0 }
 0x165   : > { %v1461_v44 = vpop.f32.mrb[8].mxu1 }
 0x166   : > { %v3084_v45 = vpop.f32.mrb[28].mxu0  ;;  %v1462_v47 = vadd.f32 %v1461_v44, %v3046_v26  ;;  %v1463_v48 = vpop.f32.mrb[9].mxu1 }
 0x167   : > { %v3087_v49 = vpop.f32.mrb[29].mxu0  ;;  %v1464_v50 = vadd.f32 %v1463_v48, %v3046_v26  ;;  %v1465_v51 = vpop.f32.mrb[10].mxu1 }
 0x168   : > { %v3090_v52 = vpop.f32.mrb[30].mxu0  ;;  %v1515_v53 = vadd.f32 %v3030_v19, %v1462_v47  ;;  %v1466_v54 = vadd.f32 %v1465_v51, %v3048_v28  ;;  %v1467_v55 = vpop.f32.mrb[11].mxu1 }
 0x169   : > { %v3094_v56 = vpop.f32.mrb[31].mxu0  ;;  %v1517_v57 = vadd.f32 %v3032_v20, %v1464_v50  ;;  %v1468_v58 = vadd.f32 %v1467_v55, %v3048_v28 }
 0x16a   : > { %v1853_v59 = vmax.f32 %v1515_v53, 0.0  ;;  %v1519_v60 = vadd.f32 %v3034_v0, %v1466_v54 }
 0x16b   : > { %v1854_v61 = vmax.f32 %v1517_v57, 0.0  ;;  %v1521_v62 = vadd.f32 %v3036_v15, %v1468_v58 }
 0x16c   : > { %v1863_v63 = vmax.f32 %v1519_v60, 0.0 }
 0x16d   : > { %v2315_v2 = vpack.c.bf16 %v1854_v61, %v1853_v59  ;;  %v1864_v19 = vmax.f32 %v1521_v62, 0.0  ;;  %v1471_v3 = vpop.f32.mrb[12].mxu1 }
 0x16e   : > { %v1472_v5 = vadd.f32 %v1471_v3, %v3052_v32  ;;  %v1473_v6 = vpop.f32.mrb[13].mxu1 }
 0x16f   : > { %2012 = vst [vmem:[%s3060_s20 + $0x8] sm:$0xff] %v2315_v2  ;;  %v2320_v7 = vpack.c.bf16 %v1864_v19, %v1863_v63  ;;  %v1474_v20 = vadd.f32 %v1473_v6, %v3052_v32  ;;  %v1475_v8 = vpop.f32.mrb[14].mxu1 }
 0x170   : > { %v1525_v0 = vadd.f32 %v3038_v22, %v1472_v5  ;;  %v1476_v11 = vadd.f32 %v1475_v8, %v3062_v46  ;;  %v1477_v10 = vpop.f32.mrb[15].mxu1 }
 0x171   : > { %2020 = vst [vmem:[%s3060_s20 + $0x30] sm:$0xff] %v2320_v7  ;;  %v1527_v15 = vadd.f32 %v3040_v23, %v1474_v20  ;;  %v1478_v12 = vadd.f32 %v1477_v10, %v3062_v46 }
 0x172   : > { %v1873_v4 = vmax.f32 %v1525_v0, 0.0  ;;  %v1529_v13 = vadd.f32 %v3042_v24, %v1476_v11 }
 0x173   : > { %v1874_v14 = vmax.f32 %v1527_v15, 0.0  ;;  %v1531_v9 = vadd.f32 %v3044_v25, %v1478_v12 }
 0x174   : > { %v1883_v16 = vmax.f32 %v1529_v13, 0.0 }
 0x175   : > { %v2325_v17 = vpack.c.bf16 %v1874_v14, %v1873_v4  ;;  %v1884_v21 = vmax.f32 %v1531_v9, 0.0 }
 0x177   : > { %2025 = vst [vmem:[%s3060_s20 + $0x58] sm:$0xff] %v2325_v17  ;;  %v2330_v18 = vpack.c.bf16 %v1884_v21, %v1883_v16 }
 0x179   : > { %2030 = vst [vmem:[%s3060_s20 + $0x80] sm:$0xff] %v2330_v18 }
 0x1a5   : > { %v1673_v22 = vpop.f32.mrb[16].mxu1 }
 0x1a6   : > { %v1674_v27 = vadd.f32 %v1673_v22, %v3046_v26  ;;  %v1675_v29 = vpop.f32.mrb[17].mxu1 }
 0x1a7   : > { %v1676_v23 = vadd.f32 %v1675_v29, %v3046_v26  ;;  %v1677_v30 = vpop.f32.mrb[18].mxu1 }
 0x1a8   : > { %v1727_v31 = vadd.f32 %v1726_v40, %v1674_v27  ;;  %v1678_v1 = vadd.f32 %v1677_v30, %v3048_v28  ;;  %v1679_v24 = vpop.f32.mrb[19].mxu1 }
 0x1a9   : > { %v1729_v33 = vadd.f32 %v1728_v41, %v1676_v23  ;;  %v1680_v25 = vadd.f32 %v1679_v24, %v3048_v28 }
 0x1aa   : > { %v1857_v34 = vmax.f32 %v1727_v31, 0.0  ;;  %v1731_v35 = vadd.f32 %v1730_v42, %v1678_v1 }
 0x1ab   : > { %v1858_v36 = vmax.f32 %v1729_v33, 0.0  ;;  %v1733_v37 = vadd.f32 %v1732_v43, %v1680_v25 }
 0x1ac   : > { %v1867_v38 = vmax.f32 %v1731_v35, 0.0 }
 0x1ad   : > { %v2317_v39 = vpack.c.bf16 %v1858_v36, %v1857_v34  ;;  %v1868_v44 = vmax.f32 %v1733_v37, 0.0  ;;  %v1683_v48 = vpop.f32.mrb[20].mxu1 }
 0x1ae   : > { %v1832_v47 = vpop.f32.mrb[32].mxu0  ;;  %v1684_v40 = vadd.f32 %v1683_v48, %v3052_v32  ;;  %v1685_v41 = vpop.f32.mrb[21].mxu1 }
 0x1af   : > { %v2390_v50 = vadd.f32 %v1832_v47, %v3046_v26  ;;  %v1834_v51 = vpop.f32.mrb[33].mxu0  ;;  %2014 = vst [vmem:[%s3060_s20 + $0x18] sm:$0xff] %v2317_v39  ;;  %v2322_v53 = vpack.c.bf16 %v1868_v44, %v1867_v38  ;;  %v1686_v43 = vadd.f32 %v1685_v41, %v3052_v32  ;;  %v1687_v55 = vpop.f32.mrb[22].mxu1 }
 0x1b0   : > { %v2391_v54 = vadd.f32 %v1834_v51, %v3046_v26  ;;  %v1836_v42 = vpop.f32.mrb[34].mxu0  ;;  %v1737_v58 = vadd.f32 %v3084_v45, %v1684_v40  ;;  %v1688_v61 = vadd.f32 %v1687_v55, %v3062_v46  ;;  %v1689_v62 = vpop.f32.mrb[23].mxu1 }
 0x1b1   : > { %v1859_v57 = vmax.f32 %v2390_v50, 0.0  ;;  %v2392_v59 = vadd.f32 %v1836_v42, %v3048_v28  ;;  %v1838_v60 = vpop.f32.mrb[35].mxu0  ;;  %2022 = vst [vmem:[%s3060_s20 + $0x40] sm:$0xff] %v2322_v53  ;;  %v1739_v2 = vadd.f32 %v3087_v49, %v1686_v43  ;;  %v1690_v19 = vadd.f32 %v1689_v62, %v3062_v46 }
 0x1b2   : > { %v1860_v63 = vmax.f32 %v2391_v54, 0.0  ;;  %v2393_v26 = vadd.f32 %v1838_v60, %v3048_v28  ;;  %v1877_v45 = vmax.f32 %v1737_v58, 0.0  ;;  %v1741_v6 = vadd.f32 %v3090_v52, %v1688_v61 }
 0x1b3   : > { %v1869_v5 = vmax.f32 %v2392_v59, 0.0  ;;  %v1878_v20 = vmax.f32 %v1739_v2, 0.0  ;;  %v1743_v49 = vadd.f32 %v3094_v56, %v1690_v19 }
 0x1b4   : > { %v2318_v7 = vpack.c.bf16 %v1860_v63, %v1859_v57  ;;  %v1870_v8 = vmax.f32 %v2393_v26, 0.0  ;;  %v1887_v28 = vmax.f32 %v1741_v6, 0.0 }
 0x1b5   : > { %v2327_v0 = vpack.c.bf16 %v1878_v20, %v1877_v45  ;;  %v1888_v10 = vmax.f32 %v1743_v49, 0.0 }
 0x1b6   : > { %2018 = vst.msk [vmem:[%s3060_s20 + $0x20] sm:$0xff] %vm3130_vm3, %v2318_v7  ;;  %v2323_v11 = vpack.c.bf16 %v1870_v8, %v1869_v5  ;;  %v1842_v15 = vpop.f32.mrb[36].mxu0 }
 0x1b7   : > { %v2394_v12 = vadd.f32 %v1842_v15, %v3052_v32  ;;  %v1844_v4 = vpop.f32.mrb[37].mxu0  ;;  %2027 = vst [vmem:[%s3060_s20 + $0x68] sm:$0xff] %v2327_v0  ;;  %v2332_v52 = vpack.c.bf16 %v1888_v10, %v1887_v28 }
 0x1b8   : > { %2023 = vst.msk [vmem:[%s3060_s20 + $0x48] sm:$0xff] %vm3130_vm3, %v2323_v11  ;;  %v2395_v56 = vadd.f32 %v1844_v4, %v3052_v32  ;;  %v1846_v13 = vpop.f32.mrb[38].mxu0 }
 0x1b9   : > { %v1879_v14 = vmax.f32 %v2394_v12, 0.0  ;;  %v2396_v9 = vadd.f32 %v1846_v13, %v3062_v46  ;;  %v1848_v16 = vpop.f32.mrb[39].mxu0  ;;  %2032 = vst [vmem:[%s3060_s20 + $0x90] sm:$0xff] %v2332_v52 }
 0x1ba   : > { %v1880_v17 = vmax.f32 %v2395_v56, 0.0  ;;  %v2397_v21 = vadd.f32 %v1848_v16, %v3062_v46 }
 0x1bb   : > { %v1889_v18 = vmax.f32 %v2396_v9, 0.0 }
 0x1bc   : > { %v2328_v22 = vpack.c.bf16 %v1880_v17, %v1879_v14  ;;  %v1890_v27 = vmax.f32 %v2397_v21, 0.0 }
 0x1be   : > { %2028 = vst.msk [vmem:[%s3060_s20 + $0x70] sm:$0xff] %vm3130_vm3, %v2328_v22  ;;  %v2333_v29 = vpack.c.bf16 %v1890_v27, %v1889_v18 }
 0x1c0   : > { %2033 = vst.msk [vmem:[%s3060_s20 + $0x98] sm:$0xff] %vm3130_vm3, %v2333_v29 }
 0x1c1 PF: > { %s13_s12 = sadd.s32 1, %s2713_s12  }
 0x1c2   : > { %p10_p4 = scmp.ge.s32.totalorder %s13_s12, 8  }
 0x1c4   :  { %12 = sbr.rel (!%p10_p4) target bundleno = 1 (0x1), region = 62 }

// kernel: minimonet_forward.49
= control target key start
LH: loop header
LB: loop body
LE: loop exit
PB: predicated region body
PF: predicated region fallthrough
CT: control target
= control target key end

     0   :  { %s1996_s18 = smov 0   ;;  %s2220_s0 = inlined_call_operand.vmem [shape: bf16[6,288,1024], index: 0, kind: input, shape index: {}]   ;;  %s2221_s1 = inlined_call_operand.vmem [shape: bf16[16,288], index: 1, kind: input, shape index: {}]   ;;  %s2222_s2 = inlined_call_operand.vmem [shape: f32[16,1], index: 2, kind: input, shape index: {}]   ;;  %s2223_s3 = inlined_call_operand.vmem [shape: bf16[4,16], index: 3, kind: input, shape index: {}]   ;;  %s2224_s4 = inlined_call_operand.vmem [shape: f32[4,1], index: 4, kind: input, shape index: {}]   ;;  %s2225_s5 = inlined_call_operand.vmem [shape: f32[6,4,1024], index: 5, kind: output, shape index: {}]  }
   0x1 LB: > { %s1743_s19 = sadd.s32 4294967295, %s1963_s18   ;;  %p1747_p0 = scmp.ge.s32.totalorder %s1963_s18, 1  ;;  %s1963_s18 = sphi %s1996_s18, %s15_s18  }
   0x2   : > { %p187_p1 = scmp.lt.s32.totalorder %s1963_s18, 7 }
   0x4   : > { %p188_p2 = pnand %p1747_p0, %p187_p1 }
   0x5   : > { %p215_p3 = scmp.lt.s32.totalorder (!%p188_p2), %s1743_s19, 5  ;;  %v2007_v0 = vld [vmem:[%s2221_s1 + $0x4] ss:$12 sps:$4 sm:$0xff] (!%p188_p2)   ;;  %v1965_v1 = vmov (!%p188_p2), 0   ;;  %vm1121_vm0 = vcmask (!%p188_p2), 261120   ;;  %vm1500_vm1 = vcmask (!%p188_p2), 130048  }
   0x6   : > { %191 = sbr.rel (%p188_p2) target bundleno = 616 (0x268), region = 40  ;;  %1951 = vset.pattern.permute.xlu0 (!%p188_p2), %v1965_v1  ;;  %1952 = vset.pattern.permute.xlu1 (!%p188_p2), %v1965_v1 }
   0x7   : > { %1157 = vmatprep.mubr.bf16.mxu0 (!%p188_p2), %v2007_v0  ;;  %1243 = vmatprep.mubr.bf16.mxu1 (!%p188_p2), %v2007_v0 }
   0xd   : > { %s2227_s19 = smov (!%p215_p3, %s1743_s19), 5 }
   0xe   : > { %s1941_s22 = smul.u32 1152, %s2227_s19  ;;  %s1908_s13 = sshll.u32 %s2227_s19, 5 }
   0xf   : > { %s224_s16 = scalar_lea.vmem %s2225_s5, %s1908_s13 }
  0x10   : > { %s2019_s25 = scalar_lea.vmem %s2220_s0, %s1941_s22 }
  0x11   : > { %v226_v2 = vld [vmem:[%s2019_s25] sm:$0xff]  ;;  %v227_v4 = vld [vmem:[%s2019_s25 + $0x8] sm:$0xff] }
  0x12   : > { %v230_v3 = vld [vmem:[%s2019_s25 + $0x20] sm:$0xff]  ;;  %v231_v6 = vld [vmem:[%s2019_s25 + $0x28] sm:$0xff] }
  0x13   : > { %v1755_v5 = vcombine.high %v226_v2, %v230_v3  ;;  %v1754_v7 = vcombine.low %v226_v2, %v230_v3  ;;  %v234_v8 = vld [vmem:[%s2019_s25 + $0x40] sm:$0xff]  ;;  %v1757_v10 = vcombine.high %v227_v4, %v231_v6  ;;  %v1756_v11 = vcombine.low %v227_v4, %v231_v6  ;;  %v235_v13 = vld [vmem:[%s2019_s25 + $0x48] sm:$0xff] }
  0x14   : > { %v238_v9 = vld [vmem:[%s2019_s25 + $0x60] sm:$0xff]  ;;  %v239_v14 = vld [vmem:[%s2019_s25 + $0x68] sm:$0xff] }
  0x15   : > { %v1763_v12 = vcombine.high %v234_v8, %v238_v9  ;;  %v242_v15 = vld [vmem:[%s2019_s25 + $0x80] sm:$0xff]  ;;  %1125 = vmatprep.subr.bf16.mxu0 %v1755_v5  ;;  %v1765_v16 = vcombine.high %v235_v13, %v239_v14  ;;  %v243_v18 = vld [vmem:[%s2019_s25 + $0x88] sm:$0xff]  ;;  %1211 = vmatprep.subr.bf16.mxu1 %v1757_v10  ;;  %v1762_v20 = vcombine.low %v234_v8, %v238_v9 }
  0x16   : > { %v246_v17 = vld [vmem:[%s2019_s25 + $0xa0] sm:$0xff]  ;;  %v247_v19 = vld [vmem:[%s2019_s25 + $0xa8] sm:$0xff]  ;;  %1126 = vmatpush1.bf16.msra.mxu0 %v1754_v7  ;;  %1212 = vmatpush1.bf16.msra.mxu1 %v1756_v11  ;;  %v1764_v21 = vcombine.low %v235_v13, %v239_v14 }
  0x17   : > { %1127 = vmatprep.subr.bf16.mxu0 %v1763_v12  ;;  %v1771_v22 = vcombine.high %v242_v15, %v246_v17  ;;  %1213 = vmatprep.subr.bf16.mxu1 %v1765_v16  ;;  %v1773_v23 = vcombine.high %v243_v18, %v247_v19  ;;  %v250_v24 = vld [vmem:[%s2019_s25 + $0xc0] sm:$0xff]  ;;  %v251_v26 = vld [vmem:[%s2019_s25 + $0xc8] sm:$0xff]  ;;  %v1770_v28 = vcombine.low %v242_v15, %v246_v17 }
  0x18   : > { %v254_v25 = vld [vmem:[%s2019_s25 + $0xe0] sm:$0xff]  ;;  %v255_v27 = vld [vmem:[%s2019_s25 + $0xe8] sm:$0xff]  ;;  %v1772_v29 = vcombine.low %v243_v18, %v247_v19 }
  0x19   : > { %v1779_v30 = vcombine.high %v250_v24, %v254_v25  ;;  %v1781_v31 = vcombine.high %v251_v26, %v255_v27  ;;  %v258_v32 = vld [vmem:[%s2019_s25 + $0x100] sm:$0xff]  ;;  %v259_v34 = vld [vmem:[%s2019_s25 + $0x108] sm:$0xff]  ;;  %v1778_v36 = vcombine.low %v250_v24, %v254_v25  ;;  %v1780_v37 = vcombine.low %v251_v26, %v255_v27 }
  0x1a   : > { %1128 = vmatpush1.bf16.msra.mxu0 %v1762_v20  ;;  %1214 = vmatpush1.bf16.msra.mxu1 %v1764_v21  ;;  %v262_v33 = vld [vmem:[%s2019_s25 + $0x120] sm:$0xff]  ;;  %v263_v35 = vld [vmem:[%s2019_s25 + $0x128] sm:$0xff] }
  0x1b   : > { %1129 = vmatprep.subr.bf16.mxu0 %v1771_v22  ;;  %1215 = vmatprep.subr.bf16.mxu1 %v1773_v23  ;;  %v1787_v38 = vcombine.high %v258_v32, %v262_v33  ;;  %v1789_v39 = vcombine.high %v259_v34, %v263_v35  ;;  %v266_v40 = vld [vmem:[%s2019_s25 + $0x140] sm:$0xff]  ;;  %v267_v42 = vld [vmem:[%s2019_s25 + $0x148] sm:$0xff]  ;;  %v1786_v44 = vcombine.low %v258_v32, %v262_v33 }
  0x1c   : > { %v270_v41 = vld [vmem:[%s2019_s25 + $0x160] sm:$0xff]  ;;  %v271_v43 = vld [vmem:[%s2019_s25 + $0x168] sm:$0xff]  ;;  %v1788_v45 = vcombine.low %v259_v34, %v263_v35 }
  0x1d   : > { %v1795_v46 = vcombine.high %v266_v40, %v270_v41  ;;  %v1797_v47 = vcombine.high %v267_v42, %v271_v43  ;;  %v274_v48 = vld [vmem:[%s2019_s25 + $0x180] sm:$0xff]  ;;  %v275_v50 = vld [vmem:[%s2019_s25 + $0x188] sm:$0xff]  ;;  %v1794_v52 = vcombine.low %v266_v40, %v270_v41  ;;  %v1796_v53 = vcombine.low %v267_v42, %v271_v43 }
  0x1e   : > { %1130 = vmatpush1.bf16.msra.mxu0 %v1770_v28  ;;  %1216 = vmatpush1.bf16.msra.mxu1 %v1772_v29  ;;  %v278_v49 = vld [vmem:[%s2019_s25 + $0x1a0] sm:$0xff]  ;;  %v279_v51 = vld [vmem:[%s2019_s25 + $0x1a8] sm:$0xff] }
  0x1f   : > { %1131 = vmatprep.subr.bf16.mxu0 %v1779_v30  ;;  %1217 = vmatprep.subr.bf16.mxu1 %v1781_v31  ;;  %v1803_v54 = vcombine.high %v274_v48, %v278_v49  ;;  %v1805_v55 = vcombine.high %v275_v50, %v279_v51  ;;  %v282_v56 = vld [vmem:[%s2019_s25 + $0x1c0] sm:$0xff]  ;;  %v283_v58 = vld [vmem:[%s2019_s25 + $0x1c8] sm:$0xff]  ;;  %v1802_v60 = vcombine.low %v274_v48, %v278_v49 }
  0x20   : > { %v286_v57 = vld [vmem:[%s2019_s25 + $0x1e0] sm:$0xff]  ;;  %v287_v59 = vld [vmem:[%s2019_s25 + $0x1e8] sm:$0xff]  ;;  %v1804_v61 = vcombine.low %v275_v50, %v279_v51 }
  0x21   : > { %v1811_v62 = vcombine.high %v282_v56, %v286_v57  ;;  %v1813_v63 = vcombine.high %v283_v58, %v287_v59  ;;  %v290_v2 = vld [vmem:[%s2019_s25 + $0x200] sm:$0xff]  ;;  %v291_v4 = vld [vmem:[%s2019_s25 + $0x208] sm:$0xff]  ;;  %v1810_v6 = vcombine.low %v282_v56, %v286_v57  ;;  %v1812_v7 = vcombine.low %v283_v58, %v287_v59 }
  0x22   : > { %1132 = vmatpush1.bf16.msra.mxu0 %v1778_v36  ;;  %1218 = vmatpush1.bf16.msra.mxu1 %v1780_v37  ;;  %v294_v3 = vld [vmem:[%s2019_s25 + $0x220] sm:$0xff]  ;;  %v295_v5 = vld [vmem:[%s2019_s25 + $0x228] sm:$0xff] }
  0x23   : > { %1133 = vmatprep.subr.bf16.mxu0 %v1787_v38  ;;  %1219 = vmatprep.subr.bf16.mxu1 %v1789_v39  ;;  %v1819_v8 = vcombine.high %v290_v2, %v294_v3  ;;  %v1821_v9 = vcombine.high %v291_v4, %v295_v5  ;;  %v298_v10 = vld [vmem:[%s2019_s25 + $0x240] sm:$0xff]  ;;  %v299_v12 = vld [vmem:[%s2019_s25 + $0x248] sm:$0xff]  ;;  %v1818_v14 = vcombine.low %v290_v2, %v294_v3 }
  0x24   : > { %v302_v11 = vld [vmem:[%s2019_s25 + $0x260] sm:$0xff]  ;;  %v303_v13 = vld [vmem:[%s2019_s25 + $0x268] sm:$0xff]  ;;  %v1820_v15 = vcombine.low %v291_v4, %v295_v5 }
  0x25   : > { %v1827_v16 = vcombine.high %v298_v10, %v302_v11  ;;  %v1829_v17 = vcombine.high %v299_v12, %v303_v13  ;;  %v306_v18 = vld [vmem:[%s2019_s25 + $0x280] sm:$0xff]  ;;  %v307_v20 = vld [vmem:[%s2019_s25 + $0x288] sm:$0xff]  ;;  %v1826_v22 = vcombine.low %v298_v10, %v302_v11  ;;  %v1828_v23 = vcombine.low %v299_v12, %v303_v13 }
  0x26   : > { %1134 = vmatpush1.bf16.msra.mxu0 %v1786_v44  ;;  %1220 = vmatpush1.bf16.msra.mxu1 %v1788_v45  ;;  %v310_v19 = vld [vmem:[%s2019_s25 + $0x2a0] sm:$0xff]  ;;  %v311_v21 = vld [vmem:[%s2019_s25 + $0x2a8] sm:$0xff] }
  0x27   : > { %1135 = vmatprep.subr.bf16.mxu0 %v1795_v46  ;;  %1221 = vmatprep.subr.bf16.mxu1 %v1797_v47  ;;  %v1835_v24 = vcombine.high %v306_v18, %v310_v19  ;;  %v1837_v25 = vcombine.high %v307_v20, %v311_v21  ;;  %v314_v26 = vld [vmem:[%s2019_s25 + $0x2c0] sm:$0xff]  ;;  %v315_v28 = vld [vmem:[%s2019_s25 + $0x2c8] sm:$0xff]  ;;  %v1834_v30 = vcombine.low %v306_v18, %v310_v19 }
  0x28   : > { %v318_v27 = vld [vmem:[%s2019_s25 + $0x2e0] sm:$0xff]  ;;  %v319_v29 = vld [vmem:[%s2019_s25 + $0x2e8] sm:$0xff]  ;;  %v1836_v31 = vcombine.low %v307_v20, %v311_v21 }
  0x29   : > { %v1843_v32 = vcombine.high %v314_v26, %v318_v27  ;;  %v1845_v33 = vcombine.high %v315_v28, %v319_v29  ;;  %v322_v34 = vld [vmem:[%s2019_s25 + $0x300] sm:$0xff]  ;;  %v323_v36 = vld [vmem:[%s2019_s25 + $0x308] sm:$0xff]  ;;  %v1842_v38 = vcombine.low %v314_v26, %v318_v27  ;;  %v1844_v39 = vcombine.low %v315_v28, %v319_v29  ;;  %v233_v26 = vld [vmem:[%s2019_s25 + $0x38] sm:$0xff] }
  0x2a   : > { %1136 = vmatpush1.bf16.msra.mxu0 %v1794_v52  ;;  %1222 = vmatpush1.bf16.msra.mxu1 %v1796_v53  ;;  %v326_v35 = vld [vmem:[%s2019_s25 + $0x320] sm:$0xff]  ;;  %v327_v37 = vld [vmem:[%s2019_s25 + $0x328] sm:$0xff] }
  0x2b   : > { %1137 = vmatprep.subr.bf16.mxu0 %v1803_v54  ;;  %1223 = vmatprep.subr.bf16.mxu1 %v1805_v55  ;;  %v1851_v40 = vcombine.high %v322_v34, %v326_v35  ;;  %v1853_v41 = vcombine.high %v323_v36, %v327_v37  ;;  %v330_v42 = vld [vmem:[%s2019_s25 + $0x340] sm:$0xff]  ;;  %v331_v44 = vld [vmem:[%s2019_s25 + $0x348] sm:$0xff]  ;;  %v1850_v46 = vcombine.low %v322_v34, %v326_v35  ;;  %v237_v34 = vld [vmem:[%s2019_s25 + $0x58] sm:$0xff] }
  0x2c   : > { %v334_v43 = vld [vmem:[%s2019_s25 + $0x360] sm:$0xff]  ;;  %v335_v45 = vld [vmem:[%s2019_s25 + $0x368] sm:$0xff]  ;;  %v1852_v48 = vcombine.low %v323_v36, %v327_v37  ;;  %v241_v35 = vld [vmem:[%s2019_s25 + $0x78] sm:$0xff] }
  0x2d   : > { %v374_v47 = vld [vmem:[%s2222_s2] sm:$0xff]  ;;  %v1859_v49 = vcombine.high %v330_v42, %v334_v43  ;;  %v1861_v50 = vcombine.high %v331_v44, %v335_v45  ;;  %v339_v53 = vld [vmem:[%s2019_s25 + $0x388] sm:$0xff]  ;;  %v1858_v56 = vcombine.low %v330_v42, %v334_v43  ;;  %v1860_v57 = vcombine.low %v331_v44, %v335_v45  ;;  %v245_v42 = vld [vmem:[%s2019_s25 + $0x98] sm:$0xff] }
  0x2e   : > { %1138 = vmatpush1.bf16.msra.mxu0 %v1802_v60  ;;  %1224 = vmatpush1.bf16.msra.mxu1 %v1804_v61  ;;  %v338_v51 = vld [vmem:[%s2019_s25 + $0x380] sm:$0xff]  ;;  %v343_v54 = vld [vmem:[%s2019_s25 + $0x3a8] sm:$0xff]  ;;  %v249_v43 = vld [vmem:[%s2019_s25 + $0xb8] sm:$0xff]  ;;  %v1768_v45 = vcombine.low %v237_v34, %v241_v35 }
  0x2f   : > { %1139 = vmatprep.subr.bf16.mxu0 %v1811_v62  ;;  %1225 = vmatprep.subr.bf16.mxu1 %v1813_v63  ;;  %v342_v52 = vld [vmem:[%s2019_s25 + $0x3a0] sm:$0xff]  ;;  %v375_v55 = vld [vmem:[%s2222_s2 + $0x8] sm:$0xff]  ;;  %v1869_v59 = vcombine.high %v339_v53, %v343_v54  ;;  %v1868_v3 = vcombine.low %v339_v53, %v343_v54  ;;  %v1776_v53 = vcombine.low %v245_v42, %v249_v43 }
  0x30   : > { %378 = vperm.xlu0 %1951, %v374_v47   ;;  %v1867_v58 = vcombine.high %v338_v51, %v342_v52  ;;  %v346_v60 = vld [vmem:[%s2019_s25 + $0x3c0] sm:$0xff]  ;;  %v347_v62 = vld [vmem:[%s2019_s25 + $0x3c8] sm:$0xff]  ;;  %v1866_v2 = vcombine.low %v338_v51, %v342_v52  ;;  %v1777_v47 = vcombine.high %v245_v42, %v249_v43  ;;  %v257_v51 = vld [vmem:[%s2019_s25 + $0xf8] sm:$0xff] }
  0x31   : > { %v350_v61 = vld [vmem:[%s2019_s25 + $0x3e0] sm:$0xff]  ;;  %v351_v63 = vld [vmem:[%s2019_s25 + $0x3e8] sm:$0xff]  ;;  %v308_v43 = vld [vmem:[%s2019_s25 + $0x290] sm:$0xff] }
  0x32   : > { %1140 = vmatpush1.bf16.msra.mxu0 %v1810_v6  ;;  %1226 = vmatpush1.bf16.msra.mxu1 %v1812_v7  ;;  %v1875_v4 = vcombine.high %v346_v60, %v350_v61  ;;  %v1877_v5 = vcombine.high %v347_v62, %v351_v63  ;;  %v354_v6 = vld [vmem:[%s2019_s25 + $0x400] sm:$0xff]  ;;  %v1874_v10 = vcombine.low %v346_v60, %v350_v61  ;;  %v367_v18 = vld [vmem:[%s2019_s25 + $0x468] sm:$0xff] }
  0x33   : > { %1141 = vmatprep.subr.bf16.mxu0 %v1819_v8  ;;  %1227 = vmatprep.subr.bf16.mxu1 %v1821_v9  ;;  %v358_v7 = vld [vmem:[%s2019_s25 + $0x420] sm:$0xff]  ;;  %v355_v8 = vld [vmem:[%s2019_s25 + $0x408] sm:$0xff]  ;;  %v1876_v11 = vcombine.low %v347_v62, %v351_v63  ;;  %v268_v63 = vld [vmem:[%s2019_s25 + $0x150] sm:$0xff] }
  0x34   : > { %383 = vperm.xlu0 %1951, %v375_v55   ;;  %v359_v9 = vld [vmem:[%s2019_s25 + $0x428] sm:$0xff]  ;;  %v1883_v12 = vcombine.high %v354_v6, %v358_v7  ;;  %v1882_v19 = vcombine.low %v354_v6, %v358_v7 }
  0x35   : > { %v1885_v13 = vcombine.high %v355_v8, %v359_v9  ;;  %v1884_v20 = vcombine.low %v355_v8, %v359_v9  ;;  %v276_v9 = vld [vmem:[%s2019_s25 + $0x190] sm:$0xff] }
  0x36   : > { %1142 = vmatpush1.bf16.msra.mxu0 %v1818_v14  ;;  %1228 = vmatpush1.bf16.msra.mxu1 %v1820_v15  ;;  %v362_v14 = vld [vmem:[%s2019_s25 + $0x440] sm:$0xff] }
  0x37   : > { %1143 = vmatprep.subr.bf16.mxu0 %v1827_v16  ;;  %1229 = vmatprep.subr.bf16.mxu1 %v1829_v17  ;;  %v366_v15 = vld [vmem:[%s2019_s25 + $0x460] sm:$0xff]  ;;  %v363_v17 = vld [vmem:[%s2019_s25 + $0x448] sm:$0xff] }
  0x38   : > { %v2100_v16 = vld [vmem:[%s2221_s1] ss:$12 sps:$4 sm:$0xff]   ;;  %v1891_v21 = vcombine.high %v362_v14, %v366_v15  ;;  %v1890_v27 = vcombine.low %v362_v14, %v366_v15  ;;  %v1892_v28 = vcombine.low %v363_v17, %v367_v18 }
  0x3a   : > { %1144 = vmatpush1.bf16.msra.mxu0 %v1826_v22  ;;  %1230 = vmatpush1.bf16.msra.mxu1 %v1828_v23  ;;  %v1893_v22 = vcombine.high %v363_v17, %v367_v18  ;;  %v228_v23 = vld [vmem:[%s2019_s25 + $0x10] sm:$0xff] }
  0x3b   : > { %1145 = vmatprep.subr.bf16.mxu0 %v1835_v24  ;;  %1231 = vmatprep.subr.bf16.mxu1 %v1837_v25  ;;  %v232_v24 = vld [vmem:[%s2019_s25 + $0x30] sm:$0xff]  ;;  %v229_v25 = vld [vmem:[%s2019_s25 + $0x18] sm:$0xff] }
  0x3c   : > { %v1759_v29 = vcombine.high %v228_v23, %v232_v24  ;;  %v1758_v36 = vcombine.low %v228_v23, %v232_v24  ;;  %v1760_v37 = vcombine.low %v229_v25, %v233_v26  ;;  %v284_v18 = vld [vmem:[%s2019_s25 + $0x1d0] sm:$0xff] }
  0x3e   : > { %1146 = vmatpush1.bf16.msra.mxu0 %v1834_v30  ;;  %1232 = vmatpush1.bf16.msra.mxu1 %v1836_v31  ;;  %v1761_v30 = vcombine.high %v229_v25, %v233_v26  ;;  %v236_v31 = vld [vmem:[%s2019_s25 + $0x50] sm:$0xff] }
  0x3f   : > { %1147 = vmatprep.subr.bf16.mxu0 %v1843_v32  ;;  %1233 = vmatprep.subr.bf16.mxu1 %v1845_v33  ;;  %v240_v32 = vld [vmem:[%s2019_s25 + $0x70] sm:$0xff] }
  0x40   : > { %v2117_v33 = vld [vmem:[%s2221_s1 + $0x8] ss:$12 sps:$4 sm:$0xff]   ;;  %v1766_v44 = vcombine.low %v236_v31, %v240_v32 }
  0x41   : > { %v292_v26 = vld [vmem:[%s2019_s25 + $0x210] sm:$0xff] }
  0x42   : > { %1148 = vmatpush1.bf16.msra.mxu0 %v1842_v38  ;;  %1234 = vmatpush1.bf16.msra.mxu1 %v1844_v39  ;;  %v1767_v38 = vcombine.high %v236_v31, %v240_v32  ;;  %v1769_v39 = vcombine.high %v237_v34, %v241_v35  ;;  %v300_v35 = vld [vmem:[%s2019_s25 + $0x250] sm:$0xff] }
  0x43   : > { %1149 = vmatprep.subr.bf16.mxu0 %v1851_v40  ;;  %1235 = vmatprep.subr.bf16.mxu1 %v1853_v41  ;;  %v244_v40 = vld [vmem:[%s2019_s25 + $0x90] sm:$0xff] }
  0x44   : > { %v248_v41 = vld [vmem:[%s2019_s25 + $0xb0] sm:$0xff] }
  0x45   : > { %v1774_v52 = vcombine.low %v244_v40, %v248_v41 }
  0x46   : > { %1150 = vmatpush1.bf16.msra.mxu0 %v1850_v46  ;;  %1236 = vmatpush1.bf16.msra.mxu1 %v1852_v48  ;;  %v1775_v46 = vcombine.high %v244_v40, %v248_v41  ;;  %v252_v48 = vld [vmem:[%s2019_s25 + $0xd0] sm:$0xff] }
  0x47   : > { %1151 = vmatprep.subr.bf16.mxu0 %v1859_v49  ;;  %1237 = vmatprep.subr.bf16.mxu1 %v1861_v50  ;;  %v256_v49 = vld [vmem:[%s2019_s25 + $0xf0] sm:$0xff]  ;;  %v253_v50 = vld [vmem:[%s2019_s25 + $0xd8] sm:$0xff] }
  0x48   : > { %v1783_v54 = vcombine.high %v252_v48, %v256_v49  ;;  %v1785_v55 = vcombine.high %v253_v50, %v257_v51  ;;  %v1782_v60 = vcombine.low %v252_v48, %v256_v49 }
  0x4a   : > { %1152 = vmatpush1.bf16.msra.mxu0 %v1858_v56  ;;  %1238 = vmatpush1.bf16.msra.mxu1 %v1860_v57  ;;  %v260_v56 = vld [vmem:[%s2019_s25 + $0x110] sm:$0xff] }
  0x4b   : > { %1153 = vmatprep.subr.bf16.mxu0 %v1867_v58  ;;  %1239 = vmatprep.subr.bf16.mxu1 %v1869_v59  ;;  %v264_v57 = vld [vmem:[%s2019_s25 + $0x130] sm:$0xff]  ;;  %v261_v58 = vld [vmem:[%s2019_s25 + $0x118] sm:$0xff] }
  0x4c   : > { %v265_v59 = vld [vmem:[%s2019_s25 + $0x138] sm:$0xff]  ;;  %v1791_v61 = vcombine.high %v260_v56, %v264_v57 }
  0x4d   : > { %v1793_v62 = vcombine.high %v261_v58, %v265_v59  ;;  %v1792_v6 = vcombine.low %v261_v58, %v265_v59  ;;  %v324_v59 = vld [vmem:[%s2019_s25 + $0x310] sm:$0xff] }
  0x4e   : > { %1154 = vmatpush1.bf16.msra.mxu0 %v1866_v2  ;;  %1240 = vmatpush1.bf16.msra.mxu1 %v1868_v3  ;;  %v272_v2 = vld [vmem:[%s2019_s25 + $0x170] sm:$0xff]  ;;  %v269_v3 = vld [vmem:[%s2019_s25 + $0x158] sm:$0xff] }
  0x4f   : > { %1155 = vmatprep.subr.bf16.mxu0 %v1875_v4  ;;  %1241 = vmatprep.subr.bf16.mxu1 %v1877_v5  ;;  %v273_v4 = vld [vmem:[%s2019_s25 + $0x178] sm:$0xff]  ;;  %v1790_v5 = vcombine.low %v260_v56, %v264_v57  ;;  %v1799_v7 = vcombine.high %v268_v63, %v272_v2 }
  0x50   : > { %v1801_v8 = vcombine.high %v269_v3, %v273_v4  ;;  %v1800_v14 = vcombine.low %v269_v3, %v273_v4  ;;  %v332_v4 = vld [vmem:[%s2019_s25 + $0x350] sm:$0xff] }
  0x52   : > { %1156 = vmatpush1.bf16.msra.mxu0 %v1874_v10  ;;  %1242 = vmatpush1.bf16.msra.mxu1 %v1876_v11  ;;  %v280_v10 = vld [vmem:[%s2019_s25 + $0x1b0] sm:$0xff]  ;;  %v277_v11 = vld [vmem:[%s2019_s25 + $0x198] sm:$0xff] }
  0x53   : > { %1168 = vmatprep.subr.bf16.mxu0 %v1883_v12  ;;  %1254 = vmatprep.subr.bf16.mxu1 %v1885_v13  ;;  %v281_v12 = vld [vmem:[%s2019_s25 + $0x1b8] sm:$0xff]  ;;  %v1798_v13 = vcombine.low %v268_v63, %v272_v2  ;;  %v1807_v15 = vcombine.high %v276_v9, %v280_v10 }
  0x54   : > { %v1809_v17 = vcombine.high %v277_v11, %v281_v12  ;;  %v1808_v23 = vcombine.low %v277_v11, %v281_v12  ;;  %v340_v12 = vld [vmem:[%s2019_s25 + $0x390] sm:$0xff] }
  0x55   : > { %1158 = vmatmul.mubr.bf16.vlgmr.msra.gmra.mrb[0].mxu0 %v2100_v16  ;;  %1244 = vmatmul.mubr.bf16.vlgmr.msra.gmra.mrb[0].mxu1 %v2100_v16 }
  0x56   : > { %1169 = vmatpush1.bf16.msra.mxu0 %v1882_v19  ;;  %1255 = vmatpush1.bf16.msra.mxu1 %v1884_v20  ;;  %v288_v19 = vld [vmem:[%s2019_s25 + $0x1f0] sm:$0xff]  ;;  %v285_v20 = vld [vmem:[%s2019_s25 + $0x1d8] sm:$0xff] }
  0x57   : > { %1170 = vmatprep.subr.bf16.mxu0 %v1891_v21  ;;  %1256 = vmatprep.subr.bf16.mxu1 %v1893_v22  ;;  %v289_v21 = vld [vmem:[%s2019_s25 + $0x1f8] sm:$0xff]  ;;  %v1806_v22 = vcombine.low %v276_v9, %v280_v10  ;;  %v1815_v24 = vcombine.high %v284_v18, %v288_v19 }
  0x58   : > { %1200 = vmatprep.mubr.bf16.mxu0 %v1965_v1  ;;  %1286 = vmatprep.mubr.bf16.mxu1 %v1965_v1  ;;  %v1817_v25 = vcombine.high %v285_v20, %v289_v21  ;;  %v1816_v31 = vcombine.low %v285_v20, %v289_v21  ;;  %v348_v21 = vld [vmem:[%s2019_s25 + $0x3d0] sm:$0xff] }
  0x5a   : > { %1171 = vmatpush1.bf16.msra.mxu0 %v1890_v27  ;;  %1257 = vmatpush1.bf16.msra.mxu1 %v1892_v28  ;;  %v296_v27 = vld [vmem:[%s2019_s25 + $0x230] sm:$0xff]  ;;  %v293_v28 = vld [vmem:[%s2019_s25 + $0x218] sm:$0xff] }
  0x5b   : > { %1297 = vmatprep.subr.bf16.mxu0 %v1759_v29  ;;  %1383 = vmatprep.subr.bf16.mxu1 %v1761_v30  ;;  %v297_v29 = vld [vmem:[%s2019_s25 + $0x238] sm:$0xff]  ;;  %v1814_v30 = vcombine.low %v284_v18, %v288_v19  ;;  %v1823_v32 = vcombine.high %v292_v26, %v296_v27 }
  0x5c   : > { %v1825_v34 = vcombine.high %v293_v28, %v297_v29  ;;  %v1824_v40 = vcombine.low %v293_v28, %v297_v29  ;;  %v356_v29 = vld [vmem:[%s2019_s25 + $0x410] sm:$0xff] }
  0x61   : > { %1898 = vmatmul.mubr.msk.bf16.vlgmr.msra.gmra.mrb[0].mxu0 %vm1121_vm0, %v2117_v33  ;;  %1899 = vmatmul.mubr.msk.bf16.vlgmr.msra.gmra.mrb[0].mxu1 %vm1121_vm0, %v2117_v33 }
  0x62   : > { %1298 = vmatpush1.bf16.msra.mxu0 %v1758_v36  ;;  %1384 = vmatpush1.bf16.msra.mxu1 %v1760_v37  ;;  %v304_v36 = vld [vmem:[%s2019_s25 + $0x270] sm:$0xff]  ;;  %v301_v37 = vld [vmem:[%s2019_s25 + $0x258] sm:$0xff] }
  0x63   : > { %1299 = vmatprep.subr.bf16.mxu0 %v1767_v38  ;;  %1385 = vmatprep.subr.bf16.mxu1 %v1769_v39  ;;  %v305_v38 = vld [vmem:[%s2019_s25 + $0x278] sm:$0xff]  ;;  %v1822_v39 = vcombine.low %v292_v26, %v296_v27  ;;  %v1831_v41 = vcombine.high %v300_v35, %v304_v36 }
  0x64   : > { %1329 = vmatprep.mubr.bf16.mxu0 %v2007_v0  ;;  %1415 = vmatprep.mubr.bf16.mxu1 %v2007_v0  ;;  %v1784_v0 = vcombine.low %v253_v50, %v257_v51  ;;  %v1833_v42 = vcombine.high %v301_v37, %v305_v38  ;;  %v1832_v48 = vcombine.low %v301_v37, %v305_v38  ;;  %v316_v51 = vld [vmem:[%s2019_s25 + $0x2d0] sm:$0xff] }
  0x65   : > { %v364_v38 = vld [vmem:[%s2019_s25 + $0x450] sm:$0xff] }
  0x66   : > { %1300 = vmatpush1.bf16.msra.mxu0 %v1766_v44  ;;  %1386 = vmatpush1.bf16.msra.mxu1 %v1768_v45  ;;  %v312_v44 = vld [vmem:[%s2019_s25 + $0x2b0] sm:$0xff]  ;;  %v309_v45 = vld [vmem:[%s2019_s25 + $0x298] sm:$0xff] }
  0x67   : > { %1301 = vmatprep.subr.bf16.mxu0 %v1775_v46  ;;  %1387 = vmatprep.subr.bf16.mxu1 %v1777_v47  ;;  %v313_v46 = vld [vmem:[%s2019_s25 + $0x2b8] sm:$0xff]  ;;  %v1830_v47 = vcombine.low %v300_v35, %v304_v36  ;;  %v1839_v49 = vcombine.high %v308_v43, %v312_v44 }
  0x68   : > { %v1841_v50 = vcombine.high %v309_v45, %v313_v46  ;;  %v1840_v56 = vcombine.low %v309_v45, %v313_v46 }
  0x6a   : > { %1302 = vmatpush1.bf16.msra.mxu0 %v1774_v52  ;;  %1388 = vmatpush1.bf16.msra.mxu1 %v1776_v53  ;;  %v320_v52 = vld [vmem:[%s2019_s25 + $0x2f0] sm:$0xff]  ;;  %v317_v53 = vld [vmem:[%s2019_s25 + $0x2d8] sm:$0xff] }
  0x6b   : > { %1303 = vmatprep.subr.bf16.mxu0 %v1783_v54  ;;  %1389 = vmatprep.subr.bf16.mxu1 %v1785_v55  ;;  %v321_v54 = vld [vmem:[%s2019_s25 + $0x2f8] sm:$0xff]  ;;  %v1838_v55 = vcombine.low %v308_v43, %v312_v44  ;;  %v1847_v57 = vcombine.high %v316_v51, %v320_v52 }
  0x6c   : > { %v1849_v58 = vcombine.high %v317_v53, %v321_v54  ;;  %v1848_v63 = vcombine.low %v317_v53, %v321_v54 }
  0x6e   : > { %1304 = vmatpush1.bf16.msra.mxu0 %v1782_v60  ;;  %1390 = vmatpush1.bf16.msra.mxu1 %v1784_v0  ;;  %v328_v60 = vld [vmem:[%s2019_s25 + $0x330] sm:$0xff]  ;;  %v325_v0 = vld [vmem:[%s2019_s25 + $0x318] sm:$0xff] }
  0x6f   : > { %1305 = vmatprep.subr.bf16.mxu0 %v1791_v61  ;;  %1391 = vmatprep.subr.bf16.mxu1 %v1793_v62  ;;  %v329_v61 = vld [vmem:[%s2019_s25 + $0x338] sm:$0xff]  ;;  %v1846_v62 = vcombine.low %v316_v51, %v320_v52  ;;  %v1855_v2 = vcombine.high %v324_v59, %v328_v60 }
  0x70   : > { %v1857_v3 = vcombine.high %v325_v0, %v329_v61  ;;  %v1856_v9 = vcombine.low %v325_v0, %v329_v61 }
  0x72   : > { %1306 = vmatpush1.bf16.msra.mxu0 %v1790_v5  ;;  %1392 = vmatpush1.bf16.msra.mxu1 %v1792_v6  ;;  %v336_v5 = vld [vmem:[%s2019_s25 + $0x370] sm:$0xff]  ;;  %v333_v6 = vld [vmem:[%s2019_s25 + $0x358] sm:$0xff] }
  0x73   : > { %1307 = vmatprep.subr.bf16.mxu0 %v1799_v7  ;;  %1393 = vmatprep.subr.bf16.mxu1 %v1801_v8  ;;  %v337_v7 = vld [vmem:[%s2019_s25 + $0x378] sm:$0xff]  ;;  %v1854_v8 = vcombine.low %v324_v59, %v328_v60  ;;  %v1863_v10 = vcombine.high %v332_v4, %v336_v5 }
  0x74   : > { %v1865_v11 = vcombine.high %v333_v6, %v337_v7  ;;  %v1864_v18 = vcombine.low %v333_v6, %v337_v7 }
  0x76   : > { %1308 = vmatpush1.bf16.msra.mxu0 %v1798_v13  ;;  %1394 = vmatpush1.bf16.msra.mxu1 %v1800_v14  ;;  %v344_v13 = vld [vmem:[%s2019_s25 + $0x3b0] sm:$0xff]  ;;  %v341_v14 = vld [vmem:[%s2019_s25 + $0x398] sm:$0xff] }
  0x77   : > { %1309 = vmatprep.subr.bf16.mxu0 %v1807_v15  ;;  %1395 = vmatprep.subr.bf16.mxu1 %v1809_v17  ;;  %v345_v15 = vld [vmem:[%s2019_s25 + $0x3b8] sm:$0xff]  ;;  %v1862_v17 = vcombine.low %v332_v4, %v336_v5  ;;  %v1871_v19 = vcombine.high %v340_v12, %v344_v13 }
  0x78   : > { %v1873_v20 = vcombine.high %v341_v14, %v345_v15  ;;  %v1872_v26 = vcombine.low %v341_v14, %v345_v15  ;;  %v1485_v14 = vld [vmem:[%s2223_s3] sm:$0x3] }
  0x7a   : > { %1310 = vmatpush1.bf16.msra.mxu0 %v1806_v22  ;;  %1396 = vmatpush1.bf16.msra.mxu1 %v1808_v23  ;;  %v352_v22 = vld [vmem:[%s2019_s25 + $0x3f0] sm:$0xff]  ;;  %v349_v23 = vld [vmem:[%s2019_s25 + $0x3d8] sm:$0xff] }
  0x7b   : > { %1311 = vmatprep.subr.bf16.mxu0 %v1815_v24  ;;  %1397 = vmatprep.subr.bf16.mxu1 %v1817_v25  ;;  %v353_v24 = vld [vmem:[%s2019_s25 + $0x3f8] sm:$0xff]  ;;  %v1870_v25 = vcombine.low %v340_v12, %v344_v13  ;;  %v1879_v27 = vcombine.high %v348_v21, %v352_v22 }
  0x7c   : > { %v1881_v28 = vcombine.high %v349_v23, %v353_v24  ;;  %v1880_v35 = vcombine.low %v349_v23, %v353_v24 }
  0x7e   : > { %1312 = vmatpush1.bf16.msra.mxu0 %v1814_v30  ;;  %1398 = vmatpush1.bf16.msra.mxu1 %v1816_v31  ;;  %v360_v30 = vld [vmem:[%s2019_s25 + $0x430] sm:$0xff]  ;;  %v357_v31 = vld [vmem:[%s2019_s25 + $0x418] sm:$0xff] }
  0x7f   : > { %1313 = vmatprep.subr.bf16.mxu0 %v1823_v32  ;;  %1399 = vmatprep.subr.bf16.mxu1 %v1825_v34  ;;  %v361_v32 = vld [vmem:[%s2019_s25 + $0x438] sm:$0xff]  ;;  %v1878_v34 = vcombine.low %v348_v21, %v352_v22  ;;  %v1887_v36 = vcombine.high %v356_v29, %v360_v30 }
  0x80   : > { %v1889_v37 = vcombine.high %v357_v31, %v361_v32  ;;  %v1888_v43 = vcombine.low %v357_v31, %v361_v32 }
  0x82   : > { %1314 = vmatpush1.bf16.msra.mxu0 %v1822_v39  ;;  %1400 = vmatpush1.bf16.msra.mxu1 %v1824_v40  ;;  %v368_v39 = vld [vmem:[%s2019_s25 + $0x470] sm:$0xff]  ;;  %v365_v40 = vld [vmem:[%s2019_s25 + $0x458] sm:$0xff] }
  0x83   : > { %1315 = vmatprep.subr.bf16.mxu0 %v1831_v41  ;;  %1401 = vmatprep.subr.bf16.mxu1 %v1833_v42  ;;  %v369_v41 = vld [vmem:[%s2019_s25 + $0x478] sm:$0xff]  ;;  %v1886_v42 = vcombine.low %v356_v29, %v360_v30  ;;  %v1895_v44 = vcombine.high %v364_v38, %v368_v39  ;;  %v1894_v46 = vcombine.low %v364_v38, %v368_v39 }
  0x84   : > { %v1897_v45 = vcombine.high %v365_v40, %v369_v41 }
  0x86   : > { %1316 = vmatpush1.bf16.msra.mxu0 %v1830_v47  ;;  %1402 = vmatpush1.bf16.msra.mxu1 %v1832_v48  ;;  %v1896_v47 = vcombine.low %v365_v40, %v369_v41 }
  0x87   : > { %1317 = vmatprep.subr.bf16.mxu0 %v1839_v49  ;;  %1403 = vmatprep.subr.bf16.mxu1 %v1841_v50 }
  0x8a   : > { %1318 = vmatpush1.bf16.msra.mxu0 %v1838_v55  ;;  %1404 = vmatpush1.bf16.msra.mxu1 %v1840_v56 }
  0x8b   : > { %1319 = vmatprep.subr.bf16.mxu0 %v1847_v57  ;;  %1405 = vmatprep.subr.bf16.mxu1 %v1849_v58 }
  0x8e   : > { %1320 = vmatpush1.bf16.msra.mxu0 %v1846_v62  ;;  %1406 = vmatpush1.bf16.msra.mxu1 %v1848_v63 }
  0x8f   : > { %1321 = vmatprep.subr.bf16.mxu0 %v1855_v2  ;;  %1407 = vmatprep.subr.bf16.mxu1 %v1857_v3 }
  0x92   : > { %1322 = vmatpush1.bf16.msra.mxu0 %v1854_v8  ;;  %1408 = vmatpush1.bf16.msra.mxu1 %v1856_v9 }
  0x93   : > { %1323 = vmatprep.subr.bf16.mxu0 %v1863_v10  ;;  %1409 = vmatprep.subr.bf16.mxu1 %v1865_v11 }
  0x96   : > { %1324 = vmatpush1.bf16.msra.mxu0 %v1862_v17  ;;  %1410 = vmatpush1.bf16.msra.mxu1 %v1864_v18 }
  0x97   : > { %1325 = vmatprep.subr.bf16.mxu0 %v1871_v19  ;;  %1411 = vmatprep.subr.bf16.mxu1 %v1873_v20 }
  0x9a   : > { %1326 = vmatpush1.bf16.msra.mxu0 %v1870_v25  ;;  %1412 = vmatpush1.bf16.msra.mxu1 %v1872_v26 }
  0x9b   : > { %1327 = vmatprep.subr.bf16.mxu0 %v1879_v27  ;;  %1413 = vmatprep.subr.bf16.mxu1 %v1881_v28 }
  0x9e   : > { %1328 = vmatpush1.bf16.msra.mxu0 %v1878_v34  ;;  %1414 = vmatpush1.bf16.msra.mxu1 %v1880_v35 }
  0x9f   : > { %1340 = vmatprep.subr.bf16.mxu0 %v1887_v36  ;;  %1426 = vmatprep.subr.bf16.mxu1 %v1889_v37 }
  0xa1   : > { %1330 = vmatmul.mubr.bf16.vlgmr.msra.gmra.mrb[4].mxu0 %v2100_v16  ;;  %1416 = vmatmul.mubr.bf16.vlgmr.msra.gmra.mrb[4].mxu1 %v2100_v16  ;;  %v1486_v16 = vld [vmem:[%s2224_s4] sm:$0xf] }
  0xa2   : > { %1341 = vmatpush1.bf16.msra.mxu0 %v1886_v42  ;;  %1427 = vmatpush1.bf16.msra.mxu1 %v1888_v43 }
  0xa3   : > { %1342 = vmatprep.subr.bf16.mxu0 %v1895_v44  ;;  %1428 = vmatprep.subr.bf16.mxu1 %v1897_v45 }
  0xa4   : > { %1372 = vmatprep.mubr.bf16.mxu0 %v1965_v1  ;;  %1458 = vmatprep.mubr.bf16.mxu1 %v1965_v1 }
  0xa5   : > { %1497 = vperm.xlu1 %1952, %v1486_v16  }
  0xa6   : > { %1343 = vmatpush1.bf16.msra.mxu0 %v1894_v46  ;;  %1429 = vmatpush1.bf16.msra.mxu1 %v1896_v47 }
  0xad   : > { %1900 = vmatmul.mubr.msk.bf16.vlgmr.msra.gmra.mrb[4].mxu0 %vm1121_vm0, %v2117_v33  ;;  %1901 = vmatmul.mubr.msk.bf16.vlgmr.msra.gmra.mrb[4].mxu1 %vm1121_vm0, %v2117_v33 }
  0xae   : > { %1536 = vmatprep.mubr.bf16.mxu0 %v1965_v1  ;;  %1577 = vmatprep.mubr.bf16.mxu1 %v1965_v1 }
  0xaf   : > { %v379_v48 = vpop.permute.xlu0 %378 }
  0xb3   : > { %v384_v50 = vpop.permute.xlu0 %383 }
 0x124   : > { %v1498_v44 = vpop.permute.xlu1 %1497 }
 0x134   : > { %v1202_v49 = vpop.f32.mrb[0].mxu0  ;;  %v1288_v52 = vpop.f32.mrb[0].mxu1 }
 0x135   : > { %v1909_v51 = vadd.f32 %v1202_v49, %v379_v48  ;;  %v1204_v53 = vpop.f32.mrb[1].mxu0  ;;  %v1913_v54 = vadd.f32 %v1288_v52, %v379_v48  ;;  %v1290_v56 = vpop.f32.mrb[1].mxu1 }
 0x136   : > { %v1910_v55 = vadd.f32 %v1204_v53, %v379_v48  ;;  %v1206_v57 = vpop.f32.mrb[2].mxu0  ;;  %v1914_v33 = vadd.f32 %v1290_v56, %v379_v48  ;;  %v1292_v59 = vpop.f32.mrb[2].mxu1 }
 0x137   : > { %v1911_v58 = vadd.f32 %v1206_v57, %v384_v50  ;;  %v1208_v60 = vpop.f32.mrb[3].mxu0  ;;  %v1915_v0 = vadd.f32 %v1292_v59, %v384_v50  ;;  %v1294_v62 = vpop.f32.mrb[3].mxu1  ;;  %v1469_v63 = vmax.f32 %v1909_v51, 0.0  ;;  %v1471_v4 = vmax.f32 %v1913_v54, 0.0 }
 0x138   : > { %v1912_v61 = vadd.f32 %v1208_v60, %v384_v50  ;;  %v1916_v3 = vadd.f32 %v1294_v62, %v384_v50  ;;  %v1470_v5 = vmax.f32 %v1910_v55, 0.0  ;;  %v1472_v8 = vmax.f32 %v1914_v33, 0.0 }
 0x139   : > { %v1477_v2 = vmax.f32 %v1911_v58, 0.0  ;;  %v1479_v6 = vmax.f32 %v1915_v0, 0.0 }
 0x13a   : > { %v1478_v7 = vmax.f32 %v1912_v61, 0.0  ;;  %v1480_v10 = vmax.f32 %v1916_v3, 0.0 }
 0x13b   : > { %v1487_v9 = vpack.c.bf16 %v1477_v2, %v1469_v63  ;;  %v1489_v11 = vpack.c.bf16 %v1479_v6, %v1471_v4 }
 0x13c   : > { %v1488_v12 = vpack.c.bf16 %v1478_v7, %v1470_v5  ;;  %v1490_v13 = vpack.c.bf16 %v1480_v10, %v1472_v8 }
 0x13e   : > { %1504 = vmatprep.subr.bf16.mxu0 %v1488_v12  ;;  %1545 = vmatprep.subr.bf16.mxu1 %v1490_v13 }
 0x13f   : > { %1505 = vmatpush1.bf16.msra.mxu0 %v1487_v9  ;;  %1546 = vmatpush1.bf16.msra.mxu1 %v1489_v11 }
 0x142   : > { %1902 = vmatmul.mubr.msk.bf16.vlgmr.msra.gmra.mrb[8].mxu0 %vm1500_vm1, %v1485_v14  ;;  %1903 = vmatmul.mubr.msk.bf16.vlgmr.msra.gmra.mrb[8].mxu1 %vm1500_vm1, %v1485_v14 }
 0x143   : > { %1618 = vmatprep.mubr.bf16.mxu0 %v1965_v1  ;;  %1659 = vmatprep.mubr.bf16.mxu1 %v1965_v1 }
 0x180   : > { %v1374_v15 = vpop.f32.mrb[4].mxu0  ;;  %v1460_v18 = vpop.f32.mrb[4].mxu1 }
 0x181   : > { %v1917_v17 = vadd.f32 %v1374_v15, %v379_v48  ;;  %v1376_v19 = vpop.f32.mrb[5].mxu0  ;;  %v1921_v20 = vadd.f32 %v1460_v18, %v379_v48  ;;  %v1462_v22 = vpop.f32.mrb[5].mxu1 }
 0x182   : > { %v1918_v21 = vadd.f32 %v1376_v19, %v379_v48  ;;  %v1378_v23 = vpop.f32.mrb[6].mxu0  ;;  %v1922_v24 = vadd.f32 %v1462_v22, %v379_v48  ;;  %v1464_v26 = vpop.f32.mrb[6].mxu1 }
 0x183   : > { %v1919_v25 = vadd.f32 %v1378_v23, %v384_v50  ;;  %v1380_v27 = vpop.f32.mrb[7].mxu0  ;;  %v1923_v28 = vadd.f32 %v1464_v26, %v384_v50  ;;  %v1466_v30 = vpop.f32.mrb[7].mxu1  ;;  %v1473_v31 = vmax.f32 %v1917_v17, 0.0  ;;  %v1475_v35 = vmax.f32 %v1921_v20, 0.0 }
 0x184   : > { %v1920_v29 = vadd.f32 %v1380_v27, %v384_v50  ;;  %v1924_v34 = vadd.f32 %v1466_v30, %v384_v50  ;;  %v1474_v1 = vmax.f32 %v1918_v21, 0.0  ;;  %v1476_v38 = vmax.f32 %v1922_v24, 0.0 }
 0x185   : > { %v1481_v32 = vmax.f32 %v1919_v25, 0.0  ;;  %v1483_v36 = vmax.f32 %v1923_v28, 0.0 }
 0x186   : > { %v1482_v37 = vmax.f32 %v1920_v29, 0.0  ;;  %v1484_v40 = vmax.f32 %v1924_v34, 0.0 }
 0x187   : > { %v1491_v39 = vpack.c.bf16 %v1481_v32, %v1473_v31  ;;  %v1493_v41 = vpack.c.bf16 %v1483_v36, %v1475_v35 }
 0x188   : > { %v1492_v42 = vpack.c.bf16 %v1482_v37, %v1474_v1  ;;  %v1494_v43 = vpack.c.bf16 %v1484_v40, %v1476_v38 }
 0x18a   : > { %1586 = vmatprep.subr.bf16.mxu0 %v1492_v42  ;;  %1627 = vmatprep.subr.bf16.mxu1 %v1494_v43 }
 0x18b   : > { %1587 = vmatpush1.bf16.msra.mxu0 %v1491_v39  ;;  %1628 = vmatpush1.bf16.msra.mxu1 %v1493_v41 }
 0x18e   : > { %1904 = vmatmul.mubr.msk.bf16.vlgmr.msra.gmra.mrb[12].mxu0 %vm1500_vm1, %v1485_v14  ;;  %1905 = vmatmul.mubr.msk.bf16.vlgmr.msra.gmra.mrb[12].mxu1 %vm1500_vm1, %v1485_v14 }
 0x215   : > { %v1538_v45 = vpop.f32.mrb[8].mxu0  ;;  %v1579_v46 = vpop.f32.mrb[8].mxu1 }
 0x216   : > { %v1540_v47 = vpop.f32.mrb[9].mxu0  ;;  %v1539_v16 = vadd.f32 %v1538_v45, %v1498_v44  ;;  %v1581_v48 = vpop.f32.mrb[9].mxu1  ;;  %v1580_v51 = vadd.f32 %v1579_v46, %v1498_v44 }
 0x217   : > { %v1542_v49 = vpop.f32.mrb[10].mxu0  ;;  %v1541_v50 = vadd.f32 %v1540_v47, %v1498_v44  ;;  %v1583_v52 = vpop.f32.mrb[10].mxu1  ;;  %v1582_v53 = vadd.f32 %v1581_v48, %v1498_v44 }
 0x218   : > { %v1543_v54 = vpop.f32.mrb[11].mxu0  ;;  %v1584_v55 = vpop.f32.mrb[11].mxu1 }
 0x219   : > { %v1676_v56 = vcombine.low %v1539_v16, %v1541_v50  ;;  %v1677_v57 = vcombine.low %v1580_v51, %v1582_v53 }
 0x21b   : > { %1684 = vst [vmem:[%s224_s16] sm:$0xff] %v1676_v56  ;;  %1685 = vst [vmem:[%s224_s16 + $0x8] sm:$0xff] %v1677_v57 }
 0x261   : > { %v1620_v33 = vpop.f32.mrb[12].mxu0  ;;  %v1661_v59 = vpop.f32.mrb[12].mxu1 }
 0x262   : > { %v1621_v58 = vadd.f32 %v1620_v33, %v1498_v44  ;;  %v1622_v60 = vpop.f32.mrb[13].mxu0  ;;  %v1662_v0 = vadd.f32 %v1661_v59, %v1498_v44  ;;  %v1663_v62 = vpop.f32.mrb[13].mxu1 }
 0x263   : > { %v1623_v61 = vadd.f32 %v1622_v60, %v1498_v44  ;;  %v1624_v63 = vpop.f32.mrb[14].mxu0  ;;  %v1664_v2 = vadd.f32 %v1663_v62, %v1498_v44  ;;  %v1665_v3 = vpop.f32.mrb[14].mxu1 }
 0x264   : > { %v1625_v4 = vpop.f32.mrb[15].mxu0  ;;  %v1666_v6 = vpop.f32.mrb[15].mxu1 }
 0x265   : > { %v1678_v5 = vcombine.low %v1621_v58, %v1623_v61  ;;  %v1679_v7 = vcombine.low %v1662_v0, %v1664_v2 }
 0x267   : > { %1686 = vst [vmem:[%s224_s16 + $0x10] sm:$0xff] %v1678_v5  ;;  %1687 = vst [vmem:[%s224_s16 + $0x18] sm:$0xff] %v1679_v7 }
 0x268 PF: > { %s15_s18 = sadd.s32 1, %s1963_s18  }
 0x269   : > { %p12_p4 = scmp.ge.s32.totalorder %s15_s18, 8  }
 0x26b   :  { %14 = sbr.rel (!%p12_p4) target bundleno = 1 (0x1), region = 70 }

</bundles_post_ra>
